<compile_context>
chip_gen: v5e
topology: v5e:2x2
jax: 0.10.0
libtpu: 0.0.40
codegen_flags: <defaults>
</compile_context>

<pallas_src>
import jax
import jax.numpy as jnp
import numpy as np
from jax.experimental import pallas as pl
from jax.experimental.pallas import tpu as pltpu


def _round_up(x, m):
    return ((x + m - 1) // m) * m


# ---------------------------------------------------------------------------
# Pallas kernel: pointwise MLP (conv1d(1x1)+BN folded) + running max over points.
# ---------------------------------------------------------------------------
def _make_kernel(n_layers, cin, n_valid, bt, nt, needs_mask, use_fma_l0):
    def kernel(x_ref, *refs):
        out_ref = refs[-1]
        w_refs = refs[0:-1:2]
        b_refs = refs[1:-1:2]

        ni = pl.program_id(1)

        @pl.when(ni == 0)
        def _init():
            out_ref[...] = jnp.full(out_ref.shape, -jnp.inf, dtype=out_ref.dtype)

        # (Bt, Nt, Cin) -> (Bt*Nt, Cin): one tall-M matmul per layer.
        x = x_ref[...].reshape(bt * nt, cin)

        # ---- layer 0 ----
        if use_fma_l0:
            # K = cin is tiny: VPU broadcast-FMAs, keep the MXU slot free.
            xf = x.astype(jnp.float32)
            w0 = w_refs[0][...]                               # (cin, d1) f32
            h = xf[:, 0:1] * w0[0:1, :]
            for k in range(1, cin):
                h = h + xf[:, k:k + 1] * w0[k:k + 1, :]
        else:
            h = jnp.dot(x, w_refs[0][...], preferred_element_type=jnp.float32)
        h = h + b_refs[0][...]
        if n_layers > 1:
            h = jnp.maximum(h, 0.0)

        # ---- remaining layers: bf16 into the MXU, f32 accumulate; no ReLU on last ----
        for li in range(1, n_layers):
            h = jnp.dot(h.astype(jnp.bfloat16), w_refs[li][...],
                        preferred_element_type=jnp.float32)
            h = h + b_refs[li][...]
            if li < n_layers - 1:
                h = jnp.maximum(h, 0.0)

        # ---- per-batch running max over the point tile ----
        feat = h.shape[-1]
        h = h.reshape(bt, nt, feat)
        if needs_mask:
            pidx = ni * nt + jax.lax.broadcasted_iota(jnp.int32, (1, nt, 1), 1)
            h = jnp.where(pidx < n_valid, h, -jnp.inf)
        tile_max = jnp.max(h, axis=1)                          # (bt, feat)
        out_ref[...] = jnp.maximum(out_ref[...], tile_max)

    return kernel


def pointnet_feat_ext_pallas(x, weights, biases, *, batch_tile=8, point_tile=256):
    """PointNet global-feature forward.

    x: (B, N, Cin) float32 pointcloud (module layout, transposed_input=False).
    weights[i]: (in_i, out_i) float32 (conv1d(1x1) with BN-eval folded in).
    biases[i] : (1, out_i)   float32.
    Returns (B, feat_size) float32.
    """
    B, N, cin = x.shape
    n_layers = len(weights)
    feat = weights[-1].shape[1]

    bt = batch_tile
    nt = min(point_tile, _round_up(N, 8))
    bp = _round_up(B, bt)
    np_ = _round_up(N, nt)
    needs_mask = (np_ != N)

    # Pad batch/points; cast the only B*N-scaled HBM stream to bf16.
    x_p = jnp.pad(x, ((0, bp - B), (0, np_ - N), (0, 0))).astype(jnp.bfloat16)

    use_fma_l0 = cin <= 8
    w_cast = []
    for i, w in enumerate(weights):
        if i == 0 and use_fma_l0:
            w_cast.append(w.astype(jnp.float32))    # stays on the VPU
        else:
            w_cast.append(w.astype(jnp.bfloat16))   # MXU operand
    b_cast = [b.astype(jnp.float32) for b in biases]

    in_specs = [pl.BlockSpec((bt, nt, cin), lambda bi, ni: (bi, ni, 0))]
    operands = [x_p]
    for w, b in zip(w_cast, b_cast):
        in_specs.append(pl.BlockSpec(w.shape, lambda bi, ni: (0, 0)))
        in_specs.append(pl.BlockSpec(b.shape, lambda bi, ni: (0, 0)))
        operands.extend([w, b])

    kernel = _make_kernel(n_layers, cin, N, bt, nt, needs_mask, use_fma_l0)

    out = pl.pallas_call(
        kernel,
        out_shape=jax.ShapeDtypeStruct((bp, feat), jnp.float32),
        grid=(bp // bt, np_ // nt),
        in_specs=in_specs,
        out_specs=pl.BlockSpec((bt, feat), lambda bi, ni: (bi, 0)),
        compiler_params=pltpu.CompilerParams(
            dimension_semantics=("parallel", "arbitrary")),
    )(*operands)
    return out[:B]


# ---------------------------------------------------------------------------
# Parameter setup (deterministic, synthetic) + BN(eval) folding — plain JAX glue.
# ---------------------------------------------------------------------------
def make_params(key, layer_dims):
    """layer_dims = [Cin, D1, ..., feat_size]. Returns folded (W_eff, b_eff)."""
    eps = 1e-5
    weights, biases = [], []
    for i in range(len(layer_dims) - 1):
        cin, cout = layer_dims[i], layer_dims[i + 1]
        key, kw, kb, kg, kbeta, km, kv = jax.random.split(key, 7)
        w = jax.random.normal(kw, (cout, cin), jnp.float32) * 0.1
        b = jax.random.normal(kb, (cout,), jnp.float32) * 0.1
        gamma = 1.0 + 0.1 * jax.random.normal(kg, (cout,), jnp.float32)
        beta = 0.1 * jax.random.normal(kbeta, (cout,), jnp.float32)
        running_mean = 0.1 * jax.random.normal(km, (cout,), jnp.float32)
        running_var = jnp.abs(jax.random.normal(kv, (cout,), jnp.float32)) + 0.5
        scale = gamma / jnp.sqrt(running_var + eps)            # (cout,)
        shift = beta - running_mean * scale                    # (cout,)
        weights.append(w.T * scale[None, :])                   # (cin, cout)
        biases.append((b * scale + shift)[None, :])            # (1, cout)
    return weights, biases


def reference_forward(x, weights, biases, use_fma_l0):
    """Pure-JAX reference mirroring PointNetFeatExt.forward (global_feat=True),
    with the same precision choices as the kernel."""
    h = x.astype(jnp.bfloat16).astype(jnp.float32)             # mirror bf16 input cast
    n = len(weights)
    for i in range(n):
        if i == 0 and use_fma_l0:
            h = jnp.einsum("bnc,cd->bnd", h, weights[i],
                           precision=jax.lax.Precision.HIGHEST)
        else:
            h = jnp.einsum("bnc,cd->bnd",
                           h.astype(jnp.bfloat16),
                           weights[i].astype(jnp.bfloat16),
                           preferred_element_type=jnp.float32)
        h = h + biases[i]
        if i < n - 1:
            h = jnp.maximum(h, 0.0)
    return jnp.max(h, axis=1)                                  # (B, F)


if __name__ == "__main__":
    # Module config: in_channels=3, layer_dims=[64, 128], feat_size=256,
    # global_feat=True, batchnorm=True (eval mode), transposed_input=False.
    # B and N deliberately not tile-aligned to exercise batch padding and the
    # -inf point mask.
    B, N = 6, 300
    layer_dims = [3, 64, 128, 256]

    key = jax.random.PRNGKey(0)
    key_x, key_p = jax.random.split(key)
    x = jax.random.normal(key_x, (B, N, layer_dims[0]), jnp.float32)

    weights, biases = make_params(key_p, layer_dims)

    out = pointnet_feat_ext_pallas(x, weights, biases,
                                   batch_tile=8, point_tile=128)
    out = jax.block_until_ready(out)

    ref = reference_forward(x, weights, biases, use_fma_l0=True)
    np.testing.assert_allclose(np.asarray(out), np.asarray(ref),
                               rtol=2e-3, atol=2e-3)
    assert out.shape == (B, layer_dims[-1])

    print("KERNEL_OK")
</pallas_src>

<mosaic_0001>
module attributes {stable_mosaic.version = 11 : i64} {
  func.func @kernel(%arg0: i32, %arg1: i32, %arg2: memref<8x128x3xbf16, #tpu.memory_space<vmem>>, %arg3: memref<3x64xf32, #tpu.memory_space<vmem>>, %arg4: memref<1x64xf32, #tpu.memory_space<vmem>>, %arg5: memref<64x128xbf16, #tpu.memory_space<vmem>>, %arg6: memref<1x128xf32, #tpu.memory_space<vmem>>, %arg7: memref<128x256xbf16, #tpu.memory_space<vmem>>, %arg8: memref<1x256xf32, #tpu.memory_space<vmem>>, %arg9: memref<8x256xf32, #tpu.memory_space<vmem>>) attributes {dimension_semantics = [#tpu.dimension_semantics<parallel>, #tpu.dimension_semantics<arbitrary>], iteration_bounds = array<i64: 1, 3>, scalar_prefetch = 0 : i64, scratch_operands = 0 : i64, tpu.core_type = #tpu.core_type<tc>, window_params = [{transform_indices = @transform_0, window_bounds = array<i64: 8, 128, 3>}, {pipeline_mode = #tpu.pipeline_mode<synchronous>, transform_indices = @transform_1, window_bounds = array<i64: 3, 64>}, {pipeline_mode = #tpu.pipeline_mode<synchronous>, transform_indices = @transform_2, window_bounds = array<i64: 1, 64>}, {pipeline_mode = #tpu.pipeline_mode<synchronous>, transform_indices = @transform_3, window_bounds = array<i64: 64, 128>}, {pipeline_mode = #tpu.pipeline_mode<synchronous>, transform_indices = @transform_4, window_bounds = array<i64: 1, 128>}, {pipeline_mode = #tpu.pipeline_mode<synchronous>, transform_indices = @transform_5, window_bounds = array<i64: 128, 256>}, {pipeline_mode = #tpu.pipeline_mode<synchronous>, transform_indices = @transform_6, window_bounds = array<i64: 1, 256>}, {transform_indices = @transform_7, window_bounds = array<i64: 8, 256>}]} {
    %c0_i32 = arith.constant 0 : i32
    %0 = arith.cmpi eq, %arg1, %c0_i32 : i32
    %1 = arith.extui %0 : i1 to i32
    %c0_i32_0 = arith.constant 0 : i32
    %2 = arith.cmpi ne, %1, %c0_i32_0 : i32
    scf.if %2 {
      %cst_24 = arith.constant 0xFF800000 : f32
      %58 = vector.broadcast %cst_24 : f32 to vector<8x256xf32>
      %c0_25 = arith.constant 0 : index
      %c0_26 = arith.constant 0 : index
      %59 = vector.load %arg9[%c0_25, %c0_26] : memref<8x256xf32, #tpu.memory_space<vmem>>, vector<8x256xf32>
      tpu.vector_store %arg9[%c0_25, %c0_26], %58 {strides = array<i32>} : memref<8x256xf32, #tpu.memory_space<vmem>>, vector<8x256xf32>,
    } else {
    }
    %c0 = arith.constant 0 : index
    %c0_1 = arith.constant 0 : index
    %c0_2 = arith.constant 0 : index
    %3 = vector.load %arg2[%c0, %c0_1, %c0_2] : memref<8x128x3xbf16, #tpu.memory_space<vmem>>, vector<8x128x3xbf16>
    %4 = vector.shape_cast %3 : vector<8x128x3xbf16> to vector<1024x3xbf16>
    %5 = arith.extf %4 : vector<1024x3xbf16> to vector<1024x3xf32>
    %c0_3 = arith.constant 0 : index
    %c0_4 = arith.constant 0 : index
    %6 = vector.load %arg3[%c0_3, %c0_4] : memref<3x64xf32, #tpu.memory_space<vmem>>, vector<3x64xf32>
    %7 = vector.extract_strided_slice %5 {offsets = [0, 0], sizes = [1024, 1], strides = [1, 1]} : vector<1024x3xf32> to vector<1024x1xf32>
    %8 = vector.extract_strided_slice %6 {offsets = [0, 0], sizes = [1, 64], strides = [1, 1]} : vector<3x64xf32> to vector<1x64xf32>
    %9 = vector.broadcast %7 : vector<1024x1xf32> to vector<1024x64xf32>
    %10 = vector.broadcast %8 : vector<1x64xf32> to vector<1024x64xf32>
    %11 = arith.mulf %9, %10 : vector<1024x64xf32>
    %12 = vector.extract_strided_slice %5 {offsets = [0, 1], sizes = [1024, 1], strides = [1, 1]} : vector<1024x3xf32> to vector<1024x1xf32>
    %13 = vector.extract_strided_slice %6 {offsets = [1, 0], sizes = [1, 64], strides = [1, 1]} : vector<3x64xf32> to vector<1x64xf32>
    %14 = vector.broadcast %12 : vector<1024x1xf32> to vector<1024x64xf32>
    %15 = vector.broadcast %13 : vector<1x64xf32> to vector<1024x64xf32>
    %16 = arith.mulf %14, %15 : vector<1024x64xf32>
    %17 = arith.addf %11, %16 : vector<1024x64xf32>
    %18 = vector.extract_strided_slice %5 {offsets = [0, 2], sizes = [1024, 1], strides = [1, 1]} : vector<1024x3xf32> to vector<1024x1xf32>
    %19 = vector.extract_strided_slice %6 {offsets = [2, 0], sizes = [1, 64], strides = [1, 1]} : vector<3x64xf32> to vector<1x64xf32>
    %20 = vector.broadcast %18 : vector<1024x1xf32> to vector<1024x64xf32>
    %21 = vector.broadcast %19 : vector<1x64xf32> to vector<1024x64xf32>
    %22 = arith.mulf %20, %21 : vector<1024x64xf32>
    %23 = arith.addf %17, %22 : vector<1024x64xf32>
    %c0_5 = arith.constant 0 : index
    %c0_6 = arith.constant 0 : index
    %24 = vector.load %arg4[%c0_5, %c0_6] : memref<1x64xf32, #tpu.memory_space<vmem>>, vector<1x64xf32>
    %25 = vector.broadcast %24 : vector<1x64xf32> to vector<1024x64xf32>
    %26 = arith.addf %23, %25 : vector<1024x64xf32>
    %cst = arith.constant 0.000000e+00 : f32
    %27 = vector.broadcast %cst : f32 to vector<1024x64xf32>
    %28 = arith.maximumf %26, %27 : vector<1024x64xf32>
    %29 = arith.truncf %28 : vector<1024x64xf32> to vector<1024x64xbf16>
    %c0_7 = arith.constant 0 : index
    %c0_8 = arith.constant 0 : index
    %30 = vector.load %arg5[%c0_7, %c0_8] : memref<64x128xbf16, #tpu.memory_space<vmem>>, vector<64x128xbf16>
    %cst_9 = arith.constant dense<0.000000e+00> : vector<1024x128xf32>
    %31 = tpu.matmul %29, %30, %cst_9 {dimension_numbers = #tpu.dot_dimension_numbers<[1], [0], [0], [1], [0, 0, 1, 1], [], []>} : vector<1024x64xbf16>, vector<64x128xbf16>, vector<1024x128xf32> -> vector<1024x128xf32>
    %c0_10 = arith.constant 0 : index
    %c0_11 = arith.constant 0 : index
    %32 = vector.load %arg6[%c0_10, %c0_11] : memref<1x128xf32, #tpu.memory_space<vmem>>, vector<1x128xf32>
    %33 = vector.broadcast %32 : vector<1x128xf32> to vector<1024x128xf32>
    %34 = arith.addf %31, %33 : vector<1024x128xf32>
    %cst_12 = arith.constant 0.000000e+00 : f32
    %35 = vector.broadcast %cst_12 : f32 to vector<1024x128xf32>
    %36 = arith.maximumf %34, %35 : vector<1024x128xf32>
    %37 = arith.truncf %36 : vector<1024x128xf32> to vector<1024x128xbf16>
    %c0_13 = arith.constant 0 : index
    %c0_14 = arith.constant 0 : index
    %38 = vector.load %arg7[%c0_13, %c0_14] : memref<128x256xbf16, #tpu.memory_space<vmem>>, vector<128x256xbf16>
    %cst_15 = arith.constant dense<0.000000e+00> : vector<1024x256xf32>
    %39 = tpu.matmul %37, %38, %cst_15 {dimension_numbers = #tpu.dot_dimension_numbers<[1], [0], [0], [1], [0, 0, 1, 1], [], []>} : vector<1024x128xbf16>, vector<128x256xbf16>, vector<1024x256xf32> -> vector<1024x256xf32>
    %c0_16 = arith.constant 0 : index
    %c0_17 = arith.constant 0 : index
    %40 = vector.load %arg8[%c0_16, %c0_17] : memref<1x256xf32, #tpu.memory_space<vmem>>, vector<1x256xf32>
    %41 = vector.broadcast %40 : vector<1x256xf32> to vector<1024x256xf32>
    %42 = arith.addf %39, %41 : vector<1024x256xf32>
    %43 = vector.shape_cast %42 : vector<1024x256xf32> to vector<8x128x256xf32>
    %c128_i32 = arith.constant 128 : i32
    %44 = arith.muli %arg1, %c128_i32 : i32
    %45 = tpu.iota {dimensions = array<i32: 1>} : vector<1x128x1xi32>
    %46 = vector.broadcast %44 : i32 to vector<1x128x1xi32>
    %47 = arith.addi %46, %45 : vector<1x128x1xi32>
    %c300_i32 = arith.constant 300 : i32
    %48 = vector.broadcast %c300_i32 : i32 to vector<1x128x1xi32>
    %49 = arith.cmpi slt, %47, %48 : vector<1x128x1xi32>
    %cst_18 = arith.constant 0xFF800000 : f32
    %50 = vector.shape_cast %49 : vector<1x128x1xi1> to vector<1x128x1xi1>
    %51 = vector.broadcast %50 : vector<1x128x1xi1> to vector<8x128x256xi1>
    %52 = vector.broadcast %cst_18 : f32 to vector<8x128x256xf32>
    %53 = arith.select %51, %43, %52 : vector<8x128x256xi1>, vector<8x128x256xf32>
    %cst_19 = arith.constant dense<0xFF800000> : vector<8x256xf32>
    %54 = vector.multi_reduction <maximumf>, %53, %cst_19 [1] : vector<8x128x256xf32> to vector<8x256xf32>
    %c0_20 = arith.constant 0 : index
    %c0_21 = arith.constant 0 : index
    %55 = vector.load %arg9[%c0_20, %c0_21] : memref<8x256xf32, #tpu.memory_space<vmem>>, vector<8x256xf32>
    %56 = arith.maximumf %55, %54 : vector<8x256xf32>
    %c0_22 = arith.constant 0 : index
    %c0_23 = arith.constant 0 : index
    %57 = vector.load %arg9[%c0_22, %c0_23] : memref<8x256xf32, #tpu.memory_space<vmem>>, vector<8x256xf32>
    tpu.vector_store %arg9[%c0_22, %c0_23], %56 {strides = array<i32>} : memref<8x256xf32, #tpu.memory_space<vmem>>, vector<8x256xf32>,
    return
  }
  func.func @transform_0(%arg0: i32, %arg1: i32) -> (i32, i32, i32) {
    %c0_i32 = arith.constant 0 : i32
    %c0_i32_0 = arith.constant 0 : i32
    return %arg0, %arg1, %c0_i32 : i32, i32, i32
  }
  func.func @transform_1(%arg0: i32, %arg1: i32) -> (i32, i32) {
    %c0_i32 = arith.constant 0 : i32
    %c0_i32_0 = arith.constant 0 : i32
    %c0_i32_1 = arith.constant 0 : i32
    return %c0_i32, %c0_i32_0 : i32, i32
  }
  func.func @transform_2(%arg0: i32, %arg1: i32) -> (i32, i32) {
    %c0_i32 = arith.constant 0 : i32
    %c0_i32_0 = arith.constant 0 : i32
    %c0_i32_1 = arith.constant 0 : i32
    return %c0_i32, %c0_i32_0 : i32, i32
  }
  func.func @transform_3(%arg0: i32, %arg1: i32) -> (i32, i32) {
    %c0_i32 = arith.constant 0 : i32
    %c0_i32_0 = arith.constant 0 : i32
    %c0_i32_1 = arith.constant 0 : i32
    return %c0_i32, %c0_i32_0 : i32, i32
  }
  func.func @transform_4(%arg0: i32, %arg1: i32) -> (i32, i32) {
    %c0_i32 = arith.constant 0 : i32
    %c0_i32_0 = arith.constant 0 : i32
    %c0_i32_1 = arith.constant 0 : i32
    return %c0_i32, %c0_i32_0 : i32, i32
  }
  func.func @transform_5(%arg0: i32, %arg1: i32) -> (i32, i32) {
    %c0_i32 = arith.constant 0 : i32
    %c0_i32_0 = arith.constant 0 : i32
    %c0_i32_1 = arith.constant 0 : i32
    return %c0_i32, %c0_i32_0 : i32, i32
  }
  func.func @transform_6(%arg0: i32, %arg1: i32) -> (i32, i32) {
    %c0_i32 = arith.constant 0 : i32
    %c0_i32_0 = arith.constant 0 : i32
    %c0_i32_1 = arith.constant 0 : i32
    return %c0_i32, %c0_i32_0 : i32, i32
  }
  func.func @transform_7(%arg0: i32, %arg1: i32) -> (i32, i32) {
    %c0_i32 = arith.constant 0 : i32
    %c0_i32_0 = arith.constant 0 : i32
    return %arg0, %c0_i32 : i32, i32
  }
}

</mosaic_0001>

<bundles_post_ra>
// kernel: tpu_custom_call.1
= control target key start
LH: loop header
LB: loop body
LE: loop exit
PB: predicated region body
PF: predicated region fallthrough
CT: control target
= control target key end

     0   :  { %12 = vsyncpa [#allocation4], 0  ;;  %s7770_s24 = smov 0   ;;  %s7772_s25 = smov 0   ;;  %s11294_s0 = inlined_call_operand.vmem [shape: bf16[8,384,3], index: 0, kind: input, shape index: {}]   ;;  %s11295_s1 = inlined_call_operand.vmem [shape: f32[3,64], index: 1, kind: input, shape index: {}]   ;;  %s11296_s2 = inlined_call_operand.vmem [shape: f32[1,64], index: 2, kind: input, shape index: {}]   ;;  %s11297_s3 = inlined_call_operand.vmem [shape: bf16[64,128], index: 3, kind: input, shape index: {}]   ;;  %s11298_s4 = inlined_call_operand.vmem [shape: f32[1,128], index: 4, kind: input, shape index: {}]   ;;  %s11299_s5 = inlined_call_operand.vmem [shape: bf16[128,256], index: 5, kind: input, shape index: {}]   ;;  %s11300_s6 = inlined_call_operand.vmem [shape: f32[1,256], index: 6, kind: input, shape index: {}]   ;;  %s11301_s7 = inlined_call_operand.hbm [shape: f32[8,256], index: 7, kind: output, shape index: {}]  }
   0x1   :  { %s7774_s26 = smov 0   ;;  %s7776_s27 = smov 0  }
   0x2   :  { %s7778_s28 = smov 0  }
   0x3 LB: > { %s6037_s29 = sadd.s32 4294967295, %s7723_s28   ;;  %s27_s30 = sadd.s32 1, %s7719_s27  ;;  %s7723_s28 = sphi %s7778_s28, %s18_s28   ;;  %s7719_s27 = sphi %s7776_s27, %s11695_s27   ;;  %s7715_s26 = sphi %s7774_s26, %s11694_s26   ;;  %s7711_s25 = sphi %s7772_s25, %s11693_s25   ;;  %s7707_s24 = sphi %s7770_s24, %s11692_s24  }
   0x4   : > { %p28_p0 = scmp.ge.s32.totalorder %s27_s30, 3  ;;  %p46_p1 = scmp.ne.s32.totalorder %s7711_s25, %s7707_s24 }
   0x5   : > { %p47_p2 = scmp.eq.s32.totalorder %s7723_s28, 0  ;;  %s39_s9 = sadd.s32 1, %s7711_s25 }
   0x6   : > { %s11697_s30 = smov (%p28_p0, %s27_s30), 0  ;;  %p6039_p5 = scmp.ge.s32.totalorder %s7723_s28, 3 }
   0x7   : > { %p48_p3 = por %p47_p2, %p46_p1  ;;  %s35_s8 = ssub.s32 %s7719_s27, %s11697_s30 }
   0x8   : > { %p37_p4 = scmp.eq.s32.totalorder %s35_s8, 0  ;;  %242 = sbr.rel (%p6039_p5) target bundleno = 81 (0x51), region = 40 }
   0xa   : > { %s7806_s10 = scalar_select %p37_p4, %s7711_s25, %s39_s9  }
   0xd   : > { %245 = sbr.rel (!%p48_p3) target bundleno = 81 (0x51), region = 44  ;;  %s247_s11 = sand.u32 (%p48_p3), 1, %s7711_s25  }
   0xe   : > { %s6195_s12 = sshll.u32 (%p48_p3), %s7719_s27, 6  ;;  %s6040_s13 = sshll.u32 (%p48_p3), %s247_s11, 9 }
   0xf   : > { %s7814_s16 = scalar_lea.vmem (%p48_p3), %s11294_s0, %s6195_s12  ;;  %s7819_s17 = scalar_lea.vmem (%p48_p3), [#allocation2], %s6040_s13 }
  0x10   : > { %v272_v0 = vld [vmem:[%s7814_s16] sm:$0xff] (%p48_p3)   ;;  %v276_v1 = vld [vmem:[%s7814_s16 + $0x8] sm:$0xff] (%p48_p3)   ;;  %v280_v2 = vld [vmem:[%s7814_s16 + $0x10] sm:$0xff] (%p48_p3)  }
  0x11   : > { %273 = vst [vmem:[%s7819_s17] sm:$0xff] (%p48_p3), %v272_v0   ;;  %v284_v3 = vld [vmem:[%s7814_s16 + $0x18] sm:$0xff] (%p48_p3)   ;;  %v288_v4 = vld [vmem:[%s7814_s16 + $0x20] sm:$0xff] (%p48_p3)   ;;  %v292_v5 = vld [vmem:[%s7814_s16 + $0x28] sm:$0xff] (%p48_p3)  }
  0x12   : > { %277 = vst [vmem:[%s7819_s17 + $0x8] sm:$0xff] %v276_v1   ;;  %v296_v6 = vld [vmem:[%s7814_s16 + $0x30] sm:$0xff]   ;;  %v300_v7 = vld [vmem:[%s7814_s16 + $0x38] sm:$0xff]   ;;  %v304_v8 = vld [vmem:[%s7814_s16 + $0xc0] sm:$0xff]  }
  0x13   : > { %281 = vst [vmem:[%s7819_s17 + $0x10] sm:$0xff] %v280_v2   ;;  %v308_v9 = vld [vmem:[%s7814_s16 + $0xc8] sm:$0xff]   ;;  %v312_v10 = vld [vmem:[%s7814_s16 + $0xd0] sm:$0xff]   ;;  %v316_v11 = vld [vmem:[%s7814_s16 + $0xd8] sm:$0xff]  }
  0x14   : > { %285 = vst [vmem:[%s7819_s17 + $0x18] sm:$0xff] %v284_v3   ;;  %v320_v12 = vld [vmem:[%s7814_s16 + $0xe0] sm:$0xff]   ;;  %v324_v13 = vld [vmem:[%s7814_s16 + $0xe8] sm:$0xff]   ;;  %v328_v14 = vld [vmem:[%s7814_s16 + $0xf0] sm:$0xff]  }
  0x15   : > { %289 = vst [vmem:[%s7819_s17 + $0x20] sm:$0xff] %v288_v4   ;;  %v332_v15 = vld [vmem:[%s7814_s16 + $0xf8] sm:$0xff]   ;;  %v336_v16 = vld [vmem:[%s7814_s16 + $0x180] sm:$0xff]   ;;  %v340_v17 = vld [vmem:[%s7814_s16 + $0x188] sm:$0xff]  }
  0x16   : > { %293 = vst [vmem:[%s7819_s17 + $0x28] sm:$0xff] %v292_v5   ;;  %v344_v18 = vld [vmem:[%s7814_s16 + $0x190] sm:$0xff]   ;;  %v348_v19 = vld [vmem:[%s7814_s16 + $0x198] sm:$0xff]   ;;  %v352_v20 = vld [vmem:[%s7814_s16 + $0x1a0] sm:$0xff]  }
  0x17   : > { %297 = vst [vmem:[%s7819_s17 + $0x30] sm:$0xff] %v296_v6   ;;  %v356_v21 = vld [vmem:[%s7814_s16 + $0x1a8] sm:$0xff]   ;;  %v360_v22 = vld [vmem:[%s7814_s16 + $0x1b0] sm:$0xff]   ;;  %v364_v23 = vld [vmem:[%s7814_s16 + $0x1b8] sm:$0xff]  }
  0x18   : > { %301 = vst [vmem:[%s7819_s17 + $0x38] sm:$0xff] %v300_v7   ;;  %v368_v24 = vld [vmem:[%s7814_s16 + $0x240] sm:$0xff]   ;;  %v372_v25 = vld [vmem:[%s7814_s16 + $0x248] sm:$0xff]   ;;  %v376_v26 = vld [vmem:[%s7814_s16 + $0x250] sm:$0xff]  }
  0x19   : > { %305 = vst [vmem:[%s7819_s17 + $0x40] sm:$0xff] %v304_v8   ;;  %v380_v27 = vld [vmem:[%s7814_s16 + $0x258] sm:$0xff]   ;;  %v384_v28 = vld [vmem:[%s7814_s16 + $0x260] sm:$0xff]   ;;  %v388_v29 = vld [vmem:[%s7814_s16 + $0x268] sm:$0xff]  }
  0x1a   : > { %309 = vst [vmem:[%s7819_s17 + $0x48] sm:$0xff] %v308_v9   ;;  %v392_v30 = vld [vmem:[%s7814_s16 + $0x270] sm:$0xff]   ;;  %v396_v31 = vld [vmem:[%s7814_s16 + $0x278] sm:$0xff]   ;;  %v400_v32 = vld [vmem:[%s7814_s16 + $0x300] sm:$0xff]  }
  0x1b   : > { %313 = vst [vmem:[%s7819_s17 + $0x50] sm:$0xff] %v312_v10   ;;  %v404_v33 = vld [vmem:[%s7814_s16 + $0x308] sm:$0xff]   ;;  %v408_v34 = vld [vmem:[%s7814_s16 + $0x310] sm:$0xff]   ;;  %v412_v35 = vld [vmem:[%s7814_s16 + $0x318] sm:$0xff]  }
  0x1c   : > { %317 = vst [vmem:[%s7819_s17 + $0x58] sm:$0xff] %v316_v11   ;;  %v416_v36 = vld [vmem:[%s7814_s16 + $0x320] sm:$0xff]   ;;  %v420_v37 = vld [vmem:[%s7814_s16 + $0x328] sm:$0xff]   ;;  %v424_v38 = vld [vmem:[%s7814_s16 + $0x330] sm:$0xff]  }
  0x1d   : > { %321 = vst [vmem:[%s7819_s17 + $0x60] sm:$0xff] %v320_v12   ;;  %v428_v39 = vld [vmem:[%s7814_s16 + $0x338] sm:$0xff]   ;;  %v432_v40 = vld [vmem:[%s7814_s16 + $0x3c0] sm:$0xff]   ;;  %v436_v41 = vld [vmem:[%s7814_s16 + $0x3c8] sm:$0xff]  }
  0x1e   : > { %325 = vst [vmem:[%s7819_s17 + $0x68] sm:$0xff] %v324_v13   ;;  %v440_v42 = vld [vmem:[%s7814_s16 + $0x3d0] sm:$0xff]   ;;  %v444_v43 = vld [vmem:[%s7814_s16 + $0x3d8] sm:$0xff]   ;;  %v448_v44 = vld [vmem:[%s7814_s16 + $0x3e0] sm:$0xff]  }
  0x1f   : > { %329 = vst [vmem:[%s7819_s17 + $0x70] sm:$0xff] %v328_v14   ;;  %v452_v45 = vld [vmem:[%s7814_s16 + $0x3e8] sm:$0xff]   ;;  %v456_v46 = vld [vmem:[%s7814_s16 + $0x3f0] sm:$0xff]   ;;  %v460_v47 = vld [vmem:[%s7814_s16 + $0x3f8] sm:$0xff]  }
  0x20   : > { %333 = vst [vmem:[%s7819_s17 + $0x78] sm:$0xff] %v332_v15   ;;  %v464_v48 = vld [vmem:[%s7814_s16 + $0x480] sm:$0xff]   ;;  %v468_v49 = vld [vmem:[%s7814_s16 + $0x488] sm:$0xff]   ;;  %v472_v50 = vld [vmem:[%s7814_s16 + $0x490] sm:$0xff]  }
  0x21   : > { %337 = vst [vmem:[%s7819_s17 + $0x80] sm:$0xff] %v336_v16   ;;  %v476_v51 = vld [vmem:[%s7814_s16 + $0x498] sm:$0xff]   ;;  %v480_v52 = vld [vmem:[%s7814_s16 + $0x4a0] sm:$0xff]   ;;  %v484_v53 = vld [vmem:[%s7814_s16 + $0x4a8] sm:$0xff]  }
  0x22   : > { %341 = vst [vmem:[%s7819_s17 + $0x88] sm:$0xff] %v340_v17   ;;  %v488_v54 = vld [vmem:[%s7814_s16 + $0x4b0] sm:$0xff]   ;;  %v492_v55 = vld [vmem:[%s7814_s16 + $0x4b8] sm:$0xff]   ;;  %v496_v56 = vld [vmem:[%s7814_s16 + $0x540] sm:$0xff]  }
  0x23   : > { %345 = vst [vmem:[%s7819_s17 + $0x90] sm:$0xff] %v344_v18   ;;  %v500_v57 = vld [vmem:[%s7814_s16 + $0x548] sm:$0xff]   ;;  %v504_v58 = vld [vmem:[%s7814_s16 + $0x550] sm:$0xff]   ;;  %v508_v59 = vld [vmem:[%s7814_s16 + $0x558] sm:$0xff]  }
  0x24   : > { %349 = vst [vmem:[%s7819_s17 + $0x98] sm:$0xff] %v348_v19   ;;  %v512_v60 = vld [vmem:[%s7814_s16 + $0x560] sm:$0xff]   ;;  %v516_v61 = vld [vmem:[%s7814_s16 + $0x568] sm:$0xff]   ;;  %v520_v62 = vld [vmem:[%s7814_s16 + $0x570] sm:$0xff]  }
  0x25   : > { %353 = vst [vmem:[%s7819_s17 + $0xa0] sm:$0xff] %v352_v20   ;;  %v524_v63 = vld [vmem:[%s7814_s16 + $0x578] sm:$0xff]  }
  0x26   : > { %357 = vst [vmem:[%s7819_s17 + $0xa8] sm:$0xff] %v356_v21  }
  0x27   : > { %361 = vst [vmem:[%s7819_s17 + $0xb0] sm:$0xff] %v360_v22  }
  0x28   : > { %365 = vst [vmem:[%s7819_s17 + $0xb8] sm:$0xff] %v364_v23  }
  0x29   : > { %369 = vst [vmem:[%s7819_s17 + $0xc0] sm:$0xff] %v368_v24  }
  0x2a   : > { %373 = vst [vmem:[%s7819_s17 + $0xc8] sm:$0xff] %v372_v25  }
  0x2b   : > { %377 = vst [vmem:[%s7819_s17 + $0xd0] sm:$0xff] %v376_v26  }
  0x2c   : > { %381 = vst [vmem:[%s7819_s17 + $0xd8] sm:$0xff] %v380_v27  }
  0x2d   : > { %385 = vst [vmem:[%s7819_s17 + $0xe0] sm:$0xff] %v384_v28  }
  0x2e   : > { %389 = vst [vmem:[%s7819_s17 + $0xe8] sm:$0xff] %v388_v29  }
  0x2f   : > { %393 = vst [vmem:[%s7819_s17 + $0xf0] sm:$0xff] %v392_v30  }
  0x30   : > { %397 = vst [vmem:[%s7819_s17 + $0xf8] sm:$0xff] %v396_v31  }
  0x31   : > { %401 = vst [vmem:[%s7819_s17 + $0x100] sm:$0xff] %v400_v32  }
  0x32   : > { %405 = vst [vmem:[%s7819_s17 + $0x108] sm:$0xff] %v404_v33  }
  0x33   : > { %409 = vst [vmem:[%s7819_s17 + $0x110] sm:$0xff] %v408_v34  }
  0x34   : > { %413 = vst [vmem:[%s7819_s17 + $0x118] sm:$0xff] %v412_v35  }
  0x35   : > { %417 = vst [vmem:[%s7819_s17 + $0x120] sm:$0xff] %v416_v36  }
  0x36   : > { %421 = vst [vmem:[%s7819_s17 + $0x128] sm:$0xff] %v420_v37  }
  0x37   : > { %425 = vst [vmem:[%s7819_s17 + $0x130] sm:$0xff] %v424_v38  }
  0x38   : > { %429 = vst [vmem:[%s7819_s17 + $0x138] sm:$0xff] %v428_v39  }
  0x39   : > { %433 = vst [vmem:[%s7819_s17 + $0x140] sm:$0xff] %v432_v40  }
  0x3a   : > { %437 = vst [vmem:[%s7819_s17 + $0x148] sm:$0xff] %v436_v41  }
  0x3b   : > { %441 = vst [vmem:[%s7819_s17 + $0x150] sm:$0xff] %v440_v42  }
  0x3c   : > { %445 = vst [vmem:[%s7819_s17 + $0x158] sm:$0xff] %v444_v43  }
  0x3d   : > { %449 = vst [vmem:[%s7819_s17 + $0x160] sm:$0xff] %v448_v44  }
  0x3e   : > { %453 = vst [vmem:[%s7819_s17 + $0x168] sm:$0xff] %v452_v45  }
  0x3f   : > { %457 = vst [vmem:[%s7819_s17 + $0x170] sm:$0xff] %v456_v46  }
  0x40   : > { %461 = vst [vmem:[%s7819_s17 + $0x178] sm:$0xff] %v460_v47  }
  0x41   : > { %465 = vst [vmem:[%s7819_s17 + $0x180] sm:$0xff] %v464_v48  }
  0x42   : > { %469 = vst [vmem:[%s7819_s17 + $0x188] sm:$0xff] %v468_v49  }
  0x43   : > { %473 = vst [vmem:[%s7819_s17 + $0x190] sm:$0xff] %v472_v50  }
  0x44   : > { %477 = vst [vmem:[%s7819_s17 + $0x198] sm:$0xff] %v476_v51  }
  0x45   : > { %481 = vst [vmem:[%s7819_s17 + $0x1a0] sm:$0xff] %v480_v52  }
  0x46   : > { %485 = vst [vmem:[%s7819_s17 + $0x1a8] sm:$0xff] %v484_v53  }
  0x47   : > { %489 = vst [vmem:[%s7819_s17 + $0x1b0] sm:$0xff] %v488_v54  }
  0x48   : > { %493 = vst [vmem:[%s7819_s17 + $0x1b8] sm:$0xff] %v492_v55  }
  0x49   : > { %497 = vst [vmem:[%s7819_s17 + $0x1c0] sm:$0xff] %v496_v56  }
  0x4a   : > { %501 = vst [vmem:[%s7819_s17 + $0x1c8] sm:$0xff] %v500_v57  }
  0x4b   : > { %505 = vst [vmem:[%s7819_s17 + $0x1d0] sm:$0xff] %v504_v58  }
  0x4c   : > { %509 = vst [vmem:[%s7819_s17 + $0x1d8] sm:$0xff] %v508_v59  }
  0x4d   : > { %513 = vst [vmem:[%s7819_s17 + $0x1e0] sm:$0xff] %v512_v60  }
  0x4e   : > { %517 = vst [vmem:[%s7819_s17 + $0x1e8] sm:$0xff] %v516_v61  }
  0x4f   : > { %521 = vst [vmem:[%s7819_s17 + $0x1f0] sm:$0xff] %v520_v62  }
  0x50   : > { %525 = vst [vmem:[%s7819_s17 + $0x1f8] sm:$0xff] %v524_v63  }
  0x51 PF: > { %p6043_p6 = scmp.ge.s32.totalorder %s7723_s28, 1  ;;  %p806_p7 = scmp.lt.s32.totalorder %s7723_s28, 4 }
  0x53   : > { %p807_p8 = pnand %p6043_p6, %p806_p7 }
  0x55   : > { %810 = sbr.rel (%p807_p8) target bundleno = 1960 (0x7a8), region = 85 }
  0x5a   : > { %s813_s18 = sand.u32 1, %s7707_s24   ;;  %p6045_p9 = scmp.ne.s32.totalorder %s7715_s26, 0 }
  0x5b   : > { %s6044_s19 = sshll.u32 %s813_s18, 9 }
  0x5c   : > { %s7949_s20 = scalar_lea.vmem [#allocation2], %s6044_s19  ;;  %845 = sbr.rel (%p6045_p9) target bundleno = 100 (0x64), region = 93 }
  0x61   : > { %v7725_v0 = vmov -inf  }
  0x62   : > { %846 = vst [vmem:[#allocation3] sm:$0xff] %v7725_v0 }
  0x63   : > { %847 = vst [vmem:[#allocation3 + $0x8] sm:$0xff] %v7725_v0 }
  0x64 PF: > { %v6475_v1 = vld [vmem:[%s7949_s20 + $0x20] sm:$0xff]   ;;  %v6473_v2 = vld [vmem:[%s7949_s20 + $0x10] sm:$0xff]   ;;  %v11302_v4 = vmov 0   ;;  %v6476_v11 = vld [vmem:[%s7949_s20 + $0x28] sm:$0xff]   ;;  %vm3772_vm0 = vcmask 523264   ;;  %s6190_s16 = sshll.u32 %s7715_s26, 7 }
  0x65   : > { %v6217_v3 = vld [vmem:[%s7949_s20] sm:$0xff]   ;;  %6628 = vset.pattern.permute.xlu2 %v11302_v4  ;;  %6617 = vset.pattern.permute.xlu1 %v11302_v4  ;;  %v6234_v5 = vunpack.c.l.bf16 %v6475_v1  ;;  %v6235_v6 = vunpack.c.h.bf16 %v6475_v1  ;;  %v6226_v7 = vunpack.c.l.bf16 %v6473_v2  ;;  %v6227_v8 = vunpack.c.h.bf16 %v6473_v2  ;;  %v6474_v12 = vld [vmem:[%s7949_s20 + $0x18] sm:$0xff]   ;;  %v6472_v15 = vld [vmem:[%s7949_s20 + $0x8] sm:$0xff]   ;;  %s7729_s12 = smov [#allocation3]   ;;  %p6559_p10 = scmp.eq.s32.totalorder %s6037_s29, 2 }
  0x66   : > { %6606 = vset.pattern.permute.xlu0 %v11302_v4  ;;  %v6218_v9 = vunpack.c.l.bf16 %v6217_v3  ;;  %v6219_v10 = vunpack.c.h.bf16 %v6217_v3  ;;  %v6238_v17 = vunpack.c.l.bf16 %v6476_v11  ;;  %v6239_v18 = vunpack.c.h.bf16 %v6476_v11  ;;  %v6479_v26 = vld [vmem:[%s7949_s20 + $0x40] sm:$0xff]   ;;  %v6478_v27 = vld [vmem:[%s7949_s20 + $0x38] sm:$0xff]   ;;  %v6477_v28 = vld [vmem:[%s7949_s20 + $0x30] sm:$0xff]   ;;  %s5975_s13 = sshll.u32 %s7729_s12, 4  ;;  %s5976_s13 = int_to_ptr.vmem [resolvable:$true] %s5975_s13 }
  0x67   : > { %v7960_v13 = vpack.i.bf16 %v6235_v6, %v6234_v5  ;;  %v7962_v14 = vpack.i.bf16 %v6227_v8, %v6226_v7  ;;  %v6230_v19 = vunpack.c.l.bf16 %v6474_v12  ;;  %v6231_v20 = vunpack.c.h.bf16 %v6474_v12  ;;  %v6482_v38 = vld [vmem:[%s7949_s20 + $0x58] sm:$0xff]   ;;  %v6481_v39 = vld [vmem:[%s7949_s20 + $0x50] sm:$0xff]   ;;  %v6480_v40 = vld [vmem:[%s7949_s20 + $0x48] sm:$0xff]  }
  0x68   : > { %v7965_v16 = vpack.i.bf16 %v6219_v10, %v6218_v9  ;;  %v6222_v21 = vunpack.c.l.bf16 %v6472_v15  ;;  %v6223_v22 = vunpack.c.h.bf16 %v6472_v15  ;;  %v7970_v23 = vpack.i.bf16 %v6239_v18, %v6238_v17  ;;  %v6485_v50 = vld [vmem:[%s7949_s20 + $0x70] sm:$0xff]   ;;  %v6484_v51 = vld [vmem:[%s7949_s20 + $0x68] sm:$0xff]   ;;  %v6483_v52 = vld [vmem:[%s7949_s20 + $0x60] sm:$0xff]  }
  0x69   : > { %6630 = vperm.xlu2 %6628, %v7960_v13   ;;  %6619 = vperm.xlu1 %6617, %v7962_v14   ;;  %v7972_v24 = vpack.i.bf16 %v6231_v20, %v6230_v19  ;;  %v6250_v29 = vunpack.c.l.bf16 %v6479_v26  ;;  %v6251_v30 = vunpack.c.h.bf16 %v6479_v26  ;;  %v6246_v31 = vunpack.c.l.bf16 %v6478_v27  ;;  %v6488_v62 = vld [vmem:[%s7949_s20 + $0x88] sm:$0xff]   ;;  %v6487_v63 = vld [vmem:[%s7949_s20 + $0x80] sm:$0xff]   ;;  %v6486_v0 = vld [vmem:[%s7949_s20 + $0x78] sm:$0xff]  }
  0x6a   : > { %6608 = vperm.xlu0 %6606, %v7965_v16   ;;  %v7974_v25 = vpack.i.bf16 %v6223_v22, %v6222_v21  ;;  %v6247_v32 = vunpack.c.h.bf16 %v6478_v27  ;;  %v6242_v33 = vunpack.c.l.bf16 %v6477_v28  ;;  %v6243_v34 = vunpack.c.h.bf16 %v6477_v28  ;;  %v6491_v11 = vld [vmem:[%s7949_s20 + $0xa0] sm:$0xff]   ;;  %v6490_v12 = vld [vmem:[%s7949_s20 + $0x98] sm:$0xff]   ;;  %v6489_v15 = vld [vmem:[%s7949_s20 + $0x90] sm:$0xff]  }
  0x6b   : > { %v7982_v35 = vpack.i.bf16 %v6251_v30, %v6250_v29  ;;  %v6262_v41 = vunpack.c.l.bf16 %v6482_v38  ;;  %v6263_v42 = vunpack.c.h.bf16 %v6482_v38  ;;  %v6258_v43 = vunpack.c.l.bf16 %v6481_v39  ;;  %v6494_v29 = vld [vmem:[%s7949_s20 + $0xb8] sm:$0xff]   ;;  %v6493_v30 = vld [vmem:[%s7949_s20 + $0xb0] sm:$0xff]  }
  0x6c   : > { %v7984_v36 = vpack.i.bf16 %v6247_v32, %v6246_v31  ;;  %v7986_v37 = vpack.i.bf16 %v6243_v34, %v6242_v33  ;;  %v6259_v44 = vunpack.c.h.bf16 %v6481_v39  ;;  %v6254_v45 = vunpack.c.l.bf16 %v6480_v40  ;;  %v6492_v31 = vld [vmem:[%s7949_s20 + $0xa8] sm:$0xff]   ;;  %v6521_v4 = vld [vmem:[%s7949_s20 + $0x190] sm:$0xff]  }
  0x6d   : > { %v6255_v46 = vunpack.c.h.bf16 %v6480_v40  ;;  %v7994_v47 = vpack.i.bf16 %v6263_v42, %v6262_v41  ;;  %v6274_v53 = vunpack.c.l.bf16 %v6485_v50  ;;  %v6275_v54 = vunpack.c.h.bf16 %v6485_v50 }
  0x6e   : > { %v7996_v48 = vpack.i.bf16 %v6259_v44, %v6258_v43  ;;  %v6270_v55 = vunpack.c.l.bf16 %v6484_v51  ;;  %v6271_v56 = vunpack.c.h.bf16 %v6484_v51  ;;  %v6266_v57 = vunpack.c.l.bf16 %v6483_v52  ;;  %v6497_v44 = vld [vmem:[%s7949_s20 + $0xd0] sm:$0xff]  }
  0x6f   : > { %v7998_v49 = vpack.i.bf16 %v6255_v46, %v6254_v45  ;;  %v6267_v58 = vunpack.c.h.bf16 %v6483_v52  ;;  %v8006_v59 = vpack.i.bf16 %v6275_v54, %v6274_v53  ;;  %v6286_v1 = vunpack.c.l.bf16 %v6488_v62  ;;  %v6496_v45 = vld [vmem:[%s7949_s20 + $0xc8] sm:$0xff]   ;;  %v6495_v46 = vld [vmem:[%s7949_s20 + $0xc0] sm:$0xff]  }
  0x70   : > { %v8008_v60 = vpack.i.bf16 %v6271_v56, %v6270_v55  ;;  %v6287_v2 = vunpack.c.h.bf16 %v6488_v62  ;;  %v6282_v3 = vunpack.c.l.bf16 %v6487_v63  ;;  %v6283_v5 = vunpack.c.h.bf16 %v6487_v63  ;;  %v6500_v62 = vld [vmem:[%s7949_s20 + $0xe8] sm:$0xff]   ;;  %v6499_v63 = vld [vmem:[%s7949_s20 + $0xe0] sm:$0xff]  }
  0x71   : > { %6635 = vperm.xlu2 %6628, %v7970_v23   ;;  %6624 = vperm.xlu1 %6617, %v7972_v24   ;;  %v8010_v61 = vpack.i.bf16 %v6267_v58, %v6266_v57  ;;  %v6278_v6 = vunpack.c.l.bf16 %v6486_v0  ;;  %v6279_v7 = vunpack.c.h.bf16 %v6486_v0  ;;  %v6298_v17 = vunpack.c.l.bf16 %v6491_v11  ;;  %v6498_v0 = vld [vmem:[%s7949_s20 + $0xd8] sm:$0xff]  }
  0x72   : > { %6613 = vperm.xlu0 %6606, %v7974_v25   ;;  %v8018_v8 = vpack.i.bf16 %v6287_v2, %v6286_v1  ;;  %v8020_v9 = vpack.i.bf16 %v6283_v5, %v6282_v3  ;;  %v6299_v18 = vunpack.c.h.bf16 %v6491_v11  ;;  %v6294_v19 = vunpack.c.l.bf16 %v6490_v12 }
  0x73   : > { %v8022_v10 = vpack.i.bf16 %v6279_v7, %v6278_v6  ;;  %v6295_v20 = vunpack.c.h.bf16 %v6490_v12  ;;  %v6290_v21 = vunpack.c.l.bf16 %v6489_v15  ;;  %v6291_v22 = vunpack.c.h.bf16 %v6489_v15 }
  0x74   : > { %v8030_v26 = vpack.i.bf16 %v6299_v18, %v6298_v17  ;;  %v6310_v32 = vunpack.c.l.bf16 %v6494_v29  ;;  %v6311_v33 = vunpack.c.h.bf16 %v6494_v29  ;;  %v6306_v34 = vunpack.c.l.bf16 %v6493_v30  ;;  %v6503_v17 = vld [vmem:[%s7949_s20 + $0x100] sm:$0xff]   ;;  %v6502_v18 = vld [vmem:[%s7949_s20 + $0xf8] sm:$0xff]  }
  0x75   : > { %v8032_v27 = vpack.i.bf16 %v6295_v20, %v6294_v19  ;;  %v8034_v28 = vpack.i.bf16 %v6291_v22, %v6290_v21  ;;  %v6307_v38 = vunpack.c.h.bf16 %v6493_v30  ;;  %v6302_v39 = vunpack.c.l.bf16 %v6492_v31  ;;  %v6501_v19 = vld [vmem:[%s7949_s20 + $0xf0] sm:$0xff]  }
  0x76   : > { %v6303_v40 = vunpack.c.h.bf16 %v6492_v31  ;;  %v8042_v41 = vpack.i.bf16 %v6311_v33, %v6310_v32  ;;  %v6322_v50 = vunpack.c.l.bf16 %v6497_v44  ;;  %v6323_v51 = vunpack.c.h.bf16 %v6497_v44 }
  0x77   : > { %v8044_v42 = vpack.i.bf16 %v6307_v38, %v6306_v34  ;;  %v6318_v52 = vunpack.c.l.bf16 %v6496_v45  ;;  %v6319_v53 = vunpack.c.h.bf16 %v6496_v45  ;;  %v6314_v54 = vunpack.c.l.bf16 %v6495_v46  ;;  %v6506_v38 = vld [vmem:[%s7949_s20 + $0x118] sm:$0xff]  }
  0x78   : > { %v8046_v43 = vpack.i.bf16 %v6303_v40, %v6302_v39  ;;  %v6315_v55 = vunpack.c.h.bf16 %v6495_v46  ;;  %v8054_v56 = vpack.i.bf16 %v6323_v51, %v6322_v50  ;;  %v6334_v1 = vunpack.c.l.bf16 %v6500_v62  ;;  %v6505_v39 = vld [vmem:[%s7949_s20 + $0x110] sm:$0xff]   ;;  %v6504_v40 = vld [vmem:[%s7949_s20 + $0x108] sm:$0xff]  }
  0x79   : > { %6650 = vperm.xlu2 %6628, %v7982_v35   ;;  %6645 = vperm.xlu1 %6617, %v7984_v36   ;;  %v8056_v57 = vpack.i.bf16 %v6319_v53, %v6318_v52  ;;  %v6335_v2 = vunpack.c.h.bf16 %v6500_v62  ;;  %v6330_v3 = vunpack.c.l.bf16 %v6499_v63  ;;  %v6331_v5 = vunpack.c.h.bf16 %v6499_v63  ;;  %v6509_v62 = vld [vmem:[%s7949_s20 + $0x130] sm:$0xff]   ;;  %v6508_v63 = vld [vmem:[%s7949_s20 + $0x128] sm:$0xff]  }
  0x7a   : > { %6640 = vperm.xlu0 %6606, %v7986_v37   ;;  %v8058_v58 = vpack.i.bf16 %v6315_v55, %v6314_v54  ;;  %v6326_v6 = vunpack.c.l.bf16 %v6498_v0  ;;  %v6327_v7 = vunpack.c.h.bf16 %v6498_v0  ;;  %v6346_v20 = vunpack.c.l.bf16 %v6503_v17  ;;  %v6507_v0 = vld [vmem:[%s7949_s20 + $0x120] sm:$0xff]  }
  0x7b   : > { %v8066_v11 = vpack.i.bf16 %v6335_v2, %v6334_v1  ;;  %v8068_v12 = vpack.i.bf16 %v6331_v5, %v6330_v3  ;;  %v6347_v21 = vunpack.c.h.bf16 %v6503_v17  ;;  %v6342_v22 = vunpack.c.l.bf16 %v6502_v18 }
  0x7c   : > { %v8070_v15 = vpack.i.bf16 %v6327_v7, %v6326_v6  ;;  %v6343_v29 = vunpack.c.h.bf16 %v6502_v18  ;;  %v6338_v30 = vunpack.c.l.bf16 %v6501_v19  ;;  %v6339_v31 = vunpack.c.h.bf16 %v6501_v19 }
  0x7d   : > { %11415 = vst [vmem:[#allocation6_spill] sm:$0xff] %v8066_v11  ;;  %v8078_v32 = vpack.i.bf16 %v6347_v21, %v6346_v20  ;;  %v6358_v44 = vunpack.c.l.bf16 %v6506_v38  ;;  %v6359_v45 = vunpack.c.h.bf16 %v6506_v38  ;;  %v6354_v46 = vunpack.c.l.bf16 %v6505_v39  ;;  %v6512_v21 = vld [vmem:[%s7949_s20 + $0x148] sm:$0xff]  }
  0x7e   : > { %11416 = vst [vmem:[#allocation7_spill] sm:$0xff] %v8070_v15  ;;  %v8080_v33 = vpack.i.bf16 %v6343_v29, %v6342_v22  ;;  %v8082_v34 = vpack.i.bf16 %v6339_v31, %v6338_v30  ;;  %v6355_v50 = vunpack.c.h.bf16 %v6505_v39  ;;  %v6350_v51 = vunpack.c.l.bf16 %v6504_v40  ;;  %v6511_v22 = vld [vmem:[%s7949_s20 + $0x140] sm:$0xff]   ;;  %v6510_v29 = vld [vmem:[%s7949_s20 + $0x138] sm:$0xff]  }
  0x7f   : > { %11417 = vst [vmem:[#allocation8_spill] sm:$0xff] %v8078_v32  ;;  %v6351_v52 = vunpack.c.h.bf16 %v6504_v40  ;;  %v8090_v53 = vpack.i.bf16 %v6359_v45, %v6358_v44  ;;  %v6370_v1 = vunpack.c.l.bf16 %v6509_v62  ;;  %v6371_v2 = vunpack.c.h.bf16 %v6509_v62  ;;  %v6514_v62 = vld [vmem:[%s7949_s20 + $0x158] sm:$0xff]  }
  0x80   : > { %11418 = vst [vmem:[#allocation9_spill] sm:$0xff] %v8080_v33  ;;  %v8092_v54 = vpack.i.bf16 %v6355_v50, %v6354_v46  ;;  %v6366_v3 = vunpack.c.l.bf16 %v6508_v63  ;;  %v6367_v5 = vunpack.c.h.bf16 %v6508_v63  ;;  %v6362_v6 = vunpack.c.l.bf16 %v6507_v0  ;;  %v6513_v63 = vld [vmem:[%s7949_s20 + $0x150] sm:$0xff]  }
  0x81   : > { %6665 = vperm.xlu2 %6628, %v7994_v47   ;;  %6660 = vperm.xlu1 %6617, %v7996_v48   ;;  %11419 = vst [vmem:[#allocation10_spill] sm:$0xff] %v8082_v34  ;;  %v8094_v55 = vpack.i.bf16 %v6351_v52, %v6350_v51  ;;  %v6363_v7 = vunpack.c.h.bf16 %v6507_v0  ;;  %v8104_v18 = vpack.i.bf16 %v6371_v2, %v6370_v1  ;;  %v6382_v30 = vunpack.c.l.bf16 %v6512_v21  ;;  %v6515_v52 = vld [vmem:[%s7949_s20 + $0x160] sm:$0xff]  }
  0x82   : > { %6655 = vperm.xlu0 %6606, %v7998_v49   ;;  %11420 = vst [vmem:[#allocation11_spill] sm:$0xff] %v8090_v53  ;;  %v8106_v19 = vpack.i.bf16 %v6367_v5, %v6366_v3  ;;  %v6383_v31 = vunpack.c.h.bf16 %v6512_v21  ;;  %v6378_v38 = vunpack.c.l.bf16 %v6511_v22  ;;  %v6379_v39 = vunpack.c.h.bf16 %v6511_v22 }
  0x83   : > { %11421 = vst [vmem:[#allocation12_spill] sm:$0xff] %v8092_v54  ;;  %v8108_v20 = vpack.i.bf16 %v6363_v7, %v6362_v6  ;;  %v6374_v40 = vunpack.c.l.bf16 %v6510_v29  ;;  %v6375_v44 = vunpack.c.h.bf16 %v6510_v29  ;;  %v6394_v0 = vunpack.c.l.bf16 %v6515_v52 }
  0x84   : > { %11422 = vst [vmem:[#allocation13_spill] sm:$0xff] %v8104_v18  ;;  %v8118_v46 = vpack.i.bf16 %v6383_v31, %v6382_v30  ;;  %v8120_v50 = vpack.i.bf16 %v6379_v39, %v6378_v38  ;;  %v6395_v1 = vunpack.c.h.bf16 %v6515_v52  ;;  %v6390_v2 = vunpack.c.l.bf16 %v6514_v62  ;;  %v6518_v30 = vld [vmem:[%s7949_s20 + $0x178] sm:$0xff]   ;;  %v6517_v31 = vld [vmem:[%s7949_s20 + $0x170] sm:$0xff]   ;;  %v6516_v38 = vld [vmem:[%s7949_s20 + $0x168] sm:$0xff]  }
  0x85   : > { %11423 = vst [vmem:[#allocation14_spill] sm:$0xff] %v8106_v19  ;;  %v8122_v51 = vpack.i.bf16 %v6375_v44, %v6374_v40  ;;  %v6391_v3 = vunpack.c.h.bf16 %v6514_v62  ;;  %v6386_v5 = vunpack.c.l.bf16 %v6513_v63  ;;  %v6387_v6 = vunpack.c.h.bf16 %v6513_v63 }
  0x86   : > { %11424 = vst [vmem:[#allocation15_spill] sm:$0xff] %v8108_v20  ;;  %v8132_v21 = vpack.i.bf16 %v6395_v1, %v6394_v0  ;;  %v6406_v39 = vunpack.c.l.bf16 %v6518_v30  ;;  %v6407_v40 = vunpack.c.h.bf16 %v6518_v30  ;;  %v6402_v44 = vunpack.c.l.bf16 %v6517_v31  ;;  %v6520_v30 = vld [vmem:[%s7949_s20 + $0x188] sm:$0xff]  }
  0x87   : > { %11425 = vst [vmem:[#allocation16_spill] sm:$0xff] %v8118_v46  ;;  %v8134_v22 = vpack.i.bf16 %v6391_v3, %v6390_v2  ;;  %v8136_v29 = vpack.i.bf16 %v6387_v6, %v6386_v5  ;;  %v6403_v52 = vunpack.c.h.bf16 %v6517_v31  ;;  %v6398_v62 = vunpack.c.l.bf16 %v6516_v38 }
  0x88   : > { %11426 = vst [vmem:[#allocation17_spill] sm:$0xff] %v8120_v50  ;;  %v6399_v63 = vunpack.c.h.bf16 %v6516_v38  ;;  %v8150_v3 = vpack.i.bf16 %v6407_v40, %v6406_v39  ;;  %v6418_v31 = vunpack.c.l.bf16 %v6521_v4  ;;  %v6419_v38 = vunpack.c.h.bf16 %v6521_v4  ;;  %v6523_v4 = vld [vmem:[%s7949_s20 + $0x1a0] sm:$0xff]  }
  0x89   : > { %6680 = vperm.xlu2 %6628, %v8006_v59   ;;  %6675 = vperm.xlu1 %6617, %v8008_v60   ;;  %11427 = vst [vmem:[#allocation18_spill] sm:$0xff] %v8122_v51  ;;  %v8152_v5 = vpack.i.bf16 %v6403_v52, %v6402_v44 }
  0x8a   : > { %6670 = vperm.xlu0 %6606, %v8010_v61   ;;  %11428 = vst [vmem:[#allocation19_spill] sm:$0xff] %v8132_v21  ;;  %v8154_v6 = vpack.i.bf16 %v6399_v63, %v6398_v62  ;;  %v8168_v63 = vpack.i.bf16 %v6419_v38, %v6418_v31 }
  0x8b   : > { %11429 = vst [vmem:[#allocation20_spill] sm:$0xff] %v8134_v22 }
  0x8c   : > { %11430 = vst [vmem:[#allocation21_spill] sm:$0xff] %v8136_v29 }
  0x8d   : > { %11431 = vst [vmem:[#allocation22_spill] sm:$0xff] %v8150_v3 }
  0x8e   : > { %11432 = vst [vmem:[#allocation23_spill] sm:$0xff] %v8152_v5 }
  0x8f   : > { %11433 = vst [vmem:[#allocation24_spill] sm:$0xff] %v8154_v6 }
  0x90   : > { %11434 = vst [vmem:[#allocation25_spill] sm:$0xff] %v8168_v63 }
  0x91   : > { %6695 = vperm.xlu2 %6628, %v8018_v8   ;;  %6690 = vperm.xlu1 %6617, %v8020_v9  }
  0x92   : > { %6685 = vperm.xlu0 %6606, %v8022_v10  }
  0x99   : > { %6710 = vperm.xlu2 %6628, %v8030_v26   ;;  %6705 = vperm.xlu1 %6617, %v8032_v27  }
  0x9a   : > { %6700 = vperm.xlu0 %6606, %v8034_v28  }
  0xa1   : > { %6725 = vperm.xlu2 %6628, %v8042_v41   ;;  %6720 = vperm.xlu1 %6617, %v8044_v42  }
  0xa2   : > { %6715 = vperm.xlu0 %6606, %v8046_v43  }
  0xa9   : > { %6740 = vperm.xlu2 %6628, %v8054_v56   ;;  %6735 = vperm.xlu1 %6617, %v8056_v57  }
  0xaa   : > { %6730 = vperm.xlu0 %6606, %v8058_v58  }
  0xb1   : > { %6755 = vperm.xlu2 %6628, %v8066_v11   ;;  %6750 = vperm.xlu1 %6617, %v8068_v12  }
  0xb2   : > { %6745 = vperm.xlu0 %6606, %v8070_v15  }
  0xb9   : > { %6770 = vperm.xlu2 %6628, %v8078_v32   ;;  %6765 = vperm.xlu1 %6617, %v8080_v33   ;;  %v6427_v32 = vunpack.c.h.bf16 %v6523_v4 }
  0xba   : > { %6760 = vperm.xlu0 %6606, %v8082_v34   ;;  %v6527_v34 = vld [vmem:[%s7949_s20 + $0x1c0] sm:$0xff]  }
  0xc1   : > { %6785 = vperm.xlu2 %6628, %v8090_v53   ;;  %6780 = vperm.xlu1 %6617, %v8092_v54   ;;  %v6524_v53 = vld [vmem:[%s7949_s20 + $0x1a8] sm:$0xff]   ;;  %v6522_v54 = vld [vmem:[%s7949_s20 + $0x198] sm:$0xff]  }
  0xc2   : > { %6775 = vperm.xlu0 %6606, %v8094_v55  }
  0xc3   : > { %v8102_v17 = vpop.permute.xlu2 %6630 }
  0xc9   : > { %6800 = vperm.xlu2 %6628, %v8104_v18   ;;  %6795 = vperm.xlu1 %6617, %v8106_v19  }
  0xca   : > { %6790 = vperm.xlu0 %6606, %v8108_v20  }
  0xcb   : > { %v8116_v45 = vpop.permute.xlu2 %6635 }
  0xd1   : > { %6815 = vperm.xlu2 %6628, %v8118_v46   ;;  %6810 = vperm.xlu1 %6617, %v8120_v50   ;;  %v6415_v50 = vunpack.c.h.bf16 %v6520_v30 }
  0xd2   : > { %6805 = vperm.xlu0 %6606, %v8122_v51  }
  0xd3   : > { %v8130_v7 = vpop.permute.xlu2 %6650 }
  0xd9   : > { %6830 = vperm.xlu2 %6628, %v8132_v21   ;;  %6825 = vperm.xlu1 %6617, %v8134_v22   ;;  %v6519_v21 = vld [vmem:[%s7949_s20 + $0x180] sm:$0xff]   ;;  %v6414_v22 = vunpack.c.l.bf16 %v6520_v30  ;;  %v6431_v30 = vunpack.c.h.bf16 %v6524_v53 }
  0xda   : > { %6820 = vperm.xlu0 %6606, %v8136_v29   ;;  %v6410_v39 = vunpack.c.l.bf16 %v6519_v21  ;;  %v6411_v40 = vunpack.c.h.bf16 %v6519_v21  ;;  %v6430_v21 = vunpack.c.l.bf16 %v6524_v53  ;;  %v6526_v53 = vld [vmem:[%s7949_s20 + $0x1b8] sm:$0xff]  }
  0xdb   : > { %v8144_v0 = vpop.permute.xlu2 %6665  ;;  %v8146_v1 = vpop.permute.xlu1 %6619  ;;  %v8170_v51 = vpack.i.bf16 %v6415_v50, %v6414_v22  ;;  %v6422_v50 = vunpack.c.l.bf16 %v6522_v54  ;;  %v6423_v22 = vunpack.c.h.bf16 %v6522_v54  ;;  %v6442_v54 = vunpack.c.l.bf16 %v6527_v34 }
  0xdc   : > { %v8148_v2 = vpop.permute.xlu0 %6608  ;;  %v8172_v19 = vpack.i.bf16 %v6411_v40, %v6410_v39  ;;  %v8186_v40 = vpack.i.bf16 %v6431_v30, %v6430_v21  ;;  %v6439_v11 = vunpack.c.h.bf16 %v6526_v53 }
  0xdd   : > { %11435 = vst [vmem:[#allocation26_spill] sm:$0xff] %v8170_v51 }
  0xde   : > { %11436 = vst [vmem:[#allocation27_spill] sm:$0xff] %v8172_v19 }
  0xdf   : > { %11437 = vst [vmem:[#allocation28_spill] sm:$0xff] %v8186_v40 }
  0xe1   : > { %6845 = vperm.xlu2 %6628, %v8150_v3   ;;  %6840 = vperm.xlu1 %6617, %v8152_v5   ;;  %v6525_v3 = vld [vmem:[%s7949_s20 + $0x1b0] sm:$0xff]  }
  0xe2   : > { %6835 = vperm.xlu0 %6606, %v8154_v6   ;;  %v6426_v6 = vunpack.c.l.bf16 %v6523_v4  ;;  %v6443_v4 = vunpack.c.h.bf16 %v6527_v34  ;;  %v6434_v21 = vunpack.c.l.bf16 %v6525_v3  ;;  %v6435_v30 = vunpack.c.h.bf16 %v6525_v3 }
  0xe3   : > { %v8162_v44 = vpop.permute.xlu2 %6680  ;;  %v8164_v52 = vpop.permute.xlu1 %6624 }
  0xe4   : > { %v8166_v62 = vpop.permute.xlu0 %6613 }
  0xe9   : > { %6860 = vperm.xlu2 %6628, %v8168_v63   ;;  %6855 = vperm.xlu1 %6617, %v8170_v51   ;;  %v8188_v63 = vpack.i.bf16 %v6427_v32, %v6426_v6  ;;  %v8190_v51 = vpack.i.bf16 %v6423_v22, %v6422_v50  ;;  %v8204_v22 = vpack.i.bf16 %v6443_v4, %v6442_v54 }
  0xea   : > { %6850 = vperm.xlu0 %6606, %v8172_v19   ;;  %v6438_v19 = vunpack.c.l.bf16 %v6526_v53 }
  0xeb   : > { %v8180_v31 = vpop.permute.xlu2 %6695  ;;  %v8182_v38 = vpop.permute.xlu1 %6645  ;;  %11438 = vst [vmem:[#allocation29_spill] sm:$0xff] %v8188_v63 }
  0xec   : > { %v8184_v39 = vpop.permute.xlu0 %6640  ;;  %11439 = vst [vmem:[#allocation30_spill] sm:$0xff] %v8190_v51  ;;  %v8206_v5 = vpack.i.bf16 %v6439_v11, %v6438_v19  ;;  %v11366_v11 = vmov 2   ;;  %v11345_v19 = vmov 1  }
  0xed   : > { %11440 = vst [vmem:[#allocation31_spill] sm:$0xff] %v8204_v22 }
  0xee   : > { %11441 = vst [vmem:[#allocation32_spill] sm:$0xff] %v8206_v5 }
  0xf1   : > { %6875 = vperm.xlu2 %6628, %v8186_v40   ;;  %6870 = vperm.xlu1 %6617, %v8188_v63   ;;  %v8208_v40 = vpack.i.bf16 %v6435_v30, %v6434_v21  ;;  %v6528_v63 = vld [vmem:[%s7949_s20 + $0x1c8] sm:$0xff]  }
  0xf2   : > { %6865 = vperm.xlu0 %6606, %v8190_v51   ;;  %v6446_v34 = vunpack.c.l.bf16 %v6528_v63  ;;  %v6447_v3 = vunpack.c.h.bf16 %v6528_v63 }
  0xf3   : > { %v8198_v32 = vpop.permute.xlu2 %6710  ;;  %v8200_v6 = vpop.permute.xlu1 %6660  ;;  %11442 = vst [vmem:[#allocation33_spill] sm:$0xff] %v8208_v40 }
  0xf4   : > { %v8202_v50 = vpop.permute.xlu0 %6655  ;;  %v8220_v54 = vpack.i.bf16 %v6447_v3, %v6446_v34 }
  0xf6   : > { %11443 = vst [vmem:[#allocation34_spill] sm:$0xff] %v8220_v54 }
  0xf9   : > { %6890 = vperm.xlu2 %6628, %v8204_v22   ;;  %6885 = vperm.xlu1 %6617, %v8206_v5  }
  0xfa   : > { %6880 = vperm.xlu0 %6606, %v8208_v40  }
  0xfb   : > { %v8214_v53 = vpop.permute.xlu2 %6725  ;;  %v8216_v15 = vpop.permute.xlu1 %6675 }
  0xfc   : > { %v8218_v51 = vpop.permute.xlu0 %6670 }
 0x101   : > { %6905 = vset.pattern.permute.xlu2 %v11366_v11  ;;  %6899 = vset.pattern.permute.xlu1 %v11345_v19 }
 0x102   : > { %6895 = vperm.xlu0 %6606, %v8220_v54   ;;  %6907 = vperm.xlu2 %6905, %v7965_v16  }
 0x103   : > { %6901 = vperm.xlu1 %6899, %v7965_v16   ;;  %v8227_v63 = vpop.permute.xlu2 %6740  ;;  %v8229_v4 = vpop.permute.xlu1 %6690 }
 0x104   : > { %v8231_v21 = vpop.permute.xlu0 %6685 }
 0x10a   : > { %6911 = vset.pattern.permute.xlu0 %v11345_v19  ;;  %6923 = vset.pattern.permute.xlu2 %v11345_v19 }
 0x10b   : > { %6917 = vset.pattern.permute.xlu1 %v11366_v11  ;;  %6913 = vperm.xlu0 %6911, %v7974_v25   ;;  %v8237_v30 = vpop.permute.xlu2 %6755  ;;  %v8239_v34 = vpop.permute.xlu1 %6705 }
 0x10c   : > { %11444 = vst [vmem:[#allocation35_spill] sm:$0xff] %v8239_v34  ;;  %6925 = vperm.xlu2 %6923, %v7962_v14   ;;  %6919 = vperm.xlu1 %6917, %v7974_v25   ;;  %v8243_v16 = vpop.permute.xlu0 %6700  ;;  %v11449_v25 = vmov 1  }
 0x113   : > { %6939 = vset.pattern.permute.xlu0 %v11366_v11  ;;  %v8246_v3 = vpop.permute.xlu2 %6770  ;;  %v8248_v54 = vpop.permute.xlu1 %6720 }
 0x114   : > { %11445 = vst [vmem:[#allocation36_spill] sm:$0xff] %v8246_v3  ;;  %6935 = vperm.xlu2 %6923, %v7972_v24   ;;  %6930 = vperm.xlu1 %6917, %v7962_v14   ;;  %v8252_v19 = vpop.permute.xlu0 %6715 }
 0x115   : > { %11446 = vst [vmem:[#allocation37_spill] sm:$0xff] %v8248_v54  ;;  %6941 = vperm.xlu0 %6939, %v7972_v24  }
 0x11b   : > { %v8255_v5 = vpop.permute.xlu2 %6785  ;;  %v8257_v40 = vpop.permute.xlu1 %6735 }
 0x11c   : > { %11447 = vst [vmem:[#allocation38_spill] sm:$0xff] %v8255_v5  ;;  %6951 = vset.pattern.permute.xlu2 %v11366_v11  ;;  %6945 = vset.pattern.permute.xlu1 %v11449_v25  ;;  %v8261_v22 = vpop.permute.xlu0 %6730 }
 0x11d   : > { %11448 = vst [vmem:[#allocation39_spill] sm:$0xff] %v8257_v40  ;;  %6967 = vset.pattern.permute.xlu0 %v11449_v25  ;;  %6953 = vperm.xlu2 %6951, %v7960_v13  }
 0x11e   : > { %11450 = vst [vmem:[#allocation40_spill] sm:$0xff] %v8261_v22  ;;  %6947 = vperm.xlu1 %6945, %v7960_v13   ;;  %6969 = vperm.xlu0 %6967, %v7986_v37  }
 0x123   : > { %v8267_v14 = vpop.permute.xlu2 %6800  ;;  %v8269_v24 = vpop.permute.xlu1 %6750 }
 0x124   : > { %11451 = vst [vmem:[#allocation41_spill] sm:$0xff] %v8267_v14  ;;  %v8271_v5 = vpop.permute.xlu0 %6745 }
 0x125   : > { %11452 = vst [vmem:[#allocation42_spill] sm:$0xff] %v8269_v24  ;;  %6963 = vperm.xlu2 %6951, %v7970_v23  }
 0x126   : > { %11453 = vst [vmem:[#allocation43_spill] sm:$0xff] %v8271_v5  ;;  %6958 = vperm.xlu1 %6945, %v7970_v23   ;;  %6995 = vset.pattern.permute.xlu0 %v11366_v11 }
 0x127   : > { %6997 = vperm.xlu0 %6995, %v7982_v35  }
 0x12b   : > { %v8277_v22 = vpop.permute.xlu2 %6815  ;;  %v8279_v40 = vpop.permute.xlu1 %6765 }
 0x12c   : > { %11454 = vst [vmem:[#allocation44_spill] sm:$0xff] %v8277_v22  ;;  %v8281_v13 = vpop.permute.xlu0 %6760 }
 0x12d   : > { %11455 = vst [vmem:[#allocation45_spill] sm:$0xff] %v8279_v40  ;;  %6979 = vset.pattern.permute.xlu2 %v11449_v25 }
 0x12e   : > { %11456 = vst [vmem:[#allocation46_spill] sm:$0xff] %v8281_v13  ;;  %6973 = vset.pattern.permute.xlu1 %v11366_v11  ;;  %6981 = vperm.xlu2 %6979, %v7984_v36  }
 0x12f   : > { %6975 = vperm.xlu1 %6973, %v7986_v37   ;;  %7023 = vset.pattern.permute.xlu0 %v11449_v25 }
 0x130   : > { %7025 = vperm.xlu0 %7023, %v7994_v47  }
 0x133   : > { %v8289_v23 = vpop.permute.xlu2 %6830  ;;  %v8291_v5 = vpop.permute.xlu1 %6780 }
 0x134   : > { %11457 = vst [vmem:[#allocation47_spill] sm:$0xff] %v8289_v23  ;;  %v8293_v22 = vpop.permute.xlu0 %6775 }
 0x135   : > { %11458 = vst [vmem:[#allocation48_spill] sm:$0xff] %v8291_v5 }
 0x136   : > { %11459 = vst [vmem:[#allocation49_spill] sm:$0xff] %v8293_v22  ;;  %6991 = vperm.xlu2 %6979, %v7982_v35  }
 0x137   : > { %6986 = vperm.xlu1 %6973, %v7984_v36  }
 0x138   : > { %7051 = vset.pattern.permute.xlu0 %v11366_v11 }
 0x139   : > { %7053 = vperm.xlu0 %7051, %v8008_v60  }
 0x13b   : > { %v8299_v13 = vpop.permute.xlu2 %6845  ;;  %v8301_v37 = vpop.permute.xlu1 %6795 }
 0x13c   : > { %11460 = vst [vmem:[#allocation50_spill] sm:$0xff] %v8299_v13  ;;  %v8303_v40 = vpop.permute.xlu0 %6790 }
 0x13d   : > { %11461 = vst [vmem:[#allocation51_spill] sm:$0xff] %v8301_v37 }
 0x13e   : > { %11462 = vst [vmem:[#allocation52_spill] sm:$0xff] %v8303_v40  ;;  %7007 = vset.pattern.permute.xlu2 %v11366_v11 }
 0x13f   : > { %7001 = vset.pattern.permute.xlu1 %v11449_v25  ;;  %7009 = vperm.xlu2 %7007, %v7998_v49  }
 0x140   : > { %7003 = vperm.xlu1 %7001, %v7998_v49  }
 0x141   : > { %7079 = vset.pattern.permute.xlu0 %v11449_v25 }
 0x142   : > { %7081 = vperm.xlu0 %7079, %v8020_v9  }
 0x143   : > { %v8311_v35 = vpop.permute.xlu2 %6860  ;;  %v8313_v36 = vpop.permute.xlu1 %6810 }
 0x144   : > { %11463 = vst [vmem:[#allocation53_spill] sm:$0xff] %v8311_v35  ;;  %v8315_v13 = vpop.permute.xlu0 %6805 }
 0x145   : > { %11464 = vst [vmem:[#allocation54_spill] sm:$0xff] %v8313_v36 }
 0x146   : > { %11465 = vst [vmem:[#allocation55_spill] sm:$0xff] %v8315_v13 }
 0x147   : > { %7019 = vperm.xlu2 %7007, %v7996_v48  }
 0x148   : > { %7014 = vperm.xlu1 %7001, %v7996_v48  }
 0x14a   : > { %7107 = vset.pattern.permute.xlu0 %v11366_v11 }
 0x14b   : > { %v8320_v37 = vpop.permute.xlu2 %6875  ;;  %v8322_v5 = vpop.permute.xlu1 %6825  ;;  %7109 = vperm.xlu0 %7107, %v8034_v28  }
 0x14c   : > { %11466 = vst [vmem:[#allocation56_spill] sm:$0xff] %v8320_v37  ;;  %v8325_v49 = vpop.permute.xlu0 %6820 }
 0x14d   : > { %11467 = vst [vmem:[#allocation57_spill] sm:$0xff] %v8322_v5 }
 0x14e   : > { %11468 = vst [vmem:[#allocation58_spill] sm:$0xff] %v8325_v49  ;;  %v6199_v49 = vld [vmem:[%s11297_s3 + $0x18] sm:$0xff] }
 0x14f   : > { %7035 = vset.pattern.permute.xlu2 %v11449_v25  ;;  %3969 = vmatpush.bf16.msra.mxu0 %v6199_v49 }
 0x150   : > { %7029 = vset.pattern.permute.xlu1 %v11366_v11  ;;  %7037 = vperm.xlu2 %7035, %v8010_v61  }
 0x151   : > { %7031 = vperm.xlu1 %7029, %v7994_v47   ;;  %6535 = vmatpush.bf16.msra.mxu3 %v6199_v49  ;;  %v6198_v47 = vld [vmem:[%s11297_s3 + $0x10] sm:$0xff]  ;;  %v11474_v49 = vmov 2  }
 0x153   : > { %v8331_v13 = vpop.permute.xlu1 %6840  ;;  %7135 = vset.pattern.permute.xlu0 %v11449_v25  ;;  %v8334_v48 = vpop.permute.xlu2 %6890  ;;  %3970 = vmatpush.bf16.msra.mxu0 %v6198_v47 }
 0x154   : > { %11469 = vst [vmem:[#allocation59_spill] sm:$0xff] %v8331_v13  ;;  %v8336_v37 = vpop.permute.xlu0 %6835  ;;  %7137 = vperm.xlu0 %7135, %v8046_v43  }
 0x155   : > { %11470 = vst [vmem:[#allocation60_spill] sm:$0xff] %v8334_v48  ;;  %v6197_v48 = vld [vmem:[%s11297_s3 + $0x8] sm:$0xff]  ;;  %6536 = vmatpush.bf16.msra.mxu3 %v6198_v47 }
 0x156   : > { %11471 = vst [vmem:[#allocation61_spill] sm:$0xff] %v8336_v37 }
 0x157   : > { %3971 = vmatpush.bf16.msra.mxu0 %v6197_v48 }
 0x158   : > { %7047 = vperm.xlu2 %7035, %v8008_v60   ;;  %v6196_v60 = vld [vmem:[%s11297_s3] sm:$0xff] }
 0x159   : > { %7042 = vperm.xlu1 %7029, %v8010_v61   ;;  %6537 = vmatpush.bf16.msra.mxu3 %v6197_v48 }
 0x15b   : > { %v8347_v11 = vpop.permute.xlu1 %6855  ;;  %3972 = vmatpush.bf16.msra.mxu0 %v6196_v60 }
 0x15c   : > { %11472 = vst [vmem:[#allocation62_spill] sm:$0xff] %v8347_v11  ;;  %v8352_v37 = vpop.permute.xlu0 %6850  ;;  %v6908_v13 = vpop.permute.xlu2 %6907  ;;  %7163 = vset.pattern.permute.xlu0 %v11474_v49 }
 0x15d   : > { %11473 = vst [vmem:[#allocation63_spill] sm:$0xff] %v8352_v37  ;;  %7165 = vperm.xlu0 %7163, %v8042_v41   ;;  %6538 = vmatpush.bf16.msra.mxu3 %v6196_v60  ;;  %v1104_v60 = vld [vmem:[%s11295_s1] sm:$0x7] }
 0x15e   : > { %v8394_v36 = vperm.slane %v1104_v60, 0  ;;  %v8396_v23 = vperm.slane %v1104_v60, 1 }
 0x160   : > { %7063 = vset.pattern.permute.xlu2 %v11474_v49 }
 0x161   : > { %7057 = vset.pattern.permute.xlu1 %v11449_v25  ;;  %7065 = vperm.xlu2 %7063, %v8006_v59  }
 0x162   : > { %7059 = vperm.xlu1 %7057, %v8006_v59  }
 0x163   : > { %v8363_v61 = vpop.permute.xlu1 %6870 }
 0x164   : > { %11475 = vst [vmem:[#allocation64_spill] sm:$0xff] %v8363_v61  ;;  %v8365_v47 = vpop.permute.xlu0 %6865  ;;  %v6909_v61 = vunpack.i.l.bf16 %v6908_v13 }
 0x165   : > { %11476 = vst [vmem:[#allocation65_spill] sm:$0xff] %v8365_v47  ;;  %7191 = vset.pattern.permute.xlu0 %v11449_v25  ;;  %v6910_v47 = vunpack.i.h.bf16 %v6908_v13 }
 0x166   : > { %v8368_v48 = vpop.permute.xlu2 %6925  ;;  %7193 = vperm.xlu0 %7191, %v8054_v56  }
 0x169   : > { %7075 = vperm.xlu2 %7063, %v8022_v10  }
 0x16a   : > { %7070 = vperm.xlu1 %7057, %v8022_v10   ;;  %v6611_v10 = vunpack.i.h.bf16 %v8148_v2 }
 0x16b   : > { %v8373_v37 = vpop.permute.xlu1 %6885 }
 0x16c   : > { %11477 = vst [vmem:[#allocation66_spill] sm:$0xff] %v8373_v37  ;;  %v8375_v11 = vpop.permute.xlu0 %6880  ;;  %v6610_v37 = vunpack.i.l.bf16 %v8148_v2  ;;  %v1747_v24 = vmul.f32 %v6611_v10, %v8394_v36 }
 0x16d   : > { %11478 = vst [vmem:[#allocation67_spill] sm:$0xff] %v8375_v11  ;;  %v8390_v11 = vperm.slane %v1104_v60, 2 }
 0x16e   : > { %7219 = vset.pattern.permute.xlu0 %v11474_v49  ;;  %v8378_v59 = vpop.permute.xlu2 %6935  ;;  %v1746_v2 = vmul.f32 %v6610_v37, %v8394_v36  ;;  %v8411_v37 = vld [vmem:[%s11296_s2] ss:$0 sm:$0xff] }
 0x16f   : > { %7221 = vperm.xlu0 %7219, %v8068_v12   ;;  %v3156_v40 = vmul.f32 %v6909_v61, %v8390_v11 }
 0x171   : > { %7091 = vset.pattern.permute.xlu2 %v11449_v25 }
 0x172   : > { %7085 = vset.pattern.permute.xlu1 %v11474_v49  ;;  %7093 = vperm.xlu2 %7091, %v8018_v8  }
 0x173   : > { %7087 = vperm.xlu1 %7085, %v8020_v9   ;;  %v3157_v9 = vmul.f32 %v6910_v47, %v8390_v11 }
 0x174   : > { %v8392_v5 = vpop.permute.xlu0 %6895 }
 0x175   : > { %11479 = vst [vmem:[#allocation68_spill] sm:$0xff] %v8392_v5  ;;  %v6902_v35 = vpop.permute.xlu1 %6901 }
 0x176   : > { %v6904_v22 = vunpack.i.h.bf16 %v6902_v35  ;;  %v6903_v14 = vunpack.i.l.bf16 %v6902_v35 }
 0x177   : > { %v8400_v54 = vpop.permute.xlu2 %6953  ;;  %7247 = vset.pattern.permute.xlu0 %v11449_v25 }
 0x178   : > { %v2388_v13 = vmul.f32 %v6904_v22, %v8396_v23  ;;  %v2387_v5 = vmul.f32 %v6903_v14, %v8396_v23  ;;  %7249 = vperm.xlu0 %7247, %v8080_v33  }
 0x17a   : > { %v2515_v60 = vadd.f32 %v2387_v5, %v1746_v2  ;;  %v2516_v35 = vadd.f32 %v2388_v13, %v1747_v24  ;;  %7103 = vperm.xlu2 %7091, %v8034_v28   ;;  %v6616_v24 = vunpack.i.h.bf16 %v8166_v62  ;;  %v6615_v2 = vunpack.i.l.bf16 %v8166_v62 }
 0x17b   : > { %7098 = vperm.xlu1 %7085, %v8018_v8  }
 0x17c   : > { %v3284_v61 = vadd.f32 %v3156_v40, %v2515_v60  ;;  %v3285_v47 = vadd.f32 %v3157_v9, %v2516_v35  ;;  %v1749_v35 = vmul.f32 %v6616_v24, %v8394_v36 }
 0x17d   : > { %v6914_v22 = vpop.permute.xlu0 %6913 }
 0x17e   : > { %v6916_v10 = vunpack.i.h.bf16 %v6914_v22  ;;  %v6915_v14 = vunpack.i.l.bf16 %v6914_v22  ;;  %v6920_v3 = vpop.permute.xlu1 %6919  ;;  %v3416_v34 = vadd.f32 %v8411_v37, %v3284_v61  ;;  %v3417_v5 = vadd.f32 %v8411_v37, %v3285_v47 }
 0x17f   : > { %v8419_v13 = vpop.permute.xlu2 %6963  ;;  %v6922_v33 = vunpack.i.h.bf16 %v6920_v3  ;;  %v6921_v28 = vunpack.i.l.bf16 %v6920_v3  ;;  %v1748_v61 = vmul.f32 %v6615_v2, %v8394_v36 }
 0x180   : > { %v2390_v8 = vmul.f32 %v6916_v10, %v8396_v23  ;;  %v2389_v40 = vmul.f32 %v6915_v14, %v8396_v23  ;;  %7275 = vset.pattern.permute.xlu0 %v11474_v49  ;;  %v3544_v9 = vmax.f32 %v3416_v34, 0.0  ;;  %v3545_v60 = vmax.f32 %v3417_v5, 0.0 }
 0x181   : > { %7277 = vperm.xlu0 %7275, %v8094_v55   ;;  %v3159_v34 = vmul.f32 %v6922_v33, %v8390_v11  ;;  %v3158_v22 = vmul.f32 %v6921_v28, %v8390_v11  ;;  %v6928_v28 = vunpack.i.h.bf16 %v8368_v48 }
 0x182   : > { %7119 = vset.pattern.permute.xlu2 %v11474_v49  ;;  %v3672_v62 = vpack.c.bf16 %v3545_v60, %v3544_v9  ;;  %v2517_v3 = vadd.f32 %v2389_v40, %v1748_v61  ;;  %v2518_v47 = vadd.f32 %v2390_v8, %v1749_v35  ;;  %v6927_v8 = vunpack.i.l.bf16 %v8368_v48 }
 0x183   : > { %7113 = vset.pattern.permute.xlu1 %v11449_v25  ;;  %7121 = vperm.xlu2 %7119, %v8032_v27   ;;  %v6622_v9 = vunpack.i.h.bf16 %v8146_v1 }
 0x184   : > { %7115 = vperm.xlu1 %7113, %v8032_v27   ;;  %6062 = vmatmul.msk.bf16.vlgmr.msra.gmra.mxu0 %vm3772_vm0, %v3672_v62  ;;  %v3286_v5 = vadd.f32 %v3158_v22, %v2517_v3  ;;  %v3287_v24 = vadd.f32 %v3159_v34, %v2518_v47  ;;  %v6621_v62 = vunpack.i.l.bf16 %v8146_v1  ;;  %v2392_v34 = vmul.f32 %v6928_v28, %v8396_v23 }
 0x185   : > { %v2391_v48 = vmul.f32 %v6927_v8, %v8396_v23 }
 0x186   : > { %v6931_v10 = vpop.permute.xlu1 %6930  ;;  %v3418_v27 = vadd.f32 %v8411_v37, %v3286_v5  ;;  %v3419_v33 = vadd.f32 %v8411_v37, %v3287_v24  ;;  %v1751_v5 = vmul.f32 %v6622_v9, %v8394_v36  ;;  %v1750_v1 = vmul.f32 %v6621_v62, %v8394_v36 }
 0x187   : > { %v8434_v14 = vpop.permute.xlu0 %6941  ;;  %v6933_v3 = vunpack.i.h.bf16 %v6931_v10  ;;  %v6632_v9 = vunpack.i.l.bf16 %v8102_v17  ;;  %v6653_v62 = vunpack.i.h.bf16 %v8130_v7 }
 0x188   : > { %v8436_v2 = vpop.permute.xlu2 %6981  ;;  %v3546_v35 = vmax.f32 %v3418_v27, 0.0  ;;  %v3547_v61 = vmax.f32 %v3419_v33, 0.0  ;;  %v6633_v27 = vunpack.i.h.bf16 %v8102_v17  ;;  %v2520_v33 = vadd.f32 %v2392_v34, %v1751_v5 }
 0x189   : > { %7303 = vset.pattern.permute.xlu0 %v11449_v25  ;;  %v2519_v28 = vadd.f32 %v2391_v48, %v1750_v1  ;;  %v6668_v34 = vunpack.i.h.bf16 %v8144_v0  ;;  %v6667_v48 = vunpack.i.l.bf16 %v8144_v0  ;;  %v6683_v5 = vunpack.i.h.bf16 %v8162_v44 }
 0x18a   : > { %7305 = vperm.xlu0 %7303, %v8108_v20   ;;  %v3673_v22 = vpack.c.bf16 %v3547_v61, %v3546_v35  ;;  %v6638_v35 = vunpack.i.h.bf16 %v8116_v45  ;;  %v6637_v61 = vunpack.i.l.bf16 %v8116_v45  ;;  %v8483_v17 = vmul.f32 %v6633_v27, %v8394_v36 }
 0x18b   : > { %7131 = vperm.xlu2 %7119, %v8030_v26   ;;  %v8486_v45 = vmul.f32 %v6632_v9, %v8394_v36  ;;  %v6682_v1 = vunpack.i.l.bf16 %v8162_v44  ;;  %v8501_v27 = vmul.f32 %v6653_v62, %v8394_v36  ;;  %v8507_v44 = vmul.f32 %v6668_v34, %v8394_v36 }
 0x18c   : > { %7126 = vperm.xlu1 %7113, %v8030_v26   ;;  %v6932_v26 = vunpack.i.l.bf16 %v6931_v10  ;;  %v3161_v10 = vmul.f32 %v6933_v3, %v8390_v11  ;;  %v6626_v9 = vunpack.i.l.bf16 %v8164_v52  ;;  %v8518_v62 = vmul.f32 %v6683_v5, %v8394_v36 }
 0x18d   : > { %11480 = vst [vmem:[#allocation69_spill] sm:$0xff] %v8501_v27  ;;  %v6648_v5 = vunpack.i.h.bf16 %v8182_v38 }
 0x18e   : > { %v3160_v24 = vmul.f32 %v6932_v26, %v8390_v11  ;;  %v3289_v3 = vadd.f32 %v3161_v10, %v2520_v33  ;;  %v8495_v10 = vmul.f32 %v6637_v61, %v8394_v36  ;;  %11482 = vst [vmem:[#allocation71_spill] sm:$0xff] %v8507_v44  ;;  %v6937_v61 = vunpack.i.l.bf16 %v8378_v59 }
 0x18f   : > { %v6642_v44 = vunpack.i.l.bf16 %v8184_v39 }
 0x190   : > { %v8446_v40 = vpop.permute.xlu1 %6947  ;;  %v8449_v60 = vpop.permute.xlu0 %6969  ;;  %v3288_v26 = vadd.f32 %v3160_v24, %v2519_v28  ;;  %v3421_v24 = vadd.f32 %v8411_v37, %v3289_v3  ;;  %v8510_v28 = vmul.f32 %v6667_v48, %v8394_v36  ;;  %v8521_v3 = vmul.f32 %v6682_v1, %v8394_v36 }
 0x191   : > { %v8452_v47 = vpop.permute.xlu2 %6991  ;;  %v6643_v1 = vunpack.i.h.bf16 %v8184_v39  ;;  %v2393_v20 = vmul.f32 %v6937_v61, %v8396_v23  ;;  %v8552_v61 = vmul.f32 %v6648_v5, %v8394_v36 }
 0x192   : > { %7331 = vset.pattern.permute.xlu0 %v11474_v49  ;;  %v3420_v0 = vadd.f32 %v8411_v37, %v3288_v26  ;;  %11483 = vst [vmem:[#allocation72_spill] sm:$0xff] %v8510_v28  ;;  %v6698_v26 = vunpack.i.h.bf16 %v8180_v31  ;;  %v6647_v28 = vunpack.i.l.bf16 %v8182_v38 }
 0x193   : > { %7333 = vperm.xlu0 %7331, %v8104_v18   ;;  %7147 = vset.pattern.permute.xlu2 %v11449_v25 }
 0x194   : > { %7141 = vset.pattern.permute.xlu1 %v11474_v49  ;;  %7149 = vperm.xlu2 %7147, %v8044_v42  }
 0x195   : > { %7143 = vperm.xlu1 %7141, %v8046_v43   ;;  %6063 = vmatmul.msk.bf16.gmra.mxu0 %vm3772_vm0, %v3673_v22  ;;  %v6652_v22 = vunpack.i.l.bf16 %v8130_v7  ;;  %v8492_v7 = vmul.f32 %v6638_v35, %v8394_v36  ;;  %v6938_v35 = vunpack.i.h.bf16 %v8378_v59  ;;  %v3549_v59 = vmax.f32 %v3421_v24, 0.0 }
 0x197   : > { %v8504_v33 = vmul.f32 %v6652_v22, %v8394_v36  ;;  %v6697_v22 = vunpack.i.l.bf16 %v8180_v31  ;;  %v2394_v31 = vmul.f32 %v6938_v35, %v8396_v23 }
 0x198   : > { %v8468_v8 = vpop.permute.xlu1 %6958 }
 0x199   : > { %v8474_v18 = vpop.permute.xlu0 %6997  ;;  %v8476_v43 = vpop.permute.xlu2 %7009  ;;  %11481 = vst [vmem:[#allocation70_spill] sm:$0xff] %v8504_v33  ;;  %v1752_v33 = vmul.f32 %v6626_v9, %v8394_v36  ;;  %v8546_v38 = vmul.f32 %v6697_v22, %v8394_v36  ;;  %v8558_v9 = vmul.f32 %v6643_v1, %v8394_v36 }
 0x19b   : > { %7359 = vset.pattern.permute.xlu0 %v11449_v25  ;;  %11486 = vst [vmem:[#allocation75_spill] sm:$0xff] %v8546_v38 }
 0x19c   : > { %7361 = vperm.xlu0 %7359, %v8118_v46   ;;  %7159 = vperm.xlu2 %7147, %v8042_v41   ;;  %v6627_v41 = vunpack.i.h.bf16 %v8164_v52  ;;  %v6943_v52 = vunpack.i.l.bf16 %v8434_v14  ;;  %v3548_v46 = vmax.f32 %v3420_v0, 0.0  ;;  %v8542_v0 = vmul.f32 %v6698_v26, %v8394_v36 }
 0x19d   : > { %7154 = vperm.xlu1 %7141, %v8044_v42   ;;  %v6944_v42 = vunpack.i.h.bf16 %v8434_v14  ;;  %v8563_v26 = vmul.f32 %v6642_v44, %v8394_v36  ;;  %v6663_v44 = vunpack.i.h.bf16 %v8200_v6 }
 0x19e   : > { %v1753_v14 = vmul.f32 %v6627_v41, %v8394_v36  ;;  %11485 = vst [vmem:[#allocation74_spill] sm:$0xff] %v8542_v0  ;;  %v3162_v24 = vmul.f32 %v6943_v52, %v8390_v11  ;;  %v3674_v35 = vpack.c.bf16 %v3549_v59, %v3548_v46  ;;  %v8555_v41 = vmul.f32 %v6647_v28, %v8394_v36 }
 0x19f   : > { %v3163_v39 = vmul.f32 %v6944_v42, %v8390_v11  ;;  %v2521_v42 = vadd.f32 %v2393_v20, %v1752_v33  ;;  %v6713_v46 = vunpack.i.h.bf16 %v8198_v32  ;;  %v6712_v28 = vunpack.i.l.bf16 %v8198_v32 }
 0x1a0   : > { %v2522_v22 = vadd.f32 %v2394_v31, %v1753_v14  ;;  %v6673_v52 = vunpack.i.h.bf16 %v8218_v51  ;;  %v6672_v59 = vunpack.i.l.bf16 %v8218_v51  ;;  %v6662_v20 = vunpack.i.l.bf16 %v8200_v6 }
 0x1a1   : > { %v8525_v34 = vpop.permute.xlu1 %6975  ;;  %v8529_v48 = vpop.permute.xlu2 %7019  ;;  %v3290_v1 = vadd.f32 %v3162_v24, %v2521_v42  ;;  %v6658_v31 = vunpack.i.h.bf16 %v8202_v50  ;;  %v6657_v14 = vunpack.i.l.bf16 %v8202_v50  ;;  %v6950_v32 = vunpack.i.h.bf16 %v8446_v40 }
 0x1a2   : > { %v8537_v27 = vpop.permute.xlu0 %7025  ;;  %v3291_v33 = vadd.f32 %v3163_v39, %v2522_v22  ;;  %v8583_v38 = vmul.f32 %v6713_v46, %v8394_v36  ;;  %v1771_v6 = vmul.f32 %v6673_v52, %v8394_v36  ;;  %v1770_v39 = vmul.f32 %v6672_v59, %v8394_v36 }
 0x1a3   : > { %11484 = vst [vmem:[#allocation73_spill] sm:$0xff] %v8537_v27  ;;  %v3422_v22 = vadd.f32 %v8411_v37, %v3290_v1  ;;  %v6956_v46 = vunpack.i.h.bf16 %v8400_v54  ;;  %v2396_v52 = vmul.f32 %v6950_v32, %v8396_v23  ;;  %v6955_v59 = vunpack.i.l.bf16 %v8400_v54 }
 0x1a4   : > { %7387 = vset.pattern.permute.xlu0 %v11474_v49  ;;  %7175 = vset.pattern.permute.xlu2 %v11474_v49  ;;  %11488 = vst [vmem:[#allocation77_spill] sm:$0xff] %v8583_v38  ;;  %v3423_v42 = vadd.f32 %v8411_v37, %v3291_v33  ;;  %v1765_v33 = vmul.f32 %v6658_v31, %v8394_v36  ;;  %v7012_v32 = vunpack.i.h.bf16 %v8476_v43  ;;  %v6727_v54 = vunpack.i.l.bf16 %v8214_v53 }
 0x1a5   : > { %7169 = vset.pattern.permute.xlu1 %v11449_v25  ;;  %7389 = vperm.xlu0 %7387, %v8136_v29   ;;  %v6949_v29 = vunpack.i.l.bf16 %v8446_v40  ;;  %v8592_v40 = vmul.f32 %v6712_v28, %v8394_v36  ;;  %v11490_v28 = vld [vmem:[#allocation30_spill] sm:$0xff]  ;;  %v3165_v31 = vmul.f32 %v6956_v46, %v8390_v11  ;;  %v3164_v38 = vmul.f32 %v6955_v59, %v8390_v11 }
 0x1a6   : > { %6064 = vmatmul.msk.bf16.gmra.mxu0 %vm3772_vm0, %v3674_v35  ;;  %7177 = vperm.xlu2 %7175, %v8058_v58   ;;  %v8633_v46 = vmul.f32 %v6727_v54, %v8394_v36 }
 0x1a7   : > { %7171 = vperm.xlu1 %7169, %v8058_v58   ;;  %11489 = vst [vmem:[#allocation78_spill] sm:$0xff] %v8592_v40 }
 0x1a9   : > { %v8572_v5 = vpop.permute.xlu1 %6986 }
 0x1aa   : > { %v7038_v35 = vpop.permute.xlu2 %7037 }
 0x1ab   : > { %v7040_v51 = vunpack.i.h.bf16 %v7038_v35  ;;  %v7039_v27 = vunpack.i.l.bf16 %v7038_v35  ;;  %v8580_v58 = vpop.permute.xlu0 %7053  ;;  %v8595_v35 = vmul.f32 %v6663_v44, %v8394_v36  ;;  %v8609_v44 = vmul.f32 %v6662_v20, %v8394_v36 }
 0x1ac   : > { %11487 = vst [vmem:[#allocation76_spill] sm:$0xff] %v8580_v58  ;;  %v7011_v58 = vunpack.i.l.bf16 %v8476_v43  ;;  %v6678_v20 = vunpack.i.h.bf16 %v8216_v15  ;;  %v2524_v43 = vadd.f32 %v2396_v52, %v8483_v17  ;;  %v6677_v17 = vunpack.i.l.bf16 %v8216_v15 }
 0x1ad   : > { %v2412_v24 = vmul.f32 %v7040_v51, %v8396_v23  ;;  %v2411_v50 = vmul.f32 %v7039_v27, %v8396_v23  ;;  %7415 = vset.pattern.permute.xlu0 %v11449_v25  ;;  %v2395_v27 = vmul.f32 %v6949_v29, %v8396_v23  ;;  %v6728_v29 = vunpack.i.h.bf16 %v8214_v53 }
 0x1ae   : > { %7187 = vperm.xlu2 %7175, %v8056_v57   ;;  %7417 = vperm.xlu0 %7415, %v11490_v28   ;;  %v3175_v53 = vmul.f32 %v7012_v32, %v8390_v11  ;;  %v8639_v32 = vmul.f32 %v6678_v20, %v8394_v36  ;;  %v8647_v15 = vmul.f32 %v6677_v17, %v8394_v36 }
 0x1af   : > { %v8602_v51 = vadd.f32 %v2411_v50, %v1770_v39  ;;  %v8604_v1 = vadd.f32 %v2412_v24, %v1771_v6  ;;  %7182 = vperm.xlu1 %7169, %v8056_v57   ;;  %v3550_v39 = vmax.f32 %v3422_v22, 0.0  ;;  %v3551_v24 = vmax.f32 %v3423_v42, 0.0 }
 0x1b0   : > { %v1764_v50 = vmul.f32 %v6657_v14, %v8394_v36  ;;  %v2523_v57 = vadd.f32 %v2395_v27, %v8486_v45  ;;  %v3174_v22 = vmul.f32 %v7011_v58, %v8390_v11 }
 0x1b1   : > { %v3675_v45 = vpack.c.bf16 %v3551_v24, %v3550_v39  ;;  %v6961_v39 = vunpack.i.h.bf16 %v8468_v8 }
 0x1b2   : > { %v7004_v6 = vpop.permute.xlu1 %7003  ;;  %v8623_v0 = vpop.permute.xlu2 %7047  ;;  %v3292_v58 = vadd.f32 %v3164_v38, %v2523_v57  ;;  %v6960_v38 = vunpack.i.l.bf16 %v8468_v8  ;;  %v6966_v57 = vunpack.i.h.bf16 %v8419_v13 }
 0x1b3   : > { %v7006_v28 = vunpack.i.h.bf16 %v7004_v6  ;;  %v7005_v40 = vunpack.i.l.bf16 %v7004_v6  ;;  %11491 = vst [vmem:[#allocation79_spill] sm:$0xff] %v8623_v0  ;;  %v8630_v6 = vmul.f32 %v6728_v29, %v8394_v36  ;;  %v7021_v29 = vunpack.i.l.bf16 %v8529_v48 }
 0x1b4   : > { %v8636_v52 = vpop.permute.xlu0 %7081 }
 0x1b5   : > { %v2406_v14 = vmul.f32 %v7006_v28, %v8396_v23  ;;  %v2405_v42 = vmul.f32 %v7005_v40, %v8396_v23  ;;  %11492 = vst [vmem:[#allocation80_spill] sm:$0xff] %v8636_v52  ;;  %v3293_v40 = vadd.f32 %v3165_v31, %v2524_v43  ;;  %v7022_v28 = vunpack.i.h.bf16 %v8529_v48 }
 0x1b6   : > { %6065 = vmatmul.msk.bf16.gmra.mxu0 %vm3772_vm0, %v3675_v45  ;;  %7203 = vset.pattern.permute.xlu2 %v11449_v25  ;;  %v3176_v17 = vmul.f32 %v7021_v29, %v8390_v11  ;;  %v6693_v29 = vunpack.i.h.bf16 %v8229_v4 }
 0x1b7   : > { %v2533_v59 = vadd.f32 %v2405_v42, %v1764_v50  ;;  %v2534_v27 = vadd.f32 %v2406_v14, %v1765_v33  ;;  %7197 = vset.pattern.permute.xlu1 %v11474_v49  ;;  %v6743_v33 = vunpack.i.h.bf16 %v8227_v63  ;;  %7443 = vset.pattern.permute.xlu0 %v11474_v49  ;;  %v11493_v50 = vld [vmem:[#allocation7_spill] sm:$0xff]  ;;  %v3424_v14 = vadd.f32 %v8411_v37, %v3292_v58 }
 0x1b8   : > { %7205 = vperm.xlu2 %7203, %v11493_v50   ;;  %7199 = vperm.xlu1 %7197, %v8054_v56   ;;  %v3425_v42 = vadd.f32 %v8411_v37, %v3293_v40  ;;  %v3177_v56 = vmul.f32 %v7022_v28, %v8390_v11  ;;  %v6742_v28 = vunpack.i.l.bf16 %v8227_v63 }
 0x1b9   : > { %v3302_v54 = vadd.f32 %v3174_v22, %v2533_v59  ;;  %v3303_v0 = vadd.f32 %v3175_v53, %v2534_v27  ;;  %v6965_v53 = vunpack.i.l.bf16 %v8419_v13  ;;  %v11494_v22 = vld [vmem:[#allocation29_spill] sm:$0xff]  ;;  %v2398_v59 = vmul.f32 %v6961_v39, %v8396_v23 }
 0x1ba   : > { %v7015_v24 = vpop.permute.xlu1 %7014  ;;  %7445 = vperm.xlu0 %7443, %v11494_v22   ;;  %v2397_v13 = vmul.f32 %v6960_v38, %v8396_v23  ;;  %v3167_v39 = vmul.f32 %v6966_v57, %v8390_v11 }
 0x1bb   : > { %v7017_v48 = vunpack.i.h.bf16 %v7015_v24  ;;  %v7016_v20 = vunpack.i.l.bf16 %v7015_v24  ;;  %v3434_v31 = vadd.f32 %v8411_v37, %v3302_v54  ;;  %v3435_v43 = vadd.f32 %v8411_v37, %v3303_v0  ;;  %v8660_v8 = vpop.permute.xlu2 %7065 }
 0x1bc   : > { %v3166_v22 = vmul.f32 %v6965_v53, %v8390_v11  ;;  %v8693_v53 = vmul.f32 %v6742_v28, %v8394_v36 }
 0x1bd   : > { %v2408_v45 = vmul.f32 %v7017_v48, %v8396_v23  ;;  %v2407_v0 = vmul.f32 %v7016_v20, %v8396_v23  ;;  %v8670_v27 = vpop.permute.xlu0 %7109  ;;  %v3562_v54 = vmax.f32 %v3434_v31, 0.0  ;;  %v3563_v24 = vmax.f32 %v3435_v43, 0.0 }
 0x1be   : > { %v6692_v48 = vunpack.i.l.bf16 %v8229_v4  ;;  %v2526_v31 = vadd.f32 %v2398_v59, %v8492_v7  ;;  %v3552_v43 = vmax.f32 %v3424_v14, 0.0  ;;  %v6688_v7 = vunpack.i.h.bf16 %v8231_v21 }
 0x1bf   : > { %v2536_v58 = vadd.f32 %v2408_v45, %v8595_v35  ;;  %v2535_v40 = vadd.f32 %v2407_v0, %v8609_v44  ;;  %v8677_v52 = vpack.c.bf16 %v3563_v24, %v3562_v54  ;;  %v3553_v35 = vmax.f32 %v3425_v42, 0.0  ;;  %v11495_v42 = vld [vmem:[#allocation23_spill] sm:$0xff] }
 0x1c0   : > { %v2525_v44 = vadd.f32 %v2397_v13, %v8495_v10  ;;  %7215 = vperm.xlu2 %7203, %v8068_v12   ;;  %7210 = vperm.xlu1 %7197, %v11493_v50   ;;  %v6687_v10 = vunpack.i.l.bf16 %v8231_v21  ;;  %v6718_v50 = vunpack.i.h.bf16 %v8252_v19  ;;  %v6971_v14 = vunpack.i.l.bf16 %v8449_v60 }
 0x1c1   : > { %v3305_v20 = vadd.f32 %v3177_v56, %v2536_v58  ;;  %v3304_v38 = vadd.f32 %v3176_v17, %v2535_v40  ;;  %v8690_v56 = vmul.f32 %v6743_v33, %v8394_v36  ;;  %v8704_v45 = vmul.f32 %v6693_v29, %v8394_v36 }
 0x1c2   : > { %7471 = vset.pattern.permute.xlu0 %v11449_v25  ;;  %v8707_v0 = vmul.f32 %v6692_v48, %v8394_v36  ;;  %v6717_v21 = vunpack.i.l.bf16 %v8252_v19  ;;  %v3676_v59 = vpack.c.bf16 %v3553_v35, %v3552_v43  ;;  %v3295_v13 = vadd.f32 %v3167_v39, %v2526_v31 }
 0x1c3   : > { %v8685_v63 = vpop.permute.xlu1 %7031  ;;  %v3436_v4 = vadd.f32 %v8411_v37, %v3304_v38  ;;  %v3437_v57 = vadd.f32 %v8411_v37, %v3305_v20  ;;  %v8698_v12 = vpop.permute.xlu2 %7075  ;;  %7473 = vperm.xlu0 %7471, %v11495_v42   ;;  %11496 = vst [vmem:[#allocation7_spill] sm:$0xff] %v8704_v45  ;;  %v3294_v54 = vadd.f32 %v3166_v22, %v2525_v44  ;;  %v6977_v24 = vunpack.i.l.bf16 %v8525_v34 }
 0x1c4   : > { %11497 = vst [vmem:[#allocation81_spill] sm:$0xff] %v8707_v0  ;;  %v8715_v29 = vmul.f32 %v6688_v7, %v8394_v36  ;;  %v1789_v48 = vmul.f32 %v6718_v50, %v8394_v36  ;;  %v6972_v38 = vunpack.i.h.bf16 %v8449_v60  ;;  %v2399_v19 = vmul.f32 %v6971_v14, %v8396_v23  ;;  %v11498_v50 = vld [vmem:[#allocation6_spill] sm:$0xff] }
 0x1c5   : > { %v3564_v17 = vmax.f32 %v3436_v4, 0.0  ;;  %v3565_v33 = vmax.f32 %v3437_v57, 0.0  ;;  %v1788_v22 = vmul.f32 %v6717_v21, %v8394_v36  ;;  %v6978_v43 = vunpack.i.h.bf16 %v8525_v34 }
 0x1c6   : > { %v7138_v58 = vpop.permute.xlu0 %7137  ;;  %6066 = vmatmul.msk.bf16.gmra.mxu0 %vm3772_vm0, %v3676_v59  ;;  %v3168_v35 = vmul.f32 %v6977_v24, %v8390_v11  ;;  %v3426_v4 = vadd.f32 %v8411_v37, %v3294_v54  ;;  %v3427_v60 = vadd.f32 %v8411_v37, %v3295_v13  ;;  %v2400_v21 = vmul.f32 %v6972_v38, %v8396_v23 }
 0x1c7   : > { %v8711_v40 = vpack.c.bf16 %v3565_v33, %v3564_v17  ;;  %v7140_v28 = vunpack.i.h.bf16 %v7138_v58  ;;  %v7139_v20 = vunpack.i.l.bf16 %v7138_v58  ;;  %v8736_v17 = vmul.f32 %v6687_v10, %v8394_v36  ;;  %v11499_v58 = vld [vmem:[#allocation22_spill] sm:$0xff] }
 0x1c8   : > { %7231 = vset.pattern.permute.xlu2 %v11474_v49  ;;  %7225 = vset.pattern.permute.xlu1 %v11449_v25  ;;  %v6758_v33 = vunpack.i.h.bf16 %v8237_v30  ;;  %v2527_v59 = vadd.f32 %v2399_v19, %v8563_v26  ;;  %v6703_v54 = vunpack.i.h.bf16 %v8243_v16  ;;  %v6702_v24 = vunpack.i.l.bf16 %v8243_v16  ;;  %v11501_v16 = vld [vmem:[#allocation35_spill] sm:$0xff] }
 0x1c9   : > { %v2430_v39 = vmul.f32 %v7140_v28, %v8396_v23  ;;  %v2429_v31 = vmul.f32 %v7139_v20, %v8396_v23  ;;  %7233 = vperm.xlu2 %7231, %v11498_v50   ;;  %7227 = vperm.xlu1 %7225, %v11498_v50   ;;  %v3169_v20 = vmul.f32 %v6978_v43, %v8390_v11  ;;  %v3554_v38 = vmax.f32 %v3426_v4, 0.0 }
 0x1ca   : > { %v2528_v50 = vadd.f32 %v2400_v21, %v8558_v9  ;;  %v1783_v43 = vmul.f32 %v6703_v54, %v8394_v36  ;;  %v6215_v54 = vld [vmem:[%s11299_s5 + $0x74] sm:$0xf0]  ;;  %v6983_v0 = vunpack.i.l.bf16 %v8436_v2 }
 0x1cb   : > { %v7043_v44 = vpop.permute.xlu1 %7042  ;;  %v8729_v57 = vadd.f32 %v2429_v31, %v1788_v22  ;;  %v8731_v7 = vadd.f32 %v2430_v39, %v1789_v48  ;;  %7499 = vset.pattern.permute.xlu0 %v11474_v49  ;;  %v3296_v48 = vadd.f32 %v3168_v35, %v2527_v59  ;;  %v3555_v22 = vmax.f32 %v3427_v60, 0.0 }
 0x1cc   : > { %v7045_v34 = vunpack.i.h.bf16 %v7043_v44  ;;  %v7044_v14 = vunpack.i.l.bf16 %v7043_v44  ;;  %v8742_v13 = vpop.permute.xlu2 %7093  ;;  %7501 = vperm.xlu0 %7499, %v11499_v58   ;;  %v8755_v31 = vmul.f32 %v6758_v33, %v8394_v36  ;;  %v6708_v44 = vunpack.i.h.bf16 %v11501_v16 }
 0x1cd   : > { %v7067_v35 = vunpack.i.l.bf16 %v8660_v8  ;;  %v3297_v60 = vadd.f32 %v3169_v20, %v2528_v50  ;;  %v8768_v21 = vadd.f32 %v8411_v37, %v3296_v48  ;;  %v6186_v48 = vld [vmem:[%s11299_s5 + $0x78] sm:$0xf0]  ;;  %v7078_v58 = vunpack.i.h.bf16 %v8698_v12 }
 0x1ce   : > { %v3181_v28 = vmul.f32 %v7045_v34, %v8390_v11  ;;  %v3180_v10 = vmul.f32 %v7044_v14, %v8390_v11  ;;  %11500 = vst [vmem:[#allocation6_spill] sm:$0xff] %v8755_v31  ;;  %v7068_v34 = vunpack.i.h.bf16 %v8660_v8  ;;  %v3677_v14 = vpack.c.bf16 %v3555_v22, %v3554_v38  ;;  %v6184_v8 = vld [vmem:[%s11299_s5 + $0x70] sm:$0xf] }
 0x1cf   : > { %v8752_v39 = vpop.permute.xlu0 %7165  ;;  %v6185_v22 = vor.u32 %v6215_v54, %v6184_v8 }
 0x1d0   : > { %v3308_v26 = vadd.f32 %v3180_v10, %v8602_v51  ;;  %v3309_v19 = vadd.f32 %v3181_v28, %v8604_v1  ;;  %v1782_v1 = vmul.f32 %v6702_v24, %v8394_v36  ;;  %v11502_v28 = vld [vmem:[#allocation10_spill] sm:$0xff]  ;;  %v3185_v24 = vmul.f32 %v7068_v34, %v8390_v11 }
 0x1d1   : > { %7243 = vperm.xlu2 %7231, %v11502_v28   ;;  %7238 = vperm.xlu1 %7225, %v11502_v28   ;;  %v6984_v34 = vunpack.i.h.bf16 %v8436_v2  ;;  %v11504_v28 = vld [vmem:[#allocation31_spill] sm:$0xff]  ;;  %v6212_v2 = vld [vmem:[%s11299_s5 + $0x64] sm:$0xf] }
 0x1d2   : > { %v3440_v4 = vadd.f32 %v8411_v37, %v3308_v26  ;;  %v3441_v51 = vadd.f32 %v8411_v37, %v3309_v19  ;;  %v6214_v26 = vld [vmem:[%s11299_s5 + $0x74] sm:$0xf]  ;;  %v3184_v19 = vmul.f32 %v7067_v35, %v8390_v11  ;;  %4588 = vmatpush.bf16.msra.mxu1 %v6185_v22  ;;  %6539 = vmatpush.bf16.msrb.mxu3 %v6185_v22 }
 0x1d3   : > { %v2402_v22 = vmul.f32 %v6984_v34, %v8396_v23  ;;  %v6211_v34 = vld [vmem:[%s11299_s5 + $0x54] sm:$0xf0] }
 0x1d4   : > { %v3568_v33 = vmax.f32 %v3440_v4, 0.0  ;;  %v3569_v59 = vmax.f32 %v3441_v51, 0.0  ;;  %v7060_v9 = vpop.permute.xlu1 %7059  ;;  %v7104_v38 = vpop.permute.xlu2 %7103  ;;  %7527 = vset.pattern.permute.xlu0 %v11449_v25  ;;  %v8785_v51 = vor.u32 %v6214_v26, %v6186_v48  ;;  %v6178_v26 = vld [vmem:[%s11299_s5 + $0x68] sm:$0xf0]  ;;  %v7112_v48 = vunpack.i.h.bf16 %v8670_v27 }
 0x1d5   : > { %v7062_v10 = vunpack.i.h.bf16 %v7060_v9  ;;  %v7061_v20 = vunpack.i.l.bf16 %v7060_v9  ;;  %v7106_v50 = vunpack.i.h.bf16 %v7104_v38  ;;  %v7105_v4 = vunpack.i.l.bf16 %v7104_v38  ;;  %7529 = vperm.xlu0 %7527, %v11504_v28   ;;  %v6176_v38 = vld [vmem:[%s11299_s5 + $0x60] sm:$0xf] }
 0x1d6   : > { %11503 = vst [vmem:[#allocation35_spill] sm:$0xff] %v8785_v51  ;;  %v8791_v54 = vpack.c.bf16 %v3569_v59, %v3568_v33  ;;  %6067 = vmatmul.msk.bf16.gmra.mxu0 %vm3772_vm0, %v3677_v14  ;;  %4917 = vmatpush.bf16.msra.mxu2 %v8785_v51  ;;  %v7111_v33 = vunpack.i.l.bf16 %v8670_v27  ;;  %v8817_v28 = vadd.f32 %v8411_v37, %v3297_v60  ;;  %v6989_v60 = vunpack.i.h.bf16 %v8572_v5 }
 0x1d7   : > { %v2416_v9 = vmul.f32 %v7062_v10, %v8396_v23  ;;  %v2415_v8 = vmul.f32 %v7061_v20, %v8396_v23  ;;  %v2424_v35 = vmul.f32 %v7106_v50, %v8396_v23  ;;  %v2423_v45 = vmul.f32 %v7105_v4, %v8396_v23  ;;  %v6213_v10 = vld [vmem:[%s11299_s5 + $0x64] sm:$0xf0] }
 0x1d8   : > { %11505 = vst [vmem:[#allocation10_spill] sm:$0xff] %v8791_v54  ;;  %v6177_v20 = vor.u32 %v6213_v10, %v6176_v38  ;;  %v8814_v51 = vpop.permute.xlu0 %7193  ;;  %v8827_v27 = vmul.f32 %v6983_v0, %v8396_v23  ;;  %v11508_v0 = vld [vmem:[#allocation9_spill] sm:$0xff]  ;;  %v6170_v38 = vld [vmem:[%s11299_s5 + $0x58] sm:$0xf0] }
 0x1d9   : > { %v2544_v59 = vadd.f32 %v2416_v9, %v8518_v62  ;;  %v2543_v14 = vadd.f32 %v2415_v8, %v8521_v3  ;;  %v2551_v50 = vadd.f32 %v2423_v45, %v1782_v1  ;;  %v2552_v4 = vadd.f32 %v2424_v35, %v1783_v43  ;;  %7259 = vset.pattern.permute.xlu2 %v11449_v25  ;;  %v6168_v1 = vld [vmem:[%s11299_s5 + $0x50] sm:$0xf]  ;;  %v6210_v35 = vld [vmem:[%s11299_s5 + $0x54] sm:$0xf] }
 0x1da   : > { %4589 = vmatpush.bf16.msra.mxu1 %v6177_v20  ;;  %v8820_v3 = vor.u32 %v6212_v2, %v6178_v26  ;;  %v8823_v8 = vmul.f32 %v6708_v44, %v8394_v36  ;;  %v7077_v45 = vunpack.i.l.bf16 %v8698_v12  ;;  %7253 = vset.pattern.permute.xlu1 %v11474_v49  ;;  %v6988_v44 = vunpack.i.l.bf16 %v8572_v5 }
 0x1db   : > { %v3313_v62 = vadd.f32 %v3185_v24, %v2544_v59  ;;  %v3312_v9 = vadd.f32 %v3184_v19, %v2543_v14  ;;  %v3192_v24 = vmul.f32 %v7111_v33, %v8390_v11  ;;  %v11507_v19 = vld [vmem:[#allocation8_spill] sm:$0xff]  ;;  %7255 = vperm.xlu1 %7253, %v11508_v0   ;;  %v3193_v5 = vmul.f32 %v7112_v48, %v8390_v11 }
 0x1dc   : > { %11506 = vst [vmem:[#allocation82_spill] sm:$0xff] %v8820_v3  ;;  %v7071_v43 = vpop.permute.xlu1 %7070  ;;  %7261 = vperm.xlu2 %7259, %v11507_v19   ;;  %v3556_v33 = vmax.f32 %v8768_v21, 0.0  ;;  %v3557_v59 = vmax.f32 %v8817_v28, 0.0  ;;  %4918 = vmatpush.bf16.msra.mxu2 %v8820_v3  ;;  %v3187_v14 = vmul.f32 %v7078_v58, %v8390_v11  ;;  %v3186_v48 = vmul.f32 %v7077_v45, %v8390_v11  ;;  %v6160_v21 = vld [vmem:[%s11299_s5 + $0x40] sm:$0xf] }
 0x1dd   : > { %v7073_v12 = vunpack.i.h.bf16 %v7071_v43  ;;  %v7072_v10 = vunpack.i.l.bf16 %v7071_v43  ;;  %v8850_v2 = vpop.permute.xlu2 %7121  ;;  %6540 = vmatpush.bf16.msrb.mxu3 %v6177_v20  ;;  %v3445_v26 = vadd.f32 %v8411_v37, %v3313_v62  ;;  %v3444_v0 = vadd.f32 %v8411_v37, %v3312_v9  ;;  %v6209_v58 = vld [vmem:[%s11299_s5 + $0x44] sm:$0xf0]  ;;  %v6208_v28 = vld [vmem:[%s11299_s5 + $0x44] sm:$0xf]  ;;  %v6162_v9 = vld [vmem:[%s11299_s5 + $0x48] sm:$0xf0] }
 0x1de   : > { %v6169_v54 = vor.u32 %v6211_v34, %v6168_v1  ;;  %v8861_v31 = vor.u32 %v6210_v35, %v6170_v38  ;;  %v3320_v20 = vadd.f32 %v3192_v24, %v2551_v50  ;;  %v8880_v34 = vor.u32 %v6208_v28, %v6162_v9  ;;  %v6146_v9 = vld [vmem:[%s11299_s5 + $0x28] sm:$0xf0] }
 0x1df   : > { %v2418_v42 = vmul.f32 %v7073_v12, %v8396_v23  ;;  %v2417_v43 = vmul.f32 %v7072_v10, %v8396_v23  ;;  %v6161_v12 = vor.u32 %v6209_v58, %v6160_v21  ;;  %v3321_v35 = vadd.f32 %v3193_v5, %v2552_v4  ;;  %v6207_v21 = vld [vmem:[%s11299_s5 + $0x34] sm:$0xf0]  ;;  %v6206_v4 = vld [vmem:[%s11299_s5 + $0x34] sm:$0xf]  ;;  %v6154_v5 = vld [vmem:[%s11299_s5 + $0x38] sm:$0xf0] }
 0x1e0   : > { %11509 = vst [vmem:[#allocation8_spill] sm:$0xff] %v8861_v31  ;;  %4590 = vmatpush.bf16.msra.mxu1 %v6169_v54  ;;  %4919 = vmatpush.bf16.msra.mxu2 %v8861_v31  ;;  %v3572_v10 = vmax.f32 %v3444_v0, 0.0  ;;  %v3573_v50 = vmax.f32 %v3445_v26, 0.0  ;;  %v3171_v24 = vmul.f32 %v6989_v60, %v8390_v11  ;;  %v3678_v60 = vpack.c.bf16 %v3557_v59, %v3556_v33 }
 0x1e1   : > { %v2546_v62 = vadd.f32 %v2418_v42, %v8715_v29  ;;  %v2545_v45 = vadd.f32 %v2417_v43, %v8736_v17  ;;  %v8877_v1 = vpop.permute.xlu0 %7221  ;;  %11510 = vst [vmem:[#allocation9_spill] sm:$0xff] %v8880_v34  ;;  %6541 = vmatpush.bf16.msrb.mxu3 %v6169_v54  ;;  %v2530_v42 = vadd.f32 %v2402_v22, %v8552_v61  ;;  %v6993_v29 = vunpack.i.l.bf16 %v8452_v47  ;;  %v6152_v43 = vld [vmem:[%s11299_s5 + $0x30] sm:$0xf] }
 0x1e2   : > { %v3170_v54 = vmul.f32 %v6988_v44, %v8390_v11  ;;  %v3452_v61 = vadd.f32 %v8411_v37, %v3320_v20  ;;  %v6994_v33 = vunpack.i.h.bf16 %v8452_v47  ;;  %v3453_v59 = vadd.f32 %v8411_v37, %v3321_v35  ;;  %v6144_v20 = vld [vmem:[%s11299_s5 + $0x20] sm:$0xf]  ;;  %v6205_v47 = vld [vmem:[%s11299_s5 + $0x24] sm:$0xf0] }
 0x1e3   : > { %v3315_v38 = vadd.f32 %v3187_v14, %v2546_v62  ;;  %v3314_v17 = vadd.f32 %v3186_v48, %v2545_v45  ;;  %7266 = vperm.xlu1 %7253, %v11507_v19   ;;  %v6707_v14 = vunpack.i.l.bf16 %v11501_v16  ;;  %v2529_v19 = vadd.f32 %v8827_v27, %v8555_v41 }
 0x1e4   : > { %7271 = vperm.xlu2 %7259, %v8094_v55   ;;  %4591 = vmatpush.bf16.msra.mxu1 %v6161_v12  ;;  %v6153_v55 = vor.u32 %v6207_v21, %v6152_v43  ;;  %v8913_v48 = vor.u32 %v6206_v4, %v6154_v5  ;;  %v2403_v16 = vmul.f32 %v6993_v29, %v8396_v23  ;;  %v6999_v58 = vunpack.i.l.bf16 %v8474_v18  ;;  %v6136_v4 = vld [vmem:[%s11299_s5 + $0x10] sm:$0xf]  ;;  %v6202_v5 = vld [vmem:[%s11299_s5 + $0x14] sm:$0xf] }
 0x1e5   : > { %v8898_v22 = vpop.permute.xlu1 %7087  ;;  %v3446_v26 = vadd.f32 %v8411_v37, %v3314_v17  ;;  %v3447_v0 = vadd.f32 %v8411_v37, %v3315_v38  ;;  %v8906_v44 = vpop.permute.xlu2 %7131  ;;  %4920 = vmatpush.bf16.msra.mxu2 %v8880_v34  ;;  %6542 = vmatpush.bf16.msrb.mxu3 %v6161_v12  ;;  %v7096_v28 = vunpack.i.h.bf16 %v8742_v13  ;;  %v6204_v37 = vld [vmem:[%s11299_s5 + $0x24] sm:$0xf]  ;;  %v8928_v41 = vpack.c.bf16 %v3573_v50, %v3572_v10 }
 0x1e6   : > { %11511 = vst [vmem:[#allocation83_spill] sm:$0xff] %v8913_v48  ;;  %6068 = vmatmul.msk.bf16.gmra.mxu0 %vm3772_vm0, %v3678_v60  ;;  %v3299_v27 = vadd.f32 %v3171_v24, %v2530_v42  ;;  %v7095_v62 = vunpack.i.l.bf16 %v8742_v13  ;;  %v3580_v12 = vmax.f32 %v3452_v61, 0.0  ;;  %v3298_v35 = vadd.f32 %v3170_v54, %v2529_v19  ;;  %v6203_v54 = vld [vmem:[%s11299_s5 + $0x14] sm:$0xf0] }
 0x1e7   : > { %v3574_v45 = vmax.f32 %v3446_v26, 0.0  ;;  %v3575_v38 = vmax.f32 %v3447_v0, 0.0  ;;  %v8936_v29 = vmul.f32 %v6707_v14, %v8394_v36  ;;  %v6145_v17 = vor.u32 %v6205_v47, %v6144_v20  ;;  %v6138_v14 = vld [vmem:[%s11299_s5 + $0x18] sm:$0xf0] }
 0x1e8   : > { %4592 = vmatpush.bf16.msra.mxu1 %v6153_v55  ;;  %v8938_v10 = vor.u32 %v6204_v37, %v6146_v9  ;;  %v3581_v50 = vmax.f32 %v3453_v59, 0.0  ;;  %v2404_v13 = vmul.f32 %v6994_v33, %v8396_v23  ;;  %v7000_v42 = vunpack.i.h.bf16 %v8474_v18  ;;  %v11514_v33 = vld [vmem:[#allocation70_spill] sm:$0xff]  ;;  %v11516_v37 = vld [vmem:[#allocation52_spill] sm:$0xff] }
 0x1e9   : > { %4921 = vmatpush.bf16.msra.mxu2 %v8913_v48  ;;  %6543 = vmatpush.bf16.msrb.mxu3 %v6153_v55  ;;  %v3172_v24 = vmul.f32 %v6999_v58, %v8390_v11  ;;  %v2422_v43 = vmul.f32 %v7096_v28, %v8396_v23  ;;  %v2421_v60 = vmul.f32 %v7095_v62, %v8396_v23  ;;  %v11513_v55 = vld [vmem:[#allocation36_spill] sm:$0xff]  ;;  %v6793_v62 = vunpack.i.h.bf16 %v11516_v37 }
 0x1ea   : > { %11512 = vst [vmem:[#allocation84_spill] sm:$0xff] %v8938_v10  ;;  %v8944_v21 = vpop.permute.xlu0 %7249  ;;  %v8962_v26 = vpack.c.bf16 %v3575_v38, %v3574_v45  ;;  %v8964_v0 = vpack.c.bf16 %v3581_v50, %v3580_v12  ;;  %v2531_v59 = vadd.f32 %v2403_v16, %v11514_v33  ;;  %v11515_v58 = vld [vmem:[#allocation12_spill] sm:$0xff]  ;;  %v6137_v16 = vor.u32 %v6203_v54, %v6136_v4  ;;  %v11517_v12 = vld [vmem:[#allocation69_spill] sm:$0xff]  ;;  %v11520_v54 = vld [vmem:[#allocation75_spill] sm:$0xff] }
 0x1eb   : > { %7281 = vset.pattern.permute.xlu1 %v11449_v25  ;;  %v8973_v28 = vld [vmem:[%s11296_s2] ss:$0 sm:$0xff]  ;;  %v2532_v38 = vadd.f32 %v2404_v13, %v11517_v12  ;;  %v3173_v50 = vmul.f32 %v7000_v42, %v8390_v11  ;;  %v8983_v19 = vor.u32 %v6202_v5, %v6138_v14  ;;  %v2549_v13 = vadd.f32 %v2421_v60, %v11520_v54  ;;  %v6200_v5 = vld [vmem:[%s11299_s5 + $0x4] sm:$0xf]  ;;  %v6130_v14 = vld [vmem:[%s11299_s5 + $0x8] sm:$0xf0] }
 0x1ec   : > { %7287 = vset.pattern.permute.xlu2 %v11474_v49  ;;  %7283 = vperm.xlu1 %7281, %v11515_v58   ;;  %v3430_v20 = vadd.f32 %v8973_v28, %v3298_v35  ;;  %v3431_v47 = vadd.f32 %v8973_v28, %v3299_v27  ;;  %v3300_v33 = vadd.f32 %v3172_v24, %v2531_v59  ;;  %v6128_v27 = vld [vmem:[%s11299_s5] sm:$0xf]  ;;  %v6201_v35 = vld [vmem:[%s11299_s5 + $0x4] sm:$0xf0] }
 0x1ed   : > { %v7099_v18 = vpop.permute.xlu1 %7098  ;;  %7289 = vperm.xlu2 %7287, %v11515_v58   ;;  %4593 = vmatpush.bf16.msra.mxu1 %v6145_v17  ;;  %11518 = vst [vmem:[#allocation36_spill] sm:$0xff] %v8983_v19  ;;  %v6129_v60 = vor.u32 %v6201_v35, %v6128_v27  ;;  %v11523_v27 = vld [vmem:[#allocation11_spill] sm:$0xff] }
 0x1ee   : > { %v7101_v9 = vunpack.i.h.bf16 %v7099_v18  ;;  %v7100_v45 = vunpack.i.l.bf16 %v7099_v18  ;;  %4922 = vmatpush.bf16.msra.mxu2 %v8938_v10  ;;  %v8981_v58 = vpop.permute.xlu2 %7149  ;;  %6544 = vmatpush.bf16.msrb.mxu3 %v6145_v17  ;;  %v11519_v18 = vld [vmem:[#allocation74_spill] sm:$0xff]  ;;  %v3558_v59 = vmax.f32 %v3430_v20, 0.0  ;;  %v3559_v12 = vmax.f32 %v3431_v47, 0.0  ;;  %v11522_v20 = vld [vmem:[#allocation37_spill] sm:$0xff] }
 0x1ef   : > { %v2550_v4 = vadd.f32 %v2422_v43, %v11519_v18  ;;  %v3301_v18 = vadd.f32 %v3173_v50, %v2532_v38  ;;  %v9007_v10 = vor.u32 %v6200_v5, %v6130_v14  ;;  %v6723_v47 = vunpack.i.h.bf16 %v11522_v20 }
 0x1f0   : > { %v3191_v42 = vmul.f32 %v7101_v9, %v8390_v11  ;;  %v3190_v24 = vmul.f32 %v7100_v45, %v8390_v11  ;;  %v7124_v9 = vunpack.i.h.bf16 %v8850_v2  ;;  %v7123_v45 = vunpack.i.l.bf16 %v8850_v2 }
 0x1f1   : > { %4594 = vmatpush.bf16.msra.mxu1 %v6137_v16  ;;  %11521 = vst [vmem:[#allocation70_spill] sm:$0xff] %v9007_v10  ;;  %v9011_v17 = vmul.f32 %v6793_v62, %v8394_v36  ;;  %v7168_v50 = vunpack.i.h.bf16 %v8752_v39  ;;  %v7167_v2 = vunpack.i.l.bf16 %v8752_v39  ;;  %v3679_v35 = vpack.c.bf16 %v3559_v12, %v3558_v59 }
 0x1f2   : > { %v3319_v61 = vadd.f32 %v3191_v42, %v2550_v4  ;;  %v3318_v43 = vadd.f32 %v3190_v24, %v2549_v13  ;;  %4923 = vmatpush.bf16.msra.mxu2 %v8983_v19  ;;  %6545 = vmatpush.bf16.msrb.mxu3 %v6137_v16  ;;  %v9020_v16 = vadd.f32 %v8973_v28, %v3300_v33 }
 0x1f3   : > { %v9004_v54 = vpop.permute.xlu0 %7277  ;;  %v3195_v14 = vmul.f32 %v7124_v9, %v8390_v11  ;;  %v3194_v39 = vmul.f32 %v7123_v45, %v8390_v11  ;;  %v9027_v59 = vadd.f32 %v8973_v28, %v3301_v18  ;;  %v3202_v9 = vmul.f32 %v7167_v2, %v8390_v11 }
 0x1f4   : > { %v3451_v4 = vadd.f32 %v8973_v28, %v3319_v61  ;;  %v3450_v38 = vadd.f32 %v8973_v28, %v3318_v43  ;;  %7294 = vperm.xlu1 %7281, %v11523_v27   ;;  %v6792_v61 = vunpack.i.l.bf16 %v11516_v37  ;;  %v3203_v37 = vmul.f32 %v7168_v50, %v8390_v11 }
 0x1f5   : > { %7299 = vperm.xlu2 %7287, %v11523_v27   ;;  %4595 = vmatpush.bf16.msra.mxu1 %v6129_v60 }
 0x1f6   : > { %v7116_v13 = vpop.permute.xlu1 %7115  ;;  %v3579_v42 = vmax.f32 %v3451_v4, 0.0  ;;  %v3578_v62 = vmax.f32 %v3450_v38, 0.0  ;;  %6069 = vmatmul.msk.bf16.gmra.mxu0 %vm3772_vm0, %v3679_v35  ;;  %v7160_v43 = vpop.permute.xlu2 %7159  ;;  %4924 = vmatpush.bf16.msra.mxu2 %v9007_v10 }
 0x1f7   : > { %v7118_v24 = vunpack.i.h.bf16 %v7116_v13  ;;  %v7117_v5 = vunpack.i.l.bf16 %v7116_v13  ;;  %v7162_v4 = vunpack.i.h.bf16 %v7160_v43  ;;  %v7161_v38 = vunpack.i.l.bf16 %v7160_v43  ;;  %6546 = vmatpush.bf16.msrb.mxu3 %v6129_v60 }
 0x1f8   : > { %v9034_v45 = vpack.c.bf16 %v3579_v42, %v3578_v62  ;;  %v7133_v60 = vunpack.i.l.bf16 %v8906_v44 }
 0x1f9   : > { %v2426_v33 = vmul.f32 %v7118_v24, %v8396_v23  ;;  %v2425_v12 = vmul.f32 %v7117_v5, %v8396_v23  ;;  %v2434_v35 = vmul.f32 %v7162_v4, %v8396_v23  ;;  %v2433_v13 = vmul.f32 %v7161_v38, %v8396_v23  ;;  %v11525_v4 = vld [vmem:[#allocation15_spill] sm:$0xff] }
 0x1fa   : > { %v1818_v24 = vmul.f32 %v6792_v61, %v8394_v36  ;;  %v7134_v5 = vunpack.i.h.bf16 %v8906_v44  ;;  %v3561_v61 = vmax.f32 %v9027_v59, 0.0  ;;  %v3196_v59 = vmul.f32 %v7133_v60, %v8390_v11  ;;  %v11526_v60 = vld [vmem:[#allocation77_spill] sm:$0xff] }
 0x1fb   : > { %v2554_v27 = vadd.f32 %v2426_v33, %v8823_v8  ;;  %v2553_v18 = vadd.f32 %v2425_v12, %v8936_v29  ;;  %v2562_v2 = vadd.f32 %v2434_v35, %v8630_v6  ;;  %v2561_v42 = vadd.f32 %v2433_v13, %v8633_v46  ;;  %v11524_v6 = vld [vmem:[#allocation14_spill] sm:$0xff] }
 0x1fc   : > { %v7306_v62 = vpop.permute.xlu0 %7305  ;;  %7309 = vset.pattern.permute.xlu1 %v11474_v49  ;;  %v3560_v33 = vmax.f32 %v9020_v16, 0.0  ;;  %v3197_v16 = vmul.f32 %v7134_v5, %v8390_v11  ;;  %v6722_v5 = vunpack.i.l.bf16 %v11522_v20 }
 0x1fd   : > { %v3323_v43 = vadd.f32 %v3195_v14, %v2554_v27  ;;  %v3322_v50 = vadd.f32 %v3194_v39, %v2553_v18  ;;  %7315 = vset.pattern.permute.xlu2 %v11449_v25  ;;  %v7308_v8 = vunpack.i.h.bf16 %v7306_v62  ;;  %v7307_v29 = vunpack.i.l.bf16 %v7306_v62  ;;  %7311 = vperm.xlu1 %7309, %v11525_v4  }
 0x1fe   : > { %v3330_v14 = vadd.f32 %v3202_v9, %v2561_v42  ;;  %v3331_v39 = vadd.f32 %v3203_v37, %v2562_v2  ;;  %7317 = vperm.xlu2 %7315, %v11524_v6   ;;  %v7127_v46 = vpop.permute.xlu1 %7126 }
 0x1ff   : > { %v3455_v12 = vadd.f32 %v8973_v28, %v3323_v43  ;;  %v3454_v44 = vadd.f32 %v8973_v28, %v3322_v50  ;;  %v2460_v38 = vmul.f32 %v7308_v8, %v8396_v23  ;;  %v2459_v27 = vmul.f32 %v7307_v29, %v8396_v23 }
 0x200   : > { %v7129_v18 = vunpack.i.h.bf16 %v7127_v46  ;;  %v7128_v35 = vunpack.i.l.bf16 %v7127_v46  ;;  %v3462_v13 = vadd.f32 %v8973_v28, %v3330_v14  ;;  %v3463_v9 = vadd.f32 %v8973_v28, %v3331_v39  ;;  %v9066_v42 = vpop.permute.xlu2 %7177  ;;  %v11527_v14 = vld [vmem:[#allocation78_spill] sm:$0xff] }
 0x201   : > { %v9059_v37 = vadd.f32 %v2459_v27, %v1818_v24  ;;  %v9062_v43 = vadd.f32 %v2460_v38, %v9011_v17  ;;  %v3974_v62 = vpop.f32.mrf.mxu0  ;;  %v3582_v8 = vmax.f32 %v3454_v44, 0.0  ;;  %v3583_v39 = vmax.f32 %v3455_v12, 0.0  ;;  %v9089_v12 = vld [vmem:[%s11298_s4] ss:$0 sm:$0xff] }
 0x202   : > { %v2428_v50 = vmul.f32 %v7129_v18, %v8396_v23  ;;  %v2427_v2 = vmul.f32 %v7128_v35, %v8396_v23  ;;  %v3590_v24 = vmax.f32 %v3462_v13, 0.0  ;;  %v11528_v17 = vunpack.i.l.bf16 %v8237_v30 }
 0x203   : > { %v11529_v38 = vunpack.i.h.bf16 %v11513_v55  ;;  %v11530_v18 = vunpack.i.l.bf16 %v11513_v55  ;;  %v3591_v35 = vmax.f32 %v3463_v9, 0.0  ;;  %v1790_v9 = vmul.f32 %v6722_v5, %v8394_v36 }
 0x204   : > { %v2556_v29 = vadd.f32 %v2428_v50, %v11526_v60  ;;  %v2555_v46 = vadd.f32 %v2427_v2, %v11527_v14  ;;  %v9074_v4 = vmul.f32 %v11528_v17, %v8394_v36  ;;  %v3680_v50 = vpack.c.bf16 %v3561_v61, %v3560_v33  ;;  %v11532_v14 = vld [vmem:[#allocation38_spill] sm:$0xff] }
 0x205   : > { %v9079_v27 = vmul.f32 %v11529_v38, %v8394_v36  ;;  %v9084_v44 = vmul.f32 %v11530_v18, %v8394_v36  ;;  %v9091_v2 = vpack.c.bf16 %v3583_v39, %v3582_v8  ;;  %v9096_v60 = vmul.f32 %v6723_v47, %v8394_v36  ;;  %v11533_v38 = vld [vmem:[#allocation13_spill] sm:$0xff]  ;;  %7322 = vperm.xlu1 %7309, %v11524_v6   ;;  %v11536_v47 = vld [vmem:[#allocation40_spill] sm:$0xff] }
 0x206   : > { %v3325_v13 = vadd.f32 %v3197_v16, %v2556_v29  ;;  %v3324_v30 = vadd.f32 %v3196_v59, %v2555_v46  ;;  %v6788_v55 = vunpack.i.h.bf16 %v11532_v14  ;;  %v6787_v17 = vunpack.i.l.bf16 %v11532_v14  ;;  %7327 = vperm.xlu2 %7315, %v11533_v38   ;;  %v11535_v16 = vld [vmem:[#allocation39_spill] sm:$0xff]  ;;  %6070 = vmatmul.msk.bf16.gmra.mxu0 %vm3772_vm0, %v3680_v50 }
 0x207   : > { %11531 = vst [vmem:[#allocation12_spill] sm:$0xff] %v9091_v2  ;;  %v9101_v18 = vpack.c.bf16 %v3591_v35, %v3590_v24  ;;  %v6738_v59 = vunpack.i.h.bf16 %v11535_v16  ;;  %v6737_v20 = vunpack.i.l.bf16 %v11535_v16  ;;  %v6733_v8 = vunpack.i.h.bf16 %v11536_v47  ;;  %v7144_v39 = vpop.permute.xlu1 %7143 }
 0x208   : > { %v3457_v33 = vadd.f32 %v8973_v28, %v3325_v13  ;;  %v3456_v61 = vadd.f32 %v8973_v28, %v3324_v30  ;;  %v6732_v29 = vunpack.i.l.bf16 %v11536_v47  ;;  %v3975_v46 = vadd.f32 %v9089_v12, %v3974_v62  ;;  %v9119_v50 = vpop.permute.xlu2 %7187 }
 0x209   : > { %11534 = vst [vmem:[#allocation52_spill] sm:$0xff] %v9101_v18  ;;  %v7146_v5 = vunpack.i.h.bf16 %v7144_v39  ;;  %v7145_v24 = vunpack.i.l.bf16 %v7144_v39  ;;  %v3976_v35 = vpop.f32.mrf.mxu0  ;;  %v9114_v30 = vmul.f32 %v6788_v55, %v8394_v36  ;;  %v9117_v6 = vmul.f32 %v6787_v17, %v8394_v36 }
 0x20a   : > { %v3584_v14 = vmax.f32 %v3456_v61, 0.0  ;;  %v3585_v13 = vmax.f32 %v3457_v33, 0.0  ;;  %v3977_v38 = vadd.f32 %v9089_v12, %v3976_v35  ;;  %v7152_v16 = vunpack.i.h.bf16 %v8981_v58 }
 0x20b   : > { %v3199_v62 = vmul.f32 %v7146_v5, %v8390_v11  ;;  %v3198_v47 = vmul.f32 %v7145_v24, %v8390_v11  ;;  %v7151_v33 = vunpack.i.l.bf16 %v8981_v58  ;;  %v4294_v61 = vmax.f32 %v3975_v46, 0.0 }
 0x20c   : > { %v9125_v39 = vpack.c.bf16 %v3585_v13, %v3584_v14  ;;  %v4295_v55 = vmax.f32 %v3977_v38, 0.0  ;;  %v9129_v18 = vmul.f32 %v6738_v59, %v8394_v36  ;;  %v9132_v17 = vmul.f32 %v6737_v20, %v8394_v36  ;;  %v11538_v14 = vld [vmem:[#allocation42_spill] sm:$0xff] }
 0x20d   : > { %v3326_v35 = vadd.f32 %v3198_v47, %v8729_v57  ;;  %v3327_v10 = vadd.f32 %v3199_v62, %v8731_v7  ;;  %v9137_v5 = vmul.f32 %v6733_v8, %v8394_v36  ;;  %v9140_v24 = vmul.f32 %v6732_v29, %v8394_v36  ;;  %7337 = vset.pattern.permute.xlu1 %v11449_v25  ;;  %v11539_v57 = vld [vmem:[#allocation18_spill] sm:$0xff]  ;;  %v11540_v7 = vld [vmem:[#allocation41_spill] sm:$0xff] }
 0x20e   : > { %11537 = vst [vmem:[#allocation69_spill] sm:$0xff] %v9125_v39  ;;  %v6753_v58 = vunpack.i.h.bf16 %v11538_v14  ;;  %7343 = vset.pattern.permute.xlu2 %v11474_v49  ;;  %v4422_v46 = vpack.c.bf16 %v4295_v55, %v4294_v61  ;;  %v2432_v59 = vmul.f32 %v7152_v16, %v8396_v23  ;;  %v6752_v38 = vunpack.i.l.bf16 %v11538_v14  ;;  %7339 = vperm.xlu1 %7337, %v11539_v57   ;;  %v11541_v16 = vld [vmem:[#allocation43_spill] sm:$0xff]  ;;  %v11542_v8 = vld [vmem:[#allocation73_spill] sm:$0xff] }
 0x20f   : > { %v3458_v20 = vadd.f32 %v8973_v28, %v3326_v35  ;;  %v3459_v13 = vadd.f32 %v8973_v28, %v3327_v10  ;;  %7345 = vperm.xlu2 %7343, %v11539_v57   ;;  %v2431_v62 = vmul.f32 %v7151_v33, %v8396_v23  ;;  %v7155_v47 = vpop.permute.xlu1 %7154  ;;  %v6748_v61 = vunpack.i.h.bf16 %v11541_v16 }
 0x210   : > { %4596 = vmatmul.bf16.vlgmr.msra.gmra.mxu1 %v4422_v46  ;;  %v6747_v10 = vunpack.i.l.bf16 %v11541_v16  ;;  %4925 = vmatmul.bf16.vlgmr.msra.gmra.mxu2 %v4422_v46  ;;  %v9157_v39 = vmul.f32 %v6753_v58, %v8394_v36  ;;  %v7028_v29 = vunpack.i.h.bf16 %v11542_v8  ;;  %v7157_v19 = vunpack.i.h.bf16 %v7155_v47 }
 0x211   : > { %v3586_v55 = vmax.f32 %v3458_v20, 0.0  ;;  %v3587_v35 = vmax.f32 %v3459_v13, 0.0  ;;  %v7156_v14 = vunpack.i.l.bf16 %v7155_v47  ;;  %v7027_v33 = vunpack.i.l.bf16 %v11542_v8 }
 0x212   : > { %v2560_v57 = vadd.f32 %v2432_v59, %v9096_v60  ;;  %v3979_v2 = vpop.f32.mrf.mxu0  ;;  %v2559_v34 = vadd.f32 %v2431_v62, %v1790_v9  ;;  %v3201_v16 = vmul.f32 %v7157_v19, %v8390_v11  ;;  %v7206_v46 = vpop.permute.xlu2 %7205  ;;  %v1802_v58 = vmul.f32 %v6752_v38, %v8394_v36 }
 0x213   : > { %v9162_v48 = vpack.c.bf16 %v3587_v35, %v3586_v55  ;;  %v3200_v20 = vmul.f32 %v7156_v14, %v8390_v11  ;;  %v1801_v13 = vmul.f32 %v6748_v61, %v8394_v36  ;;  %v7208_v31 = vunpack.i.h.bf16 %v7206_v46  ;;  %v11544_v35 = vld [vmem:[#allocation17_spill] sm:$0xff] }
 0x214   : > { %v7207_v3 = vunpack.i.l.bf16 %v7206_v46  ;;  %v1800_v47 = vmul.f32 %v6747_v10, %v8394_v36  ;;  %v2410_v8 = vmul.f32 %v7028_v29, %v8396_v23  ;;  %v3329_v60 = vadd.f32 %v3201_v16, %v2560_v57 }
 0x215   : > { %11543 = vst [vmem:[#allocation74_spill] sm:$0xff] %v9162_v48  ;;  %v3328_v59 = vadd.f32 %v3200_v20, %v2559_v34  ;;  %v2409_v55 = vmul.f32 %v7027_v33, %v8396_v23  ;;  %v7034_v9 = vunpack.i.h.bf16 %v8685_v63  ;;  %v2442_v19 = vmul.f32 %v7208_v31, %v8396_v23 }
 0x216   : > { %v2441_v62 = vmul.f32 %v7207_v3, %v8396_v23  ;;  %6071 = vmatmul.msk.bf16.gmra.mxu0 %vm3772_vm0, %v8677_v52  ;;  %v7180_v38 = vunpack.i.h.bf16 %v9066_v42  ;;  %v7179_v61 = vunpack.i.l.bf16 %v9066_v42  ;;  %v3461_v29 = vadd.f32 %v8973_v28, %v3329_v60  ;;  %7350 = vperm.xlu1 %7337, %v11544_v35  }
 0x217   : > { %7355 = vperm.xlu2 %7343, %v11544_v35   ;;  %v3460_v34 = vadd.f32 %v8973_v28, %v3328_v59  ;;  %v7033_v10 = vunpack.i.l.bf16 %v8685_v63  ;;  %v7224_v31 = vunpack.i.h.bf16 %v8877_v1  ;;  %v9186_v14 = vadd.f32 %v2442_v19, %v1801_v13 }
 0x218   : > { %v9184_v3 = vadd.f32 %v2441_v62, %v1800_v47  ;;  %v7223_v52 = vunpack.i.l.bf16 %v8877_v1  ;;  %v3589_v33 = vmax.f32 %v3461_v29, 0.0  ;;  %v3980_v42 = vadd.f32 %v9089_v12, %v3979_v2 }
 0x219   : > { %v3588_v57 = vmax.f32 %v3460_v34, 0.0  ;;  %v7172_v16 = vpop.permute.xlu1 %7171  ;;  %v3205_v59 = vmul.f32 %v7180_v38, %v8390_v11  ;;  %v3204_v63 = vmul.f32 %v7179_v61, %v8390_v11  ;;  %v3213_v2 = vmul.f32 %v7224_v31, %v8390_v11 }
 0x21a   : > { %v7174_v20 = vunpack.i.h.bf16 %v7172_v16  ;;  %v7173_v46 = vunpack.i.l.bf16 %v7172_v16  ;;  %v3981_v60 = vpop.f32.mrf.mxu0  ;;  %v7216_v35 = vpop.permute.xlu2 %7215  ;;  %v3212_v34 = vmul.f32 %v7223_v52, %v8390_v11  ;;  %v4296_v16 = vmax.f32 %v3980_v42, 0.0  ;;  %v11547_v52 = vld [vmem:[#allocation26_spill] sm:$0xff] }
 0x21b   : > { %v3982_v47 = vadd.f32 %v9089_v12, %v3981_v60  ;;  %v9193_v62 = vpack.c.bf16 %v3589_v33, %v3588_v57  ;;  %v7218_v19 = vunpack.i.h.bf16 %v7216_v35  ;;  %v7217_v29 = vunpack.i.l.bf16 %v7216_v35  ;;  %v11545_v57 = vld [vmem:[#allocation71_spill] sm:$0xff] }
 0x21c   : > { %v2436_v13 = vmul.f32 %v7174_v20, %v8396_v23  ;;  %v2435_v1 = vmul.f32 %v7173_v46, %v8396_v23  ;;  %v2538_v20 = vadd.f32 %v2410_v8, %v11545_v57  ;;  %v11546_v46 = vld [vmem:[#allocation72_spill] sm:$0xff]  ;;  %v7190_v31 = vunpack.i.h.bf16 %v9119_v50 }
 0x21d   : > { %v4297_v48 = vmax.f32 %v3982_v47, 0.0  ;;  %v2444_v60 = vmul.f32 %v7218_v19, %v8396_v23  ;;  %v2443_v33 = vmul.f32 %v7217_v29, %v8396_v23  ;;  %v2537_v35 = vadd.f32 %v2409_v55, %v11546_v46 }
 0x21e   : > { %v2563_v38 = vadd.f32 %v2435_v1, %v9140_v24  ;;  %v2564_v61 = vadd.f32 %v2436_v13, %v9137_v5  ;;  %7365 = vset.pattern.permute.xlu1 %v11474_v49  ;;  %v11548_v1 = vld [vmem:[#allocation16_spill] sm:$0xff]  ;;  %v3179_v19 = vmul.f32 %v7034_v9, %v8390_v11  ;;  %v3178_v8 = vmul.f32 %v7033_v10, %v8390_v11 }
 0x21f   : > { %7371 = vset.pattern.permute.xlu2 %v11449_v25  ;;  %v4423_v42 = vpack.c.bf16 %v4297_v48, %v4296_v16  ;;  %v2572_v5 = vadd.f32 %v2444_v60, %v9157_v39  ;;  %v2571_v13 = vadd.f32 %v2443_v33, %v1802_v58  ;;  %7367 = vperm.xlu1 %7365, %v11548_v1   ;;  %v7196_v55 = vunpack.i.h.bf16 %v8814_v51  ;;  %v11550_v1 = vld [vmem:[#allocation21_spill] sm:$0xff] }
 0x220   : > { %7373 = vperm.xlu2 %7371, %v11547_v52   ;;  %v3332_v24 = vadd.f32 %v3204_v63, %v2563_v38  ;;  %v3333_v47 = vadd.f32 %v3205_v59, %v2564_v61  ;;  %v7189_v29 = vunpack.i.l.bf16 %v9119_v50  ;;  %v7195_v58 = vunpack.i.l.bf16 %v8814_v51 }
 0x221   : > { %v7183_v57 = vpop.permute.xlu1 %7182  ;;  %4601 = vmatmul.bf16.gmra.mxu1 %v4423_v42  ;;  %4930 = vmatmul.bf16.gmra.mxu2 %v4423_v42  ;;  %v3340_v63 = vadd.f32 %v3212_v34, %v2571_v13  ;;  %v3341_v39 = vadd.f32 %v3213_v2, %v2572_v5  ;;  %v3207_v10 = vmul.f32 %v7190_v31, %v8390_v11  ;;  %v11549_v51 = vunpack.i.h.bf16 %v11540_v7 }
 0x222   : > { %v3464_v48 = vadd.f32 %v8973_v28, %v3332_v24  ;;  %v3465_v59 = vadd.f32 %v8973_v28, %v3333_v47  ;;  %v7185_v16 = vunpack.i.h.bf16 %v7183_v57  ;;  %v7184_v38 = vunpack.i.l.bf16 %v7183_v57 }
 0x223   : > { %v3984_v9 = vpop.f32.mrf.mxu0  ;;  %v3472_v61 = vadd.f32 %v8973_v28, %v3340_v63  ;;  %v3473_v50 = vadd.f32 %v8973_v28, %v3341_v39  ;;  %v9221_v60 = vpop.permute.xlu2 %7233  ;;  %v3206_v33 = vmul.f32 %v7189_v29, %v8390_v11  ;;  %v9229_v42 = vmul.f32 %v11549_v51, %v8394_v36 }
 0x224   : > { %v2438_v46 = vmul.f32 %v7185_v16, %v8396_v23  ;;  %v2437_v34 = vmul.f32 %v7184_v38, %v8396_v23  ;;  %v3592_v2 = vmax.f32 %v3464_v48, 0.0  ;;  %v3306_v24 = vadd.f32 %v3178_v8, %v2537_v35  ;;  %v11554_v16 = vld [vmem:[#allocation45_spill] sm:$0xff] }
 0x225   : > { %v3307_v31 = vadd.f32 %v3179_v19, %v2538_v20  ;;  %v3593_v47 = vmax.f32 %v3465_v59, 0.0  ;;  %v3600_v29 = vmax.f32 %v3472_v61, 0.0  ;;  %v3601_v57 = vmax.f32 %v3473_v50, 0.0  ;;  %v11553_v59 = vld [vmem:[#allocation44_spill] sm:$0xff]  ;;  %v11555_v61 = vld [vmem:[#allocation79_spill] sm:$0xff] }
 0x226   : > { %6072 = vmatmul.msk.bf16.gmra.mxu0 %vm3772_vm0, %v8711_v40  ;;  %v2566_v5 = vadd.f32 %v2438_v46, %v9129_v18  ;;  %v2565_v13 = vadd.f32 %v2437_v34, %v9132_v17  ;;  %v11551_v48 = vunpack.i.l.bf16 %v11540_v7  ;;  %v2440_v35 = vmul.f32 %v7196_v55, %v8396_v23 }
 0x227   : > { %v2439_v20 = vmul.f32 %v7195_v58, %v8396_v23  ;;  %v3985_v40 = vadd.f32 %v9089_v12, %v3984_v9  ;;  %7378 = vperm.xlu1 %7365, %v11547_v52   ;;  %v9245_v17 = vpack.c.bf16 %v3593_v47, %v3592_v2  ;;  %v9247_v8 = vpack.c.bf16 %v3601_v57, %v3600_v29 }
 0x228   : > { %7383 = vperm.xlu2 %7371, %v11550_v1   ;;  %v9239_v63 = vmul.f32 %v11551_v48, %v8394_v36  ;;  %v3335_v18 = vadd.f32 %v3207_v10, %v2566_v5  ;;  %v3334_v19 = vadd.f32 %v3206_v33, %v2565_v13  ;;  %v6818_v39 = vunpack.i.h.bf16 %v11553_v59  ;;  %v11556_v48 = vld [vmem:[#allocation46_spill] sm:$0xff] }
 0x229   : > { %11552 = vst [vmem:[#allocation75_spill] sm:$0xff] %v9247_v8  ;;  %v6817_v7 = vunpack.i.l.bf16 %v11553_v59  ;;  %v6768_v38 = vunpack.i.h.bf16 %v11554_v16  ;;  %v7049_v55 = vunpack.i.l.bf16 %v11555_v61  ;;  %v3438_v52 = vadd.f32 %v8973_v28, %v3306_v24 }
 0x22a   : > { %v3466_v58 = vadd.f32 %v8973_v28, %v3334_v19  ;;  %v7200_v50 = vpop.permute.xlu1 %7199  ;;  %v3439_v10 = vadd.f32 %v8973_v28, %v3307_v31  ;;  %v3467_v33 = vadd.f32 %v8973_v28, %v3335_v18  ;;  %v2568_v47 = vadd.f32 %v2440_v35, %v8690_v56  ;;  %v11557_v56 = vld [vmem:[#allocation25_spill] sm:$0xff] }
 0x22b   : > { %v3986_v9 = vpop.f32.mrf.mxu0  ;;  %v7202_v46 = vunpack.i.h.bf16 %v7200_v50  ;;  %v7201_v34 = vunpack.i.l.bf16 %v7200_v50  ;;  %v9258_v51 = vpop.permute.xlu2 %7243  ;;  %v2567_v5 = vadd.f32 %v2439_v20, %v8693_v53  ;;  %v4298_v13 = vmax.f32 %v3985_v40, 0.0 }
 0x22c   : > { %v3987_v2 = vadd.f32 %v9089_v12, %v3986_v9  ;;  %v3594_v57 = vmax.f32 %v3466_v58, 0.0  ;;  %v6767_v31 = vunpack.i.l.bf16 %v11554_v16  ;;  %v6763_v18 = vunpack.i.h.bf16 %v11556_v48  ;;  %v11558_v16 = vld [vmem:[#allocation76_spill] sm:$0xff] }
 0x22d   : > { %v3209_v1 = vmul.f32 %v7202_v46, %v8390_v11  ;;  %v3208_v29 = vmul.f32 %v7201_v34, %v8390_v11  ;;  %v3566_v19 = vmax.f32 %v3438_v52, 0.0  ;;  %v3567_v59 = vmax.f32 %v3439_v10, 0.0 }
 0x22e   : > { %v4299_v24 = vmax.f32 %v3987_v2, 0.0  ;;  %v3595_v35 = vmax.f32 %v3467_v33, 0.0  ;;  %v9270_v20 = vmul.f32 %v6818_v39, %v8394_v36  ;;  %v6762_v40 = vunpack.i.l.bf16 %v11556_v48  ;;  %v11560_v2 = vld [vmem:[#allocation49_spill] sm:$0xff] }
 0x22f   : > { %v3336_v50 = vadd.f32 %v3208_v29, %v2567_v5  ;;  %v3337_v9 = vadd.f32 %v3209_v1, %v2568_v47  ;;  %7393 = vset.pattern.permute.xlu1 %v11449_v25  ;;  %v7055_v58 = vunpack.i.l.bf16 %v11558_v16  ;;  %v2413_v46 = vmul.f32 %v7049_v55, %v8396_v23 }
 0x230   : > { %7399 = vset.pattern.permute.xlu2 %v11474_v49  ;;  %v4424_v53 = vpack.c.bf16 %v4299_v24, %v4298_v13  ;;  %7395 = vperm.xlu1 %7393, %v11557_v56   ;;  %v7050_v52 = vunpack.i.h.bf16 %v11555_v61  ;;  %v9279_v33 = vpack.c.bf16 %v3595_v35, %v3594_v57  ;;  %v9282_v39 = vmul.f32 %v6817_v7, %v8394_v36 }
 0x231   : > { %7401 = vperm.xlu2 %7399, %v11557_v56   ;;  %v3468_v10 = vadd.f32 %v8973_v28, %v3336_v50  ;;  %v3469_v34 = vadd.f32 %v8973_v28, %v3337_v9  ;;  %v6778_v47 = vunpack.i.h.bf16 %v11560_v2  ;;  %v3683_v55 = vpack.c.bf16 %v3567_v59, %v3566_v19 }
 0x232   : > { %4606 = vmatmul.bf16.gmra.mxu1 %v4424_v53  ;;  %4935 = vmatmul.bf16.gmra.mxu2 %v4424_v53  ;;  %11559 = vst [vmem:[#allocation37_spill] sm:$0xff] %v9279_v33  ;;  %v7211_v5 = vpop.permute.xlu1 %7210  ;;  %v6777_v48 = vunpack.i.l.bf16 %v11560_v2  ;;  %v7056_v50 = vunpack.i.h.bf16 %v11558_v16  ;;  %v3182_v9 = vmul.f32 %v7055_v58, %v8390_v11  ;;  %v2414_v7 = vmul.f32 %v7050_v52, %v8396_v23 }
 0x233   : > { %v3989_v13 = vpop.f32.mrf.mxu0  ;;  %v3596_v1 = vmax.f32 %v3468_v10, 0.0  ;;  %v3597_v29 = vmax.f32 %v3469_v34, 0.0  ;;  %v7213_v24 = vunpack.i.h.bf16 %v7211_v5  ;;  %v7212_v61 = vunpack.i.l.bf16 %v7211_v5  ;;  %v11562_v34 = vld [vmem:[#allocation20_spill] sm:$0xff] }
 0x234   : > { %v2541_v56 = vadd.f32 %v2413_v46, %v8647_v15  ;;  %v9296_v59 = vmul.f32 %v6768_v38, %v8394_v36  ;;  %v9299_v35 = vmul.f32 %v6767_v31, %v8394_v36  ;;  %v7280_v16 = vunpack.i.h.bf16 %v9004_v54 }
 0x235   : > { %v3211_v53 = vmul.f32 %v7213_v24, %v8390_v11  ;;  %v3210_v19 = vmul.f32 %v7212_v61, %v8390_v11  ;;  %v9302_v58 = vpack.c.bf16 %v3597_v29, %v3596_v1  ;;  %v9305_v52 = vmul.f32 %v6763_v18, %v8394_v36 }
 0x236   : > { %v9288_v57 = vpop.permute.xlu2 %7261  ;;  %6073 = vmatmul.msk.bf16.gmra.mxu0 %vm3772_vm0, %v3683_v55  ;;  %v9308_v15 = vmul.f32 %v6762_v40, %v8394_v36  ;;  %v1813_v38 = vmul.f32 %v6778_v47, %v8394_v36  ;;  %v1812_v31 = vmul.f32 %v6777_v48, %v8394_v36  ;;  %v3183_v2 = vmul.f32 %v7056_v50, %v8390_v11 }
 0x237   : > { %11561 = vst [vmem:[#allocation11_spill] sm:$0xff] %v9302_v58  ;;  %v3338_v46 = vadd.f32 %v3210_v19, %v9184_v3  ;;  %v3339_v10 = vadd.f32 %v3211_v53, %v9186_v14  ;;  %v3990_v5 = vadd.f32 %v9089_v12, %v3989_v13  ;;  %v2542_v18 = vadd.f32 %v2414_v7, %v8639_v32 }
 0x238   : > { %7406 = vperm.xlu1 %7393, %v11562_v34   ;;  %v3310_v40 = vadd.f32 %v3182_v9, %v2541_v56  ;;  %v3223_v14 = vmul.f32 %v7280_v16, %v8390_v11  ;;  %v7279_v1 = vunpack.i.l.bf16 %v9004_v54  ;;  %v7236_v47 = vunpack.i.h.bf16 %v9221_v60 }
 0x239   : > { %7411 = vperm.xlu2 %7399, %v11562_v34   ;;  %v3470_v55 = vadd.f32 %v8973_v28, %v3338_v46  ;;  %v3471_v3 = vadd.f32 %v8973_v28, %v3339_v10  ;;  %v7235_v29 = vunpack.i.l.bf16 %v9221_v60  ;;  %v4300_v32 = vmax.f32 %v3990_v5, 0.0 }
 0x23a   : > { %v3215_v54 = vmul.f32 %v7236_v47, %v8390_v11  ;;  %v11565_v47 = vld [vmem:[#allocation6_spill] sm:$0xff] }
 0x23b   : > { %v3991_v24 = vpop.f32.mrf.mxu0  ;;  %v3598_v61 = vmax.f32 %v3470_v55, 0.0  ;;  %v3599_v13 = vmax.f32 %v3471_v3, 0.0  ;;  %v7228_v48 = vpop.permute.xlu1 %7227  ;;  %v3214_v10 = vmul.f32 %v7235_v29, %v8390_v11  ;;  %v3222_v55 = vmul.f32 %v7279_v1, %v8390_v11 }
 0x23c   : > { %v3992_v50 = vadd.f32 %v9089_v12, %v3991_v24  ;;  %v7230_v9 = vunpack.i.h.bf16 %v7228_v48  ;;  %v7229_v7 = vunpack.i.l.bf16 %v7228_v48  ;;  %v11564_v48 = vld [vmem:[#allocation47_spill] sm:$0xff]  ;;  %v7246_v1 = vunpack.i.h.bf16 %v9258_v51 }
 0x23d   : > { %v9326_v16 = vpack.c.bf16 %v3599_v13, %v3598_v61  ;;  %v6833_v61 = vunpack.i.h.bf16 %v11564_v48 }
 0x23e   : > { %v7272_v56 = vpop.permute.xlu2 %7271  ;;  %v4301_v53 = vmax.f32 %v3992_v50, 0.0  ;;  %v2446_v60 = vmul.f32 %v7230_v9, %v8396_v23  ;;  %v2445_v34 = vmul.f32 %v7229_v7, %v8396_v23  ;;  %v3311_v9 = vadd.f32 %v3183_v2, %v2542_v18 }
 0x23f   : > { %v7274_v19 = vunpack.i.h.bf16 %v7272_v56  ;;  %v7273_v46 = vunpack.i.l.bf16 %v7272_v56  ;;  %11563 = vst [vmem:[#allocation14_spill] sm:$0xff] %v9326_v16  ;;  %v7252_v2 = vunpack.i.h.bf16 %v8944_v21  ;;  %v7251_v18 = vunpack.i.l.bf16 %v8944_v21 }
 0x240   : > { %v4425_v24 = vpack.c.bf16 %v4301_v53, %v4300_v32  ;;  %v2574_v50 = vadd.f32 %v2446_v60, %v11565_v47  ;;  %v2573_v29 = vadd.f32 %v2445_v34, %v9074_v4  ;;  %7421 = vset.pattern.permute.xlu1 %v11474_v49  ;;  %v9345_v32 = vadd.f32 %v8973_v28, %v3310_v40 }
 0x241   : > { %v2454_v5 = vmul.f32 %v7274_v19, %v8396_v23  ;;  %v2453_v3 = vmul.f32 %v7273_v46, %v8396_v23  ;;  %7427 = vset.pattern.permute.xlu2 %v11449_v25  ;;  %v11566_v19 = vld [vmem:[#allocation19_spill] sm:$0xff]  ;;  %v11567_v46 = vld [vmem:[#allocation30_spill] sm:$0xff]  ;;  %v7245_v53 = vunpack.i.l.bf16 %v9258_v51  ;;  %v3217_v51 = vmul.f32 %v7246_v1, %v8390_v11 }
 0x242   : > { %7429 = vperm.xlu2 %7427, %v11566_v19   ;;  %7423 = vperm.xlu1 %7421, %v11567_v46   ;;  %v3343_v13 = vadd.f32 %v3215_v54, %v2574_v50  ;;  %v3342_v60 = vadd.f32 %v3214_v10, %v2573_v29  ;;  %v3443_v50 = vadd.f32 %v8973_v28, %v3311_v9 }
 0x243   : > { %v2581_v7 = vadd.f32 %v2453_v3, %v1812_v31  ;;  %v2582_v56 = vadd.f32 %v2454_v5, %v1813_v38  ;;  %4611 = vmatmul.bf16.gmra.mxu1 %v4425_v24  ;;  %4940 = vmatmul.bf16.gmra.mxu2 %v4425_v24  ;;  %v3994_v4 = vpop.f32.mrf.mxu0  ;;  %v7239_v34 = vpop.permute.xlu1 %7238  ;;  %v11568_v24 = vld [vmem:[#allocation10_spill] sm:$0xff]  ;;  %v3216_v21 = vmul.f32 %v7245_v53, %v8390_v11 }
 0x244   : > { %v3475_v5 = vadd.f32 %v8973_v28, %v3343_v13  ;;  %v3474_v3 = vadd.f32 %v8973_v28, %v3342_v60  ;;  %v7241_v40 = vunpack.i.h.bf16 %v7239_v34  ;;  %v7240_v47 = vunpack.i.l.bf16 %v7239_v34 }
 0x245   : > { %v3350_v31 = vadd.f32 %v3222_v55, %v2581_v7  ;;  %v3351_v38 = vadd.f32 %v3223_v14, %v2582_v56  ;;  %v2450_v29 = vmul.f32 %v7252_v2, %v8396_v23  ;;  %v11569_v56 = vld [vmem:[#allocation48_spill] sm:$0xff]  ;;  %v2449_v60 = vmul.f32 %v7251_v18, %v8396_v23 }
 0x246   : > { %6074 = vmatmul.msk.bf16.gmra.mxu0 %vm3772_vm0, %v11568_v24  ;;  %v2448_v55 = vmul.f32 %v7241_v40, %v8396_v23  ;;  %v2447_v13 = vmul.f32 %v7240_v47, %v8396_v23  ;;  %v3602_v1 = vmax.f32 %v3474_v3, 0.0  ;;  %v3603_v7 = vmax.f32 %v3475_v5, 0.0  ;;  %v11570_v40 = vld [vmem:[#allocation29_spill] sm:$0xff] }
 0x247   : > { %v3482_v54 = vadd.f32 %v8973_v28, %v3350_v31  ;;  %v9354_v10 = vpop.permute.xlu2 %7289  ;;  %v3483_v14 = vadd.f32 %v8973_v28, %v3351_v38  ;;  %v6783_v46 = vunpack.i.h.bf16 %v11569_v56  ;;  %v6782_v38 = vunpack.i.l.bf16 %v11569_v56 }
 0x248   : > { %v2575_v31 = vadd.f32 %v2447_v13, %v9308_v15  ;;  %v2576_v53 = vadd.f32 %v2448_v55, %v9305_v52  ;;  %v3995_v34 = vadd.f32 %v9089_v12, %v3994_v4  ;;  %v9372_v9 = vpack.c.bf16 %v3603_v7, %v3602_v1 }
 0x249   : > { %v3610_v2 = vmax.f32 %v3482_v54, 0.0  ;;  %v9375_v5 = vmul.f32 %v6833_v61, %v8394_v36  ;;  %v3611_v15 = vmax.f32 %v3483_v14, 0.0  ;;  %v2578_v52 = vadd.f32 %v2450_v29, %v9296_v59 }
 0x24a   : > { %7439 = vperm.xlu2 %7427, %v11570_v40   ;;  %7434 = vperm.xlu1 %7421, %v11566_v19   ;;  %11571 = vst [vmem:[#allocation15_spill] sm:$0xff] %v9372_v9  ;;  %v3344_v3 = vadd.f32 %v3216_v21, %v2575_v31  ;;  %v3345_v18 = vadd.f32 %v3217_v51, %v2576_v53  ;;  %v3570_v4 = vmax.f32 %v9345_v32, 0.0  ;;  %v3571_v55 = vmax.f32 %v3443_v50, 0.0  ;;  %v11573_v31 = vld [vmem:[#allocation50_spill] sm:$0xff] }
 0x24b   : > { %v3996_v47 = vpop.f32.mrf.mxu0  ;;  %v2577_v13 = vadd.f32 %v2449_v60, %v9299_v35  ;;  %v9383_v61 = vpack.c.bf16 %v3611_v15, %v3610_v2  ;;  %v4302_v21 = vmax.f32 %v3995_v34, 0.0  ;;  %v7264_v32 = vunpack.i.h.bf16 %v9288_v57 }
 0x24c   : > { %v3997_v24 = vadd.f32 %v9089_v12, %v3996_v47  ;;  %v3476_v19 = vadd.f32 %v8973_v28, %v3344_v3  ;;  %v3477_v54 = vadd.f32 %v8973_v28, %v3345_v18  ;;  %v6848_v28 = vunpack.i.h.bf16 %v11573_v31 }
 0x24d   : > { %v7256_v1 = vpop.permute.xlu1 %7255  ;;  %11572 = vst [vmem:[#allocation77_spill] sm:$0xff] %v9383_v61  ;;  %v6847_v53 = vunpack.i.l.bf16 %v11573_v31  ;;  %v7263_v34 = vunpack.i.l.bf16 %v9288_v57  ;;  %v11575_v2 = vunpack.i.l.bf16 %v11564_v48  ;;  %v9403_v15 = vmul.f32 %v6783_v46, %v8394_v36  ;;  %v11576_v57 = vld [vmem:[#allocation51_spill] sm:$0xff]  ;;  %v9416_v46 = vld [vmem:[%s11296_s2] ss:$0 sm:$0xff]  ;;  %v11579_v31 = vld [vmem:[#allocation54_spill] sm:$0xff] }
 0x24e   : > { %v4303_v51 = vmax.f32 %v3997_v24, 0.0  ;;  %v7258_v7 = vunpack.i.h.bf16 %v7256_v1  ;;  %v7257_v14 = vunpack.i.l.bf16 %v7256_v1  ;;  %v3604_v59 = vmax.f32 %v3476_v19, 0.0 }
 0x24f   : > { %v9385_v56 = vpop.permute.xlu2 %7299  ;;  %v3605_v29 = vmax.f32 %v3477_v54, 0.0  ;;  %v9398_v3 = vmul.f32 %v11575_v2, %v8394_v36  ;;  %v9406_v24 = vmul.f32 %v6782_v38, %v8394_v36  ;;  %v6798_v19 = vunpack.i.h.bf16 %v11576_v57  ;;  %v11577_v54 = vld [vmem:[#allocation24_spill] sm:$0xff] }
 0x250   : > { %v3219_v50 = vmul.f32 %v7258_v7, %v8390_v11  ;;  %v3218_v35 = vmul.f32 %v7257_v14, %v8390_v11  ;;  %v4426_v60 = vpack.c.bf16 %v4303_v51, %v4302_v21  ;;  %v3685_v1 = vpack.c.bf16 %v3571_v55, %v3570_v4  ;;  %v11578_v55 = vld [vmem:[#allocation53_spill] sm:$0xff] }
 0x251   : > { %v9393_v40 = vpack.c.bf16 %v3605_v29, %v3604_v59  ;;  %v9421_v51 = vmul.f32 %v6848_v28, %v8394_v36  ;;  %v9424_v4 = vmul.f32 %v6847_v53, %v8394_v36  ;;  %v6863_v7 = vunpack.i.h.bf16 %v11578_v55 }
 0x252   : > { %v3346_v18 = vadd.f32 %v3218_v35, %v2577_v13  ;;  %v3347_v47 = vadd.f32 %v3219_v50, %v2578_v52  ;;  %7455 = vset.pattern.permute.xlu2 %v11474_v49  ;;  %7449 = vset.pattern.permute.xlu1 %v11449_v25  ;;  %v6797_v52 = vunpack.i.l.bf16 %v11576_v57  ;;  %v2452_v13 = vmul.f32 %v7264_v32, %v8396_v23 }
 0x253   : > { %11574 = vst [vmem:[#allocation78_spill] sm:$0xff] %v9393_v40  ;;  %7457 = vperm.xlu2 %7455, %v11577_v54   ;;  %7451 = vperm.xlu1 %7449, %v11577_v54   ;;  %v3999_v48 = vpop.f32.mrf.mxu0  ;;  %v2451_v14 = vmul.f32 %v7263_v34, %v8396_v23  ;;  %v6862_v29 = vunpack.i.l.bf16 %v11578_v55  ;;  %v9434_v53 = vmul.f32 %v6798_v19, %v8394_v36  ;;  %v6812_v54 = vunpack.i.l.bf16 %v11579_v31 }
 0x254   : > { %v3478_v38 = vadd.f32 %v9416_v46, %v3346_v18  ;;  %v3479_v21 = vadd.f32 %v9416_v46, %v3347_v47  ;;  %4616 = vmatmul.bf16.gmra.mxu1 %v4426_v60  ;;  %4945 = vmatmul.bf16.gmra.mxu2 %v4426_v60  ;;  %v6813_v60 = vunpack.i.h.bf16 %v11579_v31  ;;  %v2580_v18 = vadd.f32 %v2452_v13, %v9079_v27  ;;  %v11581_v27 = vld [vmem:[#allocation55_spill] sm:$0xff] }
 0x255   : > { %v7267_v59 = vpop.permute.xlu1 %7266  ;;  %v9441_v57 = vmul.f32 %v6797_v52, %v8394_v36  ;;  %v9450_v19 = vmul.f32 %v6862_v29, %v8394_v36  ;;  %v6808_v13 = vunpack.i.h.bf16 %v11581_v27  ;;  %v11582_v52 = vld [vmem:[#allocation80_spill] sm:$0xff]  ;;  %v7292_v29 = vunpack.i.h.bf16 %v9354_v10 }
 0x256   : > { %v3606_v32 = vmax.f32 %v3478_v38, 0.0  ;;  %v3607_v50 = vmax.f32 %v3479_v21, 0.0  ;;  %v7269_v35 = vunpack.i.h.bf16 %v7267_v59  ;;  %6075 = vmatmul.msk.bf16.gmra.mxu0 %vm3772_vm0, %v3685_v1  ;;  %v7268_v2 = vunpack.i.l.bf16 %v7267_v59 }
 0x257   : > { %v2579_v1 = vadd.f32 %v2451_v14, %v9084_v44  ;;  %v9447_v21 = vmul.f32 %v6863_v7, %v8394_v36  ;;  %v9454_v59 = vmul.f32 %v6813_v60, %v8394_v36  ;;  %v11583_v44 = vld [vmem:[#allocation28_spill] sm:$0xff]  ;;  %v7334_v14 = vpop.permute.xlu0 %7333  ;;  %v7291_v31 = vunpack.i.l.bf16 %v9354_v10 }
 0x258   : > { %v9431_v28 = vpop.permute.xlu2 %7317  ;;  %v3221_v34 = vmul.f32 %v7269_v35, %v8390_v11  ;;  %v9438_v47 = vpack.c.bf16 %v3607_v50, %v3606_v32  ;;  %v3220_v38 = vmul.f32 %v7268_v2, %v8390_v11  ;;  %v7084_v32 = vunpack.i.h.bf16 %v11582_v52 }
 0x259   : > { %v4000_v50 = vadd.f32 %v9089_v12, %v3999_v48  ;;  %v7335_v61 = vunpack.i.l.bf16 %v7334_v14  ;;  %v3225_v10 = vmul.f32 %v7292_v29, %v8390_v11  ;;  %v9477_v29 = vmul.f32 %v6812_v54, %v8394_v36  ;;  %v11584_v54 = vld [vmem:[#allocation33_spill] sm:$0xff] }
 0x25a   : > { %11580 = vst [vmem:[#allocation38_spill] sm:$0xff] %v9438_v47  ;;  %v3349_v55 = vadd.f32 %v3221_v34, %v2580_v18  ;;  %v3348_v35 = vadd.f32 %v3220_v38, %v2579_v1  ;;  %v7083_v18 = vunpack.i.l.bf16 %v11582_v52  ;;  %v7336_v34 = vunpack.i.h.bf16 %v7334_v14 }
 0x25b   : > { %7467 = vperm.xlu2 %7455, %v11583_v44   ;;  %7462 = vperm.xlu1 %7449, %v11583_v44   ;;  %v4001_v7 = vpop.f32.mrf.mxu0  ;;  %v4304_v44 = vmax.f32 %v4000_v50, 0.0  ;;  %v3232_v50 = vmul.f32 %v7335_v61, %v8390_v11  ;;  %v6807_v61 = vunpack.i.l.bf16 %v11581_v27 }
 0x25c   : > { %v3481_v2 = vadd.f32 %v9416_v46, %v3349_v55  ;;  %v4002_v60 = vadd.f32 %v9089_v12, %v4001_v7  ;;  %v3480_v48 = vadd.f32 %v9416_v46, %v3348_v35  ;;  %v3224_v55 = vmul.f32 %v7291_v31, %v8390_v11 }
 0x25d   : > { %v2419_v27 = vmul.f32 %v7083_v18, %v8396_v23 }
 0x25e   : > { %v3609_v1 = vmax.f32 %v3481_v2, 0.0  ;;  %v4305_v38 = vmax.f32 %v4002_v60, 0.0  ;;  %v7284_v47 = vpop.permute.xlu1 %7283  ;;  %v3608_v40 = vmax.f32 %v3480_v48, 0.0  ;;  %v3233_v2 = vmul.f32 %v7336_v34, %v8390_v11  ;;  %v11585_v34 = vld [vmem:[#allocation23_spill] sm:$0xff] }
 0x25f   : > { %v7286_v9 = vunpack.i.h.bf16 %v7284_v47  ;;  %v7285_v8 = vunpack.i.l.bf16 %v7284_v47 }
 0x260   : > { %v7328_v16 = vpop.permute.xlu2 %7327  ;;  %v4427_v33 = vpack.c.bf16 %v4305_v38, %v4304_v44  ;;  %v9470_v35 = vpack.c.bf16 %v3609_v1, %v3608_v40  ;;  %v9484_v40 = vmul.f32 %v6808_v13, %v8394_v36  ;;  %v2420_v13 = vmul.f32 %v7084_v32, %v8396_v23 }
 0x261   : > { %v7330_v58 = vunpack.i.h.bf16 %v7328_v16  ;;  %v7329_v7 = vunpack.i.l.bf16 %v7328_v16  ;;  %v2456_v52 = vmul.f32 %v7286_v9, %v8396_v23  ;;  %v2455_v14 = vmul.f32 %v7285_v8, %v8396_v23 }
 0x263   : > { %v2464_v47 = vmul.f32 %v7330_v58, %v8396_v23  ;;  %v2463_v60 = vmul.f32 %v7329_v7, %v8396_v23  ;;  %v2584_v16 = vadd.f32 %v2456_v52, %v9403_v15  ;;  %v2583_v9 = vadd.f32 %v2455_v14, %v9406_v24  ;;  %7483 = vset.pattern.permute.xlu2 %v11449_v25  ;;  %v4004_v8 = vpop.f32.mrf.mxu0 }
 0x264   : > { %7477 = vset.pattern.permute.xlu1 %v11474_v49  ;;  %7485 = vperm.xlu2 %7483, %v11584_v54   ;;  %v7302_v15 = vunpack.i.h.bf16 %v9385_v56  ;;  %v7301_v24 = vunpack.i.l.bf16 %v9385_v56 }
 0x265   : > { %v2592_v58 = vadd.f32 %v2464_v47, %v9229_v42  ;;  %v2591_v31 = vadd.f32 %v2463_v60, %v9239_v63  ;;  %7479 = vperm.xlu1 %7477, %v11585_v34   ;;  %v3353_v48 = vadd.f32 %v3225_v10, %v2584_v16  ;;  %v3352_v1 = vadd.f32 %v3224_v55, %v2583_v9 }
 0x266   : > { %4621 = vmatmul.bf16.gmra.mxu1 %v4427_v33  ;;  %4950 = vmatmul.bf16.gmra.mxu2 %v4427_v33  ;;  %v7295_v44 = vpop.permute.xlu1 %7294  ;;  %v3227_v32 = vmul.f32 %v7302_v15, %v8390_v11  ;;  %v3226_v18 = vmul.f32 %v7301_v24, %v8390_v11  ;;  %v7090_v16 = vunpack.i.h.bf16 %v8898_v22  ;;  %v4005_v9 = vadd.f32 %v9089_v12, %v4004_v8  ;;  %v11586_v24 = vld [vmem:[#allocation22_spill] sm:$0xff]  ;;  %v11589_v8 = vld [vmem:[#allocation56_spill] sm:$0xff] }
 0x267   : > { %v3360_v38 = vadd.f32 %v3232_v50, %v2591_v31  ;;  %v3361_v42 = vadd.f32 %v3233_v2, %v2592_v58  ;;  %6076 = vmatmul.msk.bf16.gmra.mxu0 %vm3772_vm0, %v8928_v41  ;;  %v3485_v63 = vadd.f32 %v9416_v46, %v3353_v48  ;;  %v3484_v7 = vadd.f32 %v9416_v46, %v3352_v1 }
 0x268   : > { %v7297_v52 = vunpack.i.h.bf16 %v7295_v44  ;;  %v7296_v56 = vunpack.i.l.bf16 %v7295_v44  ;;  %v7089_v15 = vunpack.i.l.bf16 %v8898_v22  ;;  %v11590_v22 = vld [vmem:[#allocation57_spill] sm:$0xff] }
 0x269   : > { %v3492_v10 = vadd.f32 %v9416_v46, %v3360_v38  ;;  %v3493_v33 = vadd.f32 %v9416_v46, %v3361_v42  ;;  %v9501_v55 = vpop.permute.xlu2 %7345  ;;  %v3612_v2 = vmax.f32 %v3484_v7, 0.0  ;;  %v3613_v50 = vmax.f32 %v3485_v63, 0.0 }
 0x26a   : > { %v2458_v14 = vmul.f32 %v7297_v52, %v8396_v23  ;;  %v2457_v41 = vmul.f32 %v7296_v56, %v8396_v23  ;;  %v9520_v42 = vmul.f32 %v6807_v61, %v8394_v36  ;;  %v6877_v63 = vunpack.i.l.bf16 %v11589_v8  ;;  %v11591_v56 = vld [vmem:[#allocation58_spill] sm:$0xff]  ;;  %v11593_v61 = vld [vmem:[#allocation81_spill] sm:$0xff] }
 0x26b   : > { %v3620_v47 = vmax.f32 %v3492_v10, 0.0  ;;  %v3621_v60 = vmax.f32 %v3493_v33, 0.0  ;;  %v4006_v34 = vpop.f32.mrf.mxu0  ;;  %v9515_v1 = vpack.c.bf16 %v3613_v50, %v3612_v2  ;;  %v6828_v7 = vunpack.i.h.bf16 %v11590_v22  ;;  %v11592_v10 = vld [vmem:[#allocation7_spill] sm:$0xff] }
 0x26c   : > { %v2586_v58 = vadd.f32 %v2458_v14, %v9114_v30  ;;  %v2585_v31 = vadd.f32 %v2457_v41, %v9117_v6  ;;  %7495 = vperm.xlu2 %7483, %v11586_v24   ;;  %v4007_v48 = vadd.f32 %v9089_v12, %v4006_v34  ;;  %v6878_v30 = vunpack.i.h.bf16 %v11589_v8 }
 0x26d   : > { %7490 = vperm.xlu1 %7477, %v11584_v54   ;;  %11587 = vst [vmem:[#allocation13_spill] sm:$0xff] %v9515_v1  ;;  %v9517_v38 = vpack.c.bf16 %v3621_v60, %v3620_v47  ;;  %v6827_v52 = vunpack.i.l.bf16 %v11590_v22  ;;  %v6823_v12 = vunpack.i.h.bf16 %v11591_v56  ;;  %v2548_v33 = vadd.f32 %v2420_v13, %v11592_v10 }
 0x26e   : > { %v3355_v44 = vadd.f32 %v3227_v32, %v2586_v58  ;;  %v3354_v6 = vadd.f32 %v3226_v18, %v2585_v31  ;;  %v4307_v54 = vmax.f32 %v4007_v48, 0.0  ;;  %v4306_v14 = vmax.f32 %v4005_v9, 0.0 }
 0x26f   : > { %11588 = vst [vmem:[#allocation39_spill] sm:$0xff] %v9517_v38  ;;  %v2547_v2 = vadd.f32 %v2419_v27, %v11593_v61  ;;  %v3189_v50 = vmul.f32 %v7090_v16, %v8390_v11  ;;  %v3188_v32 = vmul.f32 %v7089_v15, %v8390_v11  ;;  %v7312_v47 = vpop.permute.xlu1 %7311  ;;  %v7320_v24 = vunpack.i.h.bf16 %v9431_v28  ;;  %v9541_v16 = vpop.permute.xlu0 %7361 }
 0x270   : > { %v3486_v41 = vadd.f32 %v9416_v46, %v3354_v6  ;;  %v3487_v18 = vadd.f32 %v9416_v46, %v3355_v44  ;;  %v7314_v58 = vunpack.i.h.bf16 %v7312_v47  ;;  %v7313_v31 = vunpack.i.l.bf16 %v7312_v47 }
 0x271   : > { %v9533_v60 = vpop.permute.xlu2 %7355  ;;  %v4428_v34 = vpack.c.bf16 %v4307_v54, %v4306_v14  ;;  %v7319_v13 = vunpack.i.l.bf16 %v9431_v28  ;;  %v9538_v48 = vmul.f32 %v6878_v30, %v8394_v36  ;;  %v6822_v27 = vunpack.i.l.bf16 %v11591_v56 }
 0x272   : > { %v3614_v9 = vmax.f32 %v3486_v41, 0.0  ;;  %v3229_v15 = vmul.f32 %v7314_v58, %v8390_v11  ;;  %v3228_v8 = vmul.f32 %v7313_v31, %v8390_v11  ;;  %v9546_v6 = vmul.f32 %v6877_v63, %v8394_v36  ;;  %v11594_v41 = vld [vmem:[#allocation32_spill] sm:$0xff] }
 0x273   : > { %v4009_v44 = vpop.f32.mrf.mxu0  ;;  %v3316_v22 = vadd.f32 %v3188_v32, %v2547_v2  ;;  %v3317_v54 = vadd.f32 %v3189_v50, %v2548_v33  ;;  %v3615_v28 = vmax.f32 %v3487_v18, 0.0  ;;  %v9551_v30 = vmul.f32 %v6828_v7, %v8394_v36  ;;  %v11596_v50 = vld [vmem:[#allocation59_spill] sm:$0xff] }
 0x274   : > { %7511 = vset.pattern.permute.xlu2 %v11474_v49  ;;  %v3356_v56 = vadd.f32 %v3228_v8, %v9059_v37  ;;  %v3357_v10 = vadd.f32 %v3229_v15, %v9062_v43  ;;  %v2462_v14 = vmul.f32 %v7320_v24, %v8396_v23  ;;  %v2461_v63 = vmul.f32 %v7319_v13, %v8396_v23 }
 0x275   : > { %7505 = vset.pattern.permute.xlu1 %v11449_v25  ;;  %7513 = vperm.xlu2 %7511, %v11594_v41   ;;  %v9559_v33 = vpack.c.bf16 %v3615_v28, %v3614_v9  ;;  %v9562_v61 = vmul.f32 %v6827_v52, %v8394_v36  ;;  %v9565_v7 = vmul.f32 %v6823_v12, %v8394_v36  ;;  %v6843_v32 = vunpack.i.h.bf16 %v11596_v50 }
 0x276   : > { %4626 = vmatmul.bf16.gmra.mxu1 %v4428_v34  ;;  %4955 = vmatmul.bf16.gmra.mxu2 %v4428_v34  ;;  %v3488_v37 = vadd.f32 %v9416_v46, %v3356_v56  ;;  %v3489_v43 = vadd.f32 %v9416_v46, %v3357_v10  ;;  %v9572_v2 = vmul.f32 %v6822_v27, %v8394_v36  ;;  %v9584_v27 = vld [vmem:[%s11298_s4] ss:$0 sm:$0xff]  ;;  %v11598_v56 = vld [vmem:[#allocation61_spill] sm:$0xff] }
 0x277   : > { %7507 = vperm.xlu1 %7505, %v11594_v41   ;;  %11595 = vst [vmem:[#allocation40_spill] sm:$0xff] %v9559_v33  ;;  %6077 = vmatmul.msk.bf16.gmra.mxu0 %vm3772_vm0, %v8962_v26  ;;  %v3448_v18 = vadd.f32 %v9416_v46, %v3316_v22  ;;  %v3449_v52 = vadd.f32 %v9416_v46, %v3317_v54  ;;  %v7323_v47 = vpop.permute.xlu1 %7322  ;;  %v7390_v9 = vpop.permute.xlu0 %7389  ;;  %v6838_v10 = vunpack.i.h.bf16 %v11598_v56  ;;  %v6837_v41 = vunpack.i.l.bf16 %v11598_v56 }
 0x278   : > { %v3616_v58 = vmax.f32 %v3488_v37, 0.0  ;;  %v3617_v12 = vmax.f32 %v3489_v43, 0.0  ;;  %v7325_v31 = vunpack.i.h.bf16 %v7323_v47  ;;  %v7324_v34 = vunpack.i.l.bf16 %v7323_v47 }
 0x279   : > { %v2590_v13 = vadd.f32 %v2462_v14, %v9434_v53  ;;  %v2589_v26 = vadd.f32 %v2461_v63, %v9441_v57  ;;  %v4010_v15 = vadd.f32 %v9584_v27, %v4009_v44  ;;  %v7392_v53 = vunpack.i.h.bf16 %v7390_v9 }
 0x27a   : > { %v9577_v24 = vpop.permute.xlu2 %7373  ;;  %v3231_v8 = vmul.f32 %v7325_v31, %v8390_v11  ;;  %v3230_v22 = vmul.f32 %v7324_v34, %v8390_v11  ;;  %v9589_v28 = vpack.c.bf16 %v3617_v12, %v3616_v58  ;;  %v7391_v14 = vunpack.i.l.bf16 %v7390_v9  ;;  %v11599_v34 = vld [vmem:[#allocation27_spill] sm:$0xff] }
 0x27b   : > { %v4011_v54 = vpop.f32.mrf.mxu0  ;;  %v9594_v63 = vmul.f32 %v6843_v32, %v8394_v36  ;;  %v3576_v43 = vmax.f32 %v3448_v18, 0.0  ;;  %v3577_v47 = vmax.f32 %v3449_v52, 0.0  ;;  %v7348_v31 = vunpack.i.h.bf16 %v9501_v55 }
 0x27c   : > { %11597 = vst [vmem:[#allocation42_spill] sm:$0xff] %v9589_v28  ;;  %v4012_v57 = vadd.f32 %v9584_v27, %v4011_v54  ;;  %v3359_v37 = vadd.f32 %v3231_v8, %v2590_v13  ;;  %v3358_v44 = vadd.f32 %v3230_v22, %v2589_v26  ;;  %v7347_v12 = vunpack.i.l.bf16 %v9501_v55 }
 0x27d   : > { %7523 = vperm.xlu2 %7511, %v11599_v34   ;;  %v4308_v9 = vmax.f32 %v4010_v15, 0.0  ;;  %v7364_v56 = vunpack.i.h.bf16 %v9541_v16  ;;  %v7363_v13 = vunpack.i.l.bf16 %v9541_v16  ;;  %v3241_v18 = vmul.f32 %v7392_v53, %v8390_v11 }
 0x27e   : > { %v4309_v58 = vmax.f32 %v4012_v57, 0.0  ;;  %v3491_v54 = vadd.f32 %v9416_v46, %v3359_v37  ;;  %v3490_v32 = vadd.f32 %v9416_v46, %v3358_v44  ;;  %v3240_v52 = vmul.f32 %v7391_v14, %v8390_v11 }
 0x27f   : > { %7518 = vperm.xlu1 %7505, %v11599_v34   ;;  %v3235_v37 = vmul.f32 %v7348_v31, %v8390_v11  ;;  %v3234_v44 = vmul.f32 %v7347_v12, %v8390_v11  ;;  %v3688_v31 = vpack.c.bf16 %v3577_v47, %v3576_v43  ;;  %v5247_v12 = vlaneseq  ;;  %v11601_v43 = vld [vmem:[#allocation34_spill] sm:$0xff] }
 0x280   : > { %v3619_v26 = vmax.f32 %v3491_v54, 0.0  ;;  %v3618_v8 = vmax.f32 %v3490_v32, 0.0  ;;  %v7340_v22 = vpop.permute.xlu1 %7339  ;;  %v4429_v57 = vpack.c.bf16 %v4309_v58, %v4308_v9  ;;  %v9616_v58 = vmul.f32 %v6838_v10, %v8394_v36 }
 0x281   : > { %v7342_v38 = vunpack.i.h.bf16 %v7340_v22  ;;  %v7341_v55 = vunpack.i.l.bf16 %v7340_v22  ;;  %v9619_v9 = vmul.f32 %v6837_v41, %v8394_v36  ;;  %v2470_v10 = vmul.f32 %v7364_v56, %v8396_v23 }
 0x282   : > { %v7384_v34 = vpop.permute.xlu2 %7383  ;;  %v9609_v1 = vpack.c.bf16 %v3619_v26, %v3618_v8  ;;  %v2469_v41 = vmul.f32 %v7363_v13, %v8396_v23  ;;  %v7357_v22 = vunpack.i.l.bf16 %v9533_v60  ;;  %v9640_v13 = vshrl.u32 %v5247_v12, 7 }
 0x283   : > { %v7386_v15 = vunpack.i.h.bf16 %v7384_v34  ;;  %v7385_v28 = vunpack.i.l.bf16 %v7384_v34  ;;  %v4014_v33 = vpop.f32.mrf.mxu0  ;;  %v2466_v16 = vmul.f32 %v7342_v38, %v8396_v23  ;;  %v2465_v53 = vmul.f32 %v7341_v55, %v8396_v23 }
 0x284   : > { %11600 = vst [vmem:[#allocation18_spill] sm:$0xff] %v9609_v1 }
 0x285   : > { %v2472_v14 = vmul.f32 %v7386_v15, %v8396_v23  ;;  %v2471_v54 = vmul.f32 %v7385_v28, %v8396_v23  ;;  %v2593_v32 = vadd.f32 %v2465_v53, %v9520_v42  ;;  %v2594_v38 = vadd.f32 %v2466_v16, %v9484_v40  ;;  %7539 = vset.pattern.permute.xlu2 %v11449_v25  ;;  %v4502_v28 = vld [vmem:[%s11300_s6] sm:$0x3] }
 0x286   : > { %4631 = vmatmul.bf16.gmra.mxu1 %v4429_v57  ;;  %4960 = vmatmul.bf16.gmra.mxu2 %v4429_v57  ;;  %v7358_v25 = vunpack.i.h.bf16 %v9533_v60  ;;  %v9638_v34 = vperm.slane %v4502_v28, 0  ;;  %v9647_v15 = vstv %s6190_s16  ;;  %s5977_s16 = sshll.u32 %s11301_s7, 4  ;;  %s5978_s16 = int_to_ptr.hbm [resolvable:$true] %s5977_s16 }
 0x287   : > { %v2599_v26 = vadd.f32 %v2471_v54, %v9572_v2  ;;  %v2600_v8 = vadd.f32 %v2472_v14, %v9565_v7  ;;  %7533 = vset.pattern.permute.xlu1 %v11474_v49  ;;  %7541 = vperm.xlu2 %7539, %v11601_v43   ;;  %v3362_v40 = vadd.f32 %v3234_v44, %v2593_v32  ;;  %v11602_v7 = vld [vmem:[#allocation31_spill] sm:$0xff] }
 0x288   : > { %v3363_v42 = vadd.f32 %v3235_v37, %v2594_v38  ;;  %7535 = vperm.xlu1 %7533, %v11602_v7   ;;  %6078 = vmatmul.msk.bf16.gmra.mxu0 %vm3772_vm0, %v3688_v31  ;;  %v7351_v56 = vpop.permute.xlu1 %7350  ;;  %v5249_v31 = vadd.s32 8, %v9640_v13  ;;  %v3236_v38 = vmul.f32 %v7357_v22, %v8390_v11 }
 0x289   : > { %v3368_v2 = vadd.f32 %v3240_v52, %v2599_v26  ;;  %v3369_v47 = vadd.f32 %v3241_v18, %v2600_v8  ;;  %v3494_v57 = vadd.f32 %v9416_v46, %v3362_v40  ;;  %v4015_v52 = vadd.f32 %v9584_v27, %v4014_v33 }
 0x28a   : > { %v3495_v55 = vadd.f32 %v9416_v46, %v3363_v42  ;;  %v7353_v44 = vunpack.i.h.bf16 %v7351_v56  ;;  %v7352_v16 = vunpack.i.l.bf16 %v7351_v56  ;;  %v3237_v33 = vmul.f32 %v7358_v25, %v8390_v11 }
 0x28b   : > { %v9645_v18 = vpop.permute.xlu2 %7401  ;;  %v3500_v37 = vadd.f32 %v9416_v46, %v3368_v2  ;;  %v3501_v60 = vadd.f32 %v9416_v46, %v3369_v47  ;;  %v4016_v53 = vpop.f32.mrf.mxu0  ;;  %v3622_v12 = vmax.f32 %v3494_v57, 0.0  ;;  %v4310_v40 = vmax.f32 %v4015_v52, 0.0 }
 0x28c   : > { %v4017_v14 = vadd.f32 %v9584_v27, %v4016_v53  ;;  %v3623_v32 = vmax.f32 %v3495_v55, 0.0  ;;  %v2468_v26 = vmul.f32 %v7353_v44, %v8396_v23  ;;  %v2467_v8 = vmul.f32 %v7352_v16, %v8396_v23  ;;  %v11605_v55 = vld [vmem:[#allocation62_spill] sm:$0xff] }
 0x28d   : > { %v4597_v54 = vpop.f32.mrf.mxu1  ;;  %v9659_v2 = vadd.s32 %v9647_v15, %v9640_v13  ;;  %v11604_v57 = vmov 0   ;;  %v3628_v25 = vmax.f32 %v3500_v37, 0.0  ;;  %v3629_v22 = vmax.f32 %v3501_v60, 0.0 }
 0x28e   : > { %v4311_v42 = vmax.f32 %v4017_v14, 0.0  ;;  %v9661_v47 = vpack.c.bf16 %v3623_v32, %v3622_v12  ;;  %v2596_v7 = vadd.f32 %v2468_v26, %v9454_v59  ;;  %v2595_v56 = vadd.f32 %v2467_v8, %v9477_v29 }
 0x28f   : > { %7550 = vset.pattern.permute.xlu2 %v11604_v57  ;;  %v6858_v44 = vunpack.i.h.bf16 %v11605_v55  ;;  %v6857_v16 = vunpack.i.l.bf16 %v11605_v55  ;;  %v9669_v52 = vperm.slane %v4502_v28, 1  ;;  %v9672_v53 = vadd.s32 %v9647_v15, %v5249_v31 }
 0x290   : > { %11603 = vst [vmem:[#allocation41_spill] sm:$0xff] %v9661_v47  ;;  %7546 = vperm.xlu1 %7533, %v11601_v43   ;;  %v3365_v14 = vadd.f32 %v3237_v33, %v2596_v7  ;;  %v3364_v12 = vadd.f32 %v3236_v38, %v2595_v56  ;;  %v4430_v59 = vpack.c.bf16 %v4311_v42, %v4310_v40  ;;  %v7376_v60 = vunpack.i.h.bf16 %v9577_v24 }
 0x291   : > { %v9674_v32 = vpack.c.bf16 %v3629_v22, %v3628_v25  ;;  %v2598_v29 = vadd.f32 %v2470_v10, %v9270_v20  ;;  %v2597_v37 = vadd.f32 %v2469_v41, %v9282_v39  ;;  %vm5281_vm1 = vcmp.lt.s32.totalorder %v9659_v2, 300  ;;  %v7368_v26 = vpop.permute.xlu1 %7367  ;;  %v11607_v25 = vld [vmem:[#allocation64_spill] sm:$0xff] }
 0x292   : > { %v7375_v28 = vunpack.i.l.bf16 %v9577_v24  ;;  %v4598_v31 = vadd.f32 %v4597_v54, %v9638_v34  ;;  %v7370_v33 = vunpack.i.h.bf16 %v7368_v26  ;;  %v7369_v38 = vunpack.i.l.bf16 %v7368_v26 }
 0x293   : > { %11606 = vst [vmem:[#allocation43_spill] sm:$0xff] %v9674_v32  ;;  %v9680_v43 = vpop.permute.xlu2 %7411  ;;  %v4019_v8 = vpop.f32.mrf.mxu0  ;;  %v3497_v42 = vadd.f32 %v9416_v46, %v3365_v14  ;;  %v3496_v20 = vadd.f32 %v9416_v46, %v3364_v12  ;;  %vm5282_vm2 = vcmp.lt.s32.totalorder %v9672_v53, 300  ;;  %v5250_v54 = vadd.s32 16, %v9640_v13 }
 0x294   : > { %v4926_v40 = vpop.f32.mrf.mxu2  ;;  %v3239_v41 = vmul.f32 %v7370_v33, %v8390_v11  ;;  %v3238_v7 = vmul.f32 %v7369_v38, %v8390_v11  ;;  %v1845_v56 = vmul.f32 %v6858_v44, %v8394_v36  ;;  %v1844_v57 = vmul.f32 %v6857_v16, %v8394_v36  ;;  %v7418_v33 = vpop.permute.xlu0 %7417 }
 0x295   : > { %v4927_v39 = vadd.f32 %v4926_v40, %v9669_v52  ;;  %v4599_v10 = vpop.f32.mrf.mxu1  ;;  %v6873_v22 = vunpack.i.h.bf16 %v11607_v25  ;;  %v5329_v14 = vsel %vm5281_vm1, %v4598_v31, -inf  ;;  %v2486_v38 = vmul.f32 %v7376_v60, %v8396_v23 }
 0x296   : > { %4636 = vmatmul.bf16.gmra.mxu1 %v4430_v59  ;;  %4965 = vmatmul.bf16.gmra.mxu2 %v4430_v59  ;;  %v4600_v24 = vadd.f32 %v4599_v10, %v9638_v34  ;;  %v3366_v12 = vadd.f32 %v3238_v7, %v2597_v37  ;;  %v3367_v26 = vadd.f32 %v3239_v41, %v2598_v29  ;;  %v3624_v10 = vmax.f32 %v3496_v20, 0.0  ;;  %v11608_v37 = vld [vmem:[#allocation65_spill] sm:$0xff] }
 0x297   : > { %v3625_v44 = vmax.f32 %v3497_v42, 0.0  ;;  %v2485_v16 = vmul.f32 %v7375_v28, %v8396_v23  ;;  %v9707_v29 = vadd.s32 %v9647_v15, %v5250_v54  ;;  %v6868_v31 = vunpack.i.h.bf16 %v11608_v37 }
 0x298   : > { %v5331_v59 = vsel %vm5282_vm2, %v4600_v24, -inf  ;;  %v3498_v32 = vadd.f32 %v9416_v46, %v3366_v12  ;;  %v3499_v55 = vadd.f32 %v9416_v46, %v3367_v26  ;;  %6079 = vmatmul.msk.bf16.gmra.mxu0 %vm3772_vm0, %v9034_v45  ;;  %v6867_v41 = vunpack.i.l.bf16 %v11608_v37 }
 0x299   : > { %v5585_v40 = vmax.f32 %v5329_v14, %v5331_v59  ;;  %v4020_v60 = vadd.f32 %v9584_v27, %v4019_v8  ;;  %v7379_v20 = vpop.permute.xlu1 %7378  ;;  %v9712_v42 = vpack.c.bf16 %v3625_v44, %v3624_v10  ;;  %v9715_v45 = vmul.f32 %v6873_v22, %v8394_v36 }
 0x29a   : > { %v3626_v28 = vmax.f32 %v3498_v32, 0.0  ;;  %v3627_v7 = vmax.f32 %v3499_v55, 0.0  ;;  %v7381_v24 = vunpack.i.h.bf16 %v7379_v20  ;;  %v7380_v14 = vunpack.i.l.bf16 %v7379_v20 }
 0x29b   : > { %11609 = vst [vmem:[#allocation73_spill] sm:$0xff] %v9712_v42  ;;  %v4021_v12 = vpop.f32.mrf.mxu0  ;;  %v2614_v54 = vadd.f32 %v2486_v38, %v1845_v56  ;;  %v2613_v8 = vadd.f32 %v2485_v16, %v1844_v57  ;;  %vm5283_vm3 = vcmp.lt.s32.totalorder %v9707_v29, 300  ;;  %v5251_v56 = vadd.s32 24, %v9640_v13 }
 0x29c   : > { %v4928_v26 = vpop.f32.mrf.mxu2  ;;  %v9717_v59 = vpop.permute.xlu2 %7429  ;;  %v4022_v49 = vadd.f32 %v9584_v27, %v4021_v12  ;;  %v3255_v10 = vmul.f32 %v7381_v24, %v8390_v11  ;;  %v3254_v32 = vmul.f32 %v7380_v14, %v8390_v11  ;;  %v9727_v38 = vpack.c.bf16 %v3627_v7, %v3626_v28 }
 0x29d   : > { %v4929_v37 = vadd.f32 %v4928_v26, %v9669_v52  ;;  %v4312_v20 = vmax.f32 %v4020_v60, 0.0  ;;  %v5330_v12 = vsel %vm5281_vm1, %v4927_v39, -inf  ;;  %v7420_v24 = vunpack.i.h.bf16 %v7418_v33  ;;  %v9731_v14 = vpop.permute.xlu0 %7445 }
 0x29e   : > { %v4313_v55 = vmax.f32 %v4022_v49, 0.0  ;;  %v4602_v22 = vpop.f32.mrf.mxu1  ;;  %11610 = vst [vmem:[#allocation17_spill] sm:$0xff] %v9727_v38  ;;  %v3383_v57 = vadd.f32 %v3255_v10, %v2614_v54  ;;  %v3382_v16 = vadd.f32 %v3254_v32, %v2613_v8  ;;  %v7419_v26 = vunpack.i.l.bf16 %v7418_v33 }
 0x29f   : > { %v5332_v44 = vsel %vm5282_vm2, %v4929_v37, -inf  ;;  %v4603_v49 = vadd.f32 %v4602_v22, %v9638_v34  ;;  %v7404_v37 = vunpack.i.h.bf16 %v9645_v18  ;;  %v1849_v60 = vmul.f32 %v6868_v31, %v8394_v36 }
 0x2a0   : > { %v5606_v42 = vmax.f32 %v5330_v12, %v5332_v44  ;;  %v4431_v47 = vpack.c.bf16 %v4313_v55, %v4312_v20  ;;  %v3514_v1 = vadd.f32 %v9416_v46, %v3382_v16  ;;  %v3515_v28 = vadd.f32 %v9416_v46, %v3383_v57 }
 0x2a1   : > { %v7403_v39 = vunpack.i.l.bf16 %v9645_v18  ;;  %v5333_v7 = vsel %vm5283_vm3, %v4603_v49, -inf  ;;  %v9742_v33 = vadd.s32 %v9647_v15, %v5251_v56  ;;  %v1848_v54 = vmul.f32 %v6867_v41, %v8394_v36 }
 0x2a2   : > { %v9745_v8 = vmax.f32 %v5585_v40, %v5333_v7  ;;  %v7396_v10 = vpop.permute.xlu1 %7395  ;;  %v3642_v55 = vmax.f32 %v3514_v1, 0.0  ;;  %v3643_v44 = vmax.f32 %v3515_v28, 0.0  ;;  %v2490_v22 = vmul.f32 %v7420_v24, %v8396_v23 }
 0x2a3   : > { %v4024_v32 = vpop.f32.mrf.mxu0  ;;  %v2489_v31 = vmul.f32 %v7419_v26, %v8396_v23  ;;  %v7398_v20 = vunpack.i.h.bf16 %v7396_v10  ;;  %v7397_v18 = vunpack.i.l.bf16 %v7396_v10  ;;  %v3257_v56 = vmul.f32 %v7404_v37, %v8390_v11 }
 0x2a4   : > { %v4931_v12 = vpop.f32.mrf.mxu2  ;;  %v9751_v16 = vpop.permute.xlu2 %7439  ;;  %v3721_v40 = vpack.c.bf16 %v3643_v44, %v3642_v55  ;;  %v3256_v1 = vmul.f32 %v7403_v39, %v8390_v11  ;;  %vm5284_vm4 = vcmp.lt.s32.totalorder %v9742_v33, 300  ;;  %v7448_v28 = vunpack.i.h.bf16 %v9731_v14 }
 0x2a5   : > { %v4932_v41 = vadd.f32 %v4931_v12, %v9669_v52  ;;  %v2488_v24 = vmul.f32 %v7398_v20, %v8396_v23  ;;  %v2487_v26 = vmul.f32 %v7397_v18, %v8396_v23  ;;  %v5252_v7 = vadd.s32 32, %v9640_v13  ;;  %v11612_v18 = vld [vmem:[#allocation35_spill] sm:$0xff] }
 0x2a6   : > { %4641 = vmatmul.bf16.gmra.mxu1 %v4431_v47  ;;  %4970 = vmatmul.bf16.gmra.mxu2 %v4431_v47  ;;  %v4604_v49 = vpop.f32.mrf.mxu1  ;;  %v11611_v39 = vunpack.i.l.bf16 %v11607_v25  ;;  %v9774_v12 = vadd.f32 %v2489_v31, %v1848_v54  ;;  %v9788_v54 = vmul.f32 %v7448_v28, %v8390_v11  ;;  %v7441_v57 = vunpack.i.l.bf16 %v9751_v16 }
 0x2a7   : > { %6111 = vmatmul.msk.bf16.vlgmr.msra.gmra.mxu3 %vm3772_vm0, %v3721_v40  ;;  %v5334_v37 = vsel %vm5283_vm3, %v4932_v41, -inf  ;;  %v4605_v47 = vadd.f32 %v4604_v49, %v9638_v34  ;;  %v2616_v55 = vadd.f32 %v2488_v24, %v9447_v21  ;;  %v2615_v44 = vadd.f32 %v2487_v26, %v9450_v19  ;;  %v9783_v49 = vpop.permute.xlu0 %7473 }
 0x2a8   : > { %v9767_v10 = vmul.f32 %v11611_v39, %v8394_v36  ;;  %v9771_v20 = vmax.f32 %v5606_v42, %v5334_v37  ;;  %6547 = vmatpush.bf16.msra.mxu3 %v11612_v18  ;;  %v9776_v40 = vadd.f32 %v2490_v22, %v1849_v60  ;;  %v7414_v41 = vunpack.i.h.bf16 %v9680_v43  ;;  %6080 = vmatmul.msk.bf16.gmra.mxu0 %vm3772_vm0, %v8964_v0 }
 0x2a9   : > { %v5335_v25 = vsel %vm5284_vm4, %v4605_v47, -inf  ;;  %v7413_v21 = vunpack.i.l.bf16 %v9680_v43  ;;  %v3385_v19 = vadd.f32 %v3257_v56, %v2616_v55  ;;  %v3384_v42 = vadd.f32 %v3256_v1, %v2615_v44 }
 0x2aa   : > { %v5587_v24 = vmax.f32 %v9745_v8, %v5335_v25  ;;  %v7447_v60 = vunpack.i.l.bf16 %v9731_v14  ;;  %v4025_v22 = vadd.f32 %v9584_v27, %v4024_v32  ;;  %v7407_v31 = vpop.permute.xlu1 %7406  ;;  %v9793_v26 = vadd.s32 %v9647_v15, %v5252_v7  ;;  %v11613_v8 = vld [vmem:[#allocation82_spill] sm:$0xff] }
 0x2ab   : > { %v4026_v0 = vpop.f32.mrf.mxu0  ;;  %v7409_v37 = vunpack.i.h.bf16 %v7407_v31  ;;  %v7408_v47 = vunpack.i.l.bf16 %v7407_v31  ;;  %v5253_v1 = vadd.s32 40, %v9640_v13  ;;  %v3243_v28 = vmul.f32 %v7414_v41, %v8390_v11 }
 0x2ac   : > { %v4027_v43 = vadd.f32 %v9584_v27, %v4026_v0  ;;  %v4933_v56 = vpop.f32.mrf.mxu2  ;;  %6548 = vmatpush.bf16.msra.mxu3 %v11613_v8  ;;  %v3516_v32 = vadd.f32 %v9416_v46, %v3384_v42  ;;  %v3517_v7 = vadd.f32 %v9416_v46, %v3385_v19  ;;  %v3242_v55 = vmul.f32 %v7413_v21, %v8390_v11 }
 0x2ad   : > { %v9799_v39 = vpop.permute.xlu2 %7457  ;;  %v4934_v14 = vadd.f32 %v4933_v56, %v9669_v52  ;;  %v2474_v44 = vmul.f32 %v7409_v37, %v8396_v23  ;;  %v2473_v18 = vmul.f32 %v7408_v47, %v8396_v23  ;;  %v9808_v31 = vmul.f32 %v7447_v60, %v8390_v11  ;;  %v11614_v47 = vld [vmem:[#allocation8_spill] sm:$0xff] }
 0x2ae   : > { %v4315_v25 = vmax.f32 %v4027_v43, 0.0  ;;  %v4314_v0 = vmax.f32 %v4025_v22, 0.0  ;;  %vm5285_vm5 = vcmp.lt.s32.totalorder %v9793_v26, 300  ;;  %v9817_v37 = vadd.s32 %v9647_v15, %v5253_v1 }
 0x2af   : > { %v5336_v41 = vsel %vm5284_vm4, %v4934_v14, -inf  ;;  %v4607_v8 = vpop.f32.mrf.mxu1  ;;  %v2602_v42 = vadd.f32 %v2474_v44, %v9551_v30  ;;  %v2601_v19 = vadd.f32 %v2473_v18, %v9562_v61  ;;  %v3644_v43 = vmax.f32 %v3516_v32, 0.0  ;;  %v9824_v44 = vpop.permute.xlu0 %7501 }
 0x2b0   : > { %v5608_v21 = vmax.f32 %v9771_v20, %v5336_v41  ;;  %6549 = vmatpush.bf16.msra.mxu3 %v11614_v47  ;;  %v4608_v60 = vadd.f32 %v4607_v8, %v9638_v34  ;;  %v4432_v22 = vpack.c.bf16 %v4315_v25, %v4314_v0  ;;  %v3645_v56 = vmax.f32 %v3517_v7, 0.0 }
 0x2b1   : > { %v7476_v14 = vunpack.i.h.bf16 %v9783_v49  ;;  %v3371_v38 = vadd.f32 %v3243_v28, %v2602_v42  ;;  %v3370_v30 = vadd.f32 %v3242_v55, %v2601_v19  ;;  %v7432_v20 = vunpack.i.h.bf16 %v9717_v59  ;;  %v11615_v55 = vld [vmem:[#allocation9_spill] sm:$0xff] }
 0x2b2   : > { %v7442_v1 = vunpack.i.h.bf16 %v9751_v16  ;;  %v5337_v18 = vsel %vm5285_vm5, %v4608_v60, -inf  ;;  %v7504_v32 = vunpack.i.h.bf16 %v9824_v44  ;;  %v7431_v7 = vunpack.i.l.bf16 %v9717_v59 }
 0x2b3   : > { %v4029_v25 = vpop.f32.mrf.mxu0  ;;  %v9832_v0 = vmax.f32 %v5587_v24, %v5337_v18  ;;  %vm5286_vm6 = vcmp.lt.s32.totalorder %v9817_v37, 300  ;;  %v3722_v42 = vpack.c.bf16 %v3645_v56, %v3644_v43  ;;  %v5254_v47 = vadd.s32 48, %v9640_v13 }
 0x2b4   : > { %v7424_v28 = vpop.permute.xlu1 %7423  ;;  %6550 = vmatpush.bf16.msra.mxu3 %v11615_v55  ;;  %v2491_v60 = vmul.f32 %v7441_v57, %v8396_v23  ;;  %v3503_v59 = vadd.f32 %v9416_v46, %v3371_v38  ;;  %v3502_v24 = vadd.f32 %v9416_v46, %v3370_v30  ;;  %v2476_v55 = vmul.f32 %v7432_v20, %v8396_v23  ;;  %v11616_v30 = vld [vmem:[#allocation83_spill] sm:$0xff] }
 0x2b5   : > { %v7426_v41 = vunpack.i.h.bf16 %v7424_v28  ;;  %v7425_v8 = vunpack.i.l.bf16 %v7424_v28  ;;  %v9836_v16 = vpop.permute.xlu2 %7467  ;;  %v4936_v19 = vpop.f32.mrf.mxu2  ;;  %v2492_v28 = vmul.f32 %v7442_v1, %v8396_v23  ;;  %v7503_v56 = vunpack.i.l.bf16 %v9824_v44 }
 0x2b6   : > { %4646 = vmatmul.bf16.gmra.mxu1 %v4432_v22  ;;  %4975 = vmatmul.bf16.gmra.mxu2 %v4432_v22  ;;  %v4937_v18 = vadd.f32 %v4936_v19, %v9669_v52  ;;  %v2475_v57 = vmul.f32 %v7431_v7, %v8396_v23  ;;  %v2619_v7 = vadd.f32 %v2491_v60, %v9767_v10  ;;  %v9875_v10 = vld [vmem:[%s11296_s2] ss:$0 sm:$0xff] }
 0x2b7   : > { %v3259_v22 = vmul.f32 %v7426_v41, %v8390_v11  ;;  %v3258_v61 = vmul.f32 %v7425_v8, %v8390_v11  ;;  %6112 = vmatmul.msk.bf16.gmra.mxu3 %vm3772_vm0, %v3722_v42  ;;  %v4609_v43 = vpop.f32.mrf.mxu1  ;;  %v11617_v8 = vld [vmem:[#allocation12_spill] sm:$0xff]  ;;  %v9861_v42 = vadd.s32 %v9647_v15, %v5254_v47 }
 0x2b8   : > { %v5338_v46 = vsel %vm5285_vm5, %v4937_v18, -inf  ;;  %v4610_v38 = vadd.f32 %v4609_v43, %v9638_v34  ;;  %6551 = vmatpush.bf16.msra.mxu3 %v11616_v30  ;;  %6081 = vmatmul.msk.bf16.gmra.mxu0 %vm3772_vm0, %v11617_v8  ;;  %v3630_v18 = vmax.f32 %v3502_v24, 0.0  ;;  %v3631_v43 = vmax.f32 %v3503_v59, 0.0 }
 0x2b9   : > { %v3386_v20 = vadd.f32 %v3258_v61, %v9774_v12  ;;  %v3387_v1 = vadd.f32 %v3259_v22, %v9776_v40  ;;  %v9856_v41 = vmax.f32 %v5608_v21, %v5338_v46  ;;  %v2604_v30 = vadd.f32 %v2476_v55, %v9375_v5 }
 0x2ba   : > { %v5339_v19 = vsel %vm5286_vm6, %v4610_v38, -inf  ;;  %v2620_v12 = vadd.f32 %v2492_v28, %v9715_v45  ;;  %v4030_v40 = vadd.f32 %v9584_v27, %v4029_v25  ;;  %v2603_v22 = vadd.f32 %v2475_v57, %v9398_v3  ;;  %v11618_v45 = vld [vmem:[#allocation84_spill] sm:$0xff] }
 0x2bb   : > { %v5589_v21 = vmax.f32 %v9832_v0, %v5339_v19  ;;  %v4031_v61 = vpop.f32.mrf.mxu0  ;;  %v3518_v60 = vadd.f32 %v9875_v10, %v3386_v20  ;;  %v9878_v5 = vpack.c.bf16 %v3631_v43, %v3630_v18  ;;  %vm5287_vm7 = vcmp.lt.s32.totalorder %v9861_v42, 300 }
 0x2bc   : > { %v7435_v47 = vpop.permute.xlu1 %7434  ;;  %v4032_v46 = vadd.f32 %v9584_v27, %v4031_v61  ;;  %6552 = vmatpush.bf16.msra.mxu3 %v11618_v45  ;;  %v3519_v3 = vadd.f32 %v9875_v10, %v3387_v1  ;;  %v3388_v24 = vadd.f32 %v9808_v31, %v2619_v7  ;;  %v5255_v38 = vadd.s32 56, %v9640_v13 }
 0x2bd   : > { %v7437_v25 = vunpack.i.h.bf16 %v7435_v47  ;;  %v7436_v59 = vunpack.i.l.bf16 %v7435_v47  ;;  %v4938_v0 = vpop.f32.mrf.mxu2  ;;  %v3389_v20 = vadd.f32 %v9788_v54, %v2620_v12  ;;  %v4316_v8 = vmax.f32 %v4030_v40, 0.0  ;;  %v11619_v47 = vld [vmem:[#allocation36_spill] sm:$0xff] }
 0x2be   : > { %v4317_v55 = vmax.f32 %v4032_v46, 0.0  ;;  %v9884_v28 = vpop.permute.xlu2 %7485  ;;  %v4939_v57 = vadd.f32 %v4938_v0, %v9669_v52  ;;  %v7460_v43 = vunpack.i.h.bf16 %v9799_v39  ;;  %v7459_v1 = vunpack.i.l.bf16 %v9799_v39 }
 0x2bf   : > { %v3245_v19 = vmul.f32 %v7437_v25, %v8390_v11  ;;  %v3244_v18 = vmul.f32 %v7436_v59, %v8390_v11  ;;  %v3646_v61 = vmax.f32 %v3518_v60, 0.0  ;;  %v3647_v54 = vmax.f32 %v3519_v3, 0.0 }
 0x2c0   : > { %v5340_v31 = vsel %vm5286_vm6, %v4939_v57, -inf  ;;  %v4612_v7 = vpop.f32.mrf.mxu1  ;;  %6553 = vmatpush.bf16.msra.mxu3 %v11619_v47  ;;  %v4433_v0 = vpack.c.bf16 %v4317_v55, %v4316_v8  ;;  %v9899_v25 = vadd.s32 %v9647_v15, %v5255_v38  ;;  %v9902_v39 = vadd.f32 %v9875_v10, %v3388_v24  ;;  %v11620_v38 = vld [vmem:[#allocation70_spill] sm:$0xff] }
 0x2c1   : > { %v3373_v46 = vadd.f32 %v3245_v19, %v2604_v30  ;;  %v3372_v45 = vadd.f32 %v3244_v18, %v2603_v22  ;;  %v5610_v12 = vmax.f32 %v9856_v41, %v5340_v31  ;;  %v4613_v40 = vadd.f32 %v4612_v7, %v9638_v34 }
 0x2c2   : > { %v3251_v60 = vmul.f32 %v7504_v32, %v8390_v11  ;;  %v3250_v59 = vmul.f32 %v7503_v56, %v8390_v11  ;;  %v3247_v41 = vmul.f32 %v7460_v43, %v8390_v11  ;;  %v3246_v55 = vmul.f32 %v7459_v1, %v8390_v11 }
 0x2c3   : > { %v3505_v30 = vadd.f32 %v9875_v10, %v3373_v46  ;;  %v3504_v22 = vadd.f32 %v9875_v10, %v3372_v45  ;;  %v4034_v3 = vpop.f32.mrf.mxu0  ;;  %v5341_v57 = vsel %vm5287_vm7, %v4613_v40, -inf  ;;  %v9915_v24 = vadd.f32 %v9875_v10, %v3389_v20 }
 0x2c4   : > { %6554 = vmatpush.bf16.msra.mxu3 %v11620_v38  ;;  %v9918_v56 = vmax.f32 %v5589_v21, %v5341_v57  ;;  %v3723_v19 = vpack.c.bf16 %v3647_v54, %v3646_v61  ;;  %vm5288_vm8 = vcmp.lt.s32.totalorder %v9899_v25, 300  ;;  %v3648_v7 = vmax.f32 %v9902_v39, 0.0  ;;  %v11621_v57 = vld [vmem:[#allocation69_spill] sm:$0xff] }
 0x2c5   : > { %v3633_v44 = vmax.f32 %v3505_v30, 0.0  ;;  %v3632_v32 = vmax.f32 %v3504_v22, 0.0  ;;  %v7452_v8 = vpop.permute.xlu1 %7451  ;;  %v7470_v45 = vunpack.i.h.bf16 %v9836_v16  ;;  %v5256_v40 = vadd.s32 64, %v9640_v13 }
 0x2c6   : > { %4651 = vmatmul.bf16.gmra.mxu1 %v4433_v0  ;;  %4980 = vmatmul.bf16.gmra.mxu2 %v4433_v0  ;;  %v7454_v18 = vunpack.i.h.bf16 %v7452_v8  ;;  %v7453_v43 = vunpack.i.l.bf16 %v7452_v8  ;;  %v7496_v31 = vpop.permute.xlu2 %7495  ;;  %v4941_v1 = vpop.f32.mrf.mxu2 }
 0x2c7   : > { %v7498_v20 = vunpack.i.h.bf16 %v7496_v31  ;;  %v7497_v47 = vunpack.i.l.bf16 %v7496_v31  ;;  %6113 = vmatmul.msk.bf16.gmra.mxu3 %vm3772_vm0, %v3723_v19  ;;  %v4942_v46 = vadd.f32 %v4941_v1, %v9669_v52  ;;  %v9924_v21 = vpack.c.bf16 %v3633_v44, %v3632_v32 }
 0x2c8   : > { %v2478_v61 = vmul.f32 %v7454_v18, %v8396_v23  ;;  %v2477_v0 = vmul.f32 %v7453_v43, %v8396_v23  ;;  %v4614_v54 = vpop.f32.mrf.mxu1  ;;  %6082 = vmatmul.msk.bf16.gmra.mxu0 %vm3772_vm0, %v11621_v57  ;;  %v7469_v44 = vunpack.i.l.bf16 %v9836_v16  ;;  %v4035_v18 = vadd.f32 %v9584_v27, %v4034_v3 }
 0x2c9   : > { %v2482_v30 = vmul.f32 %v7498_v20, %v8396_v23  ;;  %v2481_v39 = vmul.f32 %v7497_v47, %v8396_v23  ;;  %v5342_v22 = vsel %vm5287_vm7, %v4942_v46, -inf  ;;  %v4615_v38 = vadd.f32 %v4614_v54, %v9638_v34 }
 0x2ca   : > { %v2605_v32 = vadd.f32 %v2477_v0, %v9619_v9  ;;  %v2606_v8 = vadd.f32 %v2478_v61, %v9616_v58  ;;  %v9940_v19 = vmax.f32 %v5610_v12, %v5342_v22  ;;  %v9950_v61 = vadd.s32 %v9647_v15, %v5256_v40 }
 0x2cb   : > { %v2610_v43 = vadd.f32 %v2482_v30, %v9421_v51  ;;  %v2609_v31 = vadd.f32 %v2481_v39, %v9424_v4  ;;  %v5343_v1 = vsel %vm5288_vm8, %v4615_v38, -inf  ;;  %v4036_v20 = vpop.f32.mrf.mxu0  ;;  %v3649_v51 = vmax.f32 %v9915_v24, 0.0 }
 0x2cc   : > { %v3374_v47 = vadd.f32 %v3246_v55, %v2605_v32  ;;  %v3375_v46 = vadd.f32 %v3247_v41, %v2606_v8  ;;  %v5591_v16 = vmax.f32 %v9918_v56, %v5343_v1  ;;  %v4037_v9 = vadd.f32 %v9584_v27, %v4036_v20 }
 0x2cd   : > { %v3378_v0 = vadd.f32 %v3250_v59, %v2609_v31  ;;  %v3379_v58 = vadd.f32 %v3251_v60, %v2610_v43  ;;  %v7463_v12 = vpop.permute.xlu1 %7462  ;;  %v5257_v55 = vadd.s32 72, %v9640_v13  ;;  %v4318_v56 = vmax.f32 %v4035_v18, 0.0 }
 0x2ce   : > { %v3506_v4 = vadd.f32 %v9875_v10, %v3374_v47  ;;  %v7465_v3 = vunpack.i.h.bf16 %v7463_v12  ;;  %v7464_v54 = vunpack.i.l.bf16 %v7463_v12  ;;  %v4943_v30 = vpop.f32.mrf.mxu2  ;;  %v3507_v41 = vadd.f32 %v9875_v10, %v3375_v46 }
 0x2cf   : > { %v4319_v39 = vmax.f32 %v4037_v9, 0.0  ;;  %v4944_v59 = vadd.f32 %v4943_v30, %v9669_v52  ;;  %v11622_v60 = vunpack.i.l.bf16 %v11596_v50  ;;  %v2480_v24 = vmul.f32 %v7476_v14, %v8396_v23 }
 0x2d0   : > { %v2494_v22 = vmul.f32 %v7465_v3, %v8396_v23  ;;  %v2493_v57 = vmul.f32 %v7464_v54, %v8396_v23  ;;  %vm5289_vm9 = vcmp.lt.s32.totalorder %v9950_v61, 300  ;;  %v3634_v18 = vmax.f32 %v3506_v4, 0.0 }
 0x2d1   : > { %v1838_v40 = vmul.f32 %v11622_v60, %v8394_v36  ;;  %v5344_v38 = vsel %vm5288_vm8, %v4944_v59, -inf  ;;  %v4617_v32 = vpop.f32.mrf.mxu1  ;;  %v4434_v8 = vpack.c.bf16 %v4319_v39, %v4318_v56  ;;  %v11623_v50 = vunpack.i.l.bf16 %v9783_v49 }
 0x2d2   : > { %v3263_v31 = vmul.f32 %v7470_v45, %v8390_v11  ;;  %v5612_v14 = vmax.f32 %v9940_v19, %v5344_v38  ;;  %v4618_v1 = vadd.f32 %v4617_v32, %v9638_v34  ;;  %v3262_v20 = vmul.f32 %v7469_v44, %v8390_v11  ;;  %v11624_v44 = vld [vmem:[#allocation67_spill] sm:$0xff] }
 0x2d3   : > { %v2479_v43 = vmul.f32 %v11623_v50, %v8396_v23  ;;  %v4039_v47 = vpop.f32.mrf.mxu0  ;;  %v3724_v46 = vpack.c.bf16 %v3649_v51, %v3648_v7  ;;  %v9976_v9 = vadd.s32 %v9647_v15, %v5257_v55  ;;  %v3635_v12 = vmax.f32 %v3507_v41, 0.0 }
 0x2d4   : > { %v3510_v4 = vadd.f32 %v9875_v10, %v3378_v0  ;;  %v2622_v3 = vadd.f32 %v2494_v22, %v9538_v48  ;;  %v2621_v49 = vadd.f32 %v2493_v57, %v9546_v6  ;;  %v5345_v45 = vsel %vm5289_vm9, %v4618_v1, -inf }
 0x2d5   : > { %v3511_v19 = vadd.f32 %v9875_v10, %v3379_v58  ;;  %v9984_v54 = vmax.f32 %v5591_v16, %v5345_v45  ;;  %v9986_v7 = vpack.c.bf16 %v3635_v12, %v3634_v18  ;;  %v6883_v51 = vunpack.i.h.bf16 %v11624_v44 }
 0x2d6   : > { %4656 = vmatmul.bf16.gmra.mxu1 %v4434_v8  ;;  %4985 = vmatmul.bf16.gmra.mxu2 %v4434_v8  ;;  %v2608_v30 = vadd.f32 %v2480_v24, %v9594_v63  ;;  %v2607_v55 = vadd.f32 %v2479_v43, %v1838_v40  ;;  %v7488_v48 = vunpack.i.h.bf16 %v9884_v28  ;;  %v3391_v58 = vadd.f32 %v3263_v31, %v2622_v3  ;;  %v11625_v63 = vld [vmem:[#allocation74_spill] sm:$0xff] }
 0x2d7   : > { %v7480_v0 = vpop.permute.xlu1 %7479  ;;  %6114 = vmatmul.msk.bf16.gmra.mxu3 %vm3772_vm0, %v3724_v46  ;;  %v4946_v56 = vpop.f32.mrf.mxu2  ;;  %v3390_v16 = vadd.f32 %v3262_v20, %v2621_v49  ;;  %vm5290_vm10 = vcmp.lt.s32.totalorder %v9976_v9, 300  ;;  %v3638_v24 = vmax.f32 %v3510_v4, 0.0  ;;  %v3639_v22 = vmax.f32 %v3511_v19, 0.0 }
 0x2d8   : > { %v7482_v6 = vunpack.i.h.bf16 %v7480_v0  ;;  %v7481_v41 = vunpack.i.l.bf16 %v7480_v0  ;;  %v4947_v39 = vadd.f32 %v4946_v56, %v9669_v52  ;;  %6083 = vmatmul.msk.bf16.gmra.mxu0 %vm3772_vm0, %v11625_v63  ;;  %v4040_v57 = vadd.f32 %v9584_v27, %v4039_v47 }
 0x2d9   : > { %v4619_v40 = vpop.f32.mrf.mxu1  ;;  %v5258_v8 = vadd.s32 80, %v9640_v13  ;;  %v7487_v18 = vunpack.i.l.bf16 %v9884_v28  ;;  %v3522_v47 = vadd.f32 %v9875_v10, %v3390_v16  ;;  %v3523_v12 = vadd.f32 %v9875_v10, %v3391_v58 }
 0x2da   : > { %v3249_v59 = vmul.f32 %v7482_v6, %v8390_v11  ;;  %v3248_v60 = vmul.f32 %v7481_v41, %v8390_v11  ;;  %v5346_v38 = vsel %vm5289_vm9, %v4947_v39, -inf  ;;  %v4620_v32 = vadd.f32 %v4619_v40, %v9638_v34 }
 0x2db   : > { %v10004_v31 = vmax.f32 %v5612_v14, %v5346_v38  ;;  %v4041_v1 = vpop.f32.mrf.mxu0  ;;  %v10014_v49 = vpack.c.bf16 %v3639_v22, %v3638_v24  ;;  %v6882_v14 = vunpack.i.l.bf16 %v11624_v44  ;;  %v4320_v45 = vmax.f32 %v4040_v57, 0.0  ;;  %v10027_v24 = vpop.permute.xlu2 %7513 }
 0x2dc   : > { %v3376_v50 = vadd.f32 %v3248_v60, %v2607_v55  ;;  %v3377_v43 = vadd.f32 %v3249_v59, %v2608_v30  ;;  %v5347_v20 = vsel %vm5290_vm10, %v4620_v32, -inf  ;;  %v4042_v46 = vadd.f32 %v9584_v27, %v4041_v1 }
 0x2dd   : > { %v5593_v28 = vmax.f32 %v9984_v54, %v5347_v20  ;;  %v10018_v0 = vadd.s32 %v9647_v15, %v5258_v8  ;;  %v1855_v58 = vmul.f32 %v6883_v51, %v8394_v36  ;;  %v2496_v16 = vmul.f32 %v7488_v48, %v8396_v23 }
 0x2de   : > { %v3508_v4 = vadd.f32 %v9875_v10, %v3376_v50  ;;  %v3509_v3 = vadd.f32 %v9875_v10, %v3377_v43  ;;  %v4321_v19 = vmax.f32 %v4042_v46, 0.0  ;;  %v2495_v54 = vmul.f32 %v7487_v18, %v8396_v23  ;;  %v11626_v50 = vld [vmem:[#allocation63_spill] sm:$0xff] }
 0x2df   : > { %v7491_v30 = vpop.permute.xlu1 %7490  ;;  %v4948_v56 = vpop.f32.mrf.mxu2  ;;  %v3650_v59 = vmax.f32 %v3522_v47, 0.0  ;;  %v3651_v60 = vmax.f32 %v3523_v12, 0.0  ;;  %v1854_v40 = vmul.f32 %v6882_v14, %v8394_v36  ;;  %vm5291_vm11 = vcmp.lt.s32.totalorder %v10018_v0, 300 }
 0x2e0   : > { %v3636_v27 = vmax.f32 %v3508_v4, 0.0  ;;  %v3637_v55 = vmax.f32 %v3509_v3, 0.0  ;;  %v7493_v6 = vunpack.i.h.bf16 %v7491_v30  ;;  %v7492_v41 = vunpack.i.l.bf16 %v7491_v30 }
 0x2e1   : > { %v4949_v39 = vadd.f32 %v4948_v56, %v9669_v52  ;;  %v4435_v44 = vpack.c.bf16 %v4321_v19, %v4320_v45  ;;  %v5259_v51 = vadd.s32 88, %v9640_v13  ;;  %v6853_v43 = vunpack.i.h.bf16 %v11626_v50  ;;  %v10057_v56 = vld [vmem:[%s11298_s4] ss:$0 sm:$0xff] }
 0x2e2   : > { %v10024_v63 = vpack.c.bf16 %v3637_v55, %v3636_v27  ;;  %v3265_v48 = vmul.f32 %v7493_v6, %v8390_v11  ;;  %v3264_v38 = vmul.f32 %v7492_v41, %v8390_v11  ;;  %v2623_v1 = vadd.f32 %v2495_v54, %v1854_v40  ;;  %v11627_v27 = vld [vmem:[#allocation66_spill] sm:$0xff] }
 0x2e3   : > { %v5348_v22 = vsel %vm5290_vm10, %v4949_v39, -inf  ;;  %v4622_v57 = vpop.f32.mrf.mxu1  ;;  %v2624_v20 = vadd.f32 %v2496_v16, %v1855_v58  ;;  %v3725_v47 = vpack.c.bf16 %v3651_v60, %v3650_v59  ;;  %v10043_v4 = vadd.s32 %v9647_v15, %v5259_v51  ;;  %v7524_v40 = vpop.permute.xlu2 %7523 }
 0x2e4   : > { %v5614_v32 = vmax.f32 %v10004_v31, %v5348_v22  ;;  %v4623_v8 = vadd.f32 %v4622_v57, %v9638_v34  ;;  %v4044_v18 = vpop.f32.mrf.mxu0  ;;  %v3392_v3 = vadd.f32 %v3264_v38, %v2623_v1  ;;  %v6852_v14 = vunpack.i.l.bf16 %v11626_v50 }
 0x2e5   : > { %v3393_v31 = vadd.f32 %v3265_v48, %v2624_v20  ;;  %v1843_v30 = vmul.f32 %v6853_v43, %v8394_v36  ;;  %v6888_v55 = vunpack.i.h.bf16 %v11627_v27  ;;  %v6887_v6 = vunpack.i.l.bf16 %v11627_v27 }
 0x2e6   : > { %v5349_v46 = vsel %vm5291_vm11, %v4623_v8, -inf  ;;  %4661 = vmatmul.bf16.gmra.mxu1 %v4435_v44  ;;  %4990 = vmatmul.bf16.gmra.mxu2 %v4435_v44  ;;  %v7516_v41 = vunpack.i.h.bf16 %v10027_v24  ;;  %v4045_v58 = vadd.f32 %v10057_v56, %v4044_v18  ;;  %vm11408_vm12 = vcmp.lt.s32.totalorder %v10043_v4, 300 }
 0x2e7   : > { %v10040_v12 = vmax.f32 %v5593_v28, %v5349_v46  ;;  %6115 = vmatmul.msk.bf16.gmra.mxu3 %vm3772_vm0, %v3725_v47  ;;  %v5260_v54 = vadd.s32 96, %v9640_v13  ;;  %v3524_v59 = vadd.f32 %v9875_v10, %v3392_v3  ;;  %v3525_v60 = vadd.f32 %v9875_v10, %v3393_v31 }
 0x2e8   : > { %6084 = vmatmul.msk.bf16.gmra.mxu0 %vm3772_vm0, %v9193_v62  ;;  %v1842_v38 = vmul.f32 %v6852_v14, %v8394_v36  ;;  %v1857_v8 = vmul.f32 %v6888_v55, %v8394_v36  ;;  %v7526_v18 = vunpack.i.h.bf16 %v7524_v40  ;;  %v7525_v43 = vunpack.i.l.bf16 %v7524_v40 }
 0x2e9   : > { %v7508_v45 = vpop.permute.xlu1 %7507  ;;  %v4951_v19 = vpop.f32.mrf.mxu2  ;;  %v10076_v46 = vadd.s32 %v9647_v15, %v5260_v54  ;;  %v3267_v47 = vmul.f32 %v7516_v41, %v8390_v11  ;;  %v7515_v3 = vunpack.i.l.bf16 %v10027_v24  ;;  %v4322_v31 = vmax.f32 %v4045_v58, 0.0 }
 0x2ea   : > { %v4952_v28 = vadd.f32 %v4951_v19, %v9669_v52  ;;  %v7510_v22 = vunpack.i.h.bf16 %v7508_v45  ;;  %v7509_v57 = vunpack.i.l.bf16 %v7508_v45  ;;  %v3652_v55 = vmax.f32 %v3524_v59, 0.0 }
 0x2eb   : > { %v4624_v16 = vpop.f32.mrf.mxu1  ;;  %v3252_v41 = vmul.f32 %v7525_v43, %v8390_v11  ;;  %vm11409_vm13 = vcmp.lt.s32.totalorder %v10076_v46, 300  ;;  %v5261_v24 = vadd.s32 104, %v9640_v13  ;;  %v3266_v40 = vmul.f32 %v7515_v3, %v8390_v11 }
 0x2ec   : > { %v5350_v39 = vsel %vm5291_vm11, %v4952_v28, -inf  ;;  %v4625_v44 = vadd.f32 %v4624_v16, %v9638_v34  ;;  %v4046_v62 = vpop.f32.mrf.mxu0  ;;  %v2498_v14 = vmul.f32 %v7510_v22, %v8396_v23  ;;  %v2497_v45 = vmul.f32 %v7509_v57, %v8396_v23 }
 0x2ed   : > { %v10067_v51 = vmax.f32 %v5614_v32, %v5350_v39  ;;  %v4047_v48 = vadd.f32 %v10057_v56, %v4046_v62  ;;  %v1856_v32 = vmul.f32 %v6887_v6, %v8394_v36  ;;  %v3653_v28 = vmax.f32 %v3525_v60, 0.0 }
 0x2ee   : > { %v5351_v50 = vsel %vm11408_vm12, %v4625_v44, -inf  ;;  %v3253_v6 = vmul.f32 %v7526_v18, %v8390_v11 }
 0x2ef   : > { %v5595_v1 = vmax.f32 %v10040_v12, %v5351_v50  ;;  %v4323_v20 = vmax.f32 %v4047_v48, 0.0  ;;  %v2625_v22 = vadd.f32 %v2497_v45, %v1856_v32  ;;  %v3726_v18 = vpack.c.bf16 %v3653_v28, %v3652_v55  ;;  %v7530_v55 = vpop.permute.xlu0 %7529 }
 0x2f0   : > { %v2626_v50 = vadd.f32 %v2498_v14, %v1857_v8  ;;  %v11628_v14 = vld [vmem:[#allocation52_spill] sm:$0xff]  ;;  %v5262_v45 = vadd.s32 112, %v9640_v13 }
 0x2f1   : > { %v7519_v19 = vpop.permute.xlu1 %7518  ;;  %v4953_v27 = vpop.f32.mrf.mxu2  ;;  %v4436_v39 = vpack.c.bf16 %v4323_v20, %v4322_v31  ;;  %v3394_v32 = vadd.f32 %v3266_v40, %v2625_v22  ;;  %v7531_v40 = vunpack.i.l.bf16 %v7530_v55 }
 0x2f2   : > { %v7521_v12 = vunpack.i.h.bf16 %v7519_v19  ;;  %v7520_v16 = vunpack.i.l.bf16 %v7519_v19  ;;  %v4954_v54 = vadd.f32 %v4953_v27, %v9669_v52  ;;  %v10098_v27 = vadd.s32 %v9647_v15, %v5261_v24 }
 0x2f3   : > { %v4627_v44 = vpop.f32.mrf.mxu1  ;;  %v3395_v3 = vadd.f32 %v3267_v47, %v2626_v50 }
 0x2f4   : > { %v2484_v58 = vmul.f32 %v7521_v12, %v8396_v23  ;;  %v2483_v62 = vmul.f32 %v7520_v16, %v8396_v23  ;;  %v5352_v59 = vsel %vm11408_vm12, %v4954_v54, -inf  ;;  %v4628_v60 = vadd.f32 %v4627_v44, %v9638_v34  ;;  %v4049_v48 = vpop.f32.mrf.mxu0 }
 0x2f5   : > { %v5616_v57 = vmax.f32 %v10067_v51, %v5352_v59  ;;  %vm11407_vm14 = vcmp.lt.s32.totalorder %v10098_v27, 300  ;;  %v4050_v28 = vadd.f32 %v10057_v56, %v4049_v48  ;;  %v10118_v48 = vadd.s32 %v9647_v15, %v5262_v45 }
 0x2f6   : > { %v2611_v43 = vadd.f32 %v2483_v62, %v1842_v38  ;;  %v2612_v20 = vadd.f32 %v2484_v58, %v1843_v30  ;;  %v5353_v31 = vsel %vm11409_vm13, %v4628_v60, -inf  ;;  %4666 = vmatmul.bf16.gmra.mxu1 %v4436_v39  ;;  %4995 = vmatmul.bf16.gmra.mxu2 %v4436_v39  ;;  %v3527_v60 = vadd.f32 %v9875_v10, %v3395_v3 }
 0x2f7   : > { %v5596_v19 = vmax.f32 %v5595_v1, %v5353_v31  ;;  %6116 = vmatmul.msk.bf16.gmra.mxu3 %vm3772_vm0, %v3726_v18  ;;  %v4324_v50 = vmax.f32 %v4050_v28, 0.0  ;;  %vm5295_vm15 = vcmp.lt.s32.totalorder %v10118_v48, 300 }
 0x2f8   : > { %v3380_v12 = vadd.f32 %v3252_v41, %v2611_v43  ;;  %v3381_v16 = vadd.f32 %v3253_v6, %v2612_v20  ;;  %6085 = vmatmul.msk.bf16.gmra.mxu0 %vm3772_vm0, %v11628_v14  ;;  %v3526_v41 = vadd.f32 %v9875_v10, %v3394_v32  ;;  %v11629_v20 = vld [vmem:[#allocation60_spill] sm:$0xff] }
 0x2f9   : > { %v4956_v51 = vpop.f32.mrf.mxu2  ;;  %v6893_v31 = vunpack.i.h.bf16 %v11629_v20 }
 0x2fa   : > { %v3512_v8 = vadd.f32 %v9875_v10, %v3380_v12  ;;  %v3513_v30 = vadd.f32 %v9875_v10, %v3381_v16  ;;  %v4957_v38 = vadd.f32 %v4956_v51, %v9669_v52  ;;  %v7536_v58 = vpop.permute.xlu1 %7535  ;;  %v6892_v12 = vunpack.i.l.bf16 %v11629_v20 }
 0x2fb   : > { %v4629_v1 = vpop.f32.mrf.mxu1  ;;  %v7537_v16 = vunpack.i.l.bf16 %v7536_v58  ;;  %v3654_v51 = vmax.f32 %v3526_v41, 0.0  ;;  %v1859_v41 = vmul.f32 %v6893_v31, %v8394_v36  ;;  %v7542_v31 = vpop.permute.xlu2 %7541 }
 0x2fc   : > { %v5354_v47 = vsel %vm11409_vm13, %v4957_v38, -inf  ;;  %v4630_v54 = vadd.f32 %v4629_v1, %v9638_v34  ;;  %v4051_v6 = vpop.f32.mrf.mxu0  ;;  %v3640_v44 = vmax.f32 %v3512_v8, 0.0  ;;  %v3641_v24 = vmax.f32 %v3513_v30, 0.0 }
 0x2fd   : > { %v5617_v39 = vmax.f32 %v5616_v57, %v5354_v47  ;;  %v4052_v59 = vadd.f32 %v10057_v56, %v4051_v6  ;;  %v7532_v57 = vunpack.i.h.bf16 %v7530_v55  ;;  %v7538_v8 = vunpack.i.h.bf16 %v7536_v58 }
 0x2fe   : > { %v5355_v62 = vsel %vm11407_vm14, %v4630_v54, -inf  ;;  %v10120_v18 = vpack.c.bf16 %v3641_v24, %v3640_v44  ;;  %v2499_v38 = vmul.f32 %v7531_v40, %v8396_v23  ;;  %v5263_v1 = vadd.s32 120, %v9640_v13 }
 0x2ff   : > { %v5597_v22 = vmax.f32 %v5596_v19, %v5355_v62  ;;  %v4325_v43 = vmax.f32 %v4052_v59, 0.0  ;;  %v3655_v19 = vmax.f32 %v3527_v60, 0.0  ;;  %v2500_v45 = vmul.f32 %v7532_v57, %v8396_v23 }
 0x300   : > { %v1858_v47 = vmul.f32 %v6892_v12, %v8394_v36  ;;  %v3268_v54 = vmul.f32 %v7537_v16, %v8390_v11  ;;  %v3269_v44 = vmul.f32 %v7538_v8, %v8390_v11  ;;  %v10139_v60 = vadd.s32 %v9647_v15, %v5263_v1 }
 0x301   : > { %v4958_v32 = vpop.f32.mrf.mxu2  ;;  %v4437_v30 = vpack.c.bf16 %v4325_v43, %v4324_v50  ;;  %v3727_v13 = vpack.c.bf16 %v3655_v19, %v3654_v51  ;;  %v2628_v40 = vadd.f32 %v2500_v45, %v1859_v41  ;;  %v7544_v1 = vunpack.i.h.bf16 %v7542_v31 }
 0x302   : > { %v4959_v3 = vadd.f32 %v4958_v32, %v9669_v52  ;;  %v2627_v58 = vadd.f32 %v2499_v38, %v1858_v47  ;;  %v7547_v32 = vpop.permute.xlu1 %7546  ;;  %v11630_v38 = vld [vmem:[#allocation68_spill] sm:$0xff] }
 0x303   : > { %v4632_v14 = vpop.f32.mrf.mxu1  ;;  %v3397_v50 = vadd.f32 %v3269_v44, %v2628_v40  ;;  %v7548_v47 = vunpack.i.l.bf16 %v7547_v32 }
 0x304   : > { %v5356_v55 = vsel %vm11407_vm14, %v4959_v3, -inf  ;;  %v4633_v28 = vadd.f32 %v4632_v14, %v9638_v34  ;;  %vm5296_vm14 = vcmp.lt.s32.totalorder %v10139_v60, 300  ;;  %v7543_v3 = vunpack.i.l.bf16 %v7542_v31 }
 0x305   : > { %v5618_v6 = vmax.f32 %v5617_v39, %v5356_v55  ;;  %v4054_v59 = vpop.f32.mrf.mxu0  ;;  %v3396_v39 = vadd.f32 %v3268_v54, %v2627_v58  ;;  %v6898_v14 = vunpack.i.h.bf16 %v11630_v38  ;;  %v6897_v55 = vunpack.i.l.bf16 %v11630_v38 }
 0x306   : > { %v5357_v24 = vsel %vm5295_vm15, %v4633_v28, -inf  ;;  %4671 = vmatmul.bf16.gmra.mxu1 %v4437_v30  ;;  %5000 = vmatmul.bf16.gmra.mxu2 %v4437_v30  ;;  %v4055_v51 = vadd.f32 %v10057_v56, %v4054_v59  ;;  %v7549_v28 = vunpack.i.h.bf16 %v7547_v32  ;;  %v2501_v58 = vmul.f32 %v7543_v3, %v8396_v23 }
 0x307   : > { %v5598_v62 = vmax.f32 %v5597_v22, %v5357_v24  ;;  %6117 = vmatmul.msk.bf16.gmra.mxu3 %vm3772_vm0, %v3727_v13  ;;  %v3528_v16 = vadd.f32 %v9875_v10, %v3396_v39  ;;  %v2502_v59 = vmul.f32 %v7544_v1, %v8396_v23 }
 0x308   : > { %6086 = vmatmul.msk.bf16.gmra.mxu0 %vm3772_vm0, %v9245_v17  ;;  %v3529_v17 = vadd.f32 %v9875_v10, %v3397_v50  ;;  %v4326_v41 = vmax.f32 %v4055_v51, 0.0  ;;  %v3270_v50 = vmul.f32 %v7548_v47, %v8390_v11  ;;  %v3271_v31 = vmul.f32 %v7549_v28, %v8390_v11 }
 0x309   : > { %v4961_v57 = vpop.f32.mrf.mxu2 }
 0x30a   : > { %v4962_v43 = vadd.f32 %v4961_v57, %v9669_v52  ;;  %v3657_v13 = vmax.f32 %v3529_v17, 0.0  ;;  %v1860_v57 = vmul.f32 %v6897_v55, %v8394_v36 }
 0x30b   : > { %v4634_v20 = vpop.f32.mrf.mxu1 }
 0x30c   : > { %v5358_v22 = vsel %vm5295_vm15, %v4962_v43, -inf  ;;  %v4635_v15 = vadd.f32 %v4634_v20, %v9638_v34  ;;  %v1861_v20 = vmul.f32 %v6898_v14, %v8394_v36 }
 0x30d   : > { %v5619_v12 = vmax.f32 %v5618_v6, %v5358_v22  ;;  %v4056_v19 = vpop.f32.mrf.mxu0  ;;  %v3656_v6 = vmax.f32 %v3528_v16, 0.0 }
 0x30e   : > { %v5359_v8 = vsel %vm5296_vm14, %v4635_v15, -inf  ;;  %v4057_v45 = vadd.f32 %v10057_v56, %v4056_v19  ;;  %v2629_v15 = vadd.f32 %v2501_v58, %v1860_v57  ;;  %v2630_v32 = vadd.f32 %v2502_v59, %v1861_v20  ;;  %v11631_v19 = vld [vmem:[#allocation37_spill] sm:$0xff] }
 0x30f   : > { %v10154_v30 = vmax.f32 %v5598_v62, %v5359_v8  ;;  %v3728_v22 = vpack.c.bf16 %v3657_v13, %v3656_v6 }
 0x310   : > { %v4327_v44 = vmax.f32 %v4057_v45, 0.0  ;;  %v3398_v51 = vadd.f32 %v3270_v50, %v2629_v15  ;;  %v3399_v17 = vadd.f32 %v3271_v31, %v2630_v32 }
 0x311   : > { %v4963_v54 = vpop.f32.mrf.mxu2 }
 0x312   : > { %v4964_v24 = vadd.f32 %v4963_v54, %v9669_v52  ;;  %v4438_v39 = vpack.c.bf16 %v4327_v44, %v4326_v41  ;;  %v3530_v1 = vadd.f32 %v9875_v10, %v3398_v51  ;;  %v3531_v47 = vadd.f32 %v9875_v10, %v3399_v17 }
 0x313   : > { %v4637_v62 = vpop.f32.mrf.mxu1 }
 0x314   : > { %v5360_v40 = vsel %vm5296_vm14, %v4964_v24, -inf  ;;  %v4638_v3 = vadd.f32 %v4637_v62, %v9638_v34  ;;  %v3658_v24 = vmax.f32 %v3530_v1, 0.0  ;;  %v3659_v59 = vmax.f32 %v3531_v47, 0.0 }
 0x315   : > { %v10166_v43 = vmax.f32 %v5619_v12, %v5360_v40  ;;  %v4059_v16 = vpop.f32.mrf.mxu0 }
 0x316   : > { %4676 = vmatmul.bf16.gmra.mxu1 %v4438_v39  ;;  %5005 = vmatmul.bf16.gmra.mxu2 %v4438_v39  ;;  %v5361_v45 = vsel %vm5281_vm1, %v4638_v3, -inf  ;;  %v4060_v55 = vadd.f32 %v10057_v56, %v4059_v16 }
 0x317   : > { %6118 = vmatmul.msk.bf16.gmra.mxu3 %vm3772_vm0, %v3728_v22  ;;  %v3729_v22 = vpack.c.bf16 %v3659_v59, %v3658_v24 }
 0x318   : > { %6087 = vmatmul.msk.bf16.gmra.mxu0 %vm3772_vm0, %v11631_v19  ;;  %v4328_v13 = vmax.f32 %v4060_v55, 0.0 }
 0x319   : > { %v4966_v8 = vpop.f32.mrf.mxu2 }
 0x31a   : > { %v4967_v12 = vadd.f32 %v4966_v8, %v9669_v52  ;;  %v11632_v8 = vld [vmem:[#allocation11_spill] sm:$0xff] }
 0x31b   : > { %v4639_v38 = vpop.f32.mrf.mxu1 }
 0x31c   : > { %v4640_v14 = vadd.f32 %v4639_v38, %v9638_v34  ;;  %v5362_v39 = vsel %vm5281_vm1, %v4967_v12, -inf }
 0x31d   : > { %v4061_v6 = vpop.f32.mrf.mxu0 }
 0x31e   : > { %v5363_v28 = vsel %vm5282_vm2, %v4640_v14, -inf  ;;  %v4062_v41 = vadd.f32 %v10057_v56, %v4061_v6 }
 0x31f   : > { %v5627_v54 = vmax.f32 %v5361_v45, %v5363_v28 }
 0x320   : > { %v4329_v58 = vmax.f32 %v4062_v41, 0.0 }
 0x321   : > { %v4968_v44 = vpop.f32.mrf.mxu2 }
 0x322   : > { %v4969_v62 = vadd.f32 %v4968_v44, %v9669_v52  ;;  %v4439_v50 = vpack.c.bf16 %v4329_v58, %v4328_v13 }
 0x323   : > { %v4642_v40 = vpop.f32.mrf.mxu1 }
 0x324   : > { %v5364_v57 = vsel %vm5282_vm2, %v4969_v62, -inf  ;;  %v4643_v10 = vadd.f32 %v4642_v40, %v9638_v34 }
 0x325   : > { %v5648_v20 = vmax.f32 %v5362_v39, %v5364_v57  ;;  %v4064_v16 = vpop.f32.mrf.mxu0 }
 0x326   : > { %v5365_v31 = vsel %vm5283_vm3, %v4643_v10, -inf  ;;  %4681 = vmatmul.bf16.gmra.mxu1 %v4439_v50  ;;  %5010 = vmatmul.bf16.gmra.mxu2 %v4439_v50  ;;  %v4065_v38 = vadd.f32 %v10057_v56, %v4064_v16  ;;  %v11633_v10 = vld [vmem:[#allocation14_spill] sm:$0xff] }
 0x327   : > { %v5628_v15 = vmax.f32 %v5627_v54, %v5365_v31  ;;  %6119 = vmatmul.msk.bf16.gmra.mxu3 %vm3772_vm0, %v3729_v22 }
 0x328   : > { %6088 = vmatmul.msk.bf16.gmra.mxu0 %vm3772_vm0, %v11632_v8  ;;  %v4330_v47 = vmax.f32 %v4065_v38, 0.0 }
 0x329   : > { %v4971_v32 = vpop.f32.mrf.mxu2 }
 0x32a   : > { %v4972_v51 = vadd.f32 %v4971_v32, %v9669_v52 }
 0x32b   : > { %v4644_v17 = vpop.f32.mrf.mxu1 }
 0x32c   : > { %v5366_v3 = vsel %vm5283_vm3, %v4972_v51, -inf  ;;  %v4645_v12 = vadd.f32 %v4644_v17, %v9638_v34 }
 0x32d   : > { %v5649_v19 = vmax.f32 %v5648_v20, %v5366_v3  ;;  %v4066_v45 = vpop.f32.mrf.mxu0 }
 0x32e   : > { %v5367_v14 = vsel %vm5284_vm4, %v4645_v12, -inf  ;;  %v4067_v55 = vadd.f32 %v10057_v56, %v4066_v45 }
 0x32f   : > { %v5629_v1 = vmax.f32 %v5628_v15, %v5367_v14 }
 0x330   : > { %v4331_v54 = vmax.f32 %v4067_v55, 0.0 }
 0x331   : > { %v4973_v28 = vpop.f32.mrf.mxu2 }
 0x332   : > { %v4974_v6 = vadd.f32 %v4973_v28, %v9669_v52  ;;  %v4440_v13 = vpack.c.bf16 %v4331_v54, %v4330_v47 }
 0x333   : > { %v4647_v41 = vpop.f32.mrf.mxu1 }
 0x334   : > { %v5368_v44 = vsel %vm5284_vm4, %v4974_v6, -inf  ;;  %v4648_v24 = vadd.f32 %v4647_v41, %v9638_v34 }
 0x335   : > { %v5650_v58 = vmax.f32 %v5649_v19, %v5368_v44  ;;  %v4069_v40 = vpop.f32.mrf.mxu0  ;;  %v11634_v44 = vld [vmem:[#allocation75_spill] sm:$0xff] }
 0x336   : > { %v5369_v62 = vsel %vm5285_vm5, %v4648_v24, -inf  ;;  %4686 = vmatmul.bf16.gmra.mxu1 %v4440_v13  ;;  %5015 = vmatmul.bf16.gmra.mxu2 %v4440_v13  ;;  %v4070_v15 = vadd.f32 %v10057_v56, %v4069_v40 }
 0x337   : > { %v5630_v59 = vmax.f32 %v5629_v1, %v5369_v62 }
 0x338   : > { %6089 = vmatmul.msk.bf16.gmra.mxu0 %vm3772_vm0, %v11633_v10  ;;  %v4332_v3 = vmax.f32 %v4070_v15, 0.0 }
 0x339   : > { %v4976_v39 = vpop.f32.mrf.mxu2 }
 0x33a   : > { %v4977_v57 = vadd.f32 %v4976_v39, %v9669_v52 }
 0x33b   : > { %v4649_v50 = vpop.f32.mrf.mxu1 }
 0x33c   : > { %v5370_v20 = vsel %vm5285_vm5, %v4977_v57, -inf  ;;  %v4650_v31 = vadd.f32 %v4649_v50, %v9638_v34 }
 0x33d   : > { %v5651_v22 = vmax.f32 %v5650_v58, %v5370_v20  ;;  %v4071_v51 = vpop.f32.mrf.mxu0 }
 0x33e   : > { %v5371_v16 = vsel %vm5286_vm6, %v4650_v31, -inf  ;;  %v4072_v8 = vadd.f32 %v10057_v56, %v4071_v51 }
 0x33f   : > { %v5631_v32 = vmax.f32 %v5630_v59, %v5371_v16 }
 0x340   : > { %v4333_v12 = vmax.f32 %v4072_v8, 0.0 }
 0x341   : > { %v4978_v17 = vpop.f32.mrf.mxu2 }
 0x342   : > { %v4979_v19 = vadd.f32 %v4978_v17, %v9669_v52  ;;  %v4441_v45 = vpack.c.bf16 %v4333_v12, %v4332_v3 }
 0x343   : > { %v4652_v38 = vpop.f32.mrf.mxu1 }
 0x344   : > { %v5372_v14 = vsel %vm5286_vm6, %v4979_v19, -inf  ;;  %v4653_v1 = vadd.f32 %v4652_v38, %v9638_v34 }
 0x345   : > { %v5652_v55 = vmax.f32 %v5651_v22, %v5372_v14  ;;  %v4074_v54 = vpop.f32.mrf.mxu0  ;;  %v11635_v14 = vld [vmem:[#allocation15_spill] sm:$0xff] }
 0x346   : > { %v5373_v28 = vsel %vm5287_vm7, %v4653_v1, -inf  ;;  %4691 = vmatmul.bf16.gmra.mxu1 %v4441_v45  ;;  %5020 = vmatmul.bf16.gmra.mxu2 %v4441_v45  ;;  %v4075_v59 = vadd.f32 %v10057_v56, %v4074_v54 }
 0x347   : > { %v5632_v47 = vmax.f32 %v5631_v32, %v5373_v28 }
 0x348   : > { %6090 = vmatmul.msk.bf16.gmra.mxu0 %vm3772_vm0, %v11634_v44  ;;  %v4334_v20 = vmax.f32 %v4075_v59, 0.0 }
 0x349   : > { %v4981_v6 = vpop.f32.mrf.mxu2 }
 0x34a   : > { %v4982_v41 = vadd.f32 %v4981_v6, %v9669_v52 }
 0x34b   : > { %v4654_v24 = vpop.f32.mrf.mxu1 }
 0x34c   : > { %v5374_v13 = vsel %vm5287_vm7, %v4982_v41, -inf  ;;  %v4655_v58 = vadd.f32 %v4654_v24, %v9638_v34 }
 0x34d   : > { %v5653_v62 = vmax.f32 %v5652_v55, %v5374_v13  ;;  %v4076_v57 = vpop.f32.mrf.mxu0 }
 0x34e   : > { %v5375_v40 = vsel %vm5288_vm8, %v4655_v58, -inf  ;;  %v4077_v10 = vadd.f32 %v10057_v56, %v4076_v57 }
 0x34f   : > { %v5633_v39 = vmax.f32 %v5632_v47, %v5375_v40 }
 0x350   : > { %v4335_v31 = vmax.f32 %v4077_v10, 0.0 }
 0x351   : > { %v4983_v50 = vpop.f32.mrf.mxu2 }
 0x352   : > { %v4984_v22 = vadd.f32 %v4983_v50, %v9669_v52  ;;  %v4442_v51 = vpack.c.bf16 %v4335_v31, %v4334_v20 }
 0x353   : > { %v4657_v15 = vpop.f32.mrf.mxu1 }
 0x354   : > { %v5376_v16 = vsel %vm5288_vm8, %v4984_v22, -inf  ;;  %v4658_v32 = vadd.f32 %v4657_v15, %v9638_v34 }
 0x355   : > { %v5654_v8 = vmax.f32 %v5653_v62, %v5376_v16  ;;  %v4079_v12 = vpop.f32.mrf.mxu0  ;;  %v11636_v16 = vld [vmem:[#allocation78_spill] sm:$0xff] }
 0x356   : > { %v5377_v17 = vsel %vm5289_vm9, %v4658_v32, -inf  ;;  %4696 = vmatmul.bf16.gmra.mxu1 %v4442_v51  ;;  %5025 = vmatmul.bf16.gmra.mxu2 %v4442_v51  ;;  %v4080_v47 = vadd.f32 %v10057_v56, %v4079_v12 }
 0x357   : > { %v5634_v3 = vmax.f32 %v5633_v39, %v5377_v17 }
 0x358   : > { %6091 = vmatmul.msk.bf16.gmra.mxu0 %vm3772_vm0, %v11635_v14  ;;  %v4336_v13 = vmax.f32 %v4080_v47, 0.0 }
 0x359   : > { %v4986_v19 = vpop.f32.mrf.mxu2 }
 0x35a   : > { %v4987_v38 = vadd.f32 %v4986_v19, %v9669_v52 }
 0x35b   : > { %v4659_v1 = vpop.f32.mrf.mxu1 }
 0x35c   : > { %v5378_v45 = vsel %vm5289_vm9, %v4987_v38, -inf  ;;  %v4660_v55 = vadd.f32 %v4659_v1, %v9638_v34 }
 0x35d   : > { %v5655_v28 = vmax.f32 %v5654_v8, %v5378_v45  ;;  %v4081_v41 = vpop.f32.mrf.mxu0 }
 0x35e   : > { %v5379_v54 = vsel %vm5290_vm10, %v4660_v55, -inf  ;;  %v4082_v44 = vadd.f32 %v10057_v56, %v4081_v41 }
 0x35f   : > { %v5635_v6 = vmax.f32 %v5634_v3, %v5379_v54 }
 0x360   : > { %v4337_v58 = vmax.f32 %v4082_v44, 0.0 }
 0x361   : > { %v4988_v24 = vpop.f32.mrf.mxu2 }
 0x362   : > { %v4989_v62 = vadd.f32 %v4988_v24, %v9669_v52  ;;  %v4443_v57 = vpack.c.bf16 %v4337_v58, %v4336_v13 }
 0x363   : > { %v4662_v59 = vpop.f32.mrf.mxu1 }
 0x364   : > { %v5380_v40 = vsel %vm5290_vm10, %v4989_v62, -inf  ;;  %v4663_v39 = vadd.f32 %v4662_v59, %v9638_v34 }
 0x365   : > { %v5656_v10 = vmax.f32 %v5655_v28, %v5380_v40  ;;  %v4084_v31 = vpop.f32.mrf.mxu0  ;;  %v11637_v40 = vld [vmem:[#allocation38_spill] sm:$0xff] }
 0x366   : > { %v5381_v50 = vsel %vm5291_vm11, %v4663_v39, -inf  ;;  %4701 = vmatmul.bf16.gmra.mxu1 %v4443_v57  ;;  %5030 = vmatmul.bf16.gmra.mxu2 %v4443_v57  ;;  %v4085_v3 = vadd.f32 %v10057_v56, %v4084_v31 }
 0x367   : > { %v5636_v20 = vmax.f32 %v5635_v6, %v5381_v50 }
 0x368   : > { %6092 = vmatmul.msk.bf16.gmra.mxu0 %vm3772_vm0, %v11636_v16  ;;  %v4338_v45 = vmax.f32 %v4085_v3, 0.0 }
 0x369   : > { %v4991_v22 = vpop.f32.mrf.mxu2 }
 0x36a   : > { %v4992_v15 = vadd.f32 %v4991_v22, %v9669_v52 }
 0x36b   : > { %v4664_v32 = vpop.f32.mrf.mxu1 }
 0x36c   : > { %v5382_v51 = vsel %vm5291_vm11, %v4992_v15, -inf  ;;  %v4665_v8 = vadd.f32 %v4664_v32, %v9638_v34 }
 0x36d   : > { %v5657_v17 = vmax.f32 %v5656_v10, %v5382_v51  ;;  %v4086_v38 = vpop.f32.mrf.mxu0 }
 0x36e   : > { %v5383_v12 = vsel %vm11408_vm12, %v4665_v8, -inf  ;;  %v4087_v14 = vadd.f32 %v10057_v56, %v4086_v38 }
 0x36f   : > { %v5637_v19 = vmax.f32 %v5636_v20, %v5383_v12 }
 0x370   : > { %v4339_v55 = vmax.f32 %v4087_v14, 0.0 }
 0x371   : > { %v4993_v1 = vpop.f32.mrf.mxu2 }
 0x372   : > { %v4994_v28 = vadd.f32 %v4993_v1, %v9669_v52  ;;  %v4444_v41 = vpack.c.bf16 %v4339_v55, %v4338_v45  ;;  %v5600_v45 = vrot.slane %v10154_v30, 4 }
 0x373   : > { %v4667_v47 = vpop.f32.mrf.mxu1 }
 0x374   : > { %v5384_v54 = vsel %vm11408_vm12, %v4994_v28, -inf  ;;  %v4668_v6 = vadd.f32 %v4667_v47, %v9638_v34  ;;  %vm11638_vm12 = vcmp.lt.s32.totalorder %v10098_v27, 300 }
 0x375   : > { %v5658_v44 = vmax.f32 %v5657_v17, %v5384_v54  ;;  %v4089_v58 = vpop.f32.mrf.mxu0 }
 0x376   : > { %v5385_v24 = vsel %vm11409_vm13, %v4668_v6, -inf  ;;  %4706 = vmatmul.bf16.gmra.mxu1 %v4444_v41  ;;  %5035 = vmatmul.bf16.gmra.mxu2 %v4444_v41  ;;  %v4090_v20 = vadd.f32 %v10057_v56, %v4089_v58  ;;  %v5601_v6 = vmax.f32 %v10154_v30, %v5600_v45 }
 0x377   : > { %v5638_v13 = vmax.f32 %v5637_v19, %v5385_v24 }
 0x378   : > { %6093 = vmatmul.msk.bf16.gmra.mxu0 %vm3772_vm0, %v11637_v40  ;;  %v4340_v51 = vmax.f32 %v4090_v20, 0.0  ;;  %v5602_v40 = vrot.slane %v5601_v6, 2 }
 0x379   : > { %v4996_v62 = vpop.f32.mrf.mxu2 }
 0x37a   : > { %v4997_v59 = vadd.f32 %v4996_v62, %v9669_v52 }
 0x37b   : > { %v4669_v39 = vpop.f32.mrf.mxu1 }
 0x37c   : > { %v5386_v57 = vsel %vm11409_vm13, %v4997_v59, -inf  ;;  %v4670_v10 = vadd.f32 %v4669_v39, %v9638_v34  ;;  %vm11639_vm13 = vmmov %vm11638_vm12 }
 0x37d   : > { %v5659_v50 = vmax.f32 %v5658_v44, %v5386_v57  ;;  %v4091_v15 = vpop.f32.mrf.mxu0 }
 0x37e   : > { %v5387_v31 = vsel %vm11638_vm12, %v4670_v10, -inf  ;;  %v4092_v16 = vadd.f32 %v10057_v56, %v4091_v15  ;;  %v5603_v15 = vmax.f32 %v5601_v6, %v5602_v40  ;;  %vm5939_vm12 = vcmask 1041409   ;;  %v11640_v6 = vld [vmem:[#allocation77_spill] sm:$0xff] }
 0x37f   : > { %v5639_v22 = vmax.f32 %v5638_v13, %v5387_v31  ;;  %v5621_v13 = vrot.slane %v10166_v43, 4 }
 0x380   : > { %v4341_v8 = vmax.f32 %v4092_v16, 0.0 }
 0x381   : > { %v4998_v32 = vpop.f32.mrf.mxu2  ;;  %v5622_v30 = vmax.f32 %v10166_v43, %v5621_v13 }
 0x382   : > { %v4999_v17 = vadd.f32 %v4998_v32, %v9669_v52  ;;  %v4445_v38 = vpack.c.bf16 %v4341_v8, %v4340_v51 }
 0x383   : > { %v4672_v3 = vpop.f32.mrf.mxu1 }
 0x384   : > { %v5388_v12 = vsel %vm11639_vm13, %v4999_v17, -inf  ;;  %v4673_v19 = vadd.f32 %v4672_v3, %v9638_v34  ;;  %v5623_v17 = vrot.slane %v5622_v30, 2  ;;  %vm11646_vm13 = vcmp.lt.s32.totalorder %v10043_v4, 300 }
 0x385   : > { %v5660_v14 = vmax.f32 %v5659_v50, %v5388_v12  ;;  %v4094_v28 = vpop.f32.mrf.mxu0 }
 0x386   : > { %v5389_v1 = vsel %vm5295_vm15, %v4673_v19, -inf  ;;  %4711 = vmatmul.bf16.gmra.mxu1 %v4445_v38  ;;  %5040 = vmatmul.bf16.gmra.mxu2 %v4445_v38  ;;  %v4095_v62 = vadd.f32 %v10057_v56, %v4094_v28  ;;  %v5604_v19 = vrot.slane %v5603_v15, 1 }
 0x387   : > { %v5640_v55 = vmax.f32 %v5639_v22, %v5389_v1  ;;  %v5624_v1 = vmax.f32 %v5622_v30, %v5623_v17 }
 0x388   : > { %6094 = vmatmul.msk.bf16.gmra.mxu0 %vm3772_vm0, %v9470_v35  ;;  %v4342_v20 = vmax.f32 %v4095_v62, 0.0 }
 0x389   : > { %v5001_v47 = vpop.f32.mrf.mxu2  ;;  %v5625_v62 = vrot.slane %v5624_v1, 1 }
 0x38a   : > { %v5002_v54 = vadd.f32 %v5001_v47, %v9669_v52 }
 0x38b   : > { %v4674_v41 = vpop.f32.mrf.mxu1 }
 0x38c   : > { %v5390_v44 = vsel %vm5295_vm15, %v5002_v54, -inf  ;;  %v4675_v24 = vadd.f32 %v4674_v41, %v9638_v34  ;;  %v5605_v41 = vmax.f32 %v5603_v15, %v5604_v19 }
 0x38d   : > { %v5661_v58 = vmax.f32 %v5660_v14, %v5390_v44  ;;  %v4096_v57 = vpop.f32.mrf.mxu0 }
 0x38e   : > { %v5391_v59 = vsel %vm5296_vm14, %v4675_v24, -inf  ;;  %v4097_v35 = vadd.f32 %v10057_v56, %v4096_v57 }
 0x38f   : > { %v5641_v39 = vmax.f32 %v5640_v55, %v5391_v59 }
 0x390   : > { %v4343_v31 = vmax.f32 %v4097_v35, 0.0 }
 0x391   : > { %v5642_v10 = vrot.slane %v5641_v39, 4  ;;  %v5003_v50 = vpop.f32.mrf.mxu2 }
 0x392   : > { %v5004_v22 = vadd.f32 %v5003_v50, %v9669_v52  ;;  %v4446_v8 = vpack.c.bf16 %v4343_v31, %v4342_v20  ;;  %v6529_v20 = vld [vmem:[%s7949_s20 + $0x1d0] sm:$0xff]  }
 0x393   : > { %v5643_v16 = vmax.f32 %v5641_v39, %v5642_v10  ;;  %v4677_v32 = vpop.f32.mrf.mxu1  ;;  %v6451_v15 = vunpack.c.h.bf16 %v6529_v20 }
 0x394   : > { %v5392_v51 = vsel %vm5296_vm14, %v5004_v22, -inf  ;;  %v4678_v47 = vadd.f32 %v4677_v32, %v9638_v34  ;;  %v6450_v22 = vunpack.c.l.bf16 %v6529_v20 }
 0x395   : > { %v5644_v3 = vrot.slane %v5643_v16, 2  ;;  %v5662_v12 = vmax.f32 %v5661_v58, %v5392_v51  ;;  %v4099_v14 = vpop.f32.mrf.mxu0 }
 0x396   : > { %4716 = vmatmul.bf16.gmra.mxu1 %v4446_v8  ;;  %5045 = vmatmul.bf16.gmra.mxu2 %v4446_v8  ;;  %v4100_v39 = vadd.f32 %v10057_v56, %v4099_v14  ;;  %v5393_v57 = vsel %vm5281_vm1, %v4678_v47, -inf }
 0x397   : > { %v5645_v43 = vmax.f32 %v5643_v16, %v5644_v3  ;;  %v5663_v38 = vrot.slane %v5662_v12, 4  ;;  %v5626_v16 = vmax.f32 %v5624_v1, %v5625_v62 }
 0x398   : > { %6095 = vmatmul.msk.bf16.gmra.mxu0 %vm3772_vm0, %v11640_v6  ;;  %v4344_v51 = vmax.f32 %v4100_v39, 0.0 }
 0x399   : > { %v5646_v45 = vrot.slane %v5645_v43, 1  ;;  %v5664_v55 = vmax.f32 %v5662_v12, %v5663_v38  ;;  %v5006_v28 = vpop.f32.mrf.mxu2  ;;  %v7556_v12 = vpack.i.bf16 %v6451_v15, %v6450_v22 }
 0x39a   : > { %v5007_v54 = vadd.f32 %v5006_v28, %v9669_v52 }
 0x39b   : > { %v5647_v44 = vmax.f32 %v5645_v43, %v5646_v45  ;;  %v5665_v24 = vrot.slane %v5664_v55, 2  ;;  %v4679_v13 = vpop.f32.mrf.mxu1  ;;  %7557 = vperm.xlu0 %7527, %v7556_v12   ;;  %7562 = vperm.xlu1 %7533, %v7556_v12  }
 0x39c   : > { %v4680_v58 = vadd.f32 %v4679_v13, %v9638_v34  ;;  %v5394_v38 = vsel %vm5281_vm1, %v5007_v54, -inf  ;;  %7552 = vperm.xlu2 %7550, %v7556_v12   ;;  %v6531_v12 = vld [vmem:[%s7949_s20 + $0x1e0] sm:$0xff]  }
 0x39d   : > { %v10312_v59 = vsel %vm5939_vm12, %v5647_v44, %v5605_v41  ;;  %v5666_v40 = vmax.f32 %v5664_v55, %v5665_v24  ;;  %v4101_v50 = vpop.f32.mrf.mxu0  ;;  %v11641_v44 = vld [vmem:[#allocation13_spill] sm:$0xff] }
 0x39e   : > { %v5395_v35 = vsel %vm5282_vm2, %v4680_v58, -inf  ;;  %v4102_v31 = vadd.f32 %v10057_v56, %v4101_v50 }
 0x39f   : > { %v5667_v30 = vrot.slane %v5666_v40, 1  ;;  %v5669_v10 = vmax.f32 %v5393_v57, %v5395_v35 }
 0x3a0   : > { %v4345_v17 = vmax.f32 %v4102_v31, 0.0 }
 0x3a1   : > { %v5668_v32 = vmax.f32 %v5666_v40, %v5667_v30  ;;  %v5008_v8 = vpop.f32.mrf.mxu2  ;;  %v6530_v30 = vld [vmem:[%s7949_s20 + $0x1d8] sm:$0xff]  }
 0x3a2   : > { %v5009_v3 = vadd.f32 %v5008_v8, %v9669_v52  ;;  %v4447_v1 = vpack.c.bf16 %v4345_v17, %v4344_v51  ;;  %v6454_v50 = vunpack.c.l.bf16 %v6530_v30  ;;  %v6455_v20 = vunpack.c.h.bf16 %v6530_v30 }
 0x3a3   : > { %v10323_v19 = vsel %vm5939_vm12, %v5668_v32, %v5626_v16  ;;  %v4682_v43 = vpop.f32.mrf.mxu1  ;;  %vm11647_vm12 = vmmov %vm11646_vm13 }
 0x3a4   : > { %v5396_v14 = vsel %vm5282_vm2, %v5009_v3, -inf  ;;  %v4683_v45 = vadd.f32 %v4682_v43, %v9638_v34  ;;  %v7571_v32 = vpack.i.bf16 %v6455_v20, %v6454_v50 }
 0x3a5   : > { %v5690_v55 = vmax.f32 %v5394_v38, %v5396_v14  ;;  %v4104_v6 = vpop.f32.mrf.mxu0 }
 0x3a6   : > { %v5397_v28 = vsel %vm5283_vm3, %v4683_v45, -inf  ;;  %4721 = vmatmul.bf16.gmra.mxu1 %v4447_v1  ;;  %5050 = vmatmul.bf16.gmra.mxu2 %v4447_v1  ;;  %v4105_v62 = vadd.f32 %v10057_v56, %v4104_v6 }
 0x3a7   : > { %v5670_v47 = vmax.f32 %v5669_v10, %v5397_v28  ;;  %7572 = vperm.xlu0 %7527, %v7571_v32   ;;  %7577 = vperm.xlu1 %7533, %v7571_v32   ;;  %v11642_v28 = vld [vmem:[#allocation40_spill] sm:$0xff] }
 0x3a8   : > { %6096 = vmatmul.msk.bf16.gmra.mxu0 %vm3772_vm0, %v11641_v44  ;;  %v4346_v31 = vmax.f32 %v4105_v62, 0.0  ;;  %7567 = vperm.xlu2 %7550, %v7571_v32  }
 0x3a9   : > { %v5011_v41 = vpop.f32.mrf.mxu2 }
 0x3aa   : > { %v5012_v54 = vadd.f32 %v5011_v41, %v9669_v52 }
 0x3ab   : > { %v4684_v24 = vpop.f32.mrf.mxu1 }
 0x3ac   : > { %v5398_v13 = vsel %vm5283_vm3, %v5012_v54, -inf  ;;  %v4685_v58 = vadd.f32 %v4684_v24, %v9638_v34 }
 0x3ad   : > { %v5691_v40 = vmax.f32 %v5690_v55, %v5398_v13  ;;  %v4106_v35 = vpop.f32.mrf.mxu0 }
 0x3ae   : > { %v5399_v39 = vsel %vm5284_vm4, %v4685_v58, -inf  ;;  %v4107_v10 = vadd.f32 %v10057_v56, %v4106_v35 }
 0x3af   : > { %v5671_v57 = vmax.f32 %v5670_v47, %v5399_v39  ;;  %v6459_v39 = vunpack.c.h.bf16 %v6531_v12 }
 0x3b0   : > { %v4347_v15 = vmax.f32 %v4107_v10, 0.0 }
 0x3b1   : > { %v5013_v22 = vpop.f32.mrf.mxu2 }
 0x3b2   : > { %v5014_v16 = vadd.f32 %v5013_v22, %v9669_v52  ;;  %v4448_v3 = vpack.c.bf16 %v4347_v15, %v4346_v31 }
 0x3b3   : > { %v4687_v51 = vpop.f32.mrf.mxu1 }
 0x3b4   : > { %v5400_v8 = vsel %vm5284_vm4, %v5014_v16, -inf  ;;  %v4688_v17 = vadd.f32 %v4687_v51, %v9638_v34 }
 0x3b5   : > { %v5692_v43 = vmax.f32 %v5691_v40, %v5400_v8  ;;  %v4109_v45 = vpop.f32.mrf.mxu0  ;;  %v6458_v40 = vunpack.c.l.bf16 %v6531_v12 }
 0x3b6   : > { %v5401_v38 = vsel %vm5285_vm5, %v4688_v17, -inf  ;;  %4726 = vmatmul.bf16.gmra.mxu1 %v4448_v3  ;;  %5055 = vmatmul.bf16.gmra.mxu2 %v4448_v3  ;;  %v4110_v54 = vadd.f32 %v10057_v56, %v4109_v45 }
 0x3b7   : > { %v5672_v14 = vmax.f32 %v5671_v57, %v5401_v38  ;;  %v7586_v50 = vpack.i.bf16 %v6459_v39, %v6458_v40 }
 0x3b8   : > { %6097 = vmatmul.msk.bf16.gmra.mxu0 %vm3772_vm0, %v11642_v28  ;;  %v4348_v57 = vmax.f32 %v4110_v54, 0.0 }
 0x3b9   : > { %v5016_v1 = vpop.f32.mrf.mxu2  ;;  %7587 = vperm.xlu0 %7527, %v7586_v50   ;;  %7592 = vperm.xlu1 %7533, %v7586_v50  }
 0x3ba   : > { %v5017_v55 = vadd.f32 %v5016_v1, %v9669_v52  ;;  %v10375_v1 = vld [vmem:[%s11298_s4] ss:$0 sm:$0xff]  ;;  %7582 = vperm.xlu2 %7550, %v7586_v50   ;;  %v6533_v50 = vld [vmem:[%s7949_s20 + $0x1f0] sm:$0xff]  }
 0x3bb   : > { %v4689_v47 = vpop.f32.mrf.mxu1 }
 0x3bc   : > { %v5402_v6 = vsel %vm5285_vm5, %v5017_v55, -inf  ;;  %v4690_v41 = vadd.f32 %v4689_v47, %v9638_v34 }
 0x3bd   : > { %v5693_v44 = vmax.f32 %v5692_v43, %v5402_v6  ;;  %v4111_v58 = vpop.f32.mrf.mxu0  ;;  %v11643_v43 = vld [vmem:[#allocation42_spill] sm:$0xff] }
 0x3be   : > { %v5403_v24 = vsel %vm5286_vm6, %v4690_v41, -inf  ;;  %v4112_v62 = vadd.f32 %v10057_v56, %v4111_v58  ;;  %v6532_v41 = vld [vmem:[%s7949_s20 + $0x1e8] sm:$0xff]  }
 0x3bf   : > { %v5673_v13 = vmax.f32 %v5672_v14, %v5403_v24  ;;  %v6463_v24 = vunpack.c.h.bf16 %v6532_v41 }
 0x3c0   : > { %v4349_v30 = vmax.f32 %v4112_v62, 0.0 }
 0x3c1   : > { %v5018_v35 = vpop.f32.mrf.mxu2 }
 0x3c2   : > { %v5019_v10 = vadd.f32 %v5018_v35, %v9669_v52  ;;  %v4449_v15 = vpack.c.bf16 %v4349_v30, %v4348_v57 }
 0x3c3   : > { %v4692_v20 = vpop.f32.mrf.mxu1 }
 0x3c4   : > { %v5404_v31 = vsel %vm5286_vm6, %v5019_v10, -inf  ;;  %v4693_v22 = vadd.f32 %v4692_v20, %v9638_v34 }
 0x3c5   : > { %v5694_v16 = vmax.f32 %v5693_v44, %v5404_v31  ;;  %v4114_v8 = vpop.f32.mrf.mxu0  ;;  %v6462_v44 = vunpack.c.l.bf16 %v6532_v41 }
 0x3c6   : > { %v5405_v56 = vsel %vm5287_vm7, %v4693_v22, -inf  ;;  %4731 = vmatmul.bf16.gmra.mxu1 %v4449_v15  ;;  %5060 = vmatmul.bf16.gmra.mxu2 %v4449_v15  ;;  %v4115_v55 = vadd.f32 %v10375_v1, %v4114_v8 }
 0x3c7   : > { %v5674_v51 = vmax.f32 %v5673_v13, %v5405_v56  ;;  %v7601_v40 = vpack.i.bf16 %v6463_v24, %v6462_v44  ;;  %v11644_v56 = vld [vmem:[#allocation18_spill] sm:$0xff] }
 0x3c8   : > { %6098 = vmatmul.msk.bf16.gmra.mxu0 %vm3772_vm0, %v11643_v43  ;;  %v4350_v13 = vmax.f32 %v4115_v55, 0.0 }
 0x3c9   : > { %v5021_v17 = vpop.f32.mrf.mxu2  ;;  %7602 = vperm.xlu0 %7527, %v7601_v40   ;;  %7607 = vperm.xlu1 %7533, %v7601_v40  }
 0x3ca   : > { %v5022_v3 = vadd.f32 %v5021_v17, %v9669_v52  ;;  %7597 = vperm.xlu2 %7550, %v7601_v40  }
 0x3cb   : > { %v4694_v38 = vpop.f32.mrf.mxu1 }
 0x3cc   : > { %v5406_v14 = vsel %vm5287_vm7, %v5022_v3, -inf  ;;  %v4695_v45 = vadd.f32 %v4694_v38, %v9638_v34 }
 0x3cd   : > { %v5695_v28 = vmax.f32 %v5694_v16, %v5406_v14  ;;  %v4116_v6 = vpop.f32.mrf.mxu0 }
 0x3ce   : > { %v5407_v32 = vsel %vm5288_vm8, %v4695_v45, -inf  ;;  %v4117_v54 = vadd.f32 %v10375_v1, %v4116_v6 }
 0x3cf   : > { %v5675_v47 = vmax.f32 %v5674_v51, %v5407_v32  ;;  %v6467_v32 = vunpack.c.h.bf16 %v6533_v50 }
 0x3d0   : > { %v4351_v12 = vmax.f32 %v4117_v54, 0.0 }
 0x3d1   : > { %v5023_v58 = vpop.f32.mrf.mxu2 }
 0x3d2   : > { %v5024_v62 = vadd.f32 %v5023_v58, %v9669_v52  ;;  %v4450_v30 = vpack.c.bf16 %v4351_v12, %v4350_v13 }
 0x3d3   : > { %v4697_v39 = vpop.f32.mrf.mxu1 }
 0x3d4   : > { %v5408_v57 = vsel %vm5288_vm8, %v5024_v62, -inf  ;;  %v4698_v35 = vadd.f32 %v4697_v39, %v9638_v34 }
 0x3d5   : > { %v5696_v10 = vmax.f32 %v5695_v28, %v5408_v57  ;;  %v4119_v22 = vpop.f32.mrf.mxu0  ;;  %v6466_v28 = vunpack.c.l.bf16 %v6533_v50 }
 0x3d6   : > { %v5409_v20 = vsel %vm5289_vm9, %v4698_v35, -inf  ;;  %4736 = vmatmul.bf16.gmra.mxu1 %v4450_v30  ;;  %5065 = vmatmul.bf16.gmra.mxu2 %v4450_v30  ;;  %v4120_v3 = vadd.f32 %v10375_v1, %v4119_v22 }
 0x3d7   : > { %v5676_v31 = vmax.f32 %v5675_v47, %v5409_v20  ;;  %v7616_v44 = vpack.i.bf16 %v6467_v32, %v6466_v28  ;;  %v11645_v20 = vld [vmem:[#allocation39_spill] sm:$0xff] }
 0x3d8   : > { %6099 = vmatmul.msk.bf16.gmra.mxu0 %vm3772_vm0, %v11644_v56  ;;  %v4352_v47 = vmax.f32 %v4120_v3, 0.0  ;;  %v6534_v3 = vld [vmem:[%s7949_s20 + $0x1f8] sm:$0xff]  }
 0x3d9   : > { %v5026_v15 = vpop.f32.mrf.mxu2  ;;  %7617 = vperm.xlu0 %7527, %v7616_v44   ;;  %7622 = vperm.xlu1 %7533, %v7616_v44  }
 0x3da   : > { %v5027_v16 = vadd.f32 %v5026_v15, %v9669_v52  ;;  %7612 = vperm.xlu2 %7550, %v7616_v44  }
 0x3db   : > { %v4699_v51 = vpop.f32.mrf.mxu1 }
 0x3dc   : > { %v5410_v8 = vsel %vm5289_vm9, %v5027_v16, -inf  ;;  %v4700_v17 = vadd.f32 %v4699_v51, %v9638_v34 }
 0x3dd   : > { %v5697_v43 = vmax.f32 %v5696_v10, %v5410_v8  ;;  %v4121_v45 = vpop.f32.mrf.mxu0 }
 0x3de   : > { %v5411_v38 = vsel %vm5290_vm10, %v4700_v17, -inf  ;;  %v4122_v55 = vadd.f32 %v10375_v1, %v4121_v45 }
 0x3df   : > { %v5677_v14 = vmax.f32 %v5676_v31, %v5411_v38  ;;  %v6470_v38 = vunpack.c.l.bf16 %v6534_v3 }
 0x3e0   : > { %v4353_v41 = vmax.f32 %v4122_v55, 0.0 }
 0x3e1   : > { %v5028_v6 = vpop.f32.mrf.mxu2 }
 0x3e2   : > { %v5029_v54 = vadd.f32 %v5028_v6, %v9669_v52  ;;  %v4451_v12 = vpack.c.bf16 %v4353_v41, %v4352_v47 }
 0x3e3   : > { %v4702_v24 = vpop.f32.mrf.mxu1 }
 0x3e4   : > { %v5412_v13 = vsel %vm5290_vm10, %v5029_v54, -inf  ;;  %v4703_v58 = vadd.f32 %v4702_v24, %v9638_v34 }
 0x3e5   : > { %v5698_v62 = vmax.f32 %v5697_v43, %v5412_v13  ;;  %v4124_v35 = vpop.f32.mrf.mxu0 }
 0x3e6   : > { %v5413_v39 = vsel %vm5291_vm11, %v4703_v58, -inf  ;;  %4741 = vmatmul.bf16.gmra.mxu1 %v4451_v12  ;;  %5070 = vmatmul.bf16.gmra.mxu2 %v4451_v12  ;;  %v4125_v56 = vadd.f32 %v10375_v1, %v4124_v35 }
 0x3e7   : > { %v5678_v57 = vmax.f32 %v5677_v14, %v5413_v39  ;;  %v6471_v14 = vunpack.c.h.bf16 %v6534_v3  ;;  %v11649_v39 = vld [vmem:[#allocation41_spill] sm:$0xff] }
 0x3e8   : > { %6100 = vmatmul.msk.bf16.gmra.mxu0 %vm3772_vm0, %v11645_v20  ;;  %v4354_v45 = vmax.f32 %v4125_v56, 0.0  ;;  %v11651_v20 = vmov 2  }
 0x3e9   : > { %v5031_v30 = vpop.f32.mrf.mxu2  ;;  %v7631_v32 = vpack.i.bf16 %v6471_v14, %v6470_v38 }
 0x3ea   : > { %v5032_v10 = vadd.f32 %v5031_v30, %v9669_v52 }
 0x3eb   : > { %v4704_v31 = vpop.f32.mrf.mxu1  ;;  %7632 = vperm.xlu0 %7527, %v7631_v32   ;;  %7637 = vperm.xlu1 %7533, %v7631_v32  }
 0x3ec   : > { %v5414_v22 = vsel %vm5291_vm11, %v5032_v10, -inf  ;;  %v4705_v15 = vadd.f32 %v4704_v31, %v9638_v34  ;;  %7627 = vperm.xlu2 %7550, %v7631_v32  }
 0x3ed   : > { %v5699_v16 = vmax.f32 %v5698_v62, %v5414_v22  ;;  %v4126_v17 = vpop.f32.mrf.mxu0 }
 0x3ee   : > { %v5415_v51 = vsel %vm11646_vm13, %v4705_v15, -inf  ;;  %v4127_v40 = vadd.f32 %v10375_v1, %v4126_v17  ;;  %vm11648_vm13 = vcmp.lt.s32.totalorder %v10076_v46, 300 }
 0x3ef   : > { %v5679_v8 = vmax.f32 %v5678_v57, %v5415_v51 }
 0x3f0   : > { %v4355_v50 = vmax.f32 %v4127_v40, 0.0 }
 0x3f1   : > { %v5033_v43 = vpop.f32.mrf.mxu2 }
 0x3f2   : > { %v5034_v55 = vadd.f32 %v5033_v43, %v9669_v52  ;;  %v4452_v41 = vpack.c.bf16 %v4355_v50, %v4354_v45 }
 0x3f3   : > { %v4707_v28 = vpop.f32.mrf.mxu1  ;;  %7641 = vset.pattern.permute.xlu0 %v11651_v20 }
 0x3f4   : > { %v5416_v47 = vsel %vm11647_vm12, %v5034_v55, -inf  ;;  %v4708_v6 = vadd.f32 %v4707_v28, %v9638_v34  ;;  %vm11650_vm12 = vmmov %vm11648_vm13 }
 0x3f5   : > { %v5700_v54 = vmax.f32 %v5699_v16, %v5416_v47  ;;  %v4129_v58 = vpop.f32.mrf.mxu0 }
 0x3f6   : > { %v5417_v24 = vsel %vm11648_vm13, %v4708_v6, -inf  ;;  %4746 = vmatmul.bf16.gmra.mxu1 %v4452_v41  ;;  %5075 = vmatmul.bf16.gmra.mxu2 %v4452_v41  ;;  %v4130_v31 = vadd.f32 %v10375_v1, %v4129_v58  ;;  %vm11652_vm13 = vcmp.lt.s32.totalorder %v10098_v27, 300  ;;  %v11654_v6 = vld [vmem:[#allocation73_spill] sm:$0xff] }
 0x3f7   : > { %v5680_v13 = vmax.f32 %v5679_v8, %v5417_v24 }
 0x3f8   : > { %6101 = vmatmul.msk.bf16.gmra.mxu0 %vm3772_vm0, %v11649_v39  ;;  %v4356_v8 = vmax.f32 %v4130_v31, 0.0 }
 0x3f9   : > { %v5036_v12 = vpop.f32.mrf.mxu2 }
 0x3fa   : > { %v5037_v62 = vadd.f32 %v5036_v12, %v9669_v52 }
 0x3fb   : > { %v4709_v57 = vpop.f32.mrf.mxu1 }
 0x3fc   : > { %v5418_v35 = vsel %vm11650_vm12, %v5037_v62, -inf  ;;  %v4710_v30 = vadd.f32 %v4709_v57, %v9638_v34  ;;  %vm11653_vm12 = vmmov %vm11652_vm13 }
 0x3fd   : > { %v5701_v10 = vmax.f32 %v5700_v54, %v5418_v35  ;;  %v4131_v16 = vpop.f32.mrf.mxu0 }
 0x3fe   : > { %v5419_v22 = vsel %vm11652_vm13, %v4710_v30, -inf  ;;  %v4132_v56 = vadd.f32 %v10375_v1, %v4131_v16  ;;  %vm5941_vm13 = vcmask 1042434  }
 0x3ff   : > { %v5681_v15 = vmax.f32 %v5680_v13, %v5419_v22 }
 0x400   : > { %v4357_v17 = vmax.f32 %v4132_v56, 0.0 }
 0x401   : > { %v5038_v51 = vpop.f32.mrf.mxu2 }
 0x402   : > { %v5039_v40 = vadd.f32 %v5038_v51, %v9669_v52  ;;  %v4453_v38 = vpack.c.bf16 %v4357_v17, %v4356_v8 }
 0x403   : > { %v4712_v3 = vpop.f32.mrf.mxu1 }
 0x404   : > { %v5420_v44 = vsel %vm11653_vm12, %v5039_v40, -inf  ;;  %v4713_v43 = vadd.f32 %v4712_v3, %v9638_v34  ;;  %vm11657_vm12 = vcmp.lt.s32.totalorder %v10043_v4, 300 }
 0x405   : > { %v5702_v14 = vmax.f32 %v5701_v10, %v5420_v44  ;;  %v4134_v55 = vpop.f32.mrf.mxu0 }
 0x406   : > { %v5421_v45 = vsel %vm5295_vm15, %v4713_v43, -inf  ;;  %4751 = vmatmul.bf16.gmra.mxu1 %v4453_v38  ;;  %5080 = vmatmul.bf16.gmra.mxu2 %v4453_v38  ;;  %v4135_v58 = vadd.f32 %v10375_v1, %v4134_v55 }
 0x407   : > { %v5682_v50 = vmax.f32 %v5681_v15, %v5421_v45  ;;  %v7553_v15 = vpop.permute.xlu2 %7552 }
 0x408   : > { %6102 = vmatmul.msk.bf16.gmra.mxu0 %vm3772_vm0, %v11654_v6  ;;  %v4358_v30 = vmax.f32 %v4135_v58, 0.0  ;;  %v7555_v51 = vunpack.i.h.bf16 %v7553_v15  ;;  %v7554_v40 = vunpack.i.l.bf16 %v7553_v15 }
 0x409   : > { %v5041_v28 = vpop.f32.mrf.mxu2 }
 0x40a   : > { %v5042_v47 = vadd.f32 %v5041_v28, %v9669_v52  ;;  %v1863_v45 = vmul.f32 %v7555_v51, %v8394_v36  ;;  %v1862_v55 = vmul.f32 %v7554_v40, %v8394_v36 }
 0x40b   : > { %v4714_v41 = vpop.f32.mrf.mxu1 }
 0x40c   : > { %v5422_v54 = vsel %vm5295_vm15, %v5042_v47, -inf  ;;  %v4715_v24 = vadd.f32 %v4714_v41, %v9638_v34 }
 0x40d   : > { %v5703_v13 = vmax.f32 %v5702_v14, %v5422_v54  ;;  %v4136_v39 = vpop.f32.mrf.mxu0  ;;  %v7558_v3 = vpop.permute.xlu0 %7557 }
 0x40e   : > { %v5423_v12 = vsel %vm5296_vm14, %v4715_v24, -inf  ;;  %v4137_v32 = vadd.f32 %v10375_v1, %v4136_v39  ;;  %v7563_v44 = vpop.permute.xlu1 %7562  ;;  %v7559_v28 = vunpack.i.l.bf16 %v7558_v3 }
 0x40f   : > { %v5683_v62 = vmax.f32 %v5682_v50, %v5423_v12  ;;  %v7560_v50 = vunpack.i.h.bf16 %v7558_v3  ;;  %v7565_v47 = vunpack.i.h.bf16 %v7563_v44  ;;  %v7564_v6 = vunpack.i.l.bf16 %v7563_v44 }
 0x410   : > { %v4359_v10 = vmax.f32 %v4137_v32, 0.0  ;;  %v2503_v39 = vmul.f32 %v7559_v28, %v8396_v23 }
 0x411   : > { %v5684_v57 = vrot.slane %v5683_v62, 4  ;;  %v5043_v35 = vpop.f32.mrf.mxu2  ;;  %v3273_v32 = vmul.f32 %v7565_v47, %v8390_v11 }
 0x412   : > { %v5044_v20 = vadd.f32 %v5043_v35, %v9669_v52  ;;  %v4454_v56 = vpack.c.bf16 %v4359_v10, %v4358_v30  ;;  %v2631_v15 = vadd.f32 %v2503_v39, %v1862_v55 }
 0x413   : > { %v5685_v31 = vmax.f32 %v5683_v62, %v5684_v57  ;;  %v4717_v22 = vpop.f32.mrf.mxu1  ;;  %v11655_v62 = vld [vmem:[#allocation17_spill] sm:$0xff] }
 0x414   : > { %v5424_v16 = vsel %vm5296_vm14, %v5044_v20, -inf  ;;  %v4718_v58 = vadd.f32 %v4717_v22, %v9638_v34  ;;  %v3272_v20 = vmul.f32 %v7564_v6, %v8390_v11 }
 0x415   : > { %v5686_v8 = vrot.slane %v5685_v31, 2  ;;  %v5704_v17 = vmax.f32 %v5703_v13, %v5424_v16  ;;  %v4139_v14 = vpop.f32.mrf.mxu0  ;;  %v2504_v13 = vmul.f32 %v7560_v50, %v8396_v23 }
 0x416   : > { %4756 = vmatmul.bf16.gmra.mxu1 %v4454_v56  ;;  %5085 = vmatmul.bf16.gmra.mxu2 %v4454_v56  ;;  %v5425_v51 = vsel %vm5281_vm1, %v4718_v58, -inf  ;;  %v3400_v40 = vadd.f32 %v3272_v20, %v2631_v15 }
 0x417   : > { %v5687_v43 = vmax.f32 %v5685_v31, %v5686_v8  ;;  %v5705_v38 = vrot.slane %v5704_v17, 4  ;;  %v2632_v10 = vadd.f32 %v2504_v13, %v1863_v45  ;;  %v4140_v8 = vadd.f32 %v10375_v1, %v4139_v14 }
 0x418   : > { %6103 = vmatmul.msk.bf16.gmra.mxu0 %vm3772_vm0, %v11655_v62  ;;  %v7568_v62 = vpop.permute.xlu2 %7567 }
 0x419   : > { %v5688_v41 = vrot.slane %v5687_v43, 1  ;;  %v5706_v54 = vmax.f32 %v5704_v17, %v5705_v38  ;;  %v5046_v24 = vpop.f32.mrf.mxu2  ;;  %v3401_v56 = vadd.f32 %v3273_v32, %v2632_v10  ;;  %v10475_v38 = vld [vmem:[%s11296_s2] ss:$0 sm:$0xff]  ;;  %v4360_v47 = vmax.f32 %v4140_v8, 0.0  ;;  %v7578_v15 = vpop.permute.xlu1 %7577 }
 0x41a   : > { %v5047_v12 = vadd.f32 %v5046_v24, %v9669_v52  ;;  %v3532_v50 = vadd.f32 %v10475_v38, %v3400_v40  ;;  %v7570_v10 = vunpack.i.h.bf16 %v7568_v62  ;;  %v7569_v20 = vunpack.i.l.bf16 %v7568_v62 }
 0x41b   : > { %v5689_v57 = vmax.f32 %v5687_v43, %v5688_v41  ;;  %v5707_v35 = vrot.slane %v5706_v54, 2  ;;  %v4719_v30 = vpop.f32.mrf.mxu1  ;;  %v7580_v40 = vunpack.i.h.bf16 %v7578_v15 }
 0x41c   : > { %v4720_v31 = vadd.f32 %v4719_v30, %v9638_v34  ;;  %v5426_v13 = vsel %vm5281_vm1, %v5047_v12, -inf  ;;  %v1864_v8 = vmul.f32 %v7569_v20, %v8394_v36 }
 0x41d   : > { %v10465_v22 = vsel %vm5941_vm13, %v5689_v57, %v10312_v59  ;;  %v5708_v16 = vmax.f32 %v5706_v54, %v5707_v35  ;;  %v4141_v43 = vpop.f32.mrf.mxu0  ;;  %v3533_v59 = vadd.f32 %v10475_v38, %v3401_v56  ;;  %v3660_v54 = vmax.f32 %v3532_v50, 0.0  ;;  %v11656_v50 = vld [vmem:[#allocation43_spill] sm:$0xff] }
 0x41e   : > { %v5427_v17 = vsel %vm5282_vm2, %v4720_v31, -inf  ;;  %v4142_v45 = vadd.f32 %v10375_v1, %v4141_v43  ;;  %v1865_v56 = vmul.f32 %v7570_v10, %v8394_v36 }
 0x41f   : > { %v5709_v3 = vrot.slane %v5708_v16, 1  ;;  %v5711_v44 = vmax.f32 %v5425_v51, %v5427_v17  ;;  %v3661_v28 = vmax.f32 %v3533_v59, 0.0 }
 0x420   : > { %v4361_v6 = vmax.f32 %v4142_v45, 0.0 }
 0x421   : > { %v5710_v55 = vmax.f32 %v5708_v16, %v5709_v3  ;;  %v5048_v14 = vpop.f32.mrf.mxu2  ;;  %v3730_v35 = vpack.c.bf16 %v3661_v28, %v3660_v54  ;;  %v7579_v3 = vunpack.i.l.bf16 %v7578_v15 }
 0x422   : > { %v5049_v41 = vadd.f32 %v5048_v14, %v9669_v52  ;;  %v4455_v57 = vpack.c.bf16 %v4361_v6, %v4360_v47 }
 0x423   : > { %v10483_v24 = vsel %vm5941_vm13, %v5710_v55, %v10323_v19  ;;  %v4722_v58 = vpop.f32.mrf.mxu1  ;;  %v7573_v19 = vpop.permute.xlu0 %7572  ;;  %6120 = vmatmul.msk.bf16.gmra.mxu3 %vm3772_vm0, %v3730_v35  ;;  %v3275_v55 = vmul.f32 %v7580_v40, %v8390_v11  ;;  %v3274_v47 = vmul.f32 %v7579_v3, %v8390_v11  ;;  %vm11658_vm13 = vmmov %vm11657_vm12 }
 0x424   : > { %v5428_v39 = vsel %vm5282_vm2, %v5049_v41, -inf  ;;  %v4723_v32 = vadd.f32 %v4722_v58, %v9638_v34  ;;  %v7575_v51 = vunpack.i.h.bf16 %v7573_v19  ;;  %v7574_v17 = vunpack.i.l.bf16 %v7573_v19 }
 0x425   : > { %v5732_v30 = vmax.f32 %v5426_v13, %v5428_v39  ;;  %v4144_v16 = vpop.f32.mrf.mxu0 }
 0x426   : > { %v5429_v31 = vsel %vm5283_vm3, %v4723_v32, -inf  ;;  %4761 = vmatmul.bf16.gmra.mxu1 %v4455_v57  ;;  %5090 = vmatmul.bf16.gmra.mxu2 %v4455_v57  ;;  %v2506_v59 = vmul.f32 %v7575_v51, %v8396_v23  ;;  %v4145_v62 = vadd.f32 %v10375_v1, %v4144_v16 }
 0x427   : > { %v5712_v12 = vmax.f32 %v5711_v44, %v5429_v31  ;;  %v2505_v44 = vmul.f32 %v7574_v17, %v8396_v23  ;;  %v7583_v17 = vpop.permute.xlu2 %7582 }
 0x428   : > { %6104 = vmatmul.msk.bf16.gmra.mxu0 %vm3772_vm0, %v11656_v50  ;;  %v2634_v28 = vadd.f32 %v2506_v59, %v1865_v56  ;;  %v4362_v56 = vmax.f32 %v4145_v62, 0.0  ;;  %v7584_v50 = vunpack.i.l.bf16 %v7583_v17 }
 0x429   : > { %v5051_v43 = vpop.f32.mrf.mxu2  ;;  %v2633_v54 = vadd.f32 %v2505_v44, %v1864_v8 }
 0x42a   : > { %v5052_v45 = vadd.f32 %v5051_v43, %v9669_v52  ;;  %v3403_v58 = vadd.f32 %v3275_v55, %v2634_v28 }
 0x42b   : > { %v4724_v14 = vpop.f32.mrf.mxu1  ;;  %v3402_v32 = vadd.f32 %v3274_v47, %v2633_v54  ;;  %v7588_v55 = vpop.permute.xlu0 %7587  ;;  %v1866_v54 = vmul.f32 %v7584_v50, %v8394_v36 }
 0x42c   : > { %v5430_v6 = vsel %vm5283_vm3, %v5052_v45, -inf  ;;  %v4725_v41 = vadd.f32 %v4724_v14, %v9638_v34  ;;  %v3535_v10 = vadd.f32 %v10475_v38, %v3403_v58  ;;  %v7585_v45 = vunpack.i.h.bf16 %v7583_v17  ;;  %v7593_v14 = vpop.permute.xlu1 %7592 }
 0x42d   : > { %v5733_v13 = vmax.f32 %v5732_v30, %v5430_v6  ;;  %v4146_v35 = vpop.f32.mrf.mxu0  ;;  %v3534_v31 = vadd.f32 %v10475_v38, %v3402_v32  ;;  %v7589_v58 = vunpack.i.l.bf16 %v7588_v55  ;;  %v7594_v62 = vunpack.i.l.bf16 %v7593_v14 }
 0x42e   : > { %v5431_v39 = vsel %vm5284_vm4, %v4725_v41, -inf  ;;  %v4147_v20 = vadd.f32 %v10375_v1, %v4146_v35  ;;  %v3663_v15 = vmax.f32 %v3535_v10, 0.0  ;;  %v1867_v6 = vmul.f32 %v7585_v45, %v8394_v36 }
 0x42f   : > { %v5713_v57 = vmax.f32 %v5712_v12, %v5431_v39  ;;  %v3662_v8 = vmax.f32 %v3534_v31, 0.0  ;;  %v7590_v41 = vunpack.i.h.bf16 %v7588_v55 }
 0x430   : > { %v4363_v51 = vmax.f32 %v4147_v20, 0.0 }
 0x431   : > { %v5053_v19 = vpop.f32.mrf.mxu2  ;;  %v3731_v43 = vpack.c.bf16 %v3663_v15, %v3662_v8  ;;  %v2508_v32 = vmul.f32 %v7590_v41, %v8396_v23  ;;  %v7598_v41 = vpop.permute.xlu2 %7597 }
 0x432   : > { %v5054_v30 = vadd.f32 %v5053_v19, %v9669_v52  ;;  %v4456_v3 = vpack.c.bf16 %v4363_v51, %v4362_v56  ;;  %v3276_v19 = vmul.f32 %v7594_v62, %v8390_v11 }
 0x433   : > { %v4727_v16 = vpop.f32.mrf.mxu1  ;;  %6121 = vmatmul.msk.bf16.gmra.mxu3 %vm3772_vm0, %v3731_v43  ;;  %v2636_v31 = vadd.f32 %v2508_v32, %v1867_v6  ;;  %v7600_v32 = vunpack.i.h.bf16 %v7598_v41 }
 0x434   : > { %v5432_v40 = vsel %vm5284_vm4, %v5054_v30, -inf  ;;  %v4728_v12 = vadd.f32 %v4727_v16, %v9638_v34 }
 0x435   : > { %v5734_v59 = vmax.f32 %v5733_v13, %v5432_v40  ;;  %v4149_v47 = vpop.f32.mrf.mxu0  ;;  %v7595_v13 = vunpack.i.h.bf16 %v7593_v14 }
 0x436   : > { %v5433_v44 = vsel %vm5285_vm5, %v4728_v12, -inf  ;;  %4766 = vmatmul.bf16.gmra.mxu1 %v4456_v3  ;;  %5095 = vmatmul.bf16.gmra.mxu2 %v4456_v3  ;;  %v4150_v16 = vadd.f32 %v10375_v1, %v4149_v47 }
 0x437   : > { %v5714_v28 = vmax.f32 %v5713_v57, %v5433_v44  ;;  %v2507_v57 = vmul.f32 %v7589_v58, %v8396_v23  ;;  %v3277_v10 = vmul.f32 %v7595_v13, %v8390_v11 }
 0x438   : > { %6105 = vmatmul.msk.bf16.gmra.mxu0 %vm3772_vm0, %v9878_v5  ;;  %v4364_v55 = vmax.f32 %v4150_v16, 0.0 }
 0x439   : > { %v5056_v39 = vpop.f32.mrf.mxu2  ;;  %v2635_v51 = vadd.f32 %v2507_v57, %v1866_v54  ;;  %v3405_v8 = vadd.f32 %v3277_v10, %v2636_v31  ;;  %v10537_v54 = vpop.f32.mrf.mxu3 }
 0x43a   : > { %v5057_v35 = vadd.f32 %v5056_v39, %v9669_v52 }
 0x43b   : > { %v4729_v20 = vpop.f32.mrf.mxu1  ;;  %v3404_v17 = vadd.f32 %v3276_v19, %v2635_v51  ;;  %v3537_v3 = vadd.f32 %v10475_v38, %v3405_v8  ;;  %v7603_v10 = vpop.permute.xlu0 %7602 }
 0x43c   : > { %v5434_v15 = vsel %vm5285_vm5, %v5057_v35, -inf  ;;  %v4730_v56 = vadd.f32 %v4729_v20, %v9638_v34  ;;  %v7599_v35 = vunpack.i.l.bf16 %v7598_v41  ;;  %v7608_v20 = vpop.permute.xlu1 %7607  ;;  %v7604_v8 = vunpack.i.l.bf16 %v7603_v10 }
 0x43d   : > { %v5735_v30 = vmax.f32 %v5734_v59, %v5434_v15  ;;  %v4151_v12 = vpop.f32.mrf.mxu0  ;;  %v3536_v45 = vadd.f32 %v10475_v38, %v3404_v17  ;;  %v3665_v44 = vmax.f32 %v3537_v3, 0.0  ;;  %v1869_v15 = vmul.f32 %v7600_v32, %v8394_v36 }
 0x43e   : > { %v5435_v5 = vsel %vm5286_vm6, %v4730_v56, -inf  ;;  %v4152_v43 = vadd.f32 %v10375_v1, %v4151_v12  ;;  %v7605_v56 = vunpack.i.h.bf16 %v7603_v10  ;;  %v1868_v51 = vmul.f32 %v7599_v35, %v8394_v36 }
 0x43f   : > { %v5715_v40 = vmax.f32 %v5714_v28, %v5435_v5  ;;  %v3664_v6 = vmax.f32 %v3536_v45, 0.0  ;;  %v7609_v16 = vunpack.i.l.bf16 %v7608_v20 }
 0x440   : > { %v4365_v14 = vmax.f32 %v4152_v43, 0.0  ;;  %v2510_v17 = vmul.f32 %v7605_v56, %v8396_v23 }
 0x441   : > { %v5058_v50 = vpop.f32.mrf.mxu2  ;;  %v3732_v62 = vpack.c.bf16 %v3665_v44, %v3664_v6 }
 0x442   : > { %v5059_v59 = vadd.f32 %v5058_v50, %v9669_v52  ;;  %v4457_v13 = vpack.c.bf16 %v4365_v14, %v4364_v55  ;;  %v2638_v45 = vadd.f32 %v2510_v17, %v1869_v15  ;;  %v3278_v50 = vmul.f32 %v7609_v16, %v8390_v11 }
 0x443   : > { %v4732_v47 = vpop.f32.mrf.mxu1  ;;  %6122 = vmatmul.msk.bf16.gmra.mxu3 %vm3772_vm0, %v3732_v62 }
 0x444   : > { %v5436_v28 = vsel %vm5286_vm6, %v5059_v59, -inf  ;;  %v4733_v58 = vadd.f32 %v4732_v47, %v9638_v34  ;;  %v10557_v47 = vpop.f32.mrf.mxu3 }
 0x445   : > { %v5736_v39 = vmax.f32 %v5735_v30, %v5436_v28  ;;  %v4154_v19 = vpop.f32.mrf.mxu0  ;;  %v7610_v30 = vunpack.i.h.bf16 %v7608_v20 }
 0x446   : > { %v5437_v57 = vsel %vm5287_vm7, %v4733_v58, -inf  ;;  %4771 = vmatmul.bf16.gmra.mxu1 %v4457_v13  ;;  %5100 = vmatmul.bf16.gmra.mxu2 %v4457_v13 }
 0x447   : > { %v5716_v31 = vmax.f32 %v5715_v40, %v5437_v57  ;;  %v2509_v40 = vmul.f32 %v7604_v8, %v8396_v23  ;;  %v3279_v3 = vmul.f32 %v7610_v30, %v8390_v11 }
 0x448   : > { %6106 = vmatmul.msk.bf16.gmra.mxu0 %vm3772_vm0, %v9924_v21  ;;  %v4155_v21 = vadd.f32 %v10375_v1, %v4154_v19 }
 0x449   : > { %v5061_v5 = vpop.f32.mrf.mxu2  ;;  %v2637_v14 = vadd.f32 %v2509_v40, %v1868_v51  ;;  %v3407_v6 = vadd.f32 %v3279_v3, %v2638_v45 }
 0x44a   : > { %v5062_v12 = vadd.f32 %v5061_v5, %v9669_v52 }
 0x44b   : > { %v4734_v43 = vpop.f32.mrf.mxu1  ;;  %v3406_v28 = vadd.f32 %v3278_v50, %v2637_v14  ;;  %v3539_v62 = vadd.f32 %v10475_v38, %v3407_v6  ;;  %v7618_v17 = vpop.permute.xlu0 %7617 }
 0x44c   : > { %v5438_v44 = vsel %vm5287_vm7, %v5062_v12, -inf  ;;  %v4735_v55 = vadd.f32 %v4734_v43, %v9638_v34  ;;  %v7623_v12 = vpop.permute.xlu1 %7622  ;;  %v7613_v43 = vpop.permute.xlu2 %7612  ;;  %v7620_v45 = vunpack.i.h.bf16 %v7618_v17  ;;  %v7619_v50 = vunpack.i.l.bf16 %v7618_v17 }
 0x44d   : > { %v5737_v59 = vmax.f32 %v5736_v39, %v5438_v44  ;;  %v4156_v13 = vpop.f32.mrf.mxu0  ;;  %v3538_v35 = vadd.f32 %v10475_v38, %v3406_v28  ;;  %v3667_v10 = vmax.f32 %v3539_v62, 0.0  ;;  %v4366_v39 = vmax.f32 %v4155_v21, 0.0 }
 0x44e   : > { %v5439_v41 = vsel %vm5288_vm8, %v4735_v55, -inf  ;;  %v4157_v32 = vadd.f32 %v10375_v1, %v4156_v13  ;;  %v7625_v44 = vunpack.i.h.bf16 %v7623_v12  ;;  %v10572_v55 = vpop.f32.mrf.mxu3  ;;  %v7615_v14 = vunpack.i.h.bf16 %v7613_v43 }
 0x44f   : > { %v5717_v58 = vmax.f32 %v5716_v31, %v5439_v41  ;;  %v3666_v56 = vmax.f32 %v3538_v35, 0.0  ;;  %v7614_v6 = vunpack.i.l.bf16 %v7613_v43  ;;  %v2512_v41 = vmul.f32 %v7620_v45, %v8396_v23 }
 0x450   : > { %v4367_v20 = vmax.f32 %v4157_v32, 0.0  ;;  %v2511_v28 = vmul.f32 %v7619_v50, %v8396_v23  ;;  %v3281_v32 = vmul.f32 %v7625_v44, %v8390_v11 }
 0x451   : > { %v5063_v57 = vpop.f32.mrf.mxu2  ;;  %v3733_v30 = vpack.c.bf16 %v3667_v10, %v3666_v56  ;;  %v1870_v62 = vmul.f32 %v7614_v6, %v8394_v36 }
 0x452   : > { %v5064_v15 = vadd.f32 %v5063_v57, %v9669_v52  ;;  %v4458_v8 = vpack.c.bf16 %v4367_v20, %v4366_v39 }
 0x453   : > { %v4737_v19 = vpop.f32.mrf.mxu1  ;;  %6123 = vmatmul.msk.bf16.gmra.mxu3 %vm3772_vm0, %v3733_v30 }
 0x454   : > { %v5440_v51 = vsel %vm5288_vm8, %v5064_v15, -inf  ;;  %v4738_v31 = vadd.f32 %v4737_v19, %v9638_v34  ;;  %v2639_v15 = vadd.f32 %v2511_v28, %v1870_v62 }
 0x455   : > { %v5738_v16 = vmax.f32 %v5737_v59, %v5440_v51  ;;  %v4159_v3 = vpop.f32.mrf.mxu0  ;;  %v7624_v59 = vunpack.i.l.bf16 %v7623_v12 }
 0x456   : > { %v5441_v5 = vsel %vm5289_vm9, %v4738_v31, -inf  ;;  %4776 = vmatmul.bf16.gmra.mxu1 %v4458_v8  ;;  %5105 = vmatmul.bf16.gmra.mxu2 %v4458_v8  ;;  %v4160_v56 = vadd.f32 %v10375_v1, %v4159_v3  ;;  %v10592_v50 = vpop.f32.mrf.mxu3 }
 0x457   : > { %v5718_v40 = vmax.f32 %v5717_v58, %v5441_v5  ;;  %v1871_v58 = vmul.f32 %v7615_v14, %v8394_v36  ;;  %v3280_v57 = vmul.f32 %v7624_v59, %v8390_v11  ;;  %v7628_v59 = vpop.permute.xlu2 %7627 }
 0x458   : > { %6107 = vmatmul.msk.bf16.gmra.mxu0 %vm3772_vm0, %v9986_v7  ;;  %v4368_v43 = vmax.f32 %v4160_v56, 0.0  ;;  %v7629_v62 = vunpack.i.l.bf16 %v7628_v59 }
 0x459   : > { %v5066_v21 = vpop.f32.mrf.mxu2  ;;  %v2640_v20 = vadd.f32 %v2512_v41, %v1871_v58  ;;  %v3408_v51 = vadd.f32 %v3280_v57, %v2639_v15  ;;  %v7630_v58 = vunpack.i.h.bf16 %v7628_v59 }
 0x45a   : > { %v5067_v13 = vadd.f32 %v5066_v21, %v9669_v52 }
 0x45b   : > { %v4739_v35 = vpop.f32.mrf.mxu1  ;;  %v3409_v31 = vadd.f32 %v3281_v32, %v2640_v20  ;;  %v3540_v17 = vadd.f32 %v10475_v38, %v3408_v51  ;;  %v1872_v20 = vmul.f32 %v7629_v62, %v8394_v36 }
 0x45c   : > { %v5442_v10 = vsel %vm5289_vm9, %v5067_v13, -inf  ;;  %v4740_v39 = vadd.f32 %v4739_v35, %v9638_v34 }
 0x45d   : > { %v5739_v19 = vmax.f32 %v5738_v16, %v5442_v10  ;;  %v4161_v30 = vpop.f32.mrf.mxu0  ;;  %v3541_v12 = vadd.f32 %v10475_v38, %v3409_v31  ;;  %v3668_v3 = vmax.f32 %v3540_v17, 0.0  ;;  %v7633_v10 = vpop.permute.xlu0 %7632 }
 0x45e   : > { %v5443_v7 = vsel %vm5290_vm10, %v4740_v39, -inf  ;;  %v4162_v5 = vadd.f32 %v10375_v1, %v4161_v30  ;;  %v1873_v39 = vmul.f32 %v7630_v58, %v8394_v36  ;;  %v7635_v15 = vunpack.i.h.bf16 %v7633_v10 }
 0x45f   : > { %v5719_v8 = vmax.f32 %v5718_v40, %v5443_v7  ;;  %v3669_v14 = vmax.f32 %v3541_v12, 0.0  ;;  %v7634_v56 = vunpack.i.l.bf16 %v7633_v10 }
 0x460   : > { %v4369_v44 = vmax.f32 %v4162_v5, 0.0  ;;  %v2514_v31 = vmul.f32 %v7635_v15, %v8396_v23 }
 0x461   : > { %v5068_v45 = vpop.f32.mrf.mxu2  ;;  %v3734_v28 = vpack.c.bf16 %v3669_v14, %v3668_v3 }
 0x462   : > { %v5069_v16 = vadd.f32 %v5068_v45, %v9669_v52  ;;  %v4459_v21 = vpack.c.bf16 %v4369_v44, %v4368_v43  ;;  %v2642_v43 = vadd.f32 %v2514_v31, %v1873_v39  ;;  %v10611_v44 = vpop.f32.mrf.mxu3 }
 0x463   : > { %v4742_v6 = vpop.f32.mrf.mxu1  ;;  %6124 = vmatmul.msk.bf16.gmra.mxu3 %vm3772_vm0, %v3734_v28 }
 0x464   : > { %v5444_v40 = vsel %vm5290_vm10, %v5069_v16, -inf  ;;  %v4743_v41 = vadd.f32 %v4742_v6, %v9638_v34 }
 0x465   : > { %v5740_v13 = vmax.f32 %v5739_v19, %v5444_v40  ;;  %v4164_v57 = vpop.f32.mrf.mxu0  ;;  %v7638_v19 = vpop.permute.xlu1 %7637 }
 0x466   : > { %v5445_v32 = vsel %vm5291_vm11, %v4743_v41, -inf  ;;  %4781 = vmatmul.bf16.gmra.mxu1 %v4459_v21  ;;  %5110 = vmatmul.bf16.gmra.mxu2 %v4459_v21  ;;  %v7640_v5 = vunpack.i.h.bf16 %v7638_v19  ;;  %v7639_v17 = vunpack.i.l.bf16 %v7638_v19  ;;  %v4165_v14 = vadd.f32 %v10375_v1, %v4164_v57 }
 0x467   : > { %v5720_v35 = vmax.f32 %v5719_v8, %v5445_v32  ;;  %v2513_v8 = vmul.f32 %v7634_v56, %v8396_v23 }
 0x468   : > { %6108 = vmatmul.msk.bf16.gmra.mxu0 %vm3772_vm0, %v10024_v63  ;;  %v3283_v3 = vmul.f32 %v7640_v5, %v8390_v11  ;;  %v3282_v63 = vmul.f32 %v7639_v17, %v8390_v11  ;;  %v4370_v62 = vmax.f32 %v4165_v14, 0.0 }
 0x469   : > { %v5071_v7 = vpop.f32.mrf.mxu2  ;;  %v2641_v45 = vadd.f32 %v2513_v8, %v1872_v20 }
 0x46a   : > { %v5072_v51 = vadd.f32 %v5071_v7, %v9669_v52  ;;  %v3411_v40 = vadd.f32 %v3283_v3, %v2642_v43 }
 0x46b   : > { %v4744_v30 = vpop.f32.mrf.mxu1  ;;  %v3410_v21 = vadd.f32 %v3282_v63, %v2641_v45 }
 0x46c   : > { %v5446_v12 = vsel %vm5291_vm11, %v5072_v51, -inf  ;;  %v4745_v36 = vadd.f32 %v4744_v30, %v9638_v34 }
 0x46d   : > { %v5741_v16 = vmax.f32 %v5740_v13, %v5446_v12  ;;  %v4166_v59 = vpop.f32.mrf.mxu0  ;;  %v3542_v58 = vadd.f32 %v10475_v38, %v3410_v21  ;;  %v3543_v13 = vadd.f32 %v10475_v38, %v3411_v40  ;;  %v10627_v38 = vpop.f32.mrf.mxu3 }
 0x46e   : > { %v5447_v23 = vsel %vm11657_vm12, %v4745_v36, -inf  ;;  %v4167_v41 = vadd.f32 %v10375_v1, %v4166_v59  ;;  %vm11659_vm12 = vcmp.lt.s32.totalorder %v10076_v46, 300 }
 0x46f   : > { %v5721_v6 = vmax.f32 %v5720_v35, %v5447_v23  ;;  %v3670_v57 = vmax.f32 %v3542_v58, 0.0  ;;  %v3671_v39 = vmax.f32 %v3543_v13, 0.0 }
 0x470   : > { %v4371_v32 = vmax.f32 %v4167_v41, 0.0 }
 0x471   : > { %v5073_v28 = vpop.f32.mrf.mxu2  ;;  %v3735_v7 = vpack.c.bf16 %v3671_v39, %v3670_v57 }
 0x472   : > { %v5074_v11 = vadd.f32 %v5073_v28, %v9669_v52  ;;  %v4460_v20 = vpack.c.bf16 %v4371_v32, %v4370_v62 }
 0x473   : > { %v4747_v10 = vpop.f32.mrf.mxu1  ;;  %6125 = vmatmul.msk.bf16.gmra.mxu3 %vm3772_vm0, %v3735_v7 }
 0x474   : > { %v5448_v35 = vsel %vm11658_vm13, %v5074_v11, -inf  ;;  %v4748_v15 = vadd.f32 %v4747_v10, %v9638_v34  ;;  %vm11660_vm13 = vmmov %vm11659_vm12 }
 0x475   : > { %v5742_v56 = vmax.f32 %v5741_v16, %v5448_v35  ;;  %v4169_v31 = vpop.f32.mrf.mxu0 }
 0x476   : > { %v5449_v19 = vsel %vm11659_vm12, %v4748_v15, -inf  ;;  %4786 = vmatmul.bf16.gmra.mxu1 %v4460_v20  ;;  %5115 = vmatmul.bf16.gmra.mxu2 %v4460_v20  ;;  %v4170_v43 = vadd.f32 %v10375_v1, %v4169_v31  ;;  %vm11661_vm12 = vcmp.lt.s32.totalorder %v10098_v27, 300  ;;  %v10655_v20 = vld [vmem:[%s11298_s4] ss:$0 sm:$0xff] }
 0x477   : > { %v5722_v51 = vmax.f32 %v5721_v6, %v5449_v19 }
 0x478   : > { %6109 = vmatmul.msk.bf16.gmra.mxu0 %vm3772_vm0, %v10014_v49  ;;  %v4372_v23 = vmax.f32 %v4170_v43, 0.0 }
 0x479   : > { %v5076_v8 = vpop.f32.mrf.mxu2 }
 0x47a   : > { %v5077_v30 = vadd.f32 %v5076_v8, %v9669_v52 }
 0x47b   : > { %v4749_v5 = vpop.f32.mrf.mxu1 }
 0x47c   : > { %v5450_v17 = vsel %vm11660_vm13, %v5077_v30, -inf  ;;  %v4750_v12 = vadd.f32 %v4749_v5, %v9638_v34  ;;  %vm11662_vm13 = vmmov %vm11661_vm12 }
 0x47d   : > { %v5743_v36 = vmax.f32 %v5742_v56, %v5450_v17  ;;  %v4171_v3 = vpop.f32.mrf.mxu0 }
 0x47e   : > { %v5451_v45 = vsel %vm11661_vm12, %v4750_v12, -inf  ;;  %v4172_v63 = vadd.f32 %v10375_v1, %v4171_v3  ;;  %vm11663_vm12 = vcmp.lt.s32.totalorder %v10043_v4, 300 }
 0x47f   : > { %v5723_v16 = vmax.f32 %v5722_v51, %v5451_v45 }
 0x480   : > { %v4373_v6 = vmax.f32 %v4172_v63, 0.0 }
 0x481   : > { %v5078_v14 = vpop.f32.mrf.mxu2 }
 0x482   : > { %v5079_v49 = vadd.f32 %v5078_v14, %v9669_v52  ;;  %v4461_v21 = vpack.c.bf16 %v4373_v6, %v4372_v23 }
 0x483   : > { %v4752_v59 = vpop.f32.mrf.mxu1 }
 0x484   : > { %v5452_v40 = vsel %vm11662_vm13, %v5079_v49, -inf  ;;  %v4753_v41 = vadd.f32 %v4752_v59, %v9638_v34  ;;  %vm11664_vm13 = vmmov %vm11663_vm12 }
 0x485   : > { %v5744_v28 = vmax.f32 %v5743_v36, %v5452_v40  ;;  %v4174_v1 = vpop.f32.mrf.mxu0 }
 0x486   : > { %v5453_v58 = vsel %vm5295_vm15, %v4753_v41, -inf  ;;  %4791 = vmatmul.bf16.gmra.mxu1 %v4461_v21  ;;  %5120 = vmatmul.bf16.gmra.mxu2 %v4461_v21  ;;  %v4175_v35 = vadd.f32 %v10655_v20, %v4174_v1 }
 0x487   : > { %v5724_v13 = vmax.f32 %v5723_v16, %v5453_v58 }
 0x488   : > { %6110 = vmatmul.msk.bf16.gmra.mxu0 %vm3772_vm0, %v10120_v18  ;;  %v4374_v31 = vmax.f32 %v4175_v35, 0.0  ;;  %vm5943_vm0 = vcmask 1043459  }
 0x489   : > { %v5081_v62 = vpop.f32.mrf.mxu2 }
 0x48a   : > { %v5082_v32 = vadd.f32 %v5081_v62, %v9669_v52 }
 0x48b   : > { %v4754_v11 = vpop.f32.mrf.mxu1 }
 0x48c   : > { %v5454_v10 = vsel %vm5295_vm15, %v5082_v32, -inf  ;;  %v4755_v57 = vadd.f32 %v4754_v11, %v9638_v34 }
 0x48d   : > { %v5745_v39 = vmax.f32 %v5744_v28, %v5454_v10  ;;  %v4176_v7 = vpop.f32.mrf.mxu0 }
 0x48e   : > { %v5455_v15 = vsel %vm5296_vm14, %v4755_v57, -inf  ;;  %v4177_v18 = vadd.f32 %v10655_v20, %v4176_v7 }
 0x48f   : > { %v5725_v56 = vmax.f32 %v5724_v13, %v5455_v15 }
 0x490   : > { %v4375_v8 = vmax.f32 %v4177_v18, 0.0 }
 0x491   : > { %v5726_v19 = vrot.slane %v5725_v56, 4  ;;  %v5083_v51 = vpop.f32.mrf.mxu2 }
 0x492   : > { %v5084_v30 = vadd.f32 %v5083_v51, %v9669_v52  ;;  %v4462_v12 = vpack.c.bf16 %v4375_v8, %v4374_v31 }
 0x493   : > { %v5727_v5 = vmax.f32 %v5725_v56, %v5726_v19  ;;  %v4757_v17 = vpop.f32.mrf.mxu1 }
 0x494   : > { %v5456_v36 = vsel %vm5296_vm14, %v5084_v30, -inf  ;;  %v4758_v49 = vadd.f32 %v4757_v17, %v9638_v34 }
 0x495   : > { %v5728_v43 = vrot.slane %v5727_v5, 2  ;;  %v5746_v45 = vmax.f32 %v5745_v39, %v5456_v36  ;;  %v4179_v63 = vpop.f32.mrf.mxu0 }
 0x496   : > { %4796 = vmatmul.bf16.gmra.mxu1 %v4462_v12  ;;  %5125 = vmatmul.bf16.gmra.mxu2 %v4462_v12  ;;  %v5457_v1 = vsel %vm5281_vm1, %v4758_v49, -inf  ;;  %v4180_v62 = vadd.f32 %v10655_v20, %v4179_v63  ;;  %v10693_v63 = vpop.f32.mrf.mxu3 }
 0x497   : > { %v5729_v16 = vmax.f32 %v5727_v5, %v5728_v43  ;;  %v5747_v3 = vrot.slane %v5746_v45, 4 }
 0x498   : > { %v4376_v56 = vmax.f32 %v4180_v62, 0.0 }
 0x499   : > { %v5730_v14 = vrot.slane %v5729_v16, 1  ;;  %v5748_v23 = vmax.f32 %v5746_v45, %v5747_v3  ;;  %v5086_v6 = vpop.f32.mrf.mxu2 }
 0x49a   : > { %v5087_v59 = vadd.f32 %v5086_v6, %v9669_v52 }
 0x49b   : > { %v5731_v21 = vmax.f32 %v5729_v16, %v5730_v14  ;;  %v5749_v40 = vrot.slane %v5748_v23, 2  ;;  %v4759_v41 = vpop.f32.mrf.mxu1 }
 0x49c   : > { %v4760_v28 = vadd.f32 %v4759_v41, %v9638_v34  ;;  %v5458_v51 = vsel %vm5281_vm1, %v5087_v59, -inf }
 0x49d   : > { %v10669_v58 = vsel %vm5943_vm0, %v5731_v21, %v10465_v22  ;;  %v5750_v13 = vmax.f32 %v5748_v23, %v5749_v40  ;;  %v4181_v57 = vpop.f32.mrf.mxu0 }
 0x49e   : > { %v5459_v32 = vsel %vm5282_vm2, %v4760_v28, -inf  ;;  %v4182_v39 = vadd.f32 %v10655_v20, %v4181_v57 }
 0x49f   : > { %v5751_v11 = vrot.slane %v5750_v13, 1  ;;  %v5753_v10 = vmax.f32 %v5457_v1, %v5459_v32 }
 0x4a0   : > { %v4377_v7 = vmax.f32 %v4182_v39, 0.0  ;;  %v10705_v39 = vpop.f32.mrf.mxu3 }
 0x4a1   : > { %v5752_v35 = vmax.f32 %v5750_v13, %v5751_v11  ;;  %v5088_v15 = vpop.f32.mrf.mxu2 }
 0x4a2   : > { %v5089_v22 = vadd.f32 %v5088_v15, %v9669_v52  ;;  %v4463_v31 = vpack.c.bf16 %v4377_v7, %v4376_v56 }
 0x4a3   : > { %v10680_v18 = vsel %vm5943_vm0, %v5752_v35, %v10483_v24  ;;  %v4762_v19 = vpop.f32.mrf.mxu1  ;;  %vm11665_vm0 = vcmp.lt.s32.totalorder %v10076_v46, 300 }
 0x4a4   : > { %v5460_v8 = vsel %vm5282_vm2, %v5089_v22, -inf  ;;  %v4763_v30 = vadd.f32 %v4762_v19, %v9638_v34 }
 0x4a5   : > { %v5774_v5 = vmax.f32 %v5458_v51, %v5460_v8  ;;  %v4184_v36 = vpop.f32.mrf.mxu0 }
 0x4a6   : > { %v5461_v17 = vsel %vm5283_vm3, %v4763_v30, -inf  ;;  %4801 = vmatmul.bf16.gmra.mxu1 %v4463_v31  ;;  %5130 = vmatmul.bf16.gmra.mxu2 %v4463_v31  ;;  %v4185_v23 = vadd.f32 %v10655_v20, %v4184_v36 }
 0x4a7   : > { %v5754_v12 = vmax.f32 %v5753_v10, %v5461_v17 }
 0x4a8   : > { %v4378_v41 = vmax.f32 %v4185_v23, 0.0  ;;  %v10715_v36 = vpop.f32.mrf.mxu3 }
 0x4a9   : > { %v5091_v24 = vpop.f32.mrf.mxu2 }
 0x4aa   : > { %v5092_v43 = vadd.f32 %v5091_v24, %v9669_v52 }
 0x4ab   : > { %v4764_v45 = vpop.f32.mrf.mxu1 }
 0x4ac   : > { %v5462_v16 = vsel %vm5283_vm3, %v5092_v43, -inf  ;;  %v4765_v3 = vadd.f32 %v4764_v45, %v9638_v34 }
 0x4ad   : > { %v5775_v14 = vmax.f32 %v5774_v5, %v5462_v16  ;;  %v4186_v59 = vpop.f32.mrf.mxu0 }
 0x4ae   : > { %v5463_v6 = vsel %vm5284_vm4, %v4765_v3, -inf  ;;  %v4187_v21 = vadd.f32 %v10655_v20, %v4186_v59 }
 0x4af   : > { %v5755_v49 = vmax.f32 %v5754_v12, %v5463_v6 }
 0x4b0   : > { %v4379_v28 = vmax.f32 %v4187_v21, 0.0 }
 0x4b1   : > { %v5093_v40 = vpop.f32.mrf.mxu2 }
 0x4b2   : > { %v5094_v13 = vadd.f32 %v5093_v40, %v9669_v52  ;;  %v4464_v62 = vpack.c.bf16 %v4379_v28, %v4378_v41 }
 0x4b3   : > { %v4767_v1 = vpop.f32.mrf.mxu1 }
 0x4b4   : > { %v5464_v32 = vsel %vm5284_vm4, %v5094_v13, -inf  ;;  %v4768_v11 = vadd.f32 %v4767_v1, %v9638_v34  ;;  %v10724_v13 = vpop.f32.mrf.mxu3 }
 0x4b5   : > { %v5776_v10 = vmax.f32 %v5775_v14, %v5464_v32  ;;  %v4189_v15 = vpop.f32.mrf.mxu0 }
 0x4b6   : > { %v5465_v57 = vsel %vm5285_vm5, %v4768_v11, -inf  ;;  %4806 = vmatmul.bf16.gmra.mxu1 %v4464_v62  ;;  %5135 = vmatmul.bf16.gmra.mxu2 %v4464_v62  ;;  %v4190_v8 = vadd.f32 %v10655_v20, %v4189_v15 }
 0x4b7   : > { %v5756_v35 = vmax.f32 %v5755_v49, %v5465_v57 }
 0x4b8   : > { %v4380_v43 = vmax.f32 %v4190_v8, 0.0 }
 0x4b9   : > { %v5096_v56 = vpop.f32.mrf.mxu2 }
 0x4ba   : > { %v5097_v7 = vadd.f32 %v5096_v56, %v9669_v52 }
 0x4bb   : > { %v4769_v22 = vpop.f32.mrf.mxu1 }
 0x4bc   : > { %v5466_v19 = vsel %vm5285_vm5, %v5097_v7, -inf  ;;  %v4770_v51 = vadd.f32 %v4769_v22, %v9638_v34 }
 0x4bd   : > { %v5777_v31 = vmax.f32 %v5776_v10, %v5466_v19  ;;  %v4191_v17 = vpop.f32.mrf.mxu0 }
 0x4be   : > { %v5467_v30 = vsel %vm5286_vm6, %v4770_v51, -inf  ;;  %v4192_v12 = vadd.f32 %v10655_v20, %v4191_v17  ;;  %v10737_v17 = vpop.f32.mrf.mxu3 }
 0x4bf   : > { %v5757_v5 = vmax.f32 %v5756_v35, %v5467_v30 }
 0x4c0   : > { %v4381_v45 = vmax.f32 %v4192_v12, 0.0 }
 0x4c1   : > { %v5098_v24 = vpop.f32.mrf.mxu2 }
 0x4c2   : > { %v5099_v16 = vadd.f32 %v5098_v24, %v9669_v52  ;;  %v4465_v14 = vpack.c.bf16 %v4381_v45, %v4380_v43 }
 0x4c3   : > { %v4772_v3 = vpop.f32.mrf.mxu1 }
 0x4c4   : > { %v5468_v23 = vsel %vm5286_vm6, %v5099_v16, -inf  ;;  %v4773_v6 = vadd.f32 %v4772_v3, %v9638_v34 }
 0x4c5   : > { %v5778_v49 = vmax.f32 %v5777_v31, %v5468_v23  ;;  %v4194_v40 = vpop.f32.mrf.mxu0 }
 0x4c6   : > { %v5469_v59 = vsel %vm5287_vm7, %v4773_v6, -inf  ;;  %4811 = vmatmul.bf16.gmra.mxu1 %v4465_v14  ;;  %5140 = vmatmul.bf16.gmra.mxu2 %v4465_v14  ;;  %v4195_v10 = vadd.f32 %v10655_v20, %v4194_v40  ;;  %v10748_v40 = vpop.f32.mrf.mxu3 }
 0x4c7   : > { %v5758_v21 = vmax.f32 %v5757_v5, %v5469_v59 }
 0x4c8   : > { %v4382_v22 = vmax.f32 %v4195_v10, 0.0 }
 0x4c9   : > { %v5101_v41 = vpop.f32.mrf.mxu2 }
 0x4ca   : > { %v5102_v28 = vadd.f32 %v5101_v41, %v9669_v52 }
 0x4cb   : > { %v4774_v1 = vpop.f32.mrf.mxu1 }
 0x4cc   : > { %v5470_v62 = vsel %vm5287_vm7, %v5102_v28, -inf  ;;  %v4775_v32 = vadd.f32 %v4774_v1, %v9638_v34 }
 0x4cd   : > { %v5779_v11 = vmax.f32 %v5778_v49, %v5470_v62  ;;  %v4196_v15 = vpop.f32.mrf.mxu0 }
 0x4ce   : > { %v5471_v57 = vsel %vm5288_vm8, %v4775_v32, -inf  ;;  %v4197_v56 = vadd.f32 %v10655_v20, %v4196_v15 }
 0x4cf   : > { %v5759_v35 = vmax.f32 %v5758_v21, %v5471_v57 }
 0x4d0   : > { %v4383_v19 = vmax.f32 %v4197_v56, 0.0 }
 0x4d1   : > { %v5103_v7 = vpop.f32.mrf.mxu2 }
 0x4d2   : > { %v5104_v51 = vadd.f32 %v5103_v7, %v9669_v52  ;;  %v4466_v8 = vpack.c.bf16 %v4383_v19, %v4382_v22 }
 0x4d3   : > { %v4777_v31 = vpop.f32.mrf.mxu1 }
 0x4d4   : > { %v5472_v30 = vsel %vm5288_vm8, %v5104_v51, -inf  ;;  %v4778_v5 = vadd.f32 %v4777_v31, %v9638_v34  ;;  %v10757_v31 = vpop.f32.mrf.mxu3 }
 0x4d5   : > { %v5780_v12 = vmax.f32 %v5779_v11, %v5472_v30  ;;  %v4199_v45 = vpop.f32.mrf.mxu0 }
 0x4d6   : > { %v5473_v24 = vsel %vm5289_vm9, %v4778_v5, -inf  ;;  %4816 = vmatmul.bf16.gmra.mxu1 %v4466_v8  ;;  %5145 = vmatmul.bf16.gmra.mxu2 %v4466_v8  ;;  %v4200_v59 = vadd.f32 %v10655_v20, %v4199_v45 }
 0x4d7   : > { %v5760_v43 = vmax.f32 %v5759_v35, %v5473_v24 }
 0x4d8   : > { %v4384_v32 = vmax.f32 %v4200_v59, 0.0 }
 0x4d9   : > { %v5106_v16 = vpop.f32.mrf.mxu2 }
 0x4da   : > { %v5107_v3 = vadd.f32 %v5106_v16, %v9669_v52 }
 0x4db   : > { %v4779_v14 = vpop.f32.mrf.mxu1 }
 0x4dc   : > { %v5474_v23 = vsel %vm5289_vm9, %v5107_v3, -inf  ;;  %v4780_v6 = vadd.f32 %v4779_v14, %v9638_v34 }
 0x4dd   : > { %v5781_v49 = vmax.f32 %v5780_v12, %v5474_v23  ;;  %v4201_v28 = vpop.f32.mrf.mxu0 }
 0x4de   : > { %v5475_v21 = vsel %vm5290_vm10, %v4780_v6, -inf  ;;  %v4202_v1 = vadd.f32 %v10655_v20, %v4201_v28 }
 0x4df   : > { %v5761_v41 = vmax.f32 %v5760_v43, %v5475_v21 }
 0x4e0   : > { %v4385_v11 = vmax.f32 %v4202_v1, 0.0 }
 0x4e1   : > { %v5108_v62 = vpop.f32.mrf.mxu2 }
 0x4e2   : > { %v5109_v10 = vadd.f32 %v5108_v62, %v9669_v52  ;;  %v4467_v35 = vpack.c.bf16 %v4385_v11, %v4384_v32 }
 0x4e3   : > { %v4782_v57 = vpop.f32.mrf.mxu1 }
 0x4e4   : > { %v5476_v15 = vsel %vm5290_vm10, %v5109_v10, -inf  ;;  %v4783_v56 = vadd.f32 %v4782_v57, %v9638_v34 }
 0x4e5   : > { %v5782_v7 = vmax.f32 %v5781_v49, %v5476_v15  ;;  %v4204_v51 = vpop.f32.mrf.mxu0 }
 0x4e6   : > { %v5477_v22 = vsel %vm5291_vm11, %v4783_v56, -inf  ;;  %4821 = vmatmul.bf16.gmra.mxu1 %v4467_v35  ;;  %5150 = vmatmul.bf16.gmra.mxu2 %v4467_v35  ;;  %v4205_v45 = vadd.f32 %v10655_v20, %v4204_v51 }
 0x4e7   : > { %v5762_v19 = vmax.f32 %v5761_v41, %v5477_v22  ;;  %v10768_v41 = vpop.f32.mrf.mxu3 }
 0x4e8   : > { %v4386_v49 = vmax.f32 %v4205_v45, 0.0 }
 0x4e9   : > { %v5111_v8 = vpop.f32.mrf.mxu2 }
 0x4ea   : > { %v5112_v30 = vadd.f32 %v5111_v8, %v9669_v52 }
 0x4eb   : > { %v4784_v5 = vpop.f32.mrf.mxu1 }
 0x4ec   : > { %v5478_v12 = vsel %vm5291_vm11, %v5112_v30, -inf  ;;  %v4785_v24 = vadd.f32 %v4784_v5, %v9638_v34 }
 0x4ed   : > { %v5783_v43 = vmax.f32 %v5782_v7, %v5478_v12  ;;  %v4206_v14 = vpop.f32.mrf.mxu0 }
 0x4ee   : > { %v5479_v16 = vsel %vm11663_vm12, %v4785_v24, -inf  ;;  %v4207_v23 = vadd.f32 %v10655_v20, %v4206_v14  ;;  %vm11666_vm12 = vmmov %vm11665_vm0 }
 0x4ef   : > { %v5763_v3 = vmax.f32 %v5762_v19, %v5479_v16  ;;  %v10779_v51 = vpop.f32.mrf.mxu3 }
 0x4f0   : > { %v4387_v59 = vmax.f32 %v4207_v23, 0.0 }
 0x4f1   : > { %v5113_v6 = vpop.f32.mrf.mxu2 }
 0x4f2   : > { %v5114_v21 = vadd.f32 %v5113_v6, %v9669_v52  ;;  %v4468_v1 = vpack.c.bf16 %v4387_v59, %v4386_v49 }
 0x4f3   : > { %v4787_v28 = vpop.f32.mrf.mxu1 }
 0x4f4   : > { %v5480_v62 = vsel %vm11664_vm13, %v5114_v21, -inf  ;;  %v4788_v32 = vadd.f32 %v4787_v28, %v9638_v34  ;;  %vm11667_vm13 = vcmp.lt.s32.totalorder %v10098_v27, 300 }
 0x4f5   : > { %v5784_v11 = vmax.f32 %v5783_v43, %v5480_v62  ;;  %v4209_v35 = vpop.f32.mrf.mxu0 }
 0x4f6   : > { %v5481_v10 = vsel %vm11665_vm0, %v4788_v32, -inf  ;;  %4826 = vmatmul.bf16.gmra.mxu1 %v4468_v1  ;;  %5155 = vmatmul.bf16.gmra.mxu2 %v4468_v1  ;;  %v4210_v30 = vadd.f32 %v10655_v20, %v4209_v35  ;;  %vm11668_vm0 = vmmov %vm11667_vm13 }
 0x4f7   : > { %v5764_v57 = vmax.f32 %v5763_v3, %v5481_v10  ;;  %v10791_v1 = vpop.f32.mrf.mxu3 }
 0x4f8   : > { %v4388_v16 = vmax.f32 %v4210_v30, 0.0 }
 0x4f9   : > { %v5116_v15 = vpop.f32.mrf.mxu2 }
 0x4fa   : > { %v5117_v56 = vadd.f32 %v5116_v15, %v9669_v52 }
 0x4fb   : > { %v4789_v7 = vpop.f32.mrf.mxu1 }
 0x4fc   : > { %v5482_v22 = vsel %vm11666_vm12, %v5117_v56, -inf  ;;  %v4790_v19 = vadd.f32 %v4789_v7, %v9638_v34  ;;  %vm5945_vm12 = vcmask 1044484  }
 0x4fd   : > { %v5785_v8 = vmax.f32 %v5784_v11, %v5482_v22  ;;  %v4211_v24 = vpop.f32.mrf.mxu0 }
 0x4fe   : > { %v5483_v5 = vsel %vm11667_vm13, %v4790_v19, -inf  ;;  %v4212_v43 = vadd.f32 %v10655_v20, %v4211_v24  ;;  %vm11671_vm13 = vcmp.lt.s32.totalorder %v10043_v4, 300 }
 0x4ff   : > { %v5765_v12 = vmax.f32 %v5764_v57, %v5483_v5  ;;  %v10801_v5 = vpop.f32.mrf.mxu3 }
 0x500   : > { %v4389_v3 = vmax.f32 %v4212_v43, 0.0 }
 0x501   : > { %v5118_v45 = vpop.f32.mrf.mxu2 }
 0x502   : > { %v5119_v14 = vadd.f32 %v5118_v45, %v9669_v52  ;;  %v4469_v6 = vpack.c.bf16 %v4389_v3, %v4388_v16 }
 0x503   : > { %v4792_v23 = vpop.f32.mrf.mxu1 }
 0x504   : > { %v5484_v49 = vsel %vm11668_vm0, %v5119_v14, -inf  ;;  %v4793_v59 = vadd.f32 %v4792_v23, %v9638_v34  ;;  %vm11673_vm0 = vcmp.lt.s32.totalorder %v10076_v46, 300 }
 0x505   : > { %v5786_v21 = vmax.f32 %v5785_v8, %v5484_v49  ;;  %v4214_v32 = vpop.f32.mrf.mxu0 }
 0x506   : > { %v5485_v28 = vsel %vm5295_vm15, %v4793_v59, -inf  ;;  %4831 = vmatmul.bf16.gmra.mxu1 %v4469_v6  ;;  %5160 = vmatmul.bf16.gmra.mxu2 %v4469_v6  ;;  %v4215_v7 = vadd.f32 %v10655_v20, %v4214_v32 }
 0x507   : > { %v5766_v62 = vmax.f32 %v5765_v12, %v5485_v28 }
 0x508   : > { %v4390_v43 = vmax.f32 %v4215_v7, 0.0 }
 0x509   : > { %v5121_v11 = vpop.f32.mrf.mxu2 }
 0x50a   : > { %v5122_v10 = vadd.f32 %v5121_v11, %v9669_v52 }
 0x50b   : > { %v4794_v57 = vpop.f32.mrf.mxu1 }
 0x50c   : > { %v5486_v35 = vsel %vm5295_vm15, %v5122_v10, -inf  ;;  %v4795_v15 = vadd.f32 %v4794_v57, %v9638_v34 }
 0x50d   : > { %v5787_v56 = vmax.f32 %v5786_v21, %v5486_v35  ;;  %v4216_v8 = vpop.f32.mrf.mxu0  ;;  %v10811_v35 = vpop.f32.mrf.mxu3 }
 0x50e   : > { %v5487_v22 = vsel %vm5296_vm14, %v4795_v15, -inf  ;;  %v4217_v30 = vadd.f32 %v10655_v20, %v4216_v8 }
 0x50f   : > { %v5767_v19 = vmax.f32 %v5766_v62, %v5487_v22 }
 0x510   : > { %v4391_v45 = vmax.f32 %v4217_v30, 0.0 }
 0x511   : > { %v5768_v12 = vrot.slane %v5767_v19, 4  ;;  %v5123_v24 = vpop.f32.mrf.mxu2 }
 0x512   : > { %v5124_v16 = vadd.f32 %v5123_v24, %v9669_v52  ;;  %v10804_v23 = vpack.c.bf16 %v4391_v45, %v4390_v43 }
 0x513   : > { %v5769_v3 = vmax.f32 %v5767_v19, %v5768_v12  ;;  %v4797_v14 = vpop.f32.mrf.mxu1  ;;  %v4220_v12 = vadd.f32 %v10655_v20, %v10537_v54 }
 0x514   : > { %v5488_v6 = vsel %vm5296_vm14, %v5124_v16, -inf  ;;  %4836 = vmatmul.bf16.vlgmr.msrb.gmra.mxu3 %v10804_v23  ;;  %v4798_v10 = vadd.f32 %v4797_v14, %v9638_v34 }
 0x515   : > { %v5770_v49 = vrot.slane %v5769_v3, 2  ;;  %v5788_v59 = vmax.f32 %v5787_v56, %v5488_v6  ;;  %v4222_v56 = vadd.f32 %v10655_v20, %v10557_v47  ;;  %v4392_v6 = vmax.f32 %v4220_v12, 0.0 }
 0x516   : > { %v5489_v24 = vsel %vm5281_vm1, %v4798_v10, -inf }
 0x517   : > { %v5771_v21 = vmax.f32 %v5769_v3, %v5770_v49  ;;  %v5789_v28 = vrot.slane %v5788_v59, 4  ;;  %v4393_v3 = vmax.f32 %v4222_v56, 0.0 }
 0x519   : > { %v5772_v62 = vrot.slane %v5771_v21, 1  ;;  %v5790_v32 = vmax.f32 %v5788_v59, %v5789_v28  ;;  %v5126_v11 = vpop.f32.mrf.mxu2 }
 0x51a   : > { %v5127_v57 = vadd.f32 %v5126_v11, %v9669_v52 }
 0x51b   : > { %v5773_v15 = vmax.f32 %v5771_v21, %v5772_v62  ;;  %v5791_v7 = vrot.slane %v5790_v32, 2  ;;  %v4799_v22 = vpop.f32.mrf.mxu1 }
 0x51c   : > { %v4800_v19 = vadd.f32 %v4799_v22, %v9638_v34  ;;  %v5490_v21 = vsel %vm5281_vm1, %v5127_v57, -inf  ;;  %v4227_v57 = vadd.f32 %v10655_v20, %v10592_v50 }
 0x51d   : > { %v10818_v8 = vsel %vm5945_vm12, %v5773_v15, %v10669_v58  ;;  %v5792_v30 = vmax.f32 %v5790_v32, %v5791_v7  ;;  %v10827_v58 = vpop.f32.mrf.mxu3  ;;  %v10838_v32 = vpack.c.bf16 %v4393_v3, %v4392_v6 }
 0x51e   : > { %v5491_v43 = vsel %vm5282_vm2, %v4800_v19, -inf }
 0x51f   : > { %v5793_v45 = vrot.slane %v5792_v30, 1  ;;  %v5795_v16 = vmax.f32 %v5489_v24, %v5491_v43  ;;  %v4225_v24 = vadd.f32 %v10655_v20, %v10572_v55 }
 0x521   : > { %v5794_v47 = vmax.f32 %v5792_v30, %v5793_v45  ;;  %v5128_v14 = vpop.f32.mrf.mxu2 }
 0x522   : > { %v5129_v49 = vadd.f32 %v5128_v14, %v9669_v52 }
 0x523   : > { %v10831_v59 = vsel %vm5945_vm12, %v5794_v47, %v10680_v18  ;;  %v4802_v54 = vpop.f32.mrf.mxu1  ;;  %v4394_v47 = vmax.f32 %v4225_v24, 0.0  ;;  %vm11674_vm12 = vmmov %vm11671_vm13 }
 0x524   : > { %v5492_v28 = vsel %vm5282_vm2, %v5129_v49, -inf  ;;  %v4803_v62 = vadd.f32 %v4802_v54, %v9638_v34  ;;  %4841 = vmatmul.bf16.gmra.mxu3 %v10838_v32 }
 0x525   : > { %v5816_v11 = vmax.f32 %v5490_v21, %v5492_v28  ;;  %v10849_v30 = vpop.f32.mrf.mxu3 }
 0x526   : > { %v5493_v10 = vsel %vm5283_vm3, %v4803_v62, -inf }
 0x527   : > { %v5796_v15 = vmax.f32 %v5795_v16, %v5493_v10  ;;  %v4395_v16 = vmax.f32 %v4227_v57, 0.0  ;;  %v4230_v57 = vadd.f32 %v10655_v20, %v10611_v44 }
 0x529   : > { %v5131_v18 = vpop.f32.mrf.mxu2  ;;  %v10859_v54 = vpack.c.bf16 %v4395_v16, %v4394_v47  ;;  %v4396_v24 = vmax.f32 %v4230_v57, 0.0 }
 0x52a   : > { %v5132_v7 = vadd.f32 %v5131_v18, %v9669_v52  ;;  %v4232_v18 = vadd.f32 %v10655_v20, %v10627_v38 }
 0x52b   : > { %v4804_v22 = vpop.f32.mrf.mxu1 }
 0x52c   : > { %v5494_v56 = vsel %vm5283_vm3, %v5132_v7, -inf  ;;  %v4805_v19 = vadd.f32 %v4804_v22, %v9638_v34 }
 0x52d   : > { %v5817_v12 = vmax.f32 %v5816_v11, %v5494_v56  ;;  %v10864_v28 = vpop.f32.mrf.mxu3  ;;  %v4397_v56 = vmax.f32 %v4232_v18, 0.0 }
 0x52e   : > { %v5495_v43 = vsel %vm5284_vm4, %v4805_v19, -inf }
 0x52f   : > { %v5797_v45 = vmax.f32 %v5796_v15, %v5495_v43 }
 0x531   : > { %v5133_v3 = vpop.f32.mrf.mxu2 }
 0x532   : > { %v5134_v50 = vadd.f32 %v5133_v3, %v9669_v52  ;;  %v10882_v3 = vpack.c.bf16 %v4397_v56, %v4396_v24 }
 0x533   : > { %v4807_v14 = vpop.f32.mrf.mxu1 }
 0x534   : > { %v5496_v6 = vsel %vm5284_vm4, %v5134_v50, -inf  ;;  %v4808_v49 = vadd.f32 %v4807_v14, %v9638_v34  ;;  %4846 = vmatmul.bf16.gmra.mxu3 %v10859_v54 }
 0x535   : > { %v5818_v21 = vmax.f32 %v5817_v12, %v5496_v6  ;;  %v10877_v19 = vpop.f32.mrf.mxu3  ;;  %v4237_v6 = vadd.f32 %v10655_v20, %v10705_v39 }
 0x536   : > { %v5497_v55 = vsel %vm5285_vm5, %v4808_v49, -inf }
 0x537   : > { %v10866_v62 = vmax.f32 %v5797_v45, %v5497_v55  ;;  %v4235_v55 = vadd.f32 %v10655_v20, %v10693_v63 }
 0x539   : > { %v5136_v11 = vpop.f32.mrf.mxu2  ;;  %v4398_v18 = vmax.f32 %v4235_v55, 0.0 }
 0x53a   : > { %v5137_v10 = vadd.f32 %v5136_v11, %v9669_v52  ;;  %v4399_v11 = vmax.f32 %v4237_v6, 0.0 }
 0x53b   : > { %v10869_v15 = vpop.f32.mrf.mxu1 }
 0x53c   : > { %v5498_v7 = vsel %vm5285_vm5, %v5137_v10, -inf  ;;  %v10897_v56 = vpack.c.bf16 %v4399_v11, %v4398_v18 }
 0x53d   : > { %v5819_v22 = vmax.f32 %v5818_v21, %v5498_v7  ;;  %v10886_v44 = vpop.f32.mrf.mxu3 }
 0x53e   : > { %11669 = vst [vmem:[#allocation71_spill] sm:$0xff] %v10897_v56 }
 0x541   : > { %v5138_v12 = vpop.f32.mrf.mxu2 }
 0x542   : > { %v5139_v43 = vadd.f32 %v5138_v12, %v9669_v52 }
 0x543   : > { %v4812_v45 = vpop.f32.mrf.mxu1 }
 0x544   : > { %v5500_v16 = vsel %vm5286_vm6, %v5139_v43, -inf  ;;  %4851 = vmatmul.bf16.gmra.mxu3 %v10882_v3 }
 0x545   : > { %v5820_v38 = vmax.f32 %v5819_v22, %v5500_v16  ;;  %v10899_v12 = vpop.f32.mrf.mxu3  ;;  %v4242_v16 = vadd.f32 %v10655_v20, %v10724_v13 }
 0x549   : > { %v5141_v47 = vpop.f32.mrf.mxu2 }
 0x54a   : > { %v5142_v50 = vadd.f32 %v5141_v47, %v9669_v52 }
 0x54b   : > { %v4814_v14 = vpop.f32.mrf.mxu1 }
 0x54c   : > { %v5502_v49 = vsel %vm5287_vm7, %v5142_v50, -inf  ;;  %v4240_v50 = vadd.f32 %v10655_v20, %v10715_v36 }
 0x54d   : > { %v5821_v21 = vmax.f32 %v5820_v38, %v5502_v49  ;;  %v10909_v6 = vpop.f32.mrf.mxu3  ;;  %v4401_v49 = vmax.f32 %v4242_v16, 0.0 }
 0x54e   : > { %v4400_v55 = vmax.f32 %v4240_v50, 0.0  ;;  %v4245_v50 = vadd.f32 %v10655_v20, %v10737_v17 }
 0x551   : > { %v5143_v10 = vpop.f32.mrf.mxu2 }
 0x552   : > { %v5144_v7 = vadd.f32 %v5143_v10, %v9669_v52 }
 0x553   : > { %v4817_v22 = vpop.f32.mrf.mxu1 }
 0x554   : > { %v5504_v57 = vsel %vm5288_vm8, %v5144_v7, -inf  ;;  %4856 = vmatmul.bf16.gmra.mxu3 %v10897_v56  ;;  %v10914_v7 = vpack.c.bf16 %v4401_v49, %v4400_v55 }
 0x555   : > { %v5822_v39 = vmax.f32 %v5821_v21, %v5504_v57  ;;  %v10917_v57 = vpop.f32.mrf.mxu3 }
 0x556   : > { %11670 = vst [vmem:[#allocation72_spill] sm:$0xff] %v10914_v7 }
 0x559   : > { %v5146_v24 = vpop.f32.mrf.mxu2 }
 0x55a   : > { %v5147_v43 = vadd.f32 %v5146_v24, %v9669_v52 }
 0x55b   : > { %v4819_v63 = vpop.f32.mrf.mxu1 }
 0x55c   : > { %v5506_v38 = vsel %vm5289_vm9, %v5147_v43, -inf  ;;  %v4247_v43 = vadd.f32 %v10655_v20, %v10748_v40 }
 0x55d   : > { %v5823_v47 = vmax.f32 %v5822_v39, %v5506_v38 }
 0x55e   : > { %v4403_v49 = vmax.f32 %v4247_v43, 0.0  ;;  %v4815_v43 = vadd.f32 %v4814_v14, %v9638_v34 }
 0x561   : > { %v5148_v21 = vpop.f32.mrf.mxu2 }
 0x562   : > { %v5149_v11 = vadd.f32 %v5148_v21, %v9669_v52  ;;  %v4402_v21 = vmax.f32 %v4245_v50, 0.0 }
 0x563   : > { %v4822_v10 = vpop.f32.mrf.mxu1 }
 0x564   : > { %v5508_v18 = vsel %vm5290_vm10, %v5149_v11, -inf  ;;  %4861 = vmatmul.bf16.gmra.mxu3 %v10914_v7  ;;  %v10927_v11 = vpop.f32.mrf.mxu3  ;;  %v10933_v7 = vpack.c.bf16 %v4403_v49, %v4402_v21  ;;  %v5503_v21 = vsel %vm5288_vm8, %v4815_v43, -inf }
 0x565   : > { %v5824_v13 = vmax.f32 %v5823_v47, %v5508_v18 }
 0x566   : > { %11672 = vst [vmem:[#allocation26_spill] sm:$0xff] %v10933_v7 }
 0x569   : > { %v5151_v39 = vpop.f32.mrf.mxu2 }
 0x56a   : > { %v5152_v36 = vadd.f32 %v5151_v39, %v9669_v52  ;;  %v4810_v39 = vadd.f32 %v10869_v15, %v9638_v34  ;;  %v4818_v15 = vadd.f32 %v4817_v22, %v9638_v34 }
 0x56b   : > { %v4824_v24 = vpop.f32.mrf.mxu1 }
 0x56c   : > { %v5510_v16 = vsel %vm5291_vm11, %v5152_v36, -inf  ;;  %v4813_v36 = vadd.f32 %v4812_v45, %v9638_v34  ;;  %v5499_v17 = vsel %vm5286_vm6, %v4810_v39, -inf  ;;  %v4252_v45 = vadd.f32 %v10655_v20, %v10768_v41  ;;  %v10952_v39 = vpop.f32.mrf.mxu3 }
 0x56d   : > { %v5825_v38 = vmax.f32 %v5824_v13, %v5510_v16  ;;  %v5799_v49 = vmax.f32 %v10866_v62, %v5499_v17  ;;  %v5505_v62 = vsel %vm5289_vm9, %v4818_v15, -inf  ;;  %v4823_v41 = vadd.f32 %v4822_v10, %v9638_v34 }
 0x56e   : > { %v5501_v50 = vsel %vm5287_vm7, %v4813_v36, -inf  ;;  %v4250_v36 = vadd.f32 %v10655_v20, %v10757_v31  ;;  %v4825_v43 = vadd.f32 %v4824_v24, %v9638_v34 }
 0x570   : > { %v4404_v56 = vmax.f32 %v4250_v36, 0.0  ;;  %v5511_v10 = vsel %vm11674_vm12, %v4825_v43, -inf }
 0x571   : > { %v5153_v47 = vpop.f32.mrf.mxu2 }
 0x572   : > { %v5154_v55 = vadd.f32 %v5153_v47, %v9669_v52 }
 0x573   : > { %v4827_v18 = vpop.f32.mrf.mxu1 }
 0x574   : > { %v5512_v40 = vsel %vm11671_vm13, %v5154_v55, -inf  ;;  %4866 = vmatmul.bf16.gmra.mxu3 %v10933_v7  ;;  %v4820_v55 = vadd.f32 %v4819_v63, %v9638_v34  ;;  %v4828_v31 = vadd.f32 %v4827_v18, %v9638_v34  ;;  %vm11675_vm13 = vcmp.lt.s32.totalorder %v10098_v27, 300 }
 0x575   : > { %v5826_v13 = vmax.f32 %v5825_v38, %v5512_v40  ;;  %v5800_v40 = vmax.f32 %v5799_v49, %v5501_v50  ;;  %vm11676_vm12 = vmmov %vm11675_vm13 }
 0x576   : > { %v5507_v63 = vsel %vm5290_vm10, %v4820_v55, -inf }
 0x577   : > { %v5801_v17 = vmax.f32 %v5800_v40, %v5503_v21  ;;  %v5513_v40 = vsel %vm11673_vm0, %v4828_v31, -inf }
 0x579   : > { %v5156_v16 = vpop.f32.mrf.mxu2 }
 0x57a   : > { %v5157_v47 = vadd.f32 %v5156_v16, %v9669_v52  ;;  %v4405_v16 = vmax.f32 %v4252_v45, 0.0 }
 0x57b   : > { %v4829_v38 = vpop.f32.mrf.mxu1 }
 0x57c   : > { %v5514_v14 = vsel %vm11673_vm0, %v5157_v47, -inf  ;;  %v5802_v47 = vmax.f32 %v5801_v17, %v5505_v62  ;;  %v4830_v45 = vadd.f32 %v4829_v38, %v9638_v34  ;;  %v10971_v21 = vpack.c.bf16 %v4405_v16, %v4404_v56 }
 0x57d   : > { %v5827_v22 = vmax.f32 %v5826_v13, %v5514_v14  ;;  %v5509_v13 = vsel %vm5291_vm11, %v4823_v41, -inf  ;;  %vm11677_vm0 = vcmp.lt.s32.totalorder %v10043_v4, 300 }
 0x57e   : > { %v5803_v15 = vmax.f32 %v5802_v47, %v5507_v63  ;;  %v5515_v38 = vsel %vm11676_vm12, %v4830_v45, -inf  ;;  %v4257_v63 = vadd.f32 %v10655_v20, %v10791_v1  ;;  %vm11678_vm12 = vcmp.lt.s32.totalorder %v10076_v46, 300 }
 0x580   : > { %v5804_v55 = vmax.f32 %v5803_v15, %v5509_v13 }
 0x581   : > { %v5158_v7 = vpop.f32.mrf.mxu2 }
 0x582   : > { %v5159_v50 = vadd.f32 %v5158_v7, %v9669_v52  ;;  %v10977_v7 = vpop.f32.mrf.mxu3  ;;  %v5805_v36 = vmax.f32 %v5804_v55, %v5511_v10  ;;  %v4407_v10 = vmax.f32 %v4257_v63, 0.0 }
 0x583   : > { %v4832_v49 = vpop.f32.mrf.mxu1 }
 0x584   : > { %v5516_v24 = vsel %vm11675_vm13, %v5159_v50, -inf  ;;  %v4833_v18 = vadd.f32 %v4832_v49, %v9638_v34  ;;  %4871 = vmatmul.bf16.gmra.mxu3 %v10971_v21  ;;  %v5806_v62 = vmax.f32 %v5805_v36, %v5513_v40  ;;  %v4255_v50 = vadd.f32 %v10655_v20, %v10779_v51 }
 0x585   : > { %v5828_v14 = vmax.f32 %v5827_v22, %v5516_v24  ;;  %vm5947_vm13 = vcmask 1045509  }
 0x586   : > { %v5517_v56 = vsel %vm5295_vm15, %v4833_v18, -inf  ;;  %v5807_v17 = vmax.f32 %v5806_v62, %v5515_v38  ;;  %v4406_v1 = vmax.f32 %v4255_v50, 0.0 }
 0x588   : > { %v5808_v13 = vmax.f32 %v5807_v17, %v5517_v56 }
 0x589   : > { %v5161_v41 = vpop.f32.mrf.mxu2 }
 0x58a   : > { %v5162_v22 = vadd.f32 %v5161_v41, %v9669_v52  ;;  %v10993_v45 = vpop.f32.mrf.mxu3 }
 0x58b   : > { %v4834_v16 = vpop.f32.mrf.mxu1 }
 0x58c   : > { %v5518_v43 = vsel %vm5295_vm15, %v5162_v22, -inf  ;;  %v4835_v47 = vadd.f32 %v4834_v16, %v9638_v34 }
 0x58d   : > { %v5829_v31 = vmax.f32 %v5828_v14, %v5518_v43  ;;  %v10998_v14 = vpack.c.bf16 %v4407_v10, %v4406_v1  ;;  %v4262_v43 = vadd.f32 %v10655_v20, %v10811_v35 }
 0x58e   : > { %v5519_v15 = vsel %vm5296_vm14, %v4835_v47, -inf }
 0x58f   : > { %v5809_v49 = vmax.f32 %v5808_v13, %v5519_v15  ;;  %v4409_v15 = vmax.f32 %v4262_v43, 0.0 }
 0x591   : > { %v5810_v24 = vrot.slane %v5809_v49, 4  ;;  %v5163_v55 = vpop.f32.mrf.mxu2 }
 0x592   : > { %v5164_v40 = vadd.f32 %v5163_v55, %v9669_v52 }
 0x593   : > { %v5811_v18 = vmax.f32 %v5809_v49, %v5810_v24 }
 0x594   : > { %v5520_v36 = vsel %vm5296_vm14, %v5164_v40, -inf  ;;  %4876 = vmatmul.bf16.gmra.mxu3 %v10998_v14 }
 0x595   : > { %v5812_v38 = vrot.slane %v5811_v18, 2  ;;  %v5830_v51 = vmax.f32 %v5829_v31, %v5520_v36  ;;  %v4260_v31 = vadd.f32 %v10655_v20, %v10801_v5 }
 0x597   : > { %v5813_v62 = vmax.f32 %v5811_v18, %v5812_v38  ;;  %v5831_v41 = vrot.slane %v5830_v51, 4  ;;  %v4837_v17 = vpop.f32.mrf.mxu3  ;;  %v4408_v55 = vmax.f32 %v4260_v31, 0.0  ;;  %v4270_v31 = vadd.f32 %v10655_v20, %v10864_v28 }
 0x598   : > { %v4838_v49 = vadd.f32 %v4837_v17, %v9638_v34 }
 0x599   : > { %v5814_v56 = vrot.slane %v5813_v62, 1  ;;  %v5832_v22 = vmax.f32 %v5830_v51, %v5831_v41  ;;  %v11017_v18 = vpack.c.bf16 %v4409_v15, %v4408_v55  ;;  %v4265_v51 = vadd.f32 %v10655_v20, %v10827_v58 }
 0x59a   : > { %v5521_v35 = vsel %vm5281_vm1, %v4838_v49, -inf }
 0x59b   : > { %v5815_v16 = vmax.f32 %v5813_v62, %v5814_v56  ;;  %v5833_v63 = vrot.slane %v5832_v22, 2  ;;  %v4410_v56 = vmax.f32 %v4265_v51, 0.0 }
 0x59d   : > { %v5834_v47 = vmax.f32 %v5832_v22, %v5833_v63  ;;  %v11004_v13 = vsel %vm5947_vm13, %v5815_v16, %v10818_v8 }
 0x59f   : > { %v5835_v50 = vrot.slane %v5834_v47, 1  ;;  %v4839_v24 = vpop.f32.mrf.mxu3 }
 0x5a0   : > { %v4840_v1 = vadd.f32 %v4839_v24, %v9638_v34 }
 0x5a1   : > { %v5836_v10 = vmax.f32 %v5834_v47, %v5835_v50  ;;  %v4272_v50 = vadd.f32 %v10655_v20, %v10877_v19 }
 0x5a2   : > { %v5523_v8 = vsel %vm5282_vm2, %v4840_v1, -inf }
 0x5a3   : > { %v11011_v40 = vsel %vm5947_vm13, %v5836_v10, %v10831_v59  ;;  %v5837_v5 = vmax.f32 %v5521_v35, %v5523_v8  ;;  %v4267_v59 = vadd.f32 %v10655_v20, %v10849_v30  ;;  %v4412_v10 = vmax.f32 %v4270_v31, 0.0 }
 0x5a4   : > { %4881 = vmatmul.bf16.gmra.mxu3 %v11017_v18  ;;  %v4413_v24 = vmax.f32 %v4272_v50, 0.0  ;;  %vm11679_vm13 = vcmp.lt.s32.totalorder %v10098_v27, 300 }
 0x5a5   : > { %v4411_v22 = vmax.f32 %v4267_v59, 0.0 }
 0x5a6   : > { %v11043_v8 = vpack.c.bf16 %v4413_v24, %v4412_v10 }
 0x5a7   : > { %v4842_v36 = vpop.f32.mrf.mxu3  ;;  %v11030_v43 = vpack.c.bf16 %v4411_v22, %v4410_v56 }
 0x5a8   : > { %v4843_v38 = vadd.f32 %v4842_v36, %v9638_v34  ;;  %v4275_v36 = vadd.f32 %v10655_v20, %v10886_v44 }
 0x5aa   : > { %v5525_v62 = vsel %vm5283_vm3, %v4843_v38, -inf  ;;  %v4277_v38 = vadd.f32 %v10655_v20, %v10899_v12 }
 0x5ab   : > { %v5838_v41 = vmax.f32 %v5837_v5, %v5525_v62  ;;  %v4414_v62 = vmax.f32 %v4275_v36, 0.0 }
 0x5af   : > { %v4844_v17 = vpop.f32.mrf.mxu3 }
 0x5b0   : > { %v4845_v16 = vadd.f32 %v4844_v17, %v9638_v34 }
 0x5b2   : > { %v5527_v63 = vsel %vm5284_vm4, %v4845_v16, -inf }
 0x5b3   : > { %v5839_v47 = vmax.f32 %v5838_v41, %v5527_v63  ;;  %v4415_v41 = vmax.f32 %v4277_v38, 0.0 }
 0x5b4   : > { %4886 = vmatmul.bf16.gmra.mxu3 %v11030_v43 }
 0x5b5   : > { %v11056_v16 = vpack.c.bf16 %v4415_v41, %v4414_v62 }
 0x5b7   : > { %v4847_v58 = vpop.f32.mrf.mxu3 }
 0x5b8   : > { %v4848_v30 = vadd.f32 %v4847_v58, %v9638_v34  ;;  %v7652_v58 = vld [vmem:[%s11298_s4] ss:$0 sm:$0xff] }
 0x5ba   : > { %v5529_v15 = vsel %vm5285_vm5, %v4848_v30, -inf  ;;  %v4282_v30 = vadd.f32 %v7652_v58, %v10917_v57 }
 0x5bb   : > { %v5840_v49 = vmax.f32 %v5839_v47, %v5529_v15  ;;  %v4280_v47 = vadd.f32 %v10655_v20, %v10909_v6 }
 0x5bd   : > { %v4416_v15 = vmax.f32 %v4280_v47, 0.0 }
 0x5bf   : > { %v4849_v55 = vpop.f32.mrf.mxu3 }
 0x5c0   : > { %v4850_v1 = vadd.f32 %v4849_v55, %v9638_v34 }
 0x5c2   : > { %v5531_v35 = vsel %vm5286_vm6, %v4850_v1, -inf }
 0x5c3   : > { %v5841_v5 = vmax.f32 %v5840_v49, %v5531_v35  ;;  %v4417_v49 = vmax.f32 %v4282_v30, 0.0  ;;  %v4285_v35 = vadd.f32 %v7652_v58, %v10927_v11 }
 0x5c4   : > { %4891 = vmatmul.bf16.gmra.mxu3 %v11043_v8 }
 0x5c5   : > { %v11071_v1 = vpack.c.bf16 %v4417_v49, %v4416_v15  ;;  %v4418_v36 = vmax.f32 %v4285_v35, 0.0 }
 0x5c7   : > { %v4852_v28 = vpop.f32.mrf.mxu3 }
 0x5c8   : > { %v4853_v19 = vadd.f32 %v4852_v28, %v9638_v34 }
 0x5ca   : > { %v5533_v51 = vsel %vm5287_vm7, %v4853_v19, -inf }
 0x5cb   : > { %v5842_v59 = vmax.f32 %v5841_v5, %v5533_v51  ;;  %v4287_v5 = vadd.f32 %v7652_v58, %v10952_v39 }
 0x5cd   : > { %v4419_v38 = vmax.f32 %v4287_v5, 0.0 }
 0x5cf   : > { %v4854_v56 = vpop.f32.mrf.mxu3  ;;  %v11082_v41 = vpack.c.bf16 %v4419_v38, %v4418_v36 }
 0x5d0   : > { %v4855_v22 = vadd.f32 %v4854_v56, %v9638_v34 }
 0x5d2   : > { %v5535_v17 = vsel %vm5288_vm8, %v4855_v22, -inf  ;;  %v4290_v22 = vadd.f32 %v7652_v58, %v10977_v7 }
 0x5d3   : > { %v5843_v63 = vmax.f32 %v5842_v59, %v5535_v17  ;;  %v4292_v17 = vadd.f32 %v7652_v58, %v10993_v45 }
 0x5d4   : > { %4896 = vmatmul.bf16.gmra.mxu3 %v11056_v16 }
 0x5d5   : > { %v4421_v47 = vmax.f32 %v4292_v17, 0.0 }
 0x5d7   : > { %v4857_v44 = vpop.f32.mrf.mxu3 }
 0x5d8   : > { %v4858_v12 = vadd.f32 %v4857_v44, %v9638_v34 }
 0x5da   : > { %v5537_v31 = vsel %vm5289_vm9, %v4858_v12, -inf  ;;  %v4420_v12 = vmax.f32 %v4290_v22, 0.0 }
 0x5db   : > { %v5844_v50 = vmax.f32 %v5843_v63, %v5537_v31 }
 0x5dc   : > { %v11093_v15 = vpack.c.bf16 %v4421_v47, %v4420_v12 }
 0x5df   : > { %v4859_v10 = vpop.f32.mrf.mxu3 }
 0x5e0   : > { %v4860_v24 = vadd.f32 %v4859_v10, %v9638_v34 }
 0x5e2   : > { %v5539_v55 = vsel %vm5290_vm10, %v4860_v24, -inf }
 0x5e3   : > { %v5845_v20 = vmax.f32 %v5844_v50, %v5539_v55 }
 0x5e4   : > { %4901 = vmatmul.bf16.gmra.mxu3 %v11071_v1 }
 0x5e7   : > { %v4862_v6 = vpop.f32.mrf.mxu3 }
 0x5e8   : > { %v4863_v57 = vadd.f32 %v4862_v6, %v9638_v34 }
 0x5ea   : > { %v5541_v28 = vsel %vm5291_vm11, %v4863_v57, -inf }
 0x5eb   : > { %v5846_v19 = vmax.f32 %v5845_v20, %v5541_v28 }
 0x5ef   : > { %v4864_v51 = vpop.f32.mrf.mxu3 }
 0x5f0   : > { %v4865_v59 = vadd.f32 %v4864_v51, %v9638_v34 }
 0x5f2   : > { %v5543_v62 = vsel %vm11677_vm0, %v4865_v59, -inf  ;;  %vm11413_vm0 = vcmask 1046534  }
 0x5f3   : > { %v5847_v56 = vmax.f32 %v5846_v19, %v5543_v62 }
 0x5f4   : > { %4906 = vmatmul.bf16.gmra.mxu3 %v11082_v41 }
 0x5f7   : > { %v4867_v11 = vpop.f32.mrf.mxu3 }
 0x5f8   : > { %v4868_v39 = vadd.f32 %v4867_v11, %v9638_v34 }
 0x5fa   : > { %v5545_v63 = vsel %vm11678_vm12, %v4868_v39, -inf  ;;  %vm11683_vm12 = vcmp.lt.s32.totalorder %v10043_v4, 300 }
 0x5fb   : > { %v5848_v44 = vmax.f32 %v5847_v56, %v5545_v63 }
 0x5ff   : > { %v4869_v30 = vpop.f32.mrf.mxu3 }
 0x600   : > { %v4870_v31 = vadd.f32 %v4869_v30, %v9638_v34 }
 0x602   : > { %v5547_v50 = vsel %vm11679_vm13, %v4870_v31, -inf  ;;  %vm11684_vm13 = vcmp.lt.s32.totalorder %v10076_v46, 300 }
 0x603   : > { %v5849_v49 = vmax.f32 %v5848_v44, %v5547_v50 }
 0x604   : > { %4911 = vmatmul.bf16.gmra.mxu3 %v11093_v15 }
 0x607   : > { %v4872_v7 = vpop.f32.mrf.mxu3 }
 0x608   : > { %v4873_v45 = vadd.f32 %v4872_v7, %v9638_v34 }
 0x60a   : > { %v5549_v58 = vsel %vm5295_vm15, %v4873_v45, -inf }
 0x60b   : > { %v5850_v10 = vmax.f32 %v5849_v49, %v5549_v58 }
 0x60f   : > { %v4874_v24 = vpop.f32.mrf.mxu3 }
 0x610   : > { %v4875_v55 = vadd.f32 %v4874_v24, %v9638_v34 }
 0x612   : > { %v5551_v20 = vsel %vm5296_vm14, %v4875_v55, -inf }
 0x613   : > { %v5851_v6 = vmax.f32 %v5850_v10, %v5551_v20  ;;  %v11680_v10 = vld [vmem:[#allocation71_spill] sm:$0xff]  ;;  %v11681_v20 = vld [vmem:[#allocation72_spill] sm:$0xff] }
 0x614   : > { %5165 = vmatmul.bf16.vlgmr.msra.gmra.mxu3 %v10804_v23 }
 0x615   : > { %v5852_v57 = vrot.slane %v5851_v6, 4 }
 0x617   : > { %v5853_v35 = vmax.f32 %v5851_v6, %v5852_v57  ;;  %v4877_v5 = vpop.f32.mrf.mxu3  ;;  %v11682_v57 = vld [vmem:[#allocation26_spill] sm:$0xff] }
 0x618   : > { %v4878_v38 = vadd.f32 %v4877_v5, %v9638_v34 }
 0x619   : > { %v5854_v28 = vrot.slane %v5853_v35, 2 }
 0x61a   : > { %v5553_v23 = vsel %vm5281_vm1, %v4878_v38, -inf }
 0x61b   : > { %v5855_v19 = vmax.f32 %v5853_v35, %v5854_v28 }
 0x61d   : > { %v5856_v36 = vrot.slane %v5855_v19, 1 }
 0x61f   : > { %v5857_v51 = vmax.f32 %v5855_v19, %v5856_v36  ;;  %v4879_v59 = vpop.f32.mrf.mxu3 }
 0x620   : > { %v4880_v62 = vadd.f32 %v4879_v59, %v9638_v34 }
 0x621   : > { %v11107_v56 = vsel %vm11413_vm0, %v5857_v51, %v11004_v13  ;;  %vm11685_vm0 = vcmp.lt.s32.totalorder %v10098_v27, 300 }
 0x622   : > { %v5555_v11 = vsel %vm5282_vm2, %v4880_v62, -inf }
 0x623   : > { %v5879_v39 = vmax.f32 %v5553_v23, %v5555_v11 }
 0x624   : > { %5170 = vmatmul.bf16.gmra.mxu3 %v10838_v32 }
 0x627   : > { %v4882_v22 = vpop.f32.mrf.mxu3 }
 0x628   : > { %v4883_v17 = vadd.f32 %v4882_v22, %v9638_v34 }
 0x62a   : > { %v5557_v63 = vsel %vm5283_vm3, %v4883_v17, -inf }
 0x62b   : > { %v5880_v44 = vmax.f32 %v5879_v39, %v5557_v63 }
 0x62f   : > { %v4884_v12 = vpop.f32.mrf.mxu3 }
 0x630   : > { %v4885_v13 = vadd.f32 %v4884_v12, %v9638_v34 }
 0x632   : > { %v5559_v47 = vsel %vm5284_vm4, %v4885_v13, -inf }
 0x633   : > { %v5881_v30 = vmax.f32 %v5880_v44, %v5559_v47 }
 0x634   : > { %5175 = vmatmul.bf16.gmra.mxu3 %v10859_v54 }
 0x637   : > { %v4887_v31 = vpop.f32.mrf.mxu3 }
 0x638   : > { %v4888_v50 = vadd.f32 %v4887_v31, %v9638_v34 }
 0x63a   : > { %v5561_v32 = vsel %vm5285_vm5, %v4888_v50, -inf }
 0x63b   : > { %v5882_v49 = vmax.f32 %v5881_v30, %v5561_v32 }
 0x63f   : > { %v4889_v7 = vpop.f32.mrf.mxu3 }
 0x640   : > { %v4890_v5 = vadd.f32 %v4889_v7, %v9638_v34 }
 0x644   : > { %5180 = vmatmul.bf16.gmra.mxu3 %v10882_v3  ;;  %v5563_v3 = vsel %vm5286_vm6, %v4890_v5, -inf }
 0x645   : > { %v5883_v51 = vmax.f32 %v5882_v49, %v5563_v3 }
 0x647   : > { %v4892_v45 = vpop.f32.mrf.mxu3 }
 0x648   : > { %v4893_v28 = vadd.f32 %v4892_v45, %v9638_v34 }
 0x64a   : > { %v5565_v36 = vsel %vm5287_vm7, %v4893_v28, -inf }
 0x64b   : > { %v5884_v11 = vmax.f32 %v5883_v51, %v5565_v36 }
 0x64f   : > { %v4894_v58 = vpop.f32.mrf.mxu3 }
 0x650   : > { %v4895_v19 = vadd.f32 %v4894_v58, %v9638_v34 }
 0x652   : > { %v5567_v62 = vsel %vm5288_vm8, %v4895_v19, -inf }
 0x653   : > { %v5885_v17 = vmax.f32 %v5884_v11, %v5567_v62 }
 0x654   : > { %5185 = vmatmul.bf16.gmra.mxu3 %v11680_v10 }
 0x657   : > { %v4897_v24 = vpop.f32.mrf.mxu3 }
 0x658   : > { %v4898_v38 = vadd.f32 %v4897_v24, %v9638_v34 }
 0x65a   : > { %v5569_v39 = vsel %vm5289_vm9, %v4898_v38, -inf }
 0x65b   : > { %v5886_v12 = vmax.f32 %v5885_v17, %v5569_v39 }
 0x65f   : > { %v4899_v55 = vpop.f32.mrf.mxu3 }
 0x660   : > { %v4900_v23 = vadd.f32 %v4899_v55, %v9638_v34 }
 0x662   : > { %v5571_v63 = vsel %vm5290_vm10, %v4900_v23, -inf  ;;  %v5921_v23 = vld [vmem:[#allocation3] sm:$0xff] }
 0x663   : > { %v5887_v30 = vmax.f32 %v5886_v12, %v5571_v63 }
 0x664   : > { %5190 = vmatmul.bf16.gmra.mxu3 %v11681_v20 }
 0x667   : > { %v4902_v6 = vpop.f32.mrf.mxu3 }
 0x668   : > { %v4903_v22 = vadd.f32 %v4902_v6, %v9638_v34 }
 0x66a   : > { %v5573_v13 = vsel %vm5291_vm11, %v4903_v22, -inf }
 0x66b   : > { %v5888_v49 = vmax.f32 %v5887_v30, %v5573_v13 }
 0x66f   : > { %v4904_v54 = vpop.f32.mrf.mxu3 }
 0x670   : > { %v4905_v44 = vadd.f32 %v4904_v54, %v9638_v34 }
 0x672   : > { %v5575_v50 = vsel %vm11683_vm12, %v4905_v44, -inf }
 0x674   : > { %5195 = vmatmul.bf16.gmra.mxu3 %v11682_v57 }
 0x677   : > { %v4907_v35 = vpop.f32.mrf.mxu3 }
 0x678   : > { %v4908_v47 = vadd.f32 %v4907_v35, %v9638_v34 }
 0x67a   : > { %v5577_v7 = vsel %vm11684_vm13, %v4908_v47, -inf }
 0x67f   : > { %v4909_v59 = vpop.f32.mrf.mxu3 }
 0x680   : > { %v4910_v32 = vadd.f32 %v4909_v59, %v9638_v34 }
 0x682   : > { %v5579_v58 = vsel %vm11685_vm0, %v4910_v32, -inf  ;;  %vm11414_vm0 = vcmask 1047559  }
 0x684   : > { %5200 = vmatmul.bf16.gmra.mxu3 %v10971_v21  ;;  %v5889_v21 = vmax.f32 %v5888_v49, %v5575_v50 }
 0x686   : > { %v5890_v10 = vmax.f32 %v5889_v21, %v5577_v7 }
 0x687   : > { %v4912_v31 = vpop.f32.mrf.mxu3 }
 0x688   : > { %v4913_v45 = vadd.f32 %v4912_v31, %v9638_v34  ;;  %v5891_v55 = vmax.f32 %v5890_v10, %v5579_v58 }
 0x68a   : > { %v5581_v24 = vsel %vm5295_vm15, %v4913_v45, -inf }
 0x68b   : > { %v5892_v54 = vmax.f32 %v5891_v55, %v5581_v24 }
 0x68f   : > { %v4914_v20 = vpop.f32.mrf.mxu3 }
 0x690   : > { %v4915_v6 = vadd.f32 %v4914_v20, %v9638_v34 }
 0x692   : > { %v5583_v57 = vsel %vm5296_vm14, %v4915_v6, -inf }
 0x693   : > { %v5893_v35 = vmax.f32 %v5892_v54, %v5583_v57 }
 0x694   : > { %5205 = vmatmul.bf16.gmra.mxu3 %v10998_v14 }
 0x695   : > { %v5894_v5 = vrot.slane %v5893_v35, 4 }
 0x697   : > { %v5895_v28 = vmax.f32 %v5893_v35, %v5894_v5  ;;  %v5166_v3 = vpop.f32.mrf.mxu3 }
 0x698   : > { %v5167_v19 = vadd.f32 %v5166_v3, %v9669_v52 }
 0x699   : > { %v5896_v36 = vrot.slane %v5895_v28, 2 }
 0x69a   : > { %v5522_v14 = vsel %vm5281_vm1, %v5167_v19, -inf }
 0x69b   : > { %v5897_v38 = vmax.f32 %v5895_v28, %v5896_v36 }
 0x69d   : > { %v5898_v51 = vrot.slane %v5897_v38, 1 }
 0x69f   : > { %v5899_v59 = vmax.f32 %v5897_v38, %v5898_v51  ;;  %v5168_v62 = vpop.f32.mrf.mxu3 }
 0x6a0   : > { %v5169_v34 = vadd.f32 %v5168_v62, %v9669_v52 }
 0x6a1   : > { %v5952_v11 = vsel %vm11414_vm0, %v5899_v59, %v11107_v56  ;;  %vm11686_vm0 = vcmp.lt.s32.totalorder %v10098_v27, 300 }
 0x6a2   : > { %v5524_v39 = vsel %vm5282_vm2, %v5169_v34, -inf  ;;  %v5962_v22 = vmax.f32 %v5921_v23, %v5952_v11 }
 0x6a3   : > { %v5858_v17 = vmax.f32 %v5522_v14, %v5524_v39 }
 0x6a4   : > { %5210 = vmatmul.bf16.gmra.mxu3 %v11017_v18  ;;  %5964 = vst [vmem:[#allocation3] sm:$0xff] %v5962_v22 }
 0x6a7   : > { %v5171_v63 = vpop.f32.mrf.mxu3 }
 0x6a8   : > { %v5172_v44 = vadd.f32 %v5171_v63, %v9669_v52 }
 0x6aa   : > { %v5526_v12 = vsel %vm5283_vm3, %v5172_v44, -inf }
 0x6ab   : > { %v5859_v13 = vmax.f32 %v5858_v17, %v5526_v12 }
 0x6af   : > { %v5173_v47 = vpop.f32.mrf.mxu3 }
 0x6b0   : > { %v5174_v56 = vadd.f32 %v5173_v47, %v9669_v52 }
 0x6b2   : > { %v5528_v30 = vsel %vm5284_vm4, %v5174_v56, -inf }
 0x6b3   : > { %v5860_v31 = vmax.f32 %v5859_v13, %v5528_v30 }
 0x6b4   : > { %5215 = vmatmul.bf16.gmra.mxu3 %v11030_v43 }
 0x6b7   : > { %v5176_v50 = vpop.f32.mrf.mxu3 }
 0x6b8   : > { %v5177_v18 = vadd.f32 %v5176_v50, %v9669_v52 }
 0x6ba   : > { %v5530_v32 = vsel %vm5285_vm5, %v5177_v18, -inf }
 0x6bb   : > { %v5861_v49 = vmax.f32 %v5860_v31, %v5530_v32 }
 0x6bf   : > { %v5178_v7 = vpop.f32.mrf.mxu3 }
 0x6c0   : > { %v5179_v45 = vadd.f32 %v5178_v7, %v9669_v52 }
 0x6c2   : > { %v5532_v21 = vsel %vm5286_vm6, %v5179_v45, -inf }
 0x6c3   : > { %v5862_v58 = vmax.f32 %v5861_v49, %v5532_v21 }
 0x6c4   : > { %5220 = vmatmul.bf16.gmra.mxu3 %v11043_v8 }
 0x6c7   : > { %v5181_v10 = vpop.f32.mrf.mxu3 }
 0x6c8   : > { %v5182_v24 = vadd.f32 %v5181_v10, %v9669_v52 }
 0x6ca   : > { %v5534_v43 = vsel %vm5287_vm7, %v5182_v24, -inf }
 0x6cb   : > { %v5863_v55 = vmax.f32 %v5862_v58, %v5534_v43 }
 0x6cf   : > { %v5183_v20 = vpop.f32.mrf.mxu3 }
 0x6d0   : > { %v5184_v6 = vadd.f32 %v5183_v20, %v9669_v52 }
 0x6d2   : > { %v5536_v54 = vsel %vm5288_vm8, %v5184_v6, -inf }
 0x6d3   : > { %v5864_v57 = vmax.f32 %v5863_v55, %v5536_v54 }
 0x6d4   : > { %5225 = vmatmul.bf16.gmra.mxu3 %v11056_v16 }
 0x6d7   : > { %v5186_v35 = vpop.f32.mrf.mxu3 }
 0x6d8   : > { %v5187_v5 = vadd.f32 %v5186_v35, %v9669_v52 }
 0x6da   : > { %v5538_v8 = vsel %vm5289_vm9, %v5187_v5, -inf }
 0x6db   : > { %v5865_v28 = vmax.f32 %v5864_v57, %v5538_v8 }
 0x6df   : > { %v5188_v3 = vpop.f32.mrf.mxu3 }
 0x6e0   : > { %v5189_v19 = vadd.f32 %v5188_v3, %v9669_v52 }
 0x6e2   : > { %v5540_v36 = vsel %vm5290_vm10, %v5189_v19, -inf }
 0x6e3   : > { %v5866_v38 = vmax.f32 %v5865_v28, %v5540_v36 }
 0x6e4   : > { %5230 = vmatmul.bf16.gmra.mxu3 %v11071_v1 }
 0x6e7   : > { %v5191_v51 = vpop.f32.mrf.mxu3 }
 0x6e8   : > { %v5192_v59 = vadd.f32 %v5191_v51, %v9669_v52 }
 0x6ea   : > { %v5542_v16 = vsel %vm5291_vm11, %v5192_v59, -inf }
 0x6eb   : > { %v5867_v62 = vmax.f32 %v5866_v38, %v5542_v16 }
 0x6ef   : > { %v5193_v23 = vpop.f32.mrf.mxu3 }
 0x6f0   : > { %v5194_v34 = vadd.f32 %v5193_v23, %v9669_v52 }
 0x6f2   : > { %v5544_v11 = vsel %vm11683_vm12, %v5194_v34, -inf }
 0x6f3   : > { %v5868_v14 = vmax.f32 %v5867_v62, %v5544_v11 }
 0x6f4   : > { %5235 = vmatmul.bf16.gmra.mxu3 %v11082_v41 }
 0x6f7   : > { %v5196_v39 = vpop.f32.mrf.mxu3 }
 0x6f8   : > { %v5197_v22 = vadd.f32 %v5196_v39, %v9669_v52 }
 0x6fa   : > { %v5546_v1 = vsel %vm11684_vm13, %v5197_v22, -inf }
 0x6fb   : > { %v5869_v17 = vmax.f32 %v5868_v14, %v5546_v1 }
 0x6ff   : > { %v5198_v63 = vpop.f32.mrf.mxu3 }
 0x700   : > { %v5199_v44 = vadd.f32 %v5198_v63, %v9669_v52 }
 0x702   : > { %v5548_v12 = vsel %vm11686_vm0, %v5199_v44, -inf  ;;  %vm11687_vm0 = vcmask 1046534  }
 0x703   : > { %v5870_v13 = vmax.f32 %v5869_v17, %v5548_v12 }
 0x704   : > { %5240 = vmatmul.bf16.gmra.mxu3 %v11093_v15 }
 0x707   : > { %v5201_v47 = vpop.f32.mrf.mxu3 }
 0x708   : > { %v5202_v56 = vadd.f32 %v5201_v47, %v9669_v52 }
 0x70a   : > { %v5550_v41 = vsel %vm5295_vm15, %v5202_v56, -inf }
 0x70b   : > { %v5871_v30 = vmax.f32 %v5870_v13, %v5550_v41 }
 0x70f   : > { %v5203_v31 = vpop.f32.mrf.mxu3 }
 0x710   : > { %v5204_v50 = vadd.f32 %v5203_v31, %v9669_v52 }
 0x712   : > { %v5552_v18 = vsel %vm5296_vm14, %v5204_v50, -inf }
 0x713   : > { %v5872_v32 = vmax.f32 %v5871_v30, %v5552_v18 }
 0x715   : > { %v5873_v49 = vrot.slane %v5872_v32, 4 }
 0x717   : > { %v5874_v7 = vmax.f32 %v5872_v32, %v5873_v49  ;;  %v5206_v45 = vpop.f32.mrf.mxu3 }
 0x718   : > { %v5207_v21 = vadd.f32 %v5206_v45, %v9669_v52 }
 0x719   : > { %v5875_v15 = vrot.slane %v5874_v7, 2 }
 0x71a   : > { %v5554_v6 = vsel %vm5281_vm1, %v5207_v21, -inf  ;;  %vm11688_vm1 = vmmov %vm11683_vm12 }
 0x71b   : > { %v5876_v58 = vmax.f32 %v5874_v7, %v5875_v15 }
 0x71d   : > { %v5877_v10 = vrot.slane %v5876_v58, 1 }
 0x71f   : > { %v5878_v24 = vmax.f32 %v5876_v58, %v5877_v10  ;;  %v5208_v43 = vpop.f32.mrf.mxu3 }
 0x720   : > { %v5209_v55 = vadd.f32 %v5208_v43, %v9669_v52 }
 0x721   : > { %v11224_v20 = vsel %vm11687_vm0, %v5878_v24, %v11011_v40 }
 0x722   : > { %v5556_v54 = vsel %vm5282_vm2, %v5209_v55, -inf  ;;  %vm11689_vm2 = vmmov %vm11684_vm13 }
 0x723   : > { %v5900_v57 = vmax.f32 %v5554_v6, %v5556_v54 }
 0x727   : > { %v5211_v35 = vpop.f32.mrf.mxu3 }
 0x728   : > { %v5212_v5 = vadd.f32 %v5211_v35, %v9669_v52 }
 0x72a   : > { %v5558_v8 = vsel %vm5283_vm3, %v5212_v5, -inf  ;;  %vm11690_vm3 = vcmp.lt.s32.totalorder %v10098_v27, 300 }
 0x72b   : > { %v5901_v28 = vmax.f32 %v5900_v57, %v5558_v8  ;;  %v5922_v8 = vld [vmem:[#allocation3 + $0x8] sm:$0xff] }
 0x72f   : > { %v5213_v3 = vpop.f32.mrf.mxu3 }
 0x730   : > { %v5214_v19 = vadd.f32 %v5213_v3, %v9669_v52 }
 0x732   : > { %v5560_v40 = vsel %vm5284_vm4, %v5214_v19, -inf  ;;  %vm11691_vm4 = vcmask 1047559  }
 0x733   : > { %v5902_v36 = vmax.f32 %v5901_v28, %v5560_v40 }
 0x737   : > { %v5216_v2 = vpop.f32.mrf.mxu3 }
 0x738   : > { %v5217_v38 = vadd.f32 %v5216_v2, %v9669_v52 }
 0x73a   : > { %v5562_v53 = vsel %vm5285_vm5, %v5217_v38, -inf }
 0x73b   : > { %v5903_v51 = vmax.f32 %v5902_v36, %v5562_v53 }
 0x73f   : > { %v5218_v59 = vpop.f32.mrf.mxu3 }
 0x740   : > { %v5219_v16 = vadd.f32 %v5218_v59, %v9669_v52 }
 0x742   : > { %v5564_v29 = vsel %vm5286_vm6, %v5219_v16, -inf }
 0x743   : > { %v5904_v62 = vmax.f32 %v5903_v51, %v5564_v29 }
 0x747   : > { %v5221_v23 = vpop.f32.mrf.mxu3 }
 0x748   : > { %v5222_v34 = vadd.f32 %v5221_v23, %v9669_v52 }
 0x74a   : > { %v5566_v33 = vsel %vm5287_vm7, %v5222_v34, -inf }
 0x74b   : > { %v5905_v11 = vmax.f32 %v5904_v62, %v5566_v33 }
 0x74f   : > { %v5223_v14 = vpop.f32.mrf.mxu3 }
 0x750   : > { %v5224_v39 = vadd.f32 %v5223_v14, %v9669_v52 }
 0x752   : > { %v5568_v26 = vsel %vm5288_vm8, %v5224_v39, -inf }
 0x753   : > { %v5906_v22 = vmax.f32 %v5905_v11, %v5568_v26 }
 0x757   : > { %v5226_v1 = vpop.f32.mrf.mxu3 }
 0x758   : > { %v5227_v17 = vadd.f32 %v5226_v1, %v9669_v52 }
 0x75a   : > { %v5570_v37 = vsel %vm5289_vm9, %v5227_v17, -inf }
 0x75b   : > { %v5907_v63 = vmax.f32 %v5906_v22, %v5570_v37 }
 0x75f   : > { %v5228_v44 = vpop.f32.mrf.mxu3 }
 0x760   : > { %v5229_v12 = vadd.f32 %v5228_v44, %v9669_v52 }
 0x762   : > { %v5572_v42 = vsel %vm5290_vm10, %v5229_v12, -inf }
 0x763   : > { %v5908_v13 = vmax.f32 %v5907_v63, %v5572_v42 }
 0x767   : > { %v5231_v47 = vpop.f32.mrf.mxu3 }
 0x768   : > { %v5232_v56 = vadd.f32 %v5231_v47, %v9669_v52 }
 0x76a   : > { %v5574_v25 = vsel %vm5291_vm11, %v5232_v56, -inf }
 0x76b   : > { %v5909_v41 = vmax.f32 %v5908_v13, %v5574_v25 }
 0x76f   : > { %v5233_v30 = vpop.f32.mrf.mxu3 }
 0x770   : > { %v5234_v31 = vadd.f32 %v5233_v30, %v9669_v52 }
 0x772   : > { %v5576_v61 = vsel %vm11688_vm1, %v5234_v31, -inf }
 0x773   : > { %v5910_v50 = vmax.f32 %v5909_v41, %v5576_v61 }
 0x777   : > { %v5236_v18 = vpop.f32.mrf.mxu3 }
 0x778   : > { %v5237_v32 = vadd.f32 %v5236_v18, %v9669_v52 }
 0x77a   : > { %v5578_v9 = vsel %vm11689_vm2, %v5237_v32, -inf }
 0x77b   : > { %v5911_v49 = vmax.f32 %v5910_v50, %v5578_v9 }
 0x77f   : > { %v5238_v7 = vpop.f32.mrf.mxu3 }
 0x780   : > { %v5239_v45 = vadd.f32 %v5238_v7, %v9669_v52 }
 0x782   : > { %v5580_v0 = vsel %vm11690_vm3, %v5239_v45, -inf }
 0x783   : > { %v5912_v21 = vmax.f32 %v5911_v49, %v5580_v0 }
 0x787   : > { %v5241_v15 = vpop.f32.mrf.mxu3 }
 0x788   : > { %v5242_v58 = vadd.f32 %v5241_v15, %v9669_v52 }
 0x78a   : > { %v5582_v4 = vsel %vm5295_vm15, %v5242_v58, -inf }
 0x78b   : > { %v5913_v10 = vmax.f32 %v5912_v21, %v5582_v4 }
 0x78f   : > { %v5243_v24 = vpop.f32.mrf.mxu3 }
 0x790   : > { %v5244_v46 = vadd.f32 %v5243_v24, %v9669_v52 }
 0x792   : > { %v5584_v43 = vsel %vm5296_vm14, %v5244_v46, -inf }
 0x793   : > { %v5914_v55 = vmax.f32 %v5913_v10, %v5584_v43 }
 0x795   : > { %v5915_v6 = vrot.slane %v5914_v55, 4 }
 0x797   : > { %v5916_v54 = vmax.f32 %v5914_v55, %v5915_v6 }
 0x799   : > { %v5917_v27 = vrot.slane %v5916_v54, 2 }
 0x79b   : > { %v5918_v57 = vmax.f32 %v5916_v54, %v5917_v27 }
 0x79d   : > { %v5919_v35 = vrot.slane %v5918_v57, 1 }
 0x79f   : > { %v5920_v5 = vmax.f32 %v5918_v57, %v5919_v35 }
 0x7a1   : > { %v5959_v52 = vsel %vm11691_vm4, %v5920_v5, %v11224_v20 }
 0x7a2   : > { %v5963_v48 = vmax.f32 %v5922_v8, %v5959_v52 }
 0x7a4   : > { %5965 = vst [vmem:[#allocation3 + $0x8] sm:$0xff] %v5963_v48 }
 0x7a5   : > { %6556 = dma.vmem_to_hbm [thread:$0]  (%p6559_p10), %s5976_s13, 256, %s5978_s16, [#allocation4]  }
 0x7a6   : > { %7702 = dma.done.wait (%p6559_p10), [#allocation4], 256  }
 0x7a7   : > { %7704 = vsyncadd (%p6559_p10), [#allocation4], 4294967040 }
 0x7a8 PF: > { %s18_s28 = sadd.s32 1, %s7723_s28   ;;  %s11692_s24 = smov %s7711_s25 }
 0x7a9   : > { %p15_p11 = scmp.ge.s32.totalorder %s18_s28, 5   ;;  %s11693_s25 = smov %s7806_s10 }
 0x7aa   : > { %s11694_s26 = smov %s7719_s27  ;;  %s11695_s27 = smov %s11697_s30 }
 0x7ab   :  { %17 = sbr.rel (!%p15_p11) target bundleno = 3 (0x3), region = 126 }
 0x7b0   :  { %5991 = vsyncpa [#allocation4], 1 }
 0x7b1   :  { %5993 = vsyncpa [#allocation4 + $0x1], 1 }

</bundles_post_ra>
